<compile_context>
chip_gen: v5e
topology: v5e:2x2
jax: 0.10.0
libtpu: 0.0.40
codegen_flags: <defaults>
</compile_context>

<pallas_src>
import functools

import numpy as np

import jax
import jax.numpy as jnp
from jax.experimental import pallas as pl
from jax.experimental.pallas import tpu as pltpu


FC2_PAD = 128   # pad fc2 output columns to a full lane width for dense stores
KSIZE = 5
PAD = 2
VMEM_LIMIT = 32 * 1024 * 1024


def _round_up(x, m):
    return ((x + m - 1) // m) * m


def _pick_batch_tile(batch, target):
    """~`target` images per grid step, >=2 steps when batch >= 2 (v7x dual TC)."""
    steps = max(pl.cdiv(batch, target), min(2, batch), 1)
    tb = pl.cdiv(batch, steps)
    steps = pl.cdiv(batch, tb)
    return tb, tb * steps


def _pick_row_tile(rows, target, mult=8):
    """Row tile that is a multiple of `mult`, >=2 steps when there is enough work."""
    rows_r = _round_up(max(rows, 1), mult)
    steps = max(pl.cdiv(rows_r, target), min(2, rows_r // mult), 1)
    tm = _round_up(pl.cdiv(rows_r, steps), mult)
    steps = pl.cdiv(rows_r, tm)
    return tm, tm * steps


# ----------------------------------------------------------------------------
# Pallas kernels
# ----------------------------------------------------------------------------
def _conv_stage_kernel(xe_ref, xo_ref, w_ref, b_ref, o_ref):
    """Fused 5x5 'same' conv + folded BN + ReLU + 2x2/stride-2 max-pool.

    xe_ref / xo_ref: [tb, R, Kin] bf16 -- even / odd rows of the spatially padded input,
        with (padded width, Cin) flattened into Kin.
    w_ref: [5, Kin, 2*N] bf16 -- per-dy banded (Toeplitz) weights; output columns ordered
        (col parity, pooled col, Cout) so column pooling is a max of two aligned slices.
    b_ref: [1, N] f32 -- (conv bias + BN shift), tiled over pooled columns.
    o_ref: [tb*Hpool, N] bf16 -- pooled activation, rows (b, pooled row), cols
        (pooled col, Cout); N is a multiple of 128 (lane-dense stores).
    """
    tb, _, kin = xe_ref.shape
    n = w_ref.shape[2] // 2
    hpool = o_ref.shape[0] // tb

    def tap(src_ref, off, dy):
        x = src_ref[:, pl.ds(off, hpool), :].reshape(tb * hpool, kin)
        return jnp.dot(x, w_ref[dy], preferred_element_type=jnp.float32)

    # Conv rows 2*q (even) and 2*q+1 (odd) for every pooled row q; each is an
    # accumulation of the 5 dy taps taken from contiguous slices of xe / xo.
    y_even = (tap(xe_ref, 0, 0) + tap(xo_ref, 0, 1) + tap(xe_ref, 1, 2)
              + tap(xo_ref, 1, 3) + tap(xe_ref, 2, 4))
    y_odd = (tap(xo_ref, 0, 0) + tap(xe_ref, 1, 1) + tap(xo_ref, 1, 2)
             + tap(xe_ref, 2, 3) + tap(xo_ref, 2, 4))

    y = jnp.maximum(y_even, y_odd)              # max-pool over rows
    z = jnp.maximum(y[:, :n], y[:, n:])         # max-pool over columns (parity-major)
    o_ref[...] = jnp.maximum(z + b_ref[...], 0.0).astype(o_ref.dtype)


def _mlp_head_kernel(x_ref, w1_ref, b1_ref, w2_ref, b2_ref, o_ref):
    """fc1 -> ReLU -> fc2 in one kernel; the [tb, 128] hidden never leaves VMEM."""
    h = jnp.dot(x_ref[...], w1_ref[...], preferred_element_type=jnp.float32)
    h = jnp.maximum(h + b1_ref[...], 0.0)
    o_ref[...] = (
        jnp.dot(h.astype(jnp.bfloat16), w2_ref[...], preferred_element_type=jnp.float32)
        + b2_ref[...]
    )


# ----------------------------------------------------------------------------
# Wrappers (pallas_call + small XLA glue on the *small* activations only)
# ----------------------------------------------------------------------------
def conv_bn_relu_pool(x_nhwc, tap_w, bias_cols, *, target_tb=64):
    """One fused Pallas call: conv5x5(pad=2) + BN(folded) + ReLU + maxpool2x2.

    x_nhwc: [B, H, W, C] activation.  Returns [B*(H/2), (W/2)*Cout] bf16, rows ordered
    (b, pooled row), columns (pooled col, Cout) -- i.e. NHWC row-major, flattened.
    """
    B, H, W, C = x_nhwc.shape
    Ho, Wo = H // 2, W // 2
    kin = (W + 2 * PAD) * C
    n = bias_cols.shape[0]                       # Wo * Cout
    assert tap_w.shape == (KSIZE, kin, 2 * n), tap_w.shape

    # Spatial pad (+2), flatten (width, cin), split rows by parity -> the kernel only
    # ever takes contiguous row slices (no HBM im2col, no strided in-kernel gathers).
    xp = jnp.pad(x_nhwc, ((0, 0), (PAD, PAD), (PAD, PAD), (0, 0)))
    xp = xp.reshape(B, H + 2 * PAD, kin).astype(jnp.bfloat16)
    xe, xo = xp[:, 0::2, :], xp[:, 1::2, :]
    R = (H + 2 * PAD) // 2

    tb, Bp = _pick_batch_tile(B, target_tb)
    if Bp != B:                                  # only the tiny padded input is padded
        xe = jnp.pad(xe, ((0, Bp - B), (0, 0), (0, 0)))
        xo = jnp.pad(xo, ((0, Bp - B), (0, 0), (0, 0)))
    steps = Bp // tb

    flops = 2 * 10 * (Bp * Ho) * kin * (2 * n)   # 5 taps x 2 row parities
    bytes_accessed = (2 * Bp * R * kin + KSIZE * kin * 2 * n + Bp * Ho * n) * 2 + 4 * n

    out = pl.pallas_call(
        _conv_stage_kernel,
        out_shape=jax.ShapeDtypeStruct((Bp * Ho, n), jnp.bfloat16),
        grid=(steps,),
        in_specs=[
            pl.BlockSpec((tb, R, kin), lambda i: (i, 0, 0)),
            pl.BlockSpec((tb, R, kin), lambda i: (i, 0, 0)),
            pl.BlockSpec((KSIZE, kin, 2 * n), lambda i: (0, 0, 0)),
            pl.BlockSpec((1, n), lambda i: (0, 0)),
        ],
        out_specs=pl.BlockSpec((tb * Ho, n), lambda i: (i, 0)),
        compiler_params=pltpu.CompilerParams(
            dimension_semantics=("parallel",),
            vmem_limit_bytes=VMEM_LIMIT,
        ),
        cost_estimate=pl.CostEstimate(
            flops=flops, transcendentals=0, bytes_accessed=bytes_accessed),
    )(xe, xo, tap_w, bias_cols.reshape(1, n))
    return out[: B * Ho]


def mlp_head(feat, w1, b1, w2, b2, *, target_tb=512):
    """feat: [B, 2048] -> [B, FC2_PAD] f32 logits (fc2 columns zero-padded)."""
    B, K = feat.shape
    n1, n2 = w1.shape[1], w2.shape[1]
    tb, Bp = _pick_row_tile(B, target_tb, mult=8)
    x = feat.astype(jnp.bfloat16)
    if Bp != B:
        x = jnp.pad(x, ((0, Bp - B), (0, 0)))
    steps = Bp // tb

    flops = 2 * Bp * K * n1 + 2 * Bp * n1 * n2
    bytes_accessed = (Bp * K + K * n1 + n1 * n2) * 2 + Bp * n2 * 4

    out = pl.pallas_call(
        _mlp_head_kernel,
        out_shape=jax.ShapeDtypeStruct((Bp, n2), jnp.float32),
        grid=(steps,),
        in_specs=[
            pl.BlockSpec((tb, K), lambda i: (i, 0)),
            pl.BlockSpec((K, n1), lambda i: (0, 0)),
            pl.BlockSpec((1, n1), lambda i: (0, 0)),
            pl.BlockSpec((n1, n2), lambda i: (0, 0)),
            pl.BlockSpec((1, n2), lambda i: (0, 0)),
        ],
        out_specs=pl.BlockSpec((tb, n2), lambda i: (i, 0)),
        compiler_params=pltpu.CompilerParams(
            dimension_semantics=("parallel",),
            vmem_limit_bytes=VMEM_LIMIT,
        ),
        cost_estimate=pl.CostEstimate(
            flops=flops, transcendentals=0, bytes_accessed=bytes_accessed),
    )(x, w1, b1.reshape(1, n1), w2, b2.reshape(1, n2))
    return out[:B]


# ----------------------------------------------------------------------------
# Weight preparation: BN folding, banded (Toeplitz) tap weights, fc permutation
# ----------------------------------------------------------------------------
def build_tap_weights(w_oihw, width):
    """[Cout, Cin, 5, 5] folded conv weight -> [5, (width+4)*Cin, 2*(width//2)*Cout].

    Per-dy banded matrices mapping one padded input row (flattened (col, cin)) to all
    conv outputs of one row; output columns ordered (col parity, pooled col, cout).
    """
    w = np.asarray(w_oihw, np.float32)
    cout, cin, kh, kw = w.shape
    wp, wo = width + 2 * PAD, width // 2
    tap = np.zeros((kh, wp * cin, 2 * wo * cout), np.float32)
    for dy in range(kh):
        for dx in range(kw):
            blk = w[:, :, dy, dx].T                                # [cin, cout]
            for par in range(2):
                for jq in range(wo):
                    jp = 2 * jq + par + dx                         # padded input column
                    col0 = (par * wo + jq) * cout
                    tap[dy, jp * cin:(jp + 1) * cin, col0:col0 + cout] = blk
    return jnp.asarray(tap)


def fc1_weight_to_mat(w_torch):
    """torch fc1 weight [128, 32*8*8] (input index c*64+i*8+j, NCHW flatten)
    -> [8*8*32, 128] with row index i*256 + j*32 + c (NHWC flatten)."""
    out_f, _ = w_torch.shape
    w = w_torch.reshape(out_f, 32, 8, 8)          # [out, c, i, j]
    w = jnp.transpose(w, (2, 3, 1, 0))            # [i, j, c, out]
    return w.reshape(8 * 8 * 32, out_f)


def prepare_inference_params(p, eps=1e-5):
    """Fold BN into conv weights/bias, build per-dy Toeplitz tap weights, bake the NCHW
    flatten permutation into fc1_w, zero-pad fc2 to FC2_PAD lanes, cast to bf16 (once)."""
    def fold(w_oihw, b, gamma, beta, mean, var):
        s = gamma / jnp.sqrt(var + eps)
        return w_oihw * s[:, None, None, None], (b - mean) * s + beta

    w1f, b1f = fold(p["conv1_w"], p["conv1_b"], p["bn1_gamma"], p["bn1_beta"],
                    p["bn1_mean"], p["bn1_var"])
    w2f, b2f = fold(p["conv2_w"], p["conv2_b"], p["bn2_gamma"], p["bn2_beta"],
                    p["bn2_mean"], p["bn2_var"])

    conv1_tap = build_tap_weights(w1f, width=32)          # [5, 36, 512]
    conv2_tap = build_tap_weights(w2f, width=16)          # [5, 320, 512]
    conv1_bias = jnp.tile(b1f, 16)                        # (pooled col, cout), cout fastest
    conv2_bias = jnp.tile(b2f, 8)

    fc1_w = fc1_weight_to_mat(p["fc1_w"])                 # [2048, 128]
    ncls = p["fc2_w"].shape[0]
    fc2_w = jnp.zeros((128, FC2_PAD), jnp.float32).at[:, :ncls].set(p["fc2_w"].T)
    fc2_b = jnp.zeros((FC2_PAD,), jnp.float32).at[:ncls].set(p["fc2_b"])
    return {
        "conv1_tap": conv1_tap.astype(jnp.bfloat16), "conv1_bias": conv1_bias,
        "conv2_tap": conv2_tap.astype(jnp.bfloat16), "conv2_bias": conv2_bias,
        "fc1_w": fc1_w.astype(jnp.bfloat16), "fc1_b": p["fc1_b"],
        "fc2_w": fc2_w.astype(jnp.bfloat16), "fc2_b": fc2_b,
    }


# ----------------------------------------------------------------------------
# Parameters (torch layouts / init)
# ----------------------------------------------------------------------------
def xavier_uniform(key, shape, fan_in, fan_out):
    bound = (6.0 / (fan_in + fan_out)) ** 0.5
    return jax.random.uniform(key, shape, jnp.float32, -bound, bound)


def init_params(key, num_classes=9):
    k1, k2, k3, k4 = jax.random.split(key, 4)
    p = {}
    p["conv1_w"] = xavier_uniform(k1, (16, 1, 5, 5), fan_in=1 * 25, fan_out=16 * 25)
    p["conv1_b"] = jnp.zeros((16,), jnp.float32)
    p["bn1_gamma"] = jnp.ones((16,), jnp.float32)
    p["bn1_beta"] = jnp.zeros((16,), jnp.float32)
    p["bn1_mean"] = jnp.zeros((16,), jnp.float32)
    p["bn1_var"] = jnp.ones((16,), jnp.float32)
    p["conv2_w"] = xavier_uniform(k2, (32, 16, 5, 5), fan_in=16 * 25, fan_out=32 * 25)
    p["conv2_b"] = jnp.zeros((32,), jnp.float32)
    p["bn2_gamma"] = jnp.ones((32,), jnp.float32)
    p["bn2_beta"] = jnp.zeros((32,), jnp.float32)
    p["bn2_mean"] = jnp.zeros((32,), jnp.float32)
    p["bn2_var"] = jnp.ones((32,), jnp.float32)
    p["fc1_w"] = xavier_uniform(k3, (128, 32 * 8 * 8), fan_in=32 * 8 * 8, fan_out=128)
    p["fc1_b"] = jnp.zeros((128,), jnp.float32)
    p["fc2_w"] = xavier_uniform(k4, (num_classes, 128), fan_in=128, fan_out=num_classes)
    p["fc2_b"] = jnp.zeros((num_classes,), jnp.float32)
    return p


# ----------------------------------------------------------------------------
# Forward pass
# ----------------------------------------------------------------------------
@functools.partial(jax.jit, static_argnames=("num_classes",))
def forward(x_nchw, ip, num_classes=9):
    B = x_nchw.shape[0]
    x = jnp.transpose(x_nchw, (0, 2, 3, 1))                       # NCHW -> NHWC [B,32,32,1]

    # conv1 + bn1 + relu + pool (one fused Pallas call) -> [B*16, 256] == [B,16,16,16]
    y1 = conv_bn_relu_pool(x, ip["conv1_tap"], ip["conv1_bias"], target_tb=64)
    y1 = y1.reshape(B, 16, 16, 16)
    # conv2 + bn2 + relu + pool (one fused Pallas call) -> [B*8, 256] == [B,8,8,32]
    y2 = conv_bn_relu_pool(y1, ip["conv2_tap"], ip["conv2_bias"], target_tb=64)

    # dropout: identity in eval mode; torch's NCHW flatten permutation is baked into fc1_w.
    feat = y2.reshape(B, 8 * 8 * 32)                              # [B, 2048], (i, j, c)
    logits = mlp_head(feat, ip["fc1_w"], ip["fc1_b"], ip["fc2_w"], ip["fc2_b"],
                      target_tb=512)
    return logits[:, :num_classes]


# ----------------------------------------------------------------------------
# Pure-JAX reference (f32 replica of the torch forward, eval mode)
# ----------------------------------------------------------------------------
def reference_forward(x_nchw, p, eps=1e-5):
    def bn(x, g, b, m, v):
        return (x - m[None, :, None, None]) * (
            g[None, :, None, None] / jnp.sqrt(v[None, :, None, None] + eps)
        ) + b[None, :, None, None]

    def conv(x, w, b):
        y = jax.lax.conv_general_dilated(
            x, w, window_strides=(1, 1), padding=((PAD, PAD), (PAD, PAD)),
            dimension_numbers=("NCHW", "OIHW", "NCHW"))
        return y + b[None, :, None, None]

    def pool(x):
        return jax.lax.reduce_window(x, -jnp.inf, jax.lax.max,
                                     (1, 1, 2, 2), (1, 1, 2, 2), "VALID")

    y = pool(jax.nn.relu(bn(conv(x_nchw, p["conv1_w"], p["conv1_b"]),
                            p["bn1_gamma"], p["bn1_beta"], p["bn1_mean"], p["bn1_var"])))
    y = pool(jax.nn.relu(bn(conv(y, p["conv2_w"], p["conv2_b"]),
                            p["bn2_gamma"], p["bn2_beta"], p["bn2_mean"], p["bn2_var"])))
    feat = y.reshape(y.shape[0], -1)                              # torch NCHW flatten
    h = jax.nn.relu(feat @ p["fc1_w"].T + p["fc1_b"])
    return h @ p["fc2_w"].T + p["fc2_b"]


if __name__ == "__main__":
    key = jax.random.PRNGKey(0)
    k_param, k_bn, k_x = jax.random.split(key, 3)
    params = init_params(k_param, num_classes=9)

    # Non-trivial BN running stats so the folded-BN path is actually exercised.
    kb1, kb2, kv1, kv2 = jax.random.split(k_bn, 4)
    params["bn1_mean"] = 0.1 * jax.random.normal(kb1, (16,), jnp.float32)
    params["bn1_var"] = 0.5 + jax.random.uniform(kv1, (16,), jnp.float32)
    params["bn2_mean"] = 0.1 * jax.random.normal(kb2, (32,), jnp.float32)
    params["bn2_var"] = 0.5 + jax.random.uniform(kv2, (32,), jnp.float32)

    iparams = prepare_inference_params(params)

    # fc1 expects 32*8*8 features after two 2x2 pools -> 32x32 input images.
    B = 2
    x = jax.random.normal(k_x, (B, 1, 32, 32), jnp.float32)       # NCHW like torch

    logits = forward(x, iparams, num_classes=9)
    jax.block_until_ready(logits)
    assert logits.shape == (B, 9), logits.shape

    # Cross-check against the pure-JAX f32 reference (bf16 MXU path -> loose tolerance).
    ref = reference_forward(x, params)
    np.testing.assert_allclose(np.asarray(logits), np.asarray(ref), rtol=5e-2, atol=5e-2)

    print("KERNEL_OK")
</pallas_src>

<mosaic_0001>
module attributes {stable_mosaic.version = 11 : i64} {
  func.func @_conv_stage_kernel(%arg0: i32, %arg1: memref<1x18x36xbf16, #tpu.memory_space<vmem>>, %arg2: memref<1x18x36xbf16, #tpu.memory_space<vmem>>, %arg3: memref<5x36x512xbf16, #tpu.memory_space<vmem>>, %arg4: memref<1x256xf32, #tpu.memory_space<vmem>>, %arg5: memref<16x256xbf16, #tpu.memory_space<vmem>>) attributes {dimension_semantics = [#tpu.dimension_semantics<parallel>], iteration_bounds = array<i64: 2>, scalar_prefetch = 0 : i64, scratch_operands = 0 : i64, tpu.core_type = #tpu.core_type<tc>, window_params = [{transform_indices = @transform_0, window_bounds = array<i64: 1, 18, 36>}, {transform_indices = @transform_1, window_bounds = array<i64: 1, 18, 36>}, {pipeline_mode = #tpu.pipeline_mode<synchronous>, transform_indices = @transform_2, window_bounds = array<i64: 5, 36, 512>}, {pipeline_mode = #tpu.pipeline_mode<synchronous>, transform_indices = @transform_3, window_bounds = array<i64: 1, 256>}, {transform_indices = @transform_4, window_bounds = array<i64: 16, 256>}]} {
    %c0 = arith.constant 0 : index
    %c0_0 = arith.constant 0 : index
    %c0_1 = arith.constant 0 : index
    %0 = vector.load %arg1[%c0, %c0_0, %c0_1] : memref<1x18x36xbf16, #tpu.memory_space<vmem>>, vector<1x16x36xbf16>
    %1 = vector.shape_cast %0 : vector<1x16x36xbf16> to vector<16x36xbf16>
    %c0_2 = arith.constant 0 : index
    %c0_3 = arith.constant 0 : index
    %c0_4 = arith.constant 0 : index
    %2 = vector.load %arg3[%c0_2, %c0_3, %c0_4] : memref<5x36x512xbf16, #tpu.memory_space<vmem>>, vector<1x36x512xbf16>
    %3 = vector.shape_cast %2 : vector<1x36x512xbf16> to vector<36x512xbf16>
    %cst = arith.constant dense<0.000000e+00> : vector<16x512xf32>
    %4 = tpu.matmul %1, %3, %cst {dimension_numbers = #tpu.dot_dimension_numbers<[1], [0], [0], [1], [0, 0, 1, 1], [], []>} : vector<16x36xbf16>, vector<36x512xbf16>, vector<16x512xf32> -> vector<16x512xf32>
    %c0_5 = arith.constant 0 : index
    %c0_6 = arith.constant 0 : index
    %c0_7 = arith.constant 0 : index
    %5 = vector.load %arg2[%c0_5, %c0_6, %c0_7] : memref<1x18x36xbf16, #tpu.memory_space<vmem>>, vector<1x16x36xbf16>
    %6 = vector.shape_cast %5 : vector<1x16x36xbf16> to vector<16x36xbf16>
    %c1 = arith.constant 1 : index
    %c0_8 = arith.constant 0 : index
    %c0_9 = arith.constant 0 : index
    %7 = vector.load %arg3[%c1, %c0_8, %c0_9] : memref<5x36x512xbf16, #tpu.memory_space<vmem>>, vector<1x36x512xbf16>
    %8 = vector.shape_cast %7 : vector<1x36x512xbf16> to vector<36x512xbf16>
    %cst_10 = arith.constant dense<0.000000e+00> : vector<16x512xf32>
    %9 = tpu.matmul %6, %8, %cst_10 {dimension_numbers = #tpu.dot_dimension_numbers<[1], [0], [0], [1], [0, 0, 1, 1], [], []>} : vector<16x36xbf16>, vector<36x512xbf16>, vector<16x512xf32> -> vector<16x512xf32>
    %10 = arith.addf %4, %9 : vector<16x512xf32>
    %c0_11 = arith.constant 0 : index
    %c1_12 = arith.constant 1 : index
    %c0_13 = arith.constant 0 : index
    %11 = vector.load %arg1[%c0_11, %c1_12, %c0_13] : memref<1x18x36xbf16, #tpu.memory_space<vmem>>, vector<1x16x36xbf16>
    %12 = vector.shape_cast %11 : vector<1x16x36xbf16> to vector<16x36xbf16>
    %c2 = arith.constant 2 : index
    %c0_14 = arith.constant 0 : index
    %c0_15 = arith.constant 0 : index
    %13 = vector.load %arg3[%c2, %c0_14, %c0_15] : memref<5x36x512xbf16, #tpu.memory_space<vmem>>, vector<1x36x512xbf16>
    %14 = vector.shape_cast %13 : vector<1x36x512xbf16> to vector<36x512xbf16>
    %cst_16 = arith.constant dense<0.000000e+00> : vector<16x512xf32>
    %15 = tpu.matmul %12, %14, %cst_16 {dimension_numbers = #tpu.dot_dimension_numbers<[1], [0], [0], [1], [0, 0, 1, 1], [], []>} : vector<16x36xbf16>, vector<36x512xbf16>, vector<16x512xf32> -> vector<16x512xf32>
    %16 = arith.addf %10, %15 : vector<16x512xf32>
    %c0_17 = arith.constant 0 : index
    %c1_18 = arith.constant 1 : index
    %c0_19 = arith.constant 0 : index
    %17 = vector.load %arg2[%c0_17, %c1_18, %c0_19] : memref<1x18x36xbf16, #tpu.memory_space<vmem>>, vector<1x16x36xbf16>
    %18 = vector.shape_cast %17 : vector<1x16x36xbf16> to vector<16x36xbf16>
    %c3 = arith.constant 3 : index
    %c0_20 = arith.constant 0 : index
    %c0_21 = arith.constant 0 : index
    %19 = vector.load %arg3[%c3, %c0_20, %c0_21] : memref<5x36x512xbf16, #tpu.memory_space<vmem>>, vector<1x36x512xbf16>
    %20 = vector.shape_cast %19 : vector<1x36x512xbf16> to vector<36x512xbf16>
    %cst_22 = arith.constant dense<0.000000e+00> : vector<16x512xf32>
    %21 = tpu.matmul %18, %20, %cst_22 {dimension_numbers = #tpu.dot_dimension_numbers<[1], [0], [0], [1], [0, 0, 1, 1], [], []>} : vector<16x36xbf16>, vector<36x512xbf16>, vector<16x512xf32> -> vector<16x512xf32>
    %22 = arith.addf %16, %21 : vector<16x512xf32>
    %c0_23 = arith.constant 0 : index
    %c2_24 = arith.constant 2 : index
    %c0_25 = arith.constant 0 : index
    %23 = vector.load %arg1[%c0_23, %c2_24, %c0_25] : memref<1x18x36xbf16, #tpu.memory_space<vmem>>, vector<1x16x36xbf16>
    %24 = vector.shape_cast %23 : vector<1x16x36xbf16> to vector<16x36xbf16>
    %c4 = arith.constant 4 : index
    %c0_26 = arith.constant 0 : index
    %c0_27 = arith.constant 0 : index
    %25 = vector.load %arg3[%c4, %c0_26, %c0_27] : memref<5x36x512xbf16, #tpu.memory_space<vmem>>, vector<1x36x512xbf16>
    %26 = vector.shape_cast %25 : vector<1x36x512xbf16> to vector<36x512xbf16>
    %cst_28 = arith.constant dense<0.000000e+00> : vector<16x512xf32>
    %27 = tpu.matmul %24, %26, %cst_28 {dimension_numbers = #tpu.dot_dimension_numbers<[1], [0], [0], [1], [0, 0, 1, 1], [], []>} : vector<16x36xbf16>, vector<36x512xbf16>, vector<16x512xf32> -> vector<16x512xf32>
    %28 = arith.addf %22, %27 : vector<16x512xf32>
    %c0_29 = arith.constant 0 : index
    %c0_30 = arith.constant 0 : index
    %c0_31 = arith.constant 0 : index
    %29 = vector.load %arg2[%c0_29, %c0_30, %c0_31] : memref<1x18x36xbf16, #tpu.memory_space<vmem>>, vector<1x16x36xbf16>
    %30 = vector.shape_cast %29 : vector<1x16x36xbf16> to vector<16x36xbf16>
    %c0_32 = arith.constant 0 : index
    %c0_33 = arith.constant 0 : index
    %c0_34 = arith.constant 0 : index
    %31 = vector.load %arg3[%c0_32, %c0_33, %c0_34] : memref<5x36x512xbf16, #tpu.memory_space<vmem>>, vector<1x36x512xbf16>
    %32 = vector.shape_cast %31 : vector<1x36x512xbf16> to vector<36x512xbf16>
    %cst_35 = arith.constant dense<0.000000e+00> : vector<16x512xf32>
    %33 = tpu.matmul %30, %32, %cst_35 {dimension_numbers = #tpu.dot_dimension_numbers<[1], [0], [0], [1], [0, 0, 1, 1], [], []>} : vector<16x36xbf16>, vector<36x512xbf16>, vector<16x512xf32> -> vector<16x512xf32>
    %c0_36 = arith.constant 0 : index
    %c1_37 = arith.constant 1 : index
    %c0_38 = arith.constant 0 : index
    %34 = vector.load %arg1[%c0_36, %c1_37, %c0_38] : memref<1x18x36xbf16, #tpu.memory_space<vmem>>, vector<1x16x36xbf16>
    %35 = vector.shape_cast %34 : vector<1x16x36xbf16> to vector<16x36xbf16>
    %c1_39 = arith.constant 1 : index
    %c0_40 = arith.constant 0 : index
    %c0_41 = arith.constant 0 : index
    %36 = vector.load %arg3[%c1_39, %c0_40, %c0_41] : memref<5x36x512xbf16, #tpu.memory_space<vmem>>, vector<1x36x512xbf16>
    %37 = vector.shape_cast %36 : vector<1x36x512xbf16> to vector<36x512xbf16>
    %cst_42 = arith.constant dense<0.000000e+00> : vector<16x512xf32>
    %38 = tpu.matmul %35, %37, %cst_42 {dimension_numbers = #tpu.dot_dimension_numbers<[1], [0], [0], [1], [0, 0, 1, 1], [], []>} : vector<16x36xbf16>, vector<36x512xbf16>, vector<16x512xf32> -> vector<16x512xf32>
    %39 = arith.addf %33, %38 : vector<16x512xf32>
    %c0_43 = arith.constant 0 : index
    %c1_44 = arith.constant 1 : index
    %c0_45 = arith.constant 0 : index
    %40 = vector.load %arg2[%c0_43, %c1_44, %c0_45] : memref<1x18x36xbf16, #tpu.memory_space<vmem>>, vector<1x16x36xbf16>
    %41 = vector.shape_cast %40 : vector<1x16x36xbf16> to vector<16x36xbf16>
    %c2_46 = arith.constant 2 : index
    %c0_47 = arith.constant 0 : index
    %c0_48 = arith.constant 0 : index
    %42 = vector.load %arg3[%c2_46, %c0_47, %c0_48] : memref<5x36x512xbf16, #tpu.memory_space<vmem>>, vector<1x36x512xbf16>
    %43 = vector.shape_cast %42 : vector<1x36x512xbf16> to vector<36x512xbf16>
    %cst_49 = arith.constant dense<0.000000e+00> : vector<16x512xf32>
    %44 = tpu.matmul %41, %43, %cst_49 {dimension_numbers = #tpu.dot_dimension_numbers<[1], [0], [0], [1], [0, 0, 1, 1], [], []>} : vector<16x36xbf16>, vector<36x512xbf16>, vector<16x512xf32> -> vector<16x512xf32>
    %45 = arith.addf %39, %44 : vector<16x512xf32>
    %c0_50 = arith.constant 0 : index
    %c2_51 = arith.constant 2 : index
    %c0_52 = arith.constant 0 : index
    %46 = vector.load %arg1[%c0_50, %c2_51, %c0_52] : memref<1x18x36xbf16, #tpu.memory_space<vmem>>, vector<1x16x36xbf16>
    %47 = vector.shape_cast %46 : vector<1x16x36xbf16> to vector<16x36xbf16>
    %c3_53 = arith.constant 3 : index
    %c0_54 = arith.constant 0 : index
    %c0_55 = arith.constant 0 : index
    %48 = vector.load %arg3[%c3_53, %c0_54, %c0_55] : memref<5x36x512xbf16, #tpu.memory_space<vmem>>, vector<1x36x512xbf16>
    %49 = vector.shape_cast %48 : vector<1x36x512xbf16> to vector<36x512xbf16>
    %cst_56 = arith.constant dense<0.000000e+00> : vector<16x512xf32>
    %50 = tpu.matmul %47, %49, %cst_56 {dimension_numbers = #tpu.dot_dimension_numbers<[1], [0], [0], [1], [0, 0, 1, 1], [], []>} : vector<16x36xbf16>, vector<36x512xbf16>, vector<16x512xf32> -> vector<16x512xf32>
    %51 = arith.addf %45, %50 : vector<16x512xf32>
    %c0_57 = arith.constant 0 : index
    %c2_58 = arith.constant 2 : index
    %c0_59 = arith.constant 0 : index
    %52 = vector.load %arg2[%c0_57, %c2_58, %c0_59] : memref<1x18x36xbf16, #tpu.memory_space<vmem>>, vector<1x16x36xbf16>
    %53 = vector.shape_cast %52 : vector<1x16x36xbf16> to vector<16x36xbf16>
    %c4_60 = arith.constant 4 : index
    %c0_61 = arith.constant 0 : index
    %c0_62 = arith.constant 0 : index
    %54 = vector.load %arg3[%c4_60, %c0_61, %c0_62] : memref<5x36x512xbf16, #tpu.memory_space<vmem>>, vector<1x36x512xbf16>
    %55 = vector.shape_cast %54 : vector<1x36x512xbf16> to vector<36x512xbf16>
    %cst_63 = arith.constant dense<0.000000e+00> : vector<16x512xf32>
    %56 = tpu.matmul %53, %55, %cst_63 {dimension_numbers = #tpu.dot_dimension_numbers<[1], [0], [0], [1], [0, 0, 1, 1], [], []>} : vector<16x36xbf16>, vector<36x512xbf16>, vector<16x512xf32> -> vector<16x512xf32>
    %57 = arith.addf %51, %56 : vector<16x512xf32>
    %58 = arith.maximumf %28, %57 : vector<16x512xf32>
    %59 = vector.extract_strided_slice %58 {offsets = [0, 0], sizes = [16, 256], strides = [1, 1]} : vector<16x512xf32> to vector<16x256xf32>
    %60 = vector.extract_strided_slice %58 {offsets = [0, 256], sizes = [16, 256], strides = [1, 1]} : vector<16x512xf32> to vector<16x256xf32>
    %61 = arith.maximumf %59, %60 : vector<16x256xf32>
    %c0_64 = arith.constant 0 : index
    %c0_65 = arith.constant 0 : index
    %62 = vector.load %arg4[%c0_64, %c0_65] : memref<1x256xf32, #tpu.memory_space<vmem>>, vector<1x256xf32>
    %63 = vector.broadcast %62 : vector<1x256xf32> to vector<16x256xf32>
    %64 = arith.addf %61, %63 : vector<16x256xf32>
    %cst_66 = arith.constant 0.000000e+00 : f32
    %65 = vector.broadcast %cst_66 : f32 to vector<16x256xf32>
    %66 = arith.maximumf %64, %65 : vector<16x256xf32>
    %67 = arith.truncf %66 : vector<16x256xf32> to vector<16x256xbf16>
    %c0_67 = arith.constant 0 : index
    %c0_68 = arith.constant 0 : index
    %68 = vector.load %arg5[%c0_67, %c0_68] : memref<16x256xbf16, #tpu.memory_space<vmem>>, vector<16x256xbf16>
    tpu.vector_store %arg5[%c0_67, %c0_68], %67 {strides = array<i32>} : memref<16x256xbf16, #tpu.memory_space<vmem>>, vector<16x256xbf16>,
    return
  }
  func.func @transform_0(%arg0: i32) -> (i32, i32, i32) {
    %c0_i32 = arith.constant 0 : i32
    %c0_i32_0 = arith.constant 0 : i32
    %c0_i32_1 = arith.constant 0 : i32
    return %arg0, %c0_i32, %c0_i32_0 : i32, i32, i32
  }
  func.func @transform_1(%arg0: i32) -> (i32, i32, i32) {
    %c0_i32 = arith.constant 0 : i32
    %c0_i32_0 = arith.constant 0 : i32
    %c0_i32_1 = arith.constant 0 : i32
    return %arg0, %c0_i32, %c0_i32_0 : i32, i32, i32
  }
  func.func @transform_2(%arg0: i32) -> (i32, i32, i32) {
    %c0_i32 = arith.constant 0 : i32
    %c0_i32_0 = arith.constant 0 : i32
    %c0_i32_1 = arith.constant 0 : i32
    %c0_i32_2 = arith.constant 0 : i32
    return %c0_i32, %c0_i32_0, %c0_i32_1 : i32, i32, i32
  }
  func.func @transform_3(%arg0: i32) -> (i32, i32) {
    %c0_i32 = arith.constant 0 : i32
    %c0_i32_0 = arith.constant 0 : i32
    %c0_i32_1 = arith.constant 0 : i32
    return %c0_i32, %c0_i32_0 : i32, i32
  }
  func.func @transform_4(%arg0: i32) -> (i32, i32) {
    %c0_i32 = arith.constant 0 : i32
    %c0_i32_0 = arith.constant 0 : i32
    return %arg0, %c0_i32 : i32, i32
  }
}

module attributes {stable_mosaic.version = 11 : i64} {
  func.func @_conv_stage_kernel(%arg0: i32, %arg1: memref<1x10x320xbf16, #tpu.memory_space<vmem>>, %arg2: memref<1x10x320xbf16, #tpu.memory_space<vmem>>, %arg3: memref<5x320x512xbf16, #tpu.memory_space<vmem>>, %arg4: memref<1x256xf32, #tpu.memory_space<vmem>>, %arg5: memref<8x256xbf16, #tpu.memory_space<vmem>>) attributes {dimension_semantics = [#tpu.dimension_semantics<parallel>], iteration_bounds = array<i64: 2>, scalar_prefetch = 0 : i64, scratch_operands = 0 : i64, tpu.core_type = #tpu.core_type<tc>, window_params = [{transform_indices = @transform_0, window_bounds = array<i64: 1, 10, 320>}, {transform_indices = @transform_1, window_bounds = array<i64: 1, 10, 320>}, {pipeline_mode = #tpu.pipeline_mode<synchronous>, transform_indices = @transform_2, window_bounds = array<i64: 5, 320, 512>}, {pipeline_mode = #tpu.pipeline_mode<synchronous>, transform_indices = @transform_3, window_bounds = array<i64: 1, 256>}, {transform_indices = @transform_4, window_bounds = array<i64: 8, 256>}]} {
    %c0 = arith.constant 0 : index
    %c0_0 = arith.constant 0 : index
    %c0_1 = arith.constant 0 : index
    %0 = vector.load %arg1[%c0, %c0_0, %c0_1] : memref<1x10x320xbf16, #tpu.memory_space<vmem>>, vector<1x8x320xbf16>
    %1 = vector.shape_cast %0 : vector<1x8x320xbf16> to vector<8x320xbf16>
    %c0_2 = arith.constant 0 : index
    %c0_3 = arith.constant 0 : index
    %c0_4 = arith.constant 0 : index
    %2 = vector.load %arg3[%c0_2, %c0_3, %c0_4] : memref<5x320x512xbf16, #tpu.memory_space<vmem>>, vector<1x320x512xbf16>
    %3 = vector.shape_cast %2 : vector<1x320x512xbf16> to vector<320x512xbf16>
    %cst = arith.constant dense<0.000000e+00> : vector<8x512xf32>
    %4 = tpu.matmul %1, %3, %cst {dimension_numbers = #tpu.dot_dimension_numbers<[1], [0], [0], [1], [0, 0, 1, 1], [], []>} : vector<8x320xbf16>, vector<320x512xbf16>, vector<8x512xf32> -> vector<8x512xf32>
    %c0_5 = arith.constant 0 : index
    %c0_6 = arith.constant 0 : index
    %c0_7 = arith.constant 0 : index
    %5 = vector.load %arg2[%c0_5, %c0_6, %c0_7] : memref<1x10x320xbf16, #tpu.memory_space<vmem>>, vector<1x8x320xbf16>
    %6 = vector.shape_cast %5 : vector<1x8x320xbf16> to vector<8x320xbf16>
    %c1 = arith.constant 1 : index
    %c0_8 = arith.constant 0 : index
    %c0_9 = arith.constant 0 : index
    %7 = vector.load %arg3[%c1, %c0_8, %c0_9] : memref<5x320x512xbf16, #tpu.memory_space<vmem>>, vector<1x320x512xbf16>
    %8 = vector.shape_cast %7 : vector<1x320x512xbf16> to vector<320x512xbf16>
    %cst_10 = arith.constant dense<0.000000e+00> : vector<8x512xf32>
    %9 = tpu.matmul %6, %8, %cst_10 {dimension_numbers = #tpu.dot_dimension_numbers<[1], [0], [0], [1], [0, 0, 1, 1], [], []>} : vector<8x320xbf16>, vector<320x512xbf16>, vector<8x512xf32> -> vector<8x512xf32>
    %10 = arith.addf %4, %9 : vector<8x512xf32>
    %c0_11 = arith.constant 0 : index
    %c1_12 = arith.constant 1 : index
    %c0_13 = arith.constant 0 : index
    %11 = vector.load %arg1[%c0_11, %c1_12, %c0_13] : memref<1x10x320xbf16, #tpu.memory_space<vmem>>, vector<1x8x320xbf16>
    %12 = vector.shape_cast %11 : vector<1x8x320xbf16> to vector<8x320xbf16>
    %c2 = arith.constant 2 : index
    %c0_14 = arith.constant 0 : index
    %c0_15 = arith.constant 0 : index
    %13 = vector.load %arg3[%c2, %c0_14, %c0_15] : memref<5x320x512xbf16, #tpu.memory_space<vmem>>, vector<1x320x512xbf16>
    %14 = vector.shape_cast %13 : vector<1x320x512xbf16> to vector<320x512xbf16>
    %cst_16 = arith.constant dense<0.000000e+00> : vector<8x512xf32>
    %15 = tpu.matmul %12, %14, %cst_16 {dimension_numbers = #tpu.dot_dimension_numbers<[1], [0], [0], [1], [0, 0, 1, 1], [], []>} : vector<8x320xbf16>, vector<320x512xbf16>, vector<8x512xf32> -> vector<8x512xf32>
    %16 = arith.addf %10, %15 : vector<8x512xf32>
    %c0_17 = arith.constant 0 : index
    %c1_18 = arith.constant 1 : index
    %c0_19 = arith.constant 0 : index
    %17 = vector.load %arg2[%c0_17, %c1_18, %c0_19] : memref<1x10x320xbf16, #tpu.memory_space<vmem>>, vector<1x8x320xbf16>
    %18 = vector.shape_cast %17 : vector<1x8x320xbf16> to vector<8x320xbf16>
    %c3 = arith.constant 3 : index
    %c0_20 = arith.constant 0 : index
    %c0_21 = arith.constant 0 : index
    %19 = vector.load %arg3[%c3, %c0_20, %c0_21] : memref<5x320x512xbf16, #tpu.memory_space<vmem>>, vector<1x320x512xbf16>
    %20 = vector.shape_cast %19 : vector<1x320x512xbf16> to vector<320x512xbf16>
    %cst_22 = arith.constant dense<0.000000e+00> : vector<8x512xf32>
    %21 = tpu.matmul %18, %20, %cst_22 {dimension_numbers = #tpu.dot_dimension_numbers<[1], [0], [0], [1], [0, 0, 1, 1], [], []>} : vector<8x320xbf16>, vector<320x512xbf16>, vector<8x512xf32> -> vector<8x512xf32>
    %22 = arith.addf %16, %21 : vector<8x512xf32>
    %c0_23 = arith.constant 0 : index
    %c2_24 = arith.constant 2 : index
    %c0_25 = arith.constant 0 : index
    %23 = vector.load %arg1[%c0_23, %c2_24, %c0_25] : memref<1x10x320xbf16, #tpu.memory_space<vmem>>, vector<1x8x320xbf16>
    %24 = vector.shape_cast %23 : vector<1x8x320xbf16> to vector<8x320xbf16>
    %c4 = arith.constant 4 : index
    %c0_26 = arith.constant 0 : index
    %c0_27 = arith.constant 0 : index
    %25 = vector.load %arg3[%c4, %c0_26, %c0_27] : memref<5x320x512xbf16, #tpu.memory_space<vmem>>, vector<1x320x512xbf16>
    %26 = vector.shape_cast %25 : vector<1x320x512xbf16> to vector<320x512xbf16>
    %cst_28 = arith.constant dense<0.000000e+00> : vector<8x512xf32>
    %27 = tpu.matmul %24, %26, %cst_28 {dimension_numbers = #tpu.dot_dimension_numbers<[1], [0], [0], [1], [0, 0, 1, 1], [], []>} : vector<8x320xbf16>, vector<320x512xbf16>, vector<8x512xf32> -> vector<8x512xf32>
    %28 = arith.addf %22, %27 : vector<8x512xf32>
    %c0_29 = arith.constant 0 : index
    %c0_30 = arith.constant 0 : index
    %c0_31 = arith.constant 0 : index
    %29 = vector.load %arg2[%c0_29, %c0_30, %c0_31] : memref<1x10x320xbf16, #tpu.memory_space<vmem>>, vector<1x8x320xbf16>
    %30 = vector.shape_cast %29 : vector<1x8x320xbf16> to vector<8x320xbf16>
    %c0_32 = arith.constant 0 : index
    %c0_33 = arith.constant 0 : index
    %c0_34 = arith.constant 0 : index
    %31 = vector.load %arg3[%c0_32, %c0_33, %c0_34] : memref<5x320x512xbf16, #tpu.memory_space<vmem>>, vector<1x320x512xbf16>
    %32 = vector.shape_cast %31 : vector<1x320x512xbf16> to vector<320x512xbf16>
    %cst_35 = arith.constant dense<0.000000e+00> : vector<8x512xf32>
    %33 = tpu.matmul %30, %32, %cst_35 {dimension_numbers = #tpu.dot_dimension_numbers<[1], [0], [0], [1], [0, 0, 1, 1], [], []>} : vector<8x320xbf16>, vector<320x512xbf16>, vector<8x512xf32> -> vector<8x512xf32>
    %c0_36 = arith.constant 0 : index
    %c1_37 = arith.constant 1 : index
    %c0_38 = arith.constant 0 : index
    %34 = vector.load %arg1[%c0_36, %c1_37, %c0_38] : memref<1x10x320xbf16, #tpu.memory_space<vmem>>, vector<1x8x320xbf16>
    %35 = vector.shape_cast %34 : vector<1x8x320xbf16> to vector<8x320xbf16>
    %c1_39 = arith.constant 1 : index
    %c0_40 = arith.constant 0 : index
    %c0_41 = arith.constant 0 : index
    %36 = vector.load %arg3[%c1_39, %c0_40, %c0_41] : memref<5x320x512xbf16, #tpu.memory_space<vmem>>, vector<1x320x512xbf16>
    %37 = vector.shape_cast %36 : vector<1x320x512xbf16> to vector<320x512xbf16>
    %cst_42 = arith.constant dense<0.000000e+00> : vector<8x512xf32>
    %38 = tpu.matmul %35, %37, %cst_42 {dimension_numbers = #tpu.dot_dimension_numbers<[1], [0], [0], [1], [0, 0, 1, 1], [], []>} : vector<8x320xbf16>, vector<320x512xbf16>, vector<8x512xf32> -> vector<8x512xf32>
    %39 = arith.addf %33, %38 : vector<8x512xf32>
    %c0_43 = arith.constant 0 : index
    %c1_44 = arith.constant 1 : index
    %c0_45 = arith.constant 0 : index
    %40 = vector.load %arg2[%c0_43, %c1_44, %c0_45] : memref<1x10x320xbf16, #tpu.memory_space<vmem>>, vector<1x8x320xbf16>
    %41 = vector.shape_cast %40 : vector<1x8x320xbf16> to vector<8x320xbf16>
    %c2_46 = arith.constant 2 : index
    %c0_47 = arith.constant 0 : index
    %c0_48 = arith.constant 0 : index
    %42 = vector.load %arg3[%c2_46, %c0_47, %c0_48] : memref<5x320x512xbf16, #tpu.memory_space<vmem>>, vector<1x320x512xbf16>
    %43 = vector.shape_cast %42 : vector<1x320x512xbf16> to vector<320x512xbf16>
    %cst_49 = arith.constant dense<0.000000e+00> : vector<8x512xf32>
    %44 = tpu.matmul %41, %43, %cst_49 {dimension_numbers = #tpu.dot_dimension_numbers<[1], [0], [0], [1], [0, 0, 1, 1], [], []>} : vector<8x320xbf16>, vector<320x512xbf16>, vector<8x512xf32> -> vector<8x512xf32>
    %45 = arith.addf %39, %44 : vector<8x512xf32>
    %c0_50 = arith.constant 0 : index
    %c2_51 = arith.constant 2 : index
    %c0_52 = arith.constant 0 : index
    %46 = vector.load %arg1[%c0_50, %c2_51, %c0_52] : memref<1x10x320xbf16, #tpu.memory_space<vmem>>, vector<1x8x320xbf16>
    %47 = vector.shape_cast %46 : vector<1x8x320xbf16> to vector<8x320xbf16>
    %c3_53 = arith.constant 3 : index
    %c0_54 = arith.constant 0 : index
    %c0_55 = arith.constant 0 : index
    %48 = vector.load %arg3[%c3_53, %c0_54, %c0_55] : memref<5x320x512xbf16, #tpu.memory_space<vmem>>, vector<1x320x512xbf16>
    %49 = vector.shape_cast %48 : vector<1x320x512xbf16> to vector<320x512xbf16>
    %cst_56 = arith.constant dense<0.000000e+00> : vector<8x512xf32>
    %50 = tpu.matmul %47, %49, %cst_56 {dimension_numbers = #tpu.dot_dimension_numbers<[1], [0], [0], [1], [0, 0, 1, 1], [], []>} : vector<8x320xbf16>, vector<320x512xbf16>, vector<8x512xf32> -> vector<8x512xf32>
    %51 = arith.addf %45, %50 : vector<8x512xf32>
    %c0_57 = arith.constant 0 : index
    %c2_58 = arith.constant 2 : index
    %c0_59 = arith.constant 0 : index
    %52 = vector.load %arg2[%c0_57, %c2_58, %c0_59] : memref<1x10x320xbf16, #tpu.memory_space<vmem>>, vector<1x8x320xbf16>
    %53 = vector.shape_cast %52 : vector<1x8x320xbf16> to vector<8x320xbf16>
    %c4_60 = arith.constant 4 : index
    %c0_61 = arith.constant 0 : index
    %c0_62 = arith.constant 0 : index
    %54 = vector.load %arg3[%c4_60, %c0_61, %c0_62] : memref<5x320x512xbf16, #tpu.memory_space<vmem>>, vector<1x320x512xbf16>
    %55 = vector.shape_cast %54 : vector<1x320x512xbf16> to vector<320x512xbf16>
    %cst_63 = arith.constant dense<0.000000e+00> : vector<8x512xf32>
    %56 = tpu.matmul %53, %55, %cst_63 {dimension_numbers = #tpu.dot_dimension_numbers<[1], [0], [0], [1], [0, 0, 1, 1], [], []>} : vector<8x320xbf16>, vector<320x512xbf16>, vector<8x512xf32> -> vector<8x512xf32>
    %57 = arith.addf %51, %56 : vector<8x512xf32>
    %58 = arith.maximumf %28, %57 : vector<8x512xf32>
    %59 = vector.extract_strided_slice %58 {offsets = [0, 0], sizes = [8, 256], strides = [1, 1]} : vector<8x512xf32> to vector<8x256xf32>
    %60 = vector.extract_strided_slice %58 {offsets = [0, 256], sizes = [8, 256], strides = [1, 1]} : vector<8x512xf32> to vector<8x256xf32>
    %61 = arith.maximumf %59, %60 : vector<8x256xf32>
    %c0_64 = arith.constant 0 : index
    %c0_65 = arith.constant 0 : index
    %62 = vector.load %arg4[%c0_64, %c0_65] : memref<1x256xf32, #tpu.memory_space<vmem>>, vector<1x256xf32>
    %63 = vector.broadcast %62 : vector<1x256xf32> to vector<8x256xf32>
    %64 = arith.addf %61, %63 : vector<8x256xf32>
    %cst_66 = arith.constant 0.000000e+00 : f32
    %65 = vector.broadcast %cst_66 : f32 to vector<8x256xf32>
    %66 = arith.maximumf %64, %65 : vector<8x256xf32>
    %67 = arith.truncf %66 : vector<8x256xf32> to vector<8x256xbf16>
    %c0_67 = arith.constant 0 : index
    %c0_68 = arith.constant 0 : index
    %68 = vector.load %arg5[%c0_67, %c0_68] : memref<8x256xbf16, #tpu.memory_space<vmem>>, vector<8x256xbf16>
    tpu.vector_store %arg5[%c0_67, %c0_68], %67 {strides = array<i32>} : memref<8x256xbf16, #tpu.memory_space<vmem>>, vector<8x256xbf16>,
    return
  }
  func.func @transform_0(%arg0: i32) -> (i32, i32, i32) {
    %c0_i32 = arith.constant 0 : i32
    %c0_i32_0 = arith.constant 0 : i32
    %c0_i32_1 = arith.constant 0 : i32
    return %arg0, %c0_i32, %c0_i32_0 : i32, i32, i32
  }
  func.func @transform_1(%arg0: i32) -> (i32, i32, i32) {
    %c0_i32 = arith.constant 0 : i32
    %c0_i32_0 = arith.constant 0 : i32
    %c0_i32_1 = arith.constant 0 : i32
    return %arg0, %c0_i32, %c0_i32_0 : i32, i32, i32
  }
  func.func @transform_2(%arg0: i32) -> (i32, i32, i32) {
    %c0_i32 = arith.constant 0 : i32
    %c0_i32_0 = arith.constant 0 : i32
    %c0_i32_1 = arith.constant 0 : i32
    %c0_i32_2 = arith.constant 0 : i32
    return %c0_i32, %c0_i32_0, %c0_i32_1 : i32, i32, i32
  }
  func.func @transform_3(%arg0: i32) -> (i32, i32) {
    %c0_i32 = arith.constant 0 : i32
    %c0_i32_0 = arith.constant 0 : i32
    %c0_i32_1 = arith.constant 0 : i32
    return %c0_i32, %c0_i32_0 : i32, i32
  }
  func.func @transform_4(%arg0: i32) -> (i32, i32) {
    %c0_i32 = arith.constant 0 : i32
    %c0_i32_0 = arith.constant 0 : i32
    return %arg0, %c0_i32 : i32, i32
  }
}

module attributes {stable_mosaic.version = 11 : i64} {
  func.func @_mlp_head_kernel(%arg0: i32, %arg1: memref<8x2048xbf16, #tpu.memory_space<vmem>>, %arg2: memref<2048x128xbf16, #tpu.memory_space<vmem>>, %arg3: memref<1x128xf32, #tpu.memory_space<vmem>>, %arg4: memref<128x128xbf16, #tpu.memory_space<vmem>>, %arg5: memref<1x128xf32, #tpu.memory_space<vmem>>, %arg6: memref<8x128xf32, #tpu.memory_space<vmem>>) attributes {dimension_semantics = [#tpu.dimension_semantics<parallel>], iteration_bounds = array<i64: 1>, scalar_prefetch = 0 : i64, scratch_operands = 0 : i64, tpu.core_type = #tpu.core_type<tc>, window_params = [{transform_indices = @transform_0, window_bounds = array<i64: 8, 2048>}, {pipeline_mode = #tpu.pipeline_mode<synchronous>, transform_indices = @transform_1, window_bounds = array<i64: 2048, 128>}, {pipeline_mode = #tpu.pipeline_mode<synchronous>, transform_indices = @transform_2, window_bounds = array<i64: 1, 128>}, {pipeline_mode = #tpu.pipeline_mode<synchronous>, transform_indices = @transform_3, window_bounds = array<i64: 128, 128>}, {pipeline_mode = #tpu.pipeline_mode<synchronous>, transform_indices = @transform_4, window_bounds = array<i64: 1, 128>}, {transform_indices = @transform_5, window_bounds = array<i64: 8, 128>}]} {
    %c0 = arith.constant 0 : index
    %c0_0 = arith.constant 0 : index
    %0 = vector.load %arg1[%c0, %c0_0] : memref<8x2048xbf16, #tpu.memory_space<vmem>>, vector<8x2048xbf16>
    %c0_1 = arith.constant 0 : index
    %c0_2 = arith.constant 0 : index
    %1 = vector.load %arg2[%c0_1, %c0_2] : memref<2048x128xbf16, #tpu.memory_space<vmem>>, vector<2048x128xbf16>
    %cst = arith.constant dense<0.000000e+00> : vector<8x128xf32>
    %2 = tpu.matmul %0, %1, %cst {dimension_numbers = #tpu.dot_dimension_numbers<[1], [0], [0], [1], [0, 0, 1, 1], [], []>} : vector<8x2048xbf16>, vector<2048x128xbf16>, vector<8x128xf32> -> vector<8x128xf32>
    %c0_3 = arith.constant 0 : index
    %c0_4 = arith.constant 0 : index
    %3 = vector.load %arg3[%c0_3, %c0_4] : memref<1x128xf32, #tpu.memory_space<vmem>>, vector<1x128xf32>
    %4 = vector.broadcast %3 : vector<1x128xf32> to vector<8x128xf32>
    %5 = arith.addf %2, %4 : vector<8x128xf32>
    %cst_5 = arith.constant 0.000000e+00 : f32
    %6 = vector.broadcast %cst_5 : f32 to vector<8x128xf32>
    %7 = arith.maximumf %5, %6 : vector<8x128xf32>
    %8 = arith.truncf %7 : vector<8x128xf32> to vector<8x128xbf16>
    %c0_6 = arith.constant 0 : index
    %c0_7 = arith.constant 0 : index
    %9 = vector.load %arg4[%c0_6, %c0_7] : memref<128x128xbf16, #tpu.memory_space<vmem>>, vector<128x128xbf16>
    %cst_8 = arith.constant dense<0.000000e+00> : vector<8x128xf32>
    %10 = tpu.matmul %8, %9, %cst_8 {dimension_numbers = #tpu.dot_dimension_numbers<[1], [0], [0], [1], [0, 0, 1, 1], [], []>} : vector<8x128xbf16>, vector<128x128xbf16>, vector<8x128xf32> -> vector<8x128xf32>
    %c0_9 = arith.constant 0 : index
    %c0_10 = arith.constant 0 : index
    %11 = vector.load %arg5[%c0_9, %c0_10] : memref<1x128xf32, #tpu.memory_space<vmem>>, vector<1x128xf32>
    %12 = vector.broadcast %11 : vector<1x128xf32> to vector<8x128xf32>
    %13 = arith.addf %10, %12 : vector<8x128xf32>
    %c0_11 = arith.constant 0 : index
    %c0_12 = arith.constant 0 : index
    %14 = vector.load %arg6[%c0_11, %c0_12] : memref<8x128xf32, #tpu.memory_space<vmem>>, vector<8x128xf32>
    tpu.vector_store %arg6[%c0_11, %c0_12], %13 {strides = array<i32>} : memref<8x128xf32, #tpu.memory_space<vmem>>, vector<8x128xf32>,
    return
  }
  func.func @transform_0(%arg0: i32) -> (i32, i32) {
    %c0_i32 = arith.constant 0 : i32
    %c0_i32_0 = arith.constant 0 : i32
    return %arg0, %c0_i32 : i32, i32
  }
  func.func @transform_1(%arg0: i32) -> (i32, i32) {
    %c0_i32 = arith.constant 0 : i32
    %c0_i32_0 = arith.constant 0 : i32
    %c0_i32_1 = arith.constant 0 : i32
    return %c0_i32, %c0_i32_0 : i32, i32
  }
  func.func @transform_2(%arg0: i32) -> (i32, i32) {
    %c0_i32 = arith.constant 0 : i32
    %c0_i32_0 = arith.constant 0 : i32
    %c0_i32_1 = arith.constant 0 : i32
    return %c0_i32, %c0_i32_0 : i32, i32
  }
  func.func @transform_3(%arg0: i32) -> (i32, i32) {
    %c0_i32 = arith.constant 0 : i32
    %c0_i32_0 = arith.constant 0 : i32
    %c0_i32_1 = arith.constant 0 : i32
    return %c0_i32, %c0_i32_0 : i32, i32
  }
  func.func @transform_4(%arg0: i32) -> (i32, i32) {
    %c0_i32 = arith.constant 0 : i32
    %c0_i32_0 = arith.constant 0 : i32
    %c0_i32_1 = arith.constant 0 : i32
    return %c0_i32, %c0_i32_0 : i32, i32
  }
  func.func @transform_5(%arg0: i32) -> (i32, i32) {
    %c0_i32 = arith.constant 0 : i32
    %c0_i32_0 = arith.constant 0 : i32
    return %arg0, %c0_i32 : i32, i32
  }
}

</mosaic_0001>

<bundles_post_ra>
// kernel: forward.3
= control target key start
LH: loop header
LB: loop body
LE: loop exit
PB: predicated region body
PF: predicated region fallthrough
CT: control target
= control target key end

     0   :  { %9 = vsyncpa [#allocation3], 0  ;;  %s2319_s0 = inlined_call_operand.vmem [shape: bf16[2,18,36], index: 0, kind: input, shape index: {}]   ;;  %s2320_s1 = inlined_call_operand.vmem [shape: bf16[2,18,36], index: 1, kind: input, shape index: {}]   ;;  %s2321_s2 = inlined_call_operand.hbm [shape: bf16[5,36,512], index: 2, kind: input, shape index: {}]   ;;  %s2322_s3 = inlined_call_operand.hbm [shape: f32[1,256], index: 3, kind: input, shape index: {}]   ;;  %s2323_s4 = inlined_call_operand.vmem [shape: bf16[32,256], index: 4, kind: output, shape index: {}]  }
   0x1   :  { %10 = vsyncpa [#allocation5], 0  ;;  %s1862_s15 = smov 0  }
   0x2 LB: > { %s152_s18 = sshll.u32 %s2321_s2, 4  ;;  %s1871_s19 = sadd.s32 4294967295, %s1831_s15   ;;  %s1831_s15 = sphi %s1862_s15, %s16_s15   ;;  %s153_s18 = int_to_ptr.hbm [resolvable:$true] %s152_s18 }
   0x3   : > { %p1446_p0 = scmp.ge.s32.totalorder %s1831_s15, 1  ;;  %p141_p1 = scmp.lt.s32.totalorder %s1831_s15, 3 }
   0x4   : > { %p1741_p2 = scmp.eq.s32.totalorder %s1871_s19, 0  ;;  %s1833_s21 = smov [#allocation2]  }
   0x5   : > { %p1876_p3 = pnand %p1446_p0, %p141_p1  ;;  %s154_s22 = sshll.u32 %s1833_s21, 4  ;;  %s155_s22 = int_to_ptr.vmem [resolvable:$true] %s154_s22 }
   0x6   : > { %s167_s25 = sshll.u32 %s2322_s3, 4  ;;  %s1834_s26 = smov [#allocation4]   ;;  %s168_s25 = int_to_ptr.hbm [resolvable:$true] %s167_s25 }
   0x7   : > { %p1734_p4 = pneg %p1876_p3  ;;  %s169_s27 = sshll.u32 %s1834_s26, 4  ;;  %s170_s27 = int_to_ptr.vmem [resolvable:$true] %s169_s27 }
   0x8   : > { %s1835_s28 = smov 256   ;;  %s1836_s29 = smov 16  }
   0x9   : > { %p1735_p5 = pnand %p1741_p2, %p1734_p4  ;;  %198 = sbr.rel (%p1876_p3) target bundleno = 332 (0x14c), region = 36 }
   0xb   : > { %1737 = dma.hbm_to_vmem [thread:$0]  (!%p1735_p5), %s153_s18, 6400, %s155_s22, [#allocation3], %s1835_s28, %s1835_s28, %s1836_s29  }
   0xc   : > { %1740 = dma.hbm_to_vmem [thread:$0]  (!%p1735_p5), %s168_s25, 32, %s170_s27, [#allocation5]  }
   0xe   : > { %1822 = dma.done.wait (%p1741_p2), [#allocation3], 6400  }
   0xf   : > { %1824 = vsyncadd (%p1741_p2), [#allocation3], 4294960896 }
  0x10   : > { %1826 = dma.done.wait (%p1741_p2), [#allocation5], 32  }
  0x11   : > { %1828 = vsyncadd (%p1741_p2), [#allocation5], 4294967264  ;;  %p236_p6 = scmp.lt.s32.totalorder %s1871_s19, 1  ;;  %v277_v0 = vld [vmem:[#allocation2 + $0x90] sm:$0x33]  ;;  %vm338_vm0 = vcmask 1041408  }
  0x12   : > { %v278_v1 = vld [vmem:[#allocation2 + $0x98] sm:$0x33]  ;;  %v310_v2 = vunpack.c.l.b16 %v277_v0  ;;  %v311_v3 = vunpack.c.h.b16 %v277_v0  ;;  %v1480_v6 = vld [vmem:[#allocation2 + $0x70] sm:$0xf]  ;;  %v1685_v7 = vld [vmem:[#allocation2 + $0x7c] sm:$0xf0] }
  0x13   : > { %s1899_s30 = scalar_select %p236_p6, %s1871_s19, 1  ;;  %v312_v4 = vunpack.c.l.b16 %v278_v1  ;;  %v313_v5 = vunpack.c.h.b16 %v278_v1  ;;  %v1683_v12 = vld [vmem:[#allocation2 + $0x74] sm:$0xf]  ;;  %v1482_v13 = vld [vmem:[#allocation2 + $0x80] sm:$0xf0]  ;;  %v1916_v23 = vor.u32 %v1685_v7, %v1480_v6  ;;  %vm334_vm1 = vcmask 293888  }
  0x14   : > { %v322_v8 = vpack.c.b16 %v310_v2, %v310_v2  ;;  %v323_v9 = vpack.c.b16 %v311_v3, %v311_v3  ;;  %v1488_v14 = vld [vmem:[#allocation2 + $0x78] sm:$0xf]  ;;  %v1686_v15 = vld [vmem:[#allocation2 + $0x84] sm:$0xf0]  ;;  %v1684_v16 = vld [vmem:[#allocation2 + $0x7c] sm:$0xf]  ;;  %v1918_v24 = vor.u32 %v1683_v12, %v1482_v13 }
  0x15   : > { %s1725_s5 = smul.u32 12, %s1899_s30  ;;  %v324_v10 = vpack.c.b16 %v312_v4, %v312_v4  ;;  %v325_v11 = vpack.c.b16 %v313_v5, %v313_v5  ;;  %v1490_v17 = vld [vmem:[#allocation2 + $0x88] sm:$0xf0]  ;;  %v1464_v22 = vld [vmem:[#allocation2 + $0x50] sm:$0xf]  ;;  %v1922_v28 = vor.u32 %v1686_v15, %v1488_v14  ;;  %vm875_vm3 = vcmask 1046528  }
  0x16   : > { %v1903_v18 = vsel %vm338_vm0, %v322_v8, 0  ;;  %v1906_v19 = vsel %vm338_vm0, %v323_v9, 0  ;;  %v1681_v25 = vld [vmem:[#allocation2 + $0x5c] sm:$0xf0]  ;;  %v1679_v26 = vld [vmem:[#allocation2 + $0x54] sm:$0xf]  ;;  %v1924_v29 = vor.u32 %v1684_v16, %v1490_v17 }
  0x17   : > { %v1909_v20 = vsel %vm338_vm0, %v324_v10, 0  ;;  %v1912_v21 = vsel %vm338_vm0, %v325_v11, 0  ;;  %356 = vmatpush.bf16.msra.mxu0 %v1903_v18  ;;  %370 = vmatpush.bf16.msra.mxu1 %v1906_v19  ;;  %v1466_v27 = vld [vmem:[#allocation2 + $0x60] sm:$0xf0]  ;;  %v1472_v30 = vld [vmem:[#allocation2 + $0x58] sm:$0xf]  ;;  %v1926_v40 = vor.u32 %v1681_v25, %v1464_v22  ;;  %s1933_s8 = scalar_lea.vmem %s2320_s1, %s1725_s5  ;;  %s2009_s11 = scalar_lea.vmem %s2319_s0, %s1725_s5 }
  0x18   : > { %384 = vmatpush.bf16.msra.mxu2 %v1909_v20  ;;  %398 = vmatpush.bf16.msra.mxu3 %v1912_v21  ;;  %v265_v31 = vld [vmem:[#allocation2 + $0x48] sm:$0x33]  ;;  %v264_v32 = vld [vmem:[#allocation2 + $0x40] sm:$0x33]  ;;  %v1680_v34 = vld [vmem:[#allocation2 + $0x5c] sm:$0xf]  ;;  %v1937_v41 = vor.u32 %v1679_v26, %v1466_v27 }
  0x19   : > { %v1682_v33 = vld [vmem:[#allocation2 + $0x64] sm:$0xf0]  ;;  %v1474_v35 = vld [vmem:[#allocation2 + $0x68] sm:$0xf0]  ;;  %v440_v36 = vunpack.c.l.b16 %v265_v31  ;;  %v441_v37 = vunpack.c.h.b16 %v265_v31  ;;  %v438_v38 = vunpack.c.l.b16 %v264_v32  ;;  %v439_v39 = vunpack.c.h.b16 %v264_v32  ;;  %v1946_v46 = vld [vmem:[%s1933_s8] sm:$0xff]  ;;  %s1455_s12 = sshll.u32 %s1871_s19, 1 }
  0x1a   : > { %v1941_v44 = vor.u32 %v1682_v33, %v1472_v30  ;;  %v1943_v45 = vor.u32 %v1680_v34, %v1474_v35  ;;  %v1528_v49 = vld [vmem:[#allocation2 + $0x28] sm:$0xf]  ;;  %v1677_v50 = vld [vmem:[#allocation2 + $0x34] sm:$0xf0]  ;;  %v1675_v53 = vld [vmem:[#allocation2 + $0x2c] sm:$0xf] }
  0x1b   : > { %357 = vmatpush.bf16.msra.mxu0 %v1916_v23  ;;  %371 = vmatpush.bf16.msra.mxu1 %v1918_v24  ;;  %v452_v42 = vpack.c.b16 %v440_v36, %v440_v36  ;;  %v453_v43 = vpack.c.b16 %v441_v37, %v441_v37  ;;  %v450_v47 = vpack.c.b16 %v438_v38, %v438_v38  ;;  %v1530_v54 = vld [vmem:[#allocation2 + $0x38] sm:$0xf0]  ;;  %v546_v55 = vld [vmem:[#allocation2 + $0xe8] sm:$0x33]  ;;  %v545_v56 = vld [vmem:[#allocation2 + $0xe0] sm:$0x33] }
  0x1c   : > { %385 = vmatpush.bf16.msra.mxu2 %v1922_v28  ;;  %399 = vmatpush.bf16.msra.mxu3 %v1924_v29  ;;  %v451_v48 = vpack.c.b16 %v439_v39, %v439_v39  ;;  %v1520_v57 = vld [vmem:[#allocation2 + $0x20] sm:$0xf]  ;;  %v1676_v58 = vld [vmem:[#allocation2 + $0x2c] sm:$0xf0]  ;;  %v1674_v59 = vld [vmem:[#allocation2 + $0x24] sm:$0xf]  ;;  %v596_v60 = vunpack.c.l.b16 %v546_v55  ;;  %v597_v61 = vunpack.c.h.b16 %v546_v55  ;;  %v1966_v0 = vor.u32 %v1677_v50, %v1528_v49 }
  0x1d   : > { %v1949_v51 = vsel %vm338_vm0, %v452_v42, 0  ;;  %v1952_v52 = vsel %vm338_vm0, %v453_v43, 0  ;;  %v1961_v62 = vsel %vm338_vm0, %v450_v47, 0  ;;  %v1968_v1 = vor.u32 %v1675_v53, %v1530_v54  ;;  %v1522_v2 = vld [vmem:[#allocation2 + $0x30] sm:$0xf0]  ;;  %p2299_p7 = scmp.lt.s32.totalorder %s1455_s12, 3 }
  0x1e   : > { %v1964_v63 = vsel %vm338_vm0, %v451_v48, 0  ;;  %v1512_v3 = vld [vmem:[#allocation2 + $0x8] sm:$0xf]  ;;  %v1673_v4 = vld [vmem:[#allocation2 + $0x14] sm:$0xf0]  ;;  %v594_v7 = vunpack.c.l.b16 %v545_v56  ;;  %v595_v8 = vunpack.c.h.b16 %v545_v56  ;;  %v608_v9 = vpack.c.b16 %v596_v60, %v596_v60  ;;  %v2028_v60 = vld [vmem:[%s2009_s11] sm:$0xff]  }
  0x1f   : > { %358 = vmatpush.bf16.msra.mxu0 %v1926_v40  ;;  %372 = vmatpush.bf16.msra.mxu1 %v1937_v41  ;;  %v1671_v5 = vld [vmem:[#allocation2 + $0xc] sm:$0xf]  ;;  %v1514_v6 = vld [vmem:[#allocation2 + $0x18] sm:$0xf0]  ;;  %v609_v10 = vpack.c.b16 %v597_v61, %v597_v61  ;;  %v1980_v11 = vor.u32 %v1676_v58, %v1520_v57  ;;  %v1982_v12 = vor.u32 %v1674_v59, %v1522_v2  ;;  %v1504_v13 = vld [vmem:[#allocation2] sm:$0xf] }
  0x20   : > { %386 = vmatpush.bf16.msra.mxu2 %v1941_v44  ;;  %400 = vmatpush.bf16.msra.mxu3 %v1943_v45  ;;  %v1986_v14 = vor.u32 %v1673_v4, %v1512_v3  ;;  %v1988_v15 = vor.u32 %v1671_v5, %v1514_v6  ;;  %v1672_v16 = vld [vmem:[#allocation2 + $0xc] sm:$0xf0]  ;;  %v1670_v17 = vld [vmem:[#allocation2 + $0x4] sm:$0xf]  ;;  %v1506_v22 = vld [vmem:[#allocation2 + $0x10] sm:$0xf0]  ;;  %v606_v25 = vpack.c.b16 %v594_v7, %v594_v7 }
  0x21   : > { %v607_v26 = vpack.c.b16 %v595_v8, %v595_v8  ;;  %v1564_v27 = vld [vmem:[#allocation2 + $0xc8] sm:$0xf]  ;;  %v1694_v30 = vld [vmem:[#allocation2 + $0xd4] sm:$0xf0]  ;;  %v1991_v31 = vsel %vm338_vm0, %v608_v9, 0  ;;  %v1994_v32 = vsel %vm338_vm0, %v609_v10, 0  ;;  %v1998_v35 = vor.u32 %v1672_v16, %v1504_v13 }
  0x22   : > { %1494 = vmatmul.msk.bf16.vlgmr.msra.gmra.mxu0 %vm334_vm1, %v1946_v46  ;;  %1495 = vmatmul.msk.bf16.vlgmr.msra.gmra.mxu1 %vm334_vm1, %v1946_v46  ;;  %v1692_v33 = vld [vmem:[#allocation2 + $0xcc] sm:$0xf]  ;;  %v1566_v34 = vld [vmem:[#allocation2 + $0xd8] sm:$0xf0]  ;;  %v2000_v36 = vor.u32 %v1670_v17, %v1506_v22  ;;  %v1556_v37 = vld [vmem:[#allocation2 + $0xc0] sm:$0xf]  ;;  %v2019_v49 = vor.u32 %v1694_v30, %v1564_v27 }
  0x23   : > { %1496 = vmatmul.msk.bf16.vlgmr.msra.gmra.mxu2 %vm334_vm1, %v1946_v46  ;;  %1497 = vmatmul.msk.bf16.vlgmr.msra.gmra.mxu3 %vm334_vm1, %v1946_v46  ;;  %v710_v38 = vld [vmem:[#allocation2 + $0x138] sm:$0x33]  ;;  %v1693_v39 = vld [vmem:[#allocation2 + $0xcc] sm:$0xf0]  ;;  %v1691_v42 = vld [vmem:[#allocation2 + $0xc4] sm:$0xf]  ;;  %v2021_v50 = vor.u32 %v1692_v33, %v1566_v34 }
  0x24   : > { %510 = vmatpush.bf16.msrb.mxu2 %v1949_v51  ;;  %524 = vmatpush.bf16.msrb.mxu3 %v1952_v52  ;;  %v709_v43 = vld [vmem:[#allocation2 + $0x130] sm:$0x33]  ;;  %v2014_v47 = vsel %vm338_vm0, %v606_v25, 0  ;;  %v2017_v48 = vsel %vm338_vm0, %v607_v26, 0  ;;  %v535_v54 = vld [vmem:[%s2009_s11 + $0x8] sm:$0x1]  ;;  %v759_v55 = vunpack.c.l.b16 %v710_v38  ;;  %v760_v56 = vunpack.c.h.b16 %v710_v38 }
  0x25   : > { %482 = vmatpush.bf16.msrb.mxu0 %v1961_v62  ;;  %496 = vmatpush.bf16.msrb.mxu1 %v1964_v63  ;;  %v1558_v53 = vld [vmem:[#allocation2 + $0xd0] sm:$0xf0]  ;;  %v1669_v57 = vld [vmem:[%s2009_s11] sm:$0xff]  ;;  %v1548_v58 = vld [vmem:[#allocation2 + $0xa8] sm:$0xf]  ;;  %v757_v61 = vunpack.c.l.b16 %v709_v43  ;;  %v758_v2 = vunpack.c.h.b16 %v709_v43  ;;  %v2032_v3 = vor.u32 %v1693_v39, %v1556_v37  ;;  %v552_v8 = vunpack.c.l.b16 %v535_v54  ;;  %s2369_s12 = smov (!%p2299_p7, %s1455_s12), 3 }
  0x26   : > { %v1690_v59 = vld [vmem:[#allocation2 + $0xb4] sm:$0xf0]  ;;  %v2034_v4 = vor.u32 %v1691_v42, %v1558_v53  ;;  %v1688_v5 = vld [vmem:[#allocation2 + $0xac] sm:$0xf]  ;;  %v1550_v6 = vld [vmem:[#allocation2 + $0xb8] sm:$0xf0]  ;;  %v771_v16 = vpack.c.b16 %v759_v55, %v759_v55  ;;  %v772_v17 = vpack.c.b16 %v760_v56, %v760_v56 }
  0x27   : > { %v1540_v7 = vld [vmem:[#allocation2 + $0xa0] sm:$0xf]  ;;  %v1689_v9 = vld [vmem:[#allocation2 + $0xac] sm:$0xf0]  ;;  %v1687_v10 = vld [vmem:[#allocation2 + $0xa4] sm:$0xf]  ;;  %v2038_v22 = vor.u32 %v1690_v59, %v1548_v58  ;;  %v2040_v25 = vor.u32 %v1688_v5, %v1550_v6  ;;  %v769_v26 = vpack.c.b16 %v757_v61, %v757_v61  ;;  %v770_v27 = vpack.c.b16 %v758_v2, %v758_v2 }
  0x28   : > { %511 = vmatpush.bf16.msrb.mxu2 %v1966_v0  ;;  %525 = vmatpush.bf16.msrb.mxu3 %v1968_v1  ;;  %v1542_v13 = vld [vmem:[#allocation2 + $0xb0] sm:$0xf0]  ;;  %v2044_v30 = vor.u32 %v1689_v9, %v1540_v7  ;;  %v2048_v34 = vpack.c.b16 %v552_v8, %v552_v8  ;;  %v559_v37 = vshll.u32 %v2028_v60, 16  ;;  %v1600_v38 = vld [vmem:[#allocation2 + $0x118] sm:$0xf]  ;;  %v2056_v53 = vsel %vm338_vm0, %v771_v16, 0 }
  0x29   : > { %483 = vmatpush.bf16.msrb.mxu0 %v1980_v11  ;;  %497 = vmatpush.bf16.msrb.mxu1 %v1982_v12  ;;  %v2046_v33 = vor.u32 %v1687_v10, %v1542_v13  ;;  %v1702_v39 = vld [vmem:[#allocation2 + $0x124] sm:$0xf0]  ;;  %v1700_v42 = vld [vmem:[#allocation2 + $0x11c] sm:$0xf]  ;;  %v1602_v43 = vld [vmem:[#allocation2 + $0x128] sm:$0xf0] }
  0x2a   : > { %2339 = vst [vmem:[#allocation8_spill] sm:$0xff] %v2056_v53  ;;  %v2059_v54 = vsel %vm338_vm0, %v772_v17, 0  ;;  %v1592_v55 = vld [vmem:[#allocation2 + $0x110] sm:$0xf]  ;;  %v1701_v56 = vld [vmem:[#allocation2 + $0x11c] sm:$0xf0]  ;;  %v2075_v8 = vor.u32 %v1702_v39, %v1600_v38  ;;  %v2077_v9 = vor.u32 %v1700_v42, %v1602_v43 }
  0x2b   : > { %2340 = vst [vmem:[#allocation9_spill] sm:$0xff] %v2059_v54  ;;  %v2064_v58 = vsel %vm338_vm0, %v769_v26, 0  ;;  %v2067_v59 = vsel %vm338_vm0, %v770_v27, 0  ;;  %v1699_v61 = vld [vmem:[#allocation2 + $0x114] sm:$0xf]  ;;  %v557_v2 = vshrl.u32 %v2028_v60, 16  ;;  %v2081_v60 = vor.u32 %v1701_v56, %v1592_v55 }
  0x2c   : > { %512 = vmatpush.bf16.msrb.mxu2 %v1986_v14  ;;  %526 = vmatpush.bf16.msrb.mxu3 %v1988_v15  ;;  %2341 = vst [vmem:[#allocation10_spill] sm:$0xff] %v2064_v58  ;;  %v561_v5 = vrot.slane %v559_v37, 1  ;;  %v564_v6 = vshll.u32 %v2048_v34, 16  ;;  %v1584_v7 = vld [vmem:[#allocation2 + $0xf8] sm:$0xf]  ;;  %s1668_s14 = sshll.u32 %s2369_s12, 3 }
  0x2d   : > { %484 = vmatpush.bf16.msrb.mxu0 %v1998_v35  ;;  %498 = vmatpush.bf16.msrb.mxu1 %v2000_v36  ;;  %2342 = vst [vmem:[#allocation11_spill] sm:$0xff] %v2067_v59  ;;  %v1698_v10 = vld [vmem:[#allocation2 + $0x104] sm:$0xf0]  ;;  %v1696_v13 = vld [vmem:[#allocation2 + $0xfc] sm:$0xf]  ;;  %s251_s18 = scalar_lea.vmem %s2323_s4, %s1668_s14 }
  0x2e   : > { %2343 = vst [vmem:[#allocation12_spill] sm:$0xff] %v2075_v8  ;;  %v871_v16 = vld [vmem:[#allocation2 + $0x188] sm:$0x33]  ;;  %v1576_v27 = vld [vmem:[#allocation2 + $0xf0] sm:$0xf]  ;;  %v2087_v43 = vor.u32 %v1698_v10, %v1584_v7 }
  0x2f   : > { %2344 = vst [vmem:[#allocation13_spill] sm:$0xff] %v2077_v9  ;;  %v1586_v26 = vld [vmem:[#allocation2 + $0x108] sm:$0xf0]  ;;  %v870_v37 = vld [vmem:[#allocation2 + $0x180] sm:$0x33]  ;;  %v907_v39 = vunpack.c.l.b16 %v871_v16  ;;  %v908_v42 = vunpack.c.h.b16 %v871_v16 }
  0x30   : > { %666 = vmatpush.bf16.msra.mxu2 %v1991_v31  ;;  %680 = vmatpush.bf16.msra.mxu3 %v1994_v32  ;;  %2345 = vst [vmem:[#allocation14_spill] sm:$0xff] %v2081_v60  ;;  %v1578_v38 = vld [vmem:[#allocation2 + $0x100] sm:$0xf0]  ;;  %v905_v55 = vunpack.c.l.b16 %v870_v37  ;;  %v906_v56 = vunpack.c.h.b16 %v870_v37  ;;  %vm555_vm2 = vsmask.f32 7424 }
  0x31   : > { %638 = vmatpush.bf16.msra.mxu0 %v2014_v47  ;;  %652 = vmatpush.bf16.msra.mxu1 %v2017_v48  ;;  %2347 = vst [vmem:[#allocation16_spill] sm:$0xff] %v2087_v43  ;;  %v920_v7 = vpack.c.b16 %v908_v42, %v908_v42  ;;  %v1709_v42 = vld [vmem:[#allocation2 + $0x16c] sm:$0xf0] }
  0x32   : > { %1534 = vmatmul.msk.bf16.vlgmr.msrb.gmra.mxu0 %vm334_vm1, %v1669_v57  ;;  %1535 = vmatmul.msk.bf16.vlgmr.msrb.gmra.mxu1 %vm334_vm1, %v1669_v57  ;;  %v917_v10 = vpack.c.b16 %v905_v55, %v905_v55 }
  0x33   : > { %1536 = vmatmul.msk.bf16.vlgmr.msrb.gmra.mxu2 %vm334_vm1, %v1669_v57  ;;  %1537 = vmatmul.msk.bf16.vlgmr.msrb.gmra.mxu3 %vm334_vm1, %v1669_v57  ;;  %v1594_v57 = vld [vmem:[#allocation2 + $0x120] sm:$0xf0] }
  0x34   : > { %667 = vmatpush.bf16.msra.mxu2 %v2019_v49  ;;  %681 = vmatpush.bf16.msra.mxu3 %v2021_v50  ;;  %v2083_v17 = vor.u32 %v1699_v61, %v1594_v57  ;;  %v562_v61 = vor.u32 %v561_v5, %v557_v2  ;;  %v566_v57 = vrot.slane %v564_v6, 1  ;;  %v918_v2 = vpack.c.b16 %v906_v56, %v906_v56  ;;  %v1636_v6 = vld [vmem:[#allocation2 + $0x168] sm:$0xf]  ;;  %v1707_v56 = vld [vmem:[#allocation2 + $0x164] sm:$0xf] }
  0x35   : > { %639 = vmatpush.bf16.msra.mxu0 %v2032_v3  ;;  %653 = vmatpush.bf16.msra.mxu1 %v2034_v4 }
  0x36   : > { %2346 = vst [vmem:[#allocation15_spill] sm:$0xff] %v2083_v17  ;;  %v2101_v5 = vsel %vm555_vm2, %v562_v61, %v566_v57  ;;  %v2120_v55 = vsel %vm338_vm0, %v918_v2, 0  ;;  %v1620_v2 = vld [vmem:[#allocation2 + $0x148] sm:$0xf] }
  0x38   : > { %668 = vmatpush.bf16.msra.mxu2 %v2038_v22  ;;  %682 = vmatpush.bf16.msra.mxu3 %v2040_v25 }
  0x39   : > { %640 = vmatpush.bf16.msra.mxu0 %v2044_v30  ;;  %654 = vmatpush.bf16.msra.mxu1 %v2046_v33 }
  0x3c   : > { %829 = vmatpush.bf16.msrb.mxu2 %v2056_v53  ;;  %843 = vmatpush.bf16.msrb.mxu3 %v2059_v54  ;;  %v1697_v53 = vld [vmem:[#allocation2 + $0xfc] sm:$0xf0]  ;;  %v1695_v54 = vld [vmem:[#allocation2 + $0xf4] sm:$0xf] }
  0x3d   : > { %801 = vmatpush.bf16.msrb.mxu0 %v2064_v58  ;;  %815 = vmatpush.bf16.msrb.mxu1 %v2067_v59  ;;  %v2089_v59 = vor.u32 %v1696_v13, %v1586_v26  ;;  %v2093_v58 = vor.u32 %v1697_v53, %v1576_v27  ;;  %v2095_v16 = vor.u32 %v1695_v54, %v1578_v38  ;;  %v1716_v53 = vld [vmem:[%s1933_s8] sm:$0xff]   ;;  %v1710_v13 = vld [vmem:[#allocation2 + $0x174] sm:$0xf0]  ;;  %v1708_v26 = vld [vmem:[#allocation2 + $0x16c] sm:$0xf]  ;;  %v2110_v38 = vsel %vm338_vm0, %v920_v7, 0 }
  0x3e   : > { %v1638_v27 = vld [vmem:[#allocation2 + $0x178] sm:$0xf0]  ;;  %2352 = vst [vmem:[#allocation21_spill] sm:$0xff] %v2110_v38  ;;  %v722_v57 = vshll.u32 %v1716_v53, 16  ;;  %v2130_v7 = vor.u32 %v1710_v13, %v1636_v6  ;;  %v720_v6 = vshrl.u32 %v1716_v53, 16 }
  0x3f   : > { %2348 = vst [vmem:[#allocation17_spill] sm:$0xff] %v2089_v59 }
  0x40   : > { %830 = vmatpush.bf16.msrb.mxu2 %v2075_v8  ;;  %844 = vmatpush.bf16.msrb.mxu3 %v2077_v9  ;;  %2349 = vst [vmem:[#allocation18_spill] sm:$0xff] %v2093_v58  ;;  %v699_v8 = vld [vmem:[%s1933_s8 + $0x8] sm:$0x1]  ;;  %v919_v9 = vpack.c.b16 %v907_v39, %v907_v39  ;;  %v1628_v39 = vld [vmem:[#allocation2 + $0x160] sm:$0xf]  ;;  %v724_v13 = vrot.slane %v722_v57, 1 }
  0x41   : > { %802 = vmatpush.bf16.msrb.mxu0 %v2081_v60  ;;  %816 = vmatpush.bf16.msrb.mxu1 %v2083_v17  ;;  %2350 = vst [vmem:[#allocation19_spill] sm:$0xff] %v2095_v16  ;;  %v716_v54 = vunpack.c.l.b16 %v699_v8  ;;  %v2117_v8 = vsel %vm338_vm0, %v917_v10, 0  ;;  %v2132_v10 = vor.u32 %v1708_v26, %v1638_v27  ;;  %v1612_v17 = vld [vmem:[#allocation2 + $0x140] sm:$0xf]  ;;  %v1703_v60 = vld [vmem:[#allocation2 + $0x144] sm:$0xf] }
  0x42   : > { %v2107_v37 = vsel %vm338_vm0, %v919_v9, 0  ;;  %1570 = vmatmul.msk.bf16.vlgmr.msra.gmra.mxu0 %vm334_vm1, %v2101_v5  ;;  %1571 = vmatmul.msk.bf16.vlgmr.msra.gmra.mxu1 %vm334_vm1, %v2101_v5  ;;  %v1630_v9 = vld [vmem:[#allocation2 + $0x170] sm:$0xf0] }
  0x43   : > { %2351 = vst [vmem:[#allocation20_spill] sm:$0xff] %v2107_v37  ;;  %1572 = vmatmul.msk.bf16.vlgmr.msra.gmra.mxu2 %vm334_vm1, %v2101_v5  ;;  %1573 = vmatmul.msk.bf16.vlgmr.msra.gmra.mxu3 %vm334_vm1, %v2101_v5  ;;  %v2126_v61 = vpack.c.b16 %v716_v54, %v716_v54  ;;  %v1704_v54 = vld [vmem:[#allocation2 + $0x14c] sm:$0xf] }
  0x44   : > { %831 = vmatpush.bf16.msrb.mxu2 %v2087_v43  ;;  %845 = vmatpush.bf16.msrb.mxu3 %v2089_v59  ;;  %v2138_v59 = vor.u32 %v1707_v56, %v1630_v9  ;;  %v1622_v43 = vld [vmem:[#allocation2 + $0x158] sm:$0xf0]  ;;  %v725_v56 = vor.u32 %v724_v13, %v720_v6 }
  0x45   : > { %803 = vmatpush.bf16.msrb.mxu0 %v2093_v58  ;;  %817 = vmatpush.bf16.msrb.mxu1 %v2095_v16  ;;  %v1706_v16 = vld [vmem:[#allocation2 + $0x154] sm:$0xf0]  ;;  %v2136_v58 = vor.u32 %v1709_v42, %v1628_v39  ;;  %v727_v26 = vshll.u32 %v2126_v61, 16  ;;  %v2145_v39 = vor.u32 %v1704_v54, %v1622_v43 }
  0x46   : > { %v2143_v27 = vor.u32 %v1706_v16, %v1620_v2 }
  0x47   : > { %v729_v9 = vrot.slane %v727_v26, 1 }
  0x48   : > { %977 = vmatpush.bf16.msra.mxu2 %v2107_v37  ;;  %991 = vmatpush.bf16.msra.mxu3 %v2110_v38  ;;  %v1705_v37 = vld [vmem:[#allocation2 + $0x14c] sm:$0xf0]  ;;  %v1614_v38 = vld [vmem:[#allocation2 + $0x150] sm:$0xf0] }
  0x49   : > { %949 = vmatpush.bf16.msra.mxu0 %v2117_v8  ;;  %963 = vmatpush.bf16.msra.mxu1 %v2120_v55  ;;  %v2149_v42 = vor.u32 %v1705_v37, %v1612_v17  ;;  %v2151_v53 = vor.u32 %v1703_v60, %v1614_v38  ;;  %v2158_v43 = vsel %vm555_vm2, %v725_v56, %v729_v9  ;;  %v1719_v60 = vld [vmem:[%s2009_s11] sm:$0xf0]  ;;  %v1720_v17 = vld [vmem:[%s2009_s11] sm:$0xe]  ;;  %v877_v38 = vrot.slane %v2048_v34, 1 }
  0x4a   : > { %v1721_v16 = vor.u32 %v1720_v17, %v1719_v60 }
  0x4c   : > { %978 = vmatpush.bf16.msra.mxu2 %v2130_v7  ;;  %992 = vmatpush.bf16.msra.mxu3 %v2132_v10  ;;  %v876_v37 = vrot.slane %v1721_v16, 1 }
  0x4d   : > { %950 = vmatpush.bf16.msra.mxu0 %v2136_v58  ;;  %964 = vmatpush.bf16.msra.mxu1 %v2138_v59 }
  0x50   : > { %979 = vmatpush.bf16.msra.mxu2 %v2143_v27  ;;  %993 = vmatpush.bf16.msra.mxu3 %v2145_v39 }
  0x51   : > { %951 = vmatpush.bf16.msra.mxu0 %v2149_v42  ;;  %965 = vmatpush.bf16.msra.mxu1 %v2151_v53 }
  0x52   : > { %1606 = vmatmul.msk.bf16.vlgmr.msrb.gmra.mxu0 %vm334_vm1, %v2158_v43  ;;  %1607 = vmatmul.msk.bf16.vlgmr.msrb.gmra.mxu1 %vm334_vm1, %v2158_v43 }
  0x53   : > { %1608 = vmatmul.msk.bf16.vlgmr.msrb.gmra.mxu2 %vm334_vm1, %v2158_v43  ;;  %1609 = vmatmul.msk.bf16.vlgmr.msrb.gmra.mxu3 %vm334_vm1, %v2158_v43 }
  0x54   : > { %1041 = vmatpush.bf16.msrb.mxu2 %v1909_v20  ;;  %1055 = vmatpush.bf16.msrb.mxu3 %v1912_v21  ;;  %v2354_v20 = vld [vmem:[#allocation9_spill] sm:$0xff]  ;;  %v2355_v21 = vld [vmem:[#allocation10_spill] sm:$0xff] }
  0x55   : > { %1013 = vmatpush.bf16.msrb.mxu0 %v1903_v18  ;;  %1027 = vmatpush.bf16.msrb.mxu1 %v1906_v19  ;;  %v2184_v18 = vsel %vm875_vm3, %v876_v37, %v877_v38  ;;  %v2353_v19 = vld [vmem:[#allocation8_spill] sm:$0xff] }
  0x58   : > { %1042 = vmatpush.bf16.msrb.mxu2 %v1922_v28  ;;  %1056 = vmatpush.bf16.msrb.mxu3 %v1924_v29  ;;  %v2358_v28 = vld [vmem:[#allocation13_spill] sm:$0xff]  ;;  %v2359_v29 = vld [vmem:[#allocation14_spill] sm:$0xff] }
  0x59   : > { %1014 = vmatpush.bf16.msrb.mxu0 %v1916_v23  ;;  %1028 = vmatpush.bf16.msrb.mxu1 %v1918_v24  ;;  %v2356_v23 = vld [vmem:[#allocation11_spill] sm:$0xff]  ;;  %v2357_v24 = vld [vmem:[#allocation12_spill] sm:$0xff] }
  0x5c   : > { %1043 = vmatpush.bf16.msrb.mxu2 %v1941_v44  ;;  %1057 = vmatpush.bf16.msrb.mxu3 %v1943_v45  ;;  %v2362_v44 = vld [vmem:[#allocation17_spill] sm:$0xff]  ;;  %v2363_v45 = vld [vmem:[#allocation18_spill] sm:$0xff] }
  0x5d   : > { %1015 = vmatpush.bf16.msrb.mxu0 %v1926_v40  ;;  %1029 = vmatpush.bf16.msrb.mxu1 %v1937_v41  ;;  %v2360_v40 = vld [vmem:[#allocation15_spill] sm:$0xff]  ;;  %v2361_v41 = vld [vmem:[#allocation16_spill] sm:$0xff] }
  0x62   : > { %1642 = vmatmul.msk.bf16.vlgmr.msra.gmra.mxu0 %vm334_vm1, %v2184_v18  ;;  %1643 = vmatmul.msk.bf16.vlgmr.msra.gmra.mxu1 %vm334_vm1, %v2184_v18 }
  0x63   : > { %1644 = vmatmul.msk.bf16.vlgmr.msra.gmra.mxu2 %vm334_vm1, %v2184_v18  ;;  %1645 = vmatmul.msk.bf16.vlgmr.msra.gmra.mxu3 %vm334_vm1, %v2184_v18 }
  0x64   : > { %1097 = vmatpush.bf16.msra.mxu2 %v1949_v51  ;;  %1111 = vmatpush.bf16.msra.mxu3 %v1952_v52  ;;  %v2365_v51 = vld [vmem:[#allocation20_spill] sm:$0xff]  ;;  %v2366_v52 = vld [vmem:[#allocation21_spill] sm:$0xff] }
  0x65   : > { %1069 = vmatpush.bf16.msra.mxu0 %v1961_v62  ;;  %1083 = vmatpush.bf16.msra.mxu1 %v1964_v63 }
  0x68   : > { %1098 = vmatpush.bf16.msra.mxu2 %v1966_v0  ;;  %1112 = vmatpush.bf16.msra.mxu3 %v1968_v1  ;;  %v1722_v0 = vld [vmem:[%s1933_s8] sm:$0xf0]  ;;  %v1723_v1 = vld [vmem:[%s1933_s8] sm:$0xe] }
  0x69   : > { %1070 = vmatpush.bf16.msra.mxu0 %v1980_v11  ;;  %1084 = vmatpush.bf16.msra.mxu1 %v1982_v12 }
  0x6c   : > { %1099 = vmatpush.bf16.msra.mxu2 %v1986_v14  ;;  %1113 = vmatpush.bf16.msra.mxu3 %v1988_v15 }
  0x6d   : > { %1071 = vmatpush.bf16.msra.mxu0 %v1998_v35  ;;  %1085 = vmatpush.bf16.msra.mxu1 %v2000_v36  ;;  %v1253_v35 = vrot.slane %v2126_v61, 1 }
  0x72   : > { %1646 = vmatmul.msk.bf16.vlgmr.msrb.gmra.mxu0 %vm334_vm1, %v2101_v5  ;;  %1647 = vmatmul.msk.bf16.vlgmr.msrb.gmra.mxu1 %vm334_vm1, %v2101_v5 }
  0x73   : > { %1648 = vmatmul.msk.bf16.vlgmr.msrb.gmra.mxu2 %vm334_vm1, %v2101_v5  ;;  %1649 = vmatmul.msk.bf16.vlgmr.msrb.gmra.mxu3 %vm334_vm1, %v2101_v5 }
  0x74   : > { %1153 = vmatpush.bf16.msrb.mxu2 %v1991_v31  ;;  %1167 = vmatpush.bf16.msrb.mxu3 %v1994_v32  ;;  %v1724_v31 = vor.u32 %v1723_v1, %v1722_v0 }
  0x75   : > { %1125 = vmatpush.bf16.msrb.mxu0 %v2014_v47  ;;  %1139 = vmatpush.bf16.msrb.mxu1 %v2017_v48 }
  0x76   : > { %v1252_v32 = vrot.slane %v1724_v31, 1 }
  0x78   : > { %1154 = vmatpush.bf16.msrb.mxu2 %v2019_v49  ;;  %1168 = vmatpush.bf16.msrb.mxu3 %v2021_v50  ;;  %v1254_v50 = vsel %vm875_vm3, %v1252_v32, %v1253_v35 }
  0x79   : > { %1126 = vmatpush.bf16.msrb.mxu0 %v2032_v3  ;;  %1140 = vmatpush.bf16.msrb.mxu1 %v2034_v4 }
  0x7c   : > { %1155 = vmatpush.bf16.msrb.mxu2 %v2038_v22  ;;  %1169 = vmatpush.bf16.msrb.mxu3 %v2040_v25 }
  0x7d   : > { %1127 = vmatpush.bf16.msrb.mxu0 %v2044_v30  ;;  %1141 = vmatpush.bf16.msrb.mxu1 %v2046_v33 }
  0x82   : > { %1650 = vmatmul.msk.bf16.vlgmr.msra.gmra.mxu0 %vm334_vm1, %v1946_v46  ;;  %1651 = vmatmul.msk.bf16.vlgmr.msra.gmra.mxu1 %vm334_vm1, %v1946_v46 }
  0x83   : > { %1652 = vmatmul.msk.bf16.vlgmr.msra.gmra.mxu2 %vm334_vm1, %v1946_v46  ;;  %1653 = vmatmul.msk.bf16.vlgmr.msra.gmra.mxu3 %vm334_vm1, %v1946_v46  ;;  %v2364_v46 = vld [vmem:[#allocation19_spill] sm:$0xff] }
  0x84   : > { %1217 = vmatpush.bf16.msra.mxu2 %v2353_v19  ;;  %1231 = vmatpush.bf16.msra.mxu3 %v2354_v20 }
  0x85   : > { %1189 = vmatpush.bf16.msra.mxu0 %v2355_v21  ;;  %1203 = vmatpush.bf16.msra.mxu1 %v2356_v23 }
  0x88   : > { %1218 = vmatpush.bf16.msra.mxu2 %v2357_v24  ;;  %1232 = vmatpush.bf16.msra.mxu3 %v2358_v28 }
  0x89   : > { %1190 = vmatpush.bf16.msra.mxu0 %v2359_v29  ;;  %1204 = vmatpush.bf16.msra.mxu1 %v2360_v40 }
  0x8c   : > { %1219 = vmatpush.bf16.msra.mxu2 %v2361_v41  ;;  %1233 = vmatpush.bf16.msra.mxu3 %v2362_v44 }
  0x8d   : > { %1191 = vmatpush.bf16.msra.mxu0 %v2363_v45  ;;  %1205 = vmatpush.bf16.msra.mxu1 %v2364_v46 }
  0x92   : > { %1654 = vmatmul.msk.bf16.vlgmr.msrb.gmra.mxu0 %vm334_vm1, %v2158_v43  ;;  %1655 = vmatmul.msk.bf16.vlgmr.msrb.gmra.mxu1 %vm334_vm1, %v2158_v43 }
  0x93   : > { %1656 = vmatmul.msk.bf16.vlgmr.msrb.gmra.mxu2 %vm334_vm1, %v2158_v43  ;;  %1657 = vmatmul.msk.bf16.vlgmr.msrb.gmra.mxu3 %vm334_vm1, %v2158_v43 }
  0x94   : > { %1291 = vmatpush.bf16.msrb.mxu2 %v2365_v51  ;;  %1305 = vmatpush.bf16.msrb.mxu3 %v2366_v52 }
  0x95   : > { %1263 = vmatpush.bf16.msrb.mxu0 %v2117_v8  ;;  %1277 = vmatpush.bf16.msrb.mxu1 %v2120_v55 }
  0x98   : > { %1292 = vmatpush.bf16.msrb.mxu2 %v2130_v7  ;;  %1306 = vmatpush.bf16.msrb.mxu3 %v2132_v10 }
  0x99   : > { %1264 = vmatpush.bf16.msrb.mxu0 %v2136_v58  ;;  %1278 = vmatpush.bf16.msrb.mxu1 %v2138_v59 }
  0x9c   : > { %1293 = vmatpush.bf16.msrb.mxu2 %v2143_v27  ;;  %1307 = vmatpush.bf16.msrb.mxu3 %v2145_v39 }
  0x9d   : > { %1265 = vmatpush.bf16.msrb.mxu0 %v2149_v42  ;;  %1279 = vmatpush.bf16.msrb.mxu1 %v2151_v53 }
  0x9f   : > { %v360_v62 = vpop.f32.mrf.mxu0  ;;  %v374_v63 = vpop.f32.mrf.mxu1 }
  0xa2   : > { %1658 = vmatmul.msk.bf16.vlgmr.msra.gmra.mxu0 %vm334_vm1, %v2184_v18  ;;  %1659 = vmatmul.msk.bf16.vlgmr.msra.gmra.mxu1 %vm334_vm1, %v2184_v18 }
  0xa3   : > { %1660 = vmatmul.msk.bf16.vlgmr.msra.gmra.mxu2 %vm334_vm1, %v2184_v18  ;;  %1661 = vmatmul.msk.bf16.vlgmr.msra.gmra.mxu3 %vm334_vm1, %v2184_v18 }
  0xa6   : > { %v388_v11 = vpop.f32.mrf.mxu2  ;;  %v402_v12 = vpop.f32.mrf.mxu3 }
  0xa7   : > { %v362_v14 = vpop.f32.mrf.mxu0  ;;  %v376_v15 = vpop.f32.mrf.mxu1 }
  0xae   : > { %v390_v36 = vpop.f32.mrf.mxu2  ;;  %v404_v47 = vpop.f32.mrf.mxu3 }
  0xaf   : > { %v486_v48 = vpop.f32.mrf.mxu0  ;;  %v500_v49 = vpop.f32.mrf.mxu1 }
  0xb0   : > { %v487_v3 = vadd.f32 %v486_v48, %v360_v62  ;;  %v501_v4 = vadd.f32 %v500_v49, %v374_v63 }
  0xb2   : > { %1662 = vmatmul.msk.bf16.vlgmr.msrb.gmra.mxu0 %vm334_vm1, %v1254_v50  ;;  %1663 = vmatmul.msk.bf16.vlgmr.msrb.gmra.mxu1 %vm334_vm1, %v1254_v50 }
  0xb3   : > { %1664 = vmatmul.msk.bf16.vlgmr.msrb.gmra.mxu2 %vm334_vm1, %v1254_v50  ;;  %1665 = vmatmul.msk.bf16.vlgmr.msrb.gmra.mxu3 %vm334_vm1, %v1254_v50 }
  0xb6   : > { %v514_v22 = vpop.f32.mrf.mxu2  ;;  %v528_v25 = vpop.f32.mrf.mxu3 }
  0xb7   : > { %v515_v30 = vadd.f32 %v514_v22, %v388_v11  ;;  %v529_v33 = vadd.f32 %v528_v25, %v402_v12  ;;  %v488_v34 = vpop.f32.mrf.mxu0  ;;  %v502_v58 = vpop.f32.mrf.mxu1 }
  0xb8   : > { %v489_v59 = vadd.f32 %v488_v34, %v362_v14  ;;  %v503_v5 = vadd.f32 %v502_v58, %v376_v15 }
  0xbe   : > { %v516_v8 = vpop.f32.mrf.mxu2  ;;  %v530_v55 = vpop.f32.mrf.mxu3 }
  0xbf   : > { %v517_v61 = vadd.f32 %v516_v8, %v390_v36  ;;  %v531_v57 = vadd.f32 %v530_v55, %v404_v47  ;;  %v642_v7 = vpop.f32.mrf.mxu0  ;;  %v656_v10 = vpop.f32.mrf.mxu1 }
  0xc0   : > { %v689_v2 = vadd.f32 %v642_v7, %v487_v3  ;;  %v690_v54 = vadd.f32 %v656_v10, %v501_v4 }
  0xc6   : > { %v670_v6 = vpop.f32.mrf.mxu2  ;;  %v684_v13 = vpop.f32.mrf.mxu3 }
  0xc7   : > { %v691_v26 = vadd.f32 %v670_v6, %v515_v30  ;;  %v692_v27 = vadd.f32 %v684_v13, %v529_v33  ;;  %v644_v39 = vpop.f32.mrf.mxu0  ;;  %v658_v42 = vpop.f32.mrf.mxu1 }
  0xc8   : > { %v693_v53 = vadd.f32 %v644_v39, %v489_v59  ;;  %v694_v56 = vadd.f32 %v658_v42, %v503_v5 }
  0xce   : > { %v672_v9 = vpop.f32.mrf.mxu2  ;;  %v686_v43 = vpop.f32.mrf.mxu3 }
  0xcf   : > { %v695_v60 = vadd.f32 %v672_v9, %v517_v61  ;;  %v696_v17 = vadd.f32 %v686_v43, %v531_v57  ;;  %v805_v16 = vpop.f32.mrf.mxu0  ;;  %v819_v37 = vpop.f32.mrf.mxu1 }
  0xd0   : > { %v852_v38 = vadd.f32 %v805_v16, %v689_v2  ;;  %v853_v18 = vadd.f32 %v819_v37, %v690_v54 }
  0xd6   : > { %v833_v19 = vpop.f32.mrf.mxu2  ;;  %v847_v20 = vpop.f32.mrf.mxu3 }
  0xd7   : > { %v854_v21 = vadd.f32 %v833_v19, %v691_v26  ;;  %v855_v23 = vadd.f32 %v847_v20, %v692_v27  ;;  %v807_v24 = vpop.f32.mrf.mxu0  ;;  %v821_v28 = vpop.f32.mrf.mxu1 }
  0xd8   : > { %v856_v29 = vadd.f32 %v807_v24, %v693_v53  ;;  %v857_v40 = vadd.f32 %v821_v28, %v694_v56 }
  0xde   : > { %v835_v41 = vpop.f32.mrf.mxu2  ;;  %v849_v44 = vpop.f32.mrf.mxu3 }
  0xdf   : > { %v858_v45 = vadd.f32 %v835_v41, %v695_v60  ;;  %v859_v46 = vadd.f32 %v849_v44, %v696_v17  ;;  %v953_v51 = vpop.f32.mrf.mxu0  ;;  %v967_v52 = vpop.f32.mrf.mxu1 }
  0xe0   : > { %v2282_v62 = vadd.f32 %v953_v51, %v852_v38  ;;  %v2284_v63 = vadd.f32 %v967_v52, %v853_v18  ;;  %v1334_v51 = vld [vmem:[#allocation4] sm:$0x3] }
  0xe6   : > { %v981_v0 = vpop.f32.mrf.mxu2  ;;  %v995_v1 = vpop.f32.mrf.mxu3 }
  0xe7   : > { %v2286_v11 = vadd.f32 %v981_v0, %v854_v21  ;;  %v2288_v12 = vadd.f32 %v995_v1, %v855_v23  ;;  %v955_v14 = vpop.f32.mrf.mxu0  ;;  %v969_v15 = vpop.f32.mrf.mxu1 }
  0xe8   : > { %v2290_v31 = vadd.f32 %v955_v14, %v856_v29  ;;  %v2292_v32 = vadd.f32 %v969_v15, %v857_v40 }
  0xee   : > { %v983_v35 = vpop.f32.mrf.mxu2  ;;  %v997_v36 = vpop.f32.mrf.mxu3 }
  0xef   : > { %v2294_v47 = vadd.f32 %v983_v35, %v858_v45  ;;  %v2296_v48 = vadd.f32 %v997_v36, %v859_v46  ;;  %v1017_v49 = vpop.f32.mrf.mxu0  ;;  %v1031_v50 = vpop.f32.mrf.mxu1 }
  0xf6   : > { %v1045_v3 = vpop.f32.mrf.mxu2  ;;  %v1059_v4 = vpop.f32.mrf.mxu3 }
  0xf7   : > { %v1019_v22 = vpop.f32.mrf.mxu0  ;;  %v1033_v25 = vpop.f32.mrf.mxu1 }
  0xfe   : > { %v1047_v30 = vpop.f32.mrf.mxu2  ;;  %v1061_v33 = vpop.f32.mrf.mxu3 }
  0xff   : > { %v1073_v34 = vpop.f32.mrf.mxu0  ;;  %v1087_v58 = vpop.f32.mrf.mxu1 }
 0x100   : > { %v1074_v16 = vadd.f32 %v1073_v34, %v1017_v49  ;;  %v1088_v37 = vadd.f32 %v1087_v58, %v1031_v50  ;;  %v1337_v34 = vperm.slane %v1334_v51, 1 }
 0x106   : > { %v1101_v59 = vpop.f32.mrf.mxu2  ;;  %v1115_v5 = vpop.f32.mrf.mxu3 }
 0x107   : > { %v1075_v8 = vpop.f32.mrf.mxu0  ;;  %v1089_v55 = vpop.f32.mrf.mxu1  ;;  %v1102_v19 = vadd.f32 %v1101_v59, %v1045_v3  ;;  %v1116_v20 = vadd.f32 %v1115_v5, %v1059_v4  ;;  %v1336_v4 = vperm.slane %v1334_v51, 0 }
 0x108   : > { %v1076_v52 = vadd.f32 %v1075_v8, %v1019_v22  ;;  %v1090_v0 = vadd.f32 %v1089_v55, %v1033_v25 }
 0x10e   : > { %v1103_v61 = vpop.f32.mrf.mxu2  ;;  %v1117_v57 = vpop.f32.mrf.mxu3 }
 0x10f   : > { %v1129_v7 = vpop.f32.mrf.mxu0  ;;  %v1143_v10 = vpop.f32.mrf.mxu1  ;;  %v1104_v15 = vadd.f32 %v1103_v61, %v1047_v30  ;;  %v1118_v35 = vadd.f32 %v1117_v57, %v1061_v33 }
 0x110   : > { %v1176_v21 = vadd.f32 %v1129_v7, %v1074_v16  ;;  %v1177_v23 = vadd.f32 %v1143_v10, %v1088_v37 }
 0x116   : > { %v1157_v2 = vpop.f32.mrf.mxu2  ;;  %v1171_v54 = vpop.f32.mrf.mxu3 }
 0x117   : > { %v1131_v6 = vpop.f32.mrf.mxu0  ;;  %v1145_v13 = vpop.f32.mrf.mxu1  ;;  %v1178_v24 = vadd.f32 %v1157_v2, %v1102_v19  ;;  %v1179_v28 = vadd.f32 %v1171_v54, %v1116_v20 }
 0x118   : > { %v1180_v50 = vadd.f32 %v1131_v6, %v1076_v52  ;;  %v1181_v3 = vadd.f32 %v1145_v13, %v1090_v0 }
 0x11e   : > { %v1159_v26 = vpop.f32.mrf.mxu2  ;;  %v1173_v27 = vpop.f32.mrf.mxu3 }
 0x11f   : > { %v1193_v39 = vpop.f32.mrf.mxu0  ;;  %v1207_v42 = vpop.f32.mrf.mxu1  ;;  %v1182_v8 = vadd.f32 %v1159_v26, %v1104_v15  ;;  %v1183_v55 = vadd.f32 %v1173_v27, %v1118_v35 }
 0x120   : > { %v1240_v29 = vadd.f32 %v1193_v39, %v1176_v21  ;;  %v1241_v40 = vadd.f32 %v1207_v42, %v1177_v23 }
 0x126   : > { %v1221_v53 = vpop.f32.mrf.mxu2  ;;  %v1235_v56 = vpop.f32.mrf.mxu3 }
 0x127   : > { %v1195_v9 = vpop.f32.mrf.mxu0  ;;  %v1209_v43 = vpop.f32.mrf.mxu1  ;;  %v1242_v41 = vadd.f32 %v1221_v53, %v1178_v24  ;;  %v1243_v44 = vadd.f32 %v1235_v56, %v1179_v28 }
 0x128   : > { %v1244_v30 = vadd.f32 %v1195_v9, %v1180_v50  ;;  %v1245_v61 = vadd.f32 %v1209_v43, %v1181_v3 }
 0x12e   : > { %v1223_v60 = vpop.f32.mrf.mxu2  ;;  %v1237_v17 = vpop.f32.mrf.mxu3 }
 0x12f   : > { %v1267_v38 = vpop.f32.mrf.mxu0  ;;  %v1281_v18 = vpop.f32.mrf.mxu1  ;;  %v1246_v10 = vadd.f32 %v1223_v60, %v1182_v8  ;;  %v1247_v54 = vadd.f32 %v1237_v17, %v1183_v55 }
 0x130   : > { %v1314_v45 = vadd.f32 %v1267_v38, %v1240_v29  ;;  %v1315_v46 = vadd.f32 %v1281_v18, %v1241_v40 }
 0x132   : > { %v1322_v58 = vmax.f32 %v2282_v62, %v1314_v45  ;;  %v1323_v59 = vmax.f32 %v2284_v63, %v1315_v46 }
 0x136   : > { %v1295_v1 = vpop.f32.mrf.mxu2  ;;  %v1309_v14 = vpop.f32.mrf.mxu3 }
 0x137   : > { %v1316_v36 = vadd.f32 %v1295_v1, %v1242_v41  ;;  %v1317_v49 = vadd.f32 %v1309_v14, %v1243_v44  ;;  %v1269_v25 = vpop.f32.mrf.mxu0  ;;  %v1283_v33 = vpop.f32.mrf.mxu1 }
 0x138   : > { %v1318_v2 = vadd.f32 %v1269_v25, %v1244_v30  ;;  %v1319_v6 = vadd.f32 %v1283_v33, %v1245_v61 }
 0x139   : > { %v1324_v5 = vmax.f32 %v2286_v11, %v1316_v36  ;;  %v1325_v22 = vmax.f32 %v2288_v12, %v1317_v49 }
 0x13a   : > { %v1326_v26 = vmax.f32 %v2290_v31, %v1318_v2  ;;  %v1327_v56 = vmax.f32 %v2292_v32, %v1319_v6 }
 0x13b   : > { %v1330_v57 = vmax.f32 %v1322_v58, %v1324_v5  ;;  %v1331_v7 = vmax.f32 %v1323_v59, %v1325_v22 }
 0x13d   : > { %v1340_v62 = vadd.f32 %v1336_v4, %v1330_v57  ;;  %v1341_v63 = vadd.f32 %v1337_v34, %v1331_v7 }
 0x13e   : > { %v1297_v11 = vpop.f32.mrf.mxu2  ;;  %v1311_v13 = vpop.f32.mrf.mxu3 }
 0x13f   : > { %v1344_v39 = vmax.f32 %v1340_v62, 0.0  ;;  %v1345_v42 = vmax.f32 %v1341_v63, 0.0  ;;  %v1320_v12 = vadd.f32 %v1297_v11, %v1246_v10  ;;  %v1321_v53 = vadd.f32 %v1311_v13, %v1247_v54 }
 0x141   : > { %v1348_v27 = vpack.c.bf16 %v1345_v42, %v1344_v39  ;;  %v1328_v9 = vmax.f32 %v2294_v47, %v1320_v12  ;;  %v1329_v43 = vmax.f32 %v2296_v48, %v1321_v53 }
 0x143   : > { %1350 = vst [vmem:[%s251_s18] sm:$0xff] %v1348_v27  ;;  %v1332_v60 = vmax.f32 %v1326_v26, %v1328_v9  ;;  %v1333_v17 = vmax.f32 %v1327_v56, %v1329_v43 }
 0x145   : > { %v1342_v16 = vadd.f32 %v1336_v4, %v1332_v60  ;;  %v1343_v37 = vadd.f32 %v1337_v34, %v1333_v17 }
 0x147   : > { %v1346_v38 = vmax.f32 %v1342_v16, 0.0  ;;  %v1347_v18 = vmax.f32 %v1343_v37, 0.0 }
 0x149   : > { %v1349_v19 = vpack.c.bf16 %v1347_v18, %v1346_v38 }
 0x14b   : > { %1351 = vst [vmem:[%s251_s18 + $0x8] sm:$0xff] %v1349_v19 }
 0x14c PF: > { %s16_s15 = sadd.s32 1, %s1831_s15  }
 0x14d   : > { %p13_p8 = scmp.ge.s32.totalorder %s16_s15, 4  }
 0x14f   :  { %15 = sbr.rel (!%p13_p8) target bundleno = 2 (0x2), region = 82 }
 0x154   :  { %1376 = vsyncpa [#allocation3], 1 }
 0x155   :  { %1378 = vsyncpa [#allocation3 + $0x1], 1 }
 0x156   :  { %1379 = vsyncpa [#allocation5], 1 }

// kernel: forward.5
= control target key start
LH: loop header
LB: loop body
LE: loop exit
PB: predicated region body
PF: predicated region fallthrough
CT: control target
= control target key end

     0   :  { %s2561_s1 = inlined_call_operand.vmem [shape: bf16[2048,128], index: 1, kind: input, shape index: {}]   ;;  %s2562_s2 = inlined_call_operand.vmem [shape: f32[1,128], index: 2, kind: input, shape index: {}]   ;;  %s2563_s0 = inlined_call_operand.vmem [shape: bf16[8,2048], index: 0, kind: input, shape index: {}]   ;;  %s2564_s4 = inlined_call_operand.vmem [shape: f32[1,128], index: 4, kind: input, shape index: {}]   ;;  %s2565_s3 = inlined_call_operand.vmem [shape: bf16[128,128], index: 3, kind: input, shape index: {}]   ;;  %s2566_s5 = inlined_call_operand.vmem [shape: f32[8,128], index: 5, kind: output, shape index: {}]  }
   0x1   :  { %v1959_v0 = vld [vmem:[%s2561_s1 + $0x38] sm:$0xff]  ;;  %v1958_v4 = vld [vmem:[%s2561_s1 + $0x30] sm:$0xff]  ;;  %v1957_v8 = vld [vmem:[%s2561_s1 + $0x28] sm:$0xff] }
   0x2   :  { %v1967_v1 = vld [vmem:[%s2561_s1 + $0x78] sm:$0xff]  ;;  %1112 = vmatpush.bf16.msra.mxu0 %v1959_v0  ;;  %v1966_v5 = vld [vmem:[%s2561_s1 + $0x70] sm:$0xff]  ;;  %v1965_v9 = vld [vmem:[%s2561_s1 + $0x68] sm:$0xff] }
   0x3   :  { %v1975_v2 = vld [vmem:[%s2561_s1 + $0xb8] sm:$0xff]  ;;  %1125 = vmatpush.bf16.msra.mxu1 %v1967_v1  ;;  %v1974_v6 = vld [vmem:[%s2561_s1 + $0xb0] sm:$0xff]  ;;  %v1973_v10 = vld [vmem:[%s2561_s1 + $0xa8] sm:$0xff] }
   0x4   :  { %v1983_v3 = vld [vmem:[%s2561_s1 + $0xf8] sm:$0xff]  ;;  %1138 = vmatpush.bf16.msra.mxu2 %v1975_v2  ;;  %v1982_v7 = vld [vmem:[%s2561_s1 + $0xf0] sm:$0xff]  ;;  %v1981_v11 = vld [vmem:[%s2561_s1 + $0xe8] sm:$0xff] }
   0x5   :  { %1151 = vmatpush.bf16.msra.mxu3 %v1983_v3  ;;  %v1956_v12 = vld [vmem:[%s2561_s1 + $0x20] sm:$0xff]  ;;  %v1955_v16 = vld [vmem:[%s2561_s1 + $0x18] sm:$0xff]  ;;  %v1954_v20 = vld [vmem:[%s2561_s1 + $0x10] sm:$0xff] }
   0x6   :  { %1113 = vmatpush.bf16.msra.mxu0 %v1958_v4  ;;  %v1964_v13 = vld [vmem:[%s2561_s1 + $0x60] sm:$0xff]  ;;  %v1963_v17 = vld [vmem:[%s2561_s1 + $0x58] sm:$0xff]  ;;  %v1962_v21 = vld [vmem:[%s2561_s1 + $0x50] sm:$0xff] }
   0x7   :  { %1126 = vmatpush.bf16.msra.mxu1 %v1966_v5  ;;  %v1972_v14 = vld [vmem:[%s2561_s1 + $0xa0] sm:$0xff]  ;;  %v1971_v18 = vld [vmem:[%s2561_s1 + $0x98] sm:$0xff]  ;;  %v1970_v22 = vld [vmem:[%s2561_s1 + $0x90] sm:$0xff] }
   0x8   :  { %1139 = vmatpush.bf16.msra.mxu2 %v1974_v6  ;;  %v1980_v15 = vld [vmem:[%s2561_s1 + $0xe0] sm:$0xff]  ;;  %v1979_v19 = vld [vmem:[%s2561_s1 + $0xd8] sm:$0xff]  ;;  %v1978_v23 = vld [vmem:[%s2561_s1 + $0xd0] sm:$0xff] }
   0x9   :  { %1152 = vmatpush.bf16.msra.mxu3 %v1982_v7  ;;  %v1953_v24 = vld [vmem:[%s2561_s1 + $0x8] sm:$0xff]  ;;  %v20_v29 = vld [vmem:[%s2563_s0] sm:$0xff]  ;;  %v1991_v38 = vld [vmem:[%s2561_s1 + $0x138] sm:$0xff] }
   0xa   :  { %1114 = vmatpush.bf16.msra.mxu0 %v1957_v8  ;;  %v1961_v25 = vld [vmem:[%s2561_s1 + $0x48] sm:$0xff]  ;;  %v1952_v30 = vld [vmem:[%s2561_s1] sm:$0xff]  ;;  %v296_v33 = vunpack.c.l.b16 %v20_v29  ;;  %v297_v37 = vunpack.c.h.b16 %v20_v29  ;;  %v1999_v39 = vld [vmem:[%s2561_s1 + $0x178] sm:$0xff] }
   0xb   :  { %1127 = vmatpush.bf16.msra.mxu1 %v1965_v9  ;;  %v1969_v26 = vld [vmem:[%s2561_s1 + $0x88] sm:$0xff]  ;;  %v1960_v31 = vld [vmem:[%s2561_s1 + $0x40] sm:$0xff]  ;;  %v2007_v40 = vld [vmem:[%s2561_s1 + $0x1b8] sm:$0xff] }
   0xc   :  { %1140 = vmatpush.bf16.msra.mxu2 %v1973_v10  ;;  %v1977_v27 = vld [vmem:[%s2561_s1 + $0xc8] sm:$0xff]  ;;  %v1968_v34 = vld [vmem:[%s2561_s1 + $0x80] sm:$0xff]  ;;  %v2015_v41 = vld [vmem:[%s2561_s1 + $0x1f8] sm:$0xff]  ;;  %v312_v43 = vpack.c.b16 %v296_v33, %v296_v33  ;;  %v313_v45 = vpack.c.b16 %v297_v37, %v297_v37 }
   0xd   :  { %1153 = vmatpush.bf16.msra.mxu3 %v1981_v11  ;;  %v21_v28 = vld [vmem:[%s2563_s0 + $0x8] sm:$0xff]  ;;  %v1976_v35 = vld [vmem:[%s2561_s1 + $0xc0] sm:$0xff]  ;;  %v1990_v46 = vld [vmem:[%s2561_s1 + $0x130] sm:$0xff] }
   0xe   :  { %1115 = vmatpush.bf16.msra.mxu0 %v1956_v12  ;;  %v298_v32 = vunpack.c.l.b16 %v21_v28  ;;  %v299_v36 = vunpack.c.h.b16 %v21_v28  ;;  %v1998_v47 = vld [vmem:[%s2561_s1 + $0x170] sm:$0xff]  ;;  %v1989_v50 = vld [vmem:[%s2561_s1 + $0x128] sm:$0xff]  ;;  %v1988_v54 = vld [vmem:[%s2561_s1 + $0x120] sm:$0xff] }
   0xf   :  { %1128 = vmatpush.bf16.msra.mxu1 %v1964_v13  ;;  %v2006_v48 = vld [vmem:[%s2561_s1 + $0x1b0] sm:$0xff]  ;;  %v1997_v51 = vld [vmem:[%s2561_s1 + $0x168] sm:$0xff]  ;;  %v1996_v55 = vld [vmem:[%s2561_s1 + $0x160] sm:$0xff] }
  0x10   :  { %1141 = vmatpush.bf16.msra.mxu2 %v1972_v14  ;;  %v314_v42 = vpack.c.b16 %v298_v32, %v298_v32  ;;  %v315_v44 = vpack.c.b16 %v299_v36, %v299_v36  ;;  %v2014_v49 = vld [vmem:[%s2561_s1 + $0x1f0] sm:$0xff]  ;;  %v2005_v52 = vld [vmem:[%s2561_s1 + $0x1a8] sm:$0xff]  ;;  %v2004_v56 = vld [vmem:[%s2561_s1 + $0x1a0] sm:$0xff] }
  0x11   :  { %1154 = vmatpush.bf16.msra.mxu3 %v1980_v15  ;;  %v2013_v53 = vld [vmem:[%s2561_s1 + $0x1e8] sm:$0xff]  ;;  %v2012_v57 = vld [vmem:[%s2561_s1 + $0x1e0] sm:$0xff]  ;;  %v1987_v58 = vld [vmem:[%s2561_s1 + $0x118] sm:$0xff] }
  0x12   :  { %1116 = vmatpush.bf16.msra.mxu0 %v1955_v16  ;;  %v1995_v59 = vld [vmem:[%s2561_s1 + $0x158] sm:$0xff]  ;;  %v1986_v62 = vld [vmem:[%s2561_s1 + $0x110] sm:$0xff]  ;;  %v1985_v2 = vld [vmem:[%s2561_s1 + $0x108] sm:$0xff] }
  0x13   :  { %1129 = vmatpush.bf16.msra.mxu1 %v1963_v17  ;;  %v2003_v60 = vld [vmem:[%s2561_s1 + $0x198] sm:$0xff]  ;;  %v1994_v63 = vld [vmem:[%s2561_s1 + $0x150] sm:$0xff]  ;;  %v1993_v3 = vld [vmem:[%s2561_s1 + $0x148] sm:$0xff] }
  0x14   :  { %1142 = vmatpush.bf16.msra.mxu2 %v1971_v18  ;;  %v2011_v61 = vld [vmem:[%s2561_s1 + $0x1d8] sm:$0xff]  ;;  %v2002_v0 = vld [vmem:[%s2561_s1 + $0x190] sm:$0xff]  ;;  %v2001_v4 = vld [vmem:[%s2561_s1 + $0x188] sm:$0xff] }
  0x15   :  { %1155 = vmatpush.bf16.msra.mxu3 %v1979_v19  ;;  %v2010_v1 = vld [vmem:[%s2561_s1 + $0x1d0] sm:$0xff]  ;;  %v2009_v5 = vld [vmem:[%s2561_s1 + $0x1c8] sm:$0xff]  ;;  %v23_v6 = vld [vmem:[%s2563_s0 + $0x18] sm:$0xff] }
  0x16   :  { %1117 = vmatpush.bf16.msra.mxu0 %v1954_v20  ;;  %v22_v7 = vld [vmem:[%s2563_s0 + $0x10] sm:$0xff]  ;;  %v1984_v8 = vld [vmem:[%s2561_s1 + $0x100] sm:$0xff]  ;;  %v302_v10 = vunpack.c.l.b16 %v23_v6  ;;  %v303_v14 = vunpack.c.h.b16 %v23_v6  ;;  %v2023_v16 = vld [vmem:[%s2561_s1 + $0x238] sm:$0xff] }
  0x17   :  { %1130 = vmatpush.bf16.msra.mxu1 %v1962_v21  ;;  %v1992_v9 = vld [vmem:[%s2561_s1 + $0x140] sm:$0xff]  ;;  %v300_v11 = vunpack.c.l.b16 %v22_v7  ;;  %v301_v15 = vunpack.c.h.b16 %v22_v7  ;;  %v2031_v17 = vld [vmem:[%s2561_s1 + $0x278] sm:$0xff]  ;;  %v2021_v28 = vld [vmem:[%s2561_s1 + $0x228] sm:$0xff] }
  0x18   :  { %1143 = vmatpush.bf16.msra.mxu2 %v1970_v22  ;;  %v2000_v12 = vld [vmem:[%s2561_s1 + $0x180] sm:$0xff]  ;;  %v2039_v18 = vld [vmem:[%s2561_s1 + $0x2b8] sm:$0xff]  ;;  %v318_v20 = vpack.c.b16 %v302_v10, %v302_v10  ;;  %v319_v22 = vpack.c.b16 %v303_v14, %v303_v14  ;;  %v2029_v29 = vld [vmem:[%s2561_s1 + $0x268] sm:$0xff] }
  0x19   :  { %1156 = vmatpush.bf16.msra.mxu3 %v1978_v23  ;;  %v2008_v13 = vld [vmem:[%s2561_s1 + $0x1c0] sm:$0xff]  ;;  %v2047_v19 = vld [vmem:[%s2561_s1 + $0x2f8] sm:$0xff]  ;;  %v316_v21 = vpack.c.b16 %v300_v11, %v300_v11  ;;  %v317_v23 = vpack.c.b16 %v301_v15, %v301_v15  ;;  %v2053_v6 = vld [vmem:[%s2561_s1 + $0x328] sm:$0xff] }
  0x1a   :  { %1118 = vmatpush.bf16.msra.mxu0 %v1953_v24  ;;  %v2022_v24 = vld [vmem:[%s2561_s1 + $0x230] sm:$0xff]  ;;  %v2020_v32 = vld [vmem:[%s2561_s1 + $0x220] sm:$0xff]  ;;  %v2019_v36 = vld [vmem:[%s2561_s1 + $0x218] sm:$0xff] }
  0x1b   :  { %1131 = vmatpush.bf16.msra.mxu1 %v1961_v25  ;;  %v2030_v25 = vld [vmem:[%s2561_s1 + $0x270] sm:$0xff]  ;;  %v2028_v33 = vld [vmem:[%s2561_s1 + $0x260] sm:$0xff]  ;;  %v2027_v37 = vld [vmem:[%s2561_s1 + $0x258] sm:$0xff] }
  0x1c   :  { %1144 = vmatpush.bf16.msra.mxu2 %v1969_v26  ;;  %v2038_v26 = vld [vmem:[%s2561_s1 + $0x2b0] sm:$0xff]  ;;  %v2061_v7 = vld [vmem:[%s2561_s1 + $0x368] sm:$0xff]  ;;  %v2052_v10 = vld [vmem:[%s2561_s1 + $0x320] sm:$0xff] }
  0x1d   :  { %1157 = vmatpush.bf16.msra.mxu3 %v1977_v27  ;;  %v2046_v27 = vld [vmem:[%s2561_s1 + $0x2f0] sm:$0xff]  ;;  %v2060_v11 = vld [vmem:[%s2561_s1 + $0x360] sm:$0xff]  ;;  %v2051_v14 = vld [vmem:[%s2561_s1 + $0x318] sm:$0xff] }
  0x1e   :  { %1119 = vmatpush.bf16.msra.mxu0 %v1952_v30  ;;  %v2037_v30 = vld [vmem:[%s2561_s1 + $0x2a8] sm:$0xff]  ;;  %v2059_v15 = vld [vmem:[%s2561_s1 + $0x358] sm:$0xff] }
  0x1f   :  { %1132 = vmatpush.bf16.msra.mxu1 %v1960_v31  ;;  %v2045_v31 = vld [vmem:[%s2561_s1 + $0x2e8] sm:$0xff] }
  0x20   :  { %1145 = vmatpush.bf16.msra.mxu2 %v1968_v34  ;;  %v2036_v34 = vld [vmem:[%s2561_s1 + $0x2a0] sm:$0xff] }
  0x21   :  { %1158 = vmatpush.bf16.msra.mxu3 %v1976_v35  ;;  %1120 = vmatmul.bf16.vlgmr.msra.gmra.mxu0 %v312_v43  ;;  %v2044_v35 = vld [vmem:[%s2561_s1 + $0x2e0] sm:$0xff]  ;;  %v2042_v43 = vld [vmem:[%s2561_s1 + $0x2d0] sm:$0xff] }
  0x22   :  { %1164 = vmatpush.bf16.msrb.mxu0 %v1991_v38  ;;  %1133 = vmatmul.bf16.vlgmr.msra.gmra.mxu1 %v313_v45  ;;  %v2035_v38 = vld [vmem:[%s2561_s1 + $0x298] sm:$0xff]  ;;  %v2025_v45 = vld [vmem:[%s2561_s1 + $0x248] sm:$0xff] }
  0x23   :  { %1177 = vmatpush.bf16.msrb.mxu1 %v1999_v39  ;;  %1146 = vmatmul.bf16.vlgmr.msra.gmra.mxu2 %v314_v42  ;;  %v2043_v39 = vld [vmem:[%s2561_s1 + $0x2d8] sm:$0xff]  ;;  %v2034_v42 = vld [vmem:[%s2561_s1 + $0x290] sm:$0xff] }
  0x24   :  { %1190 = vmatpush.bf16.msrb.mxu2 %v2007_v40  ;;  %1159 = vmatmul.bf16.vlgmr.msra.gmra.mxu3 %v315_v44  ;;  %v2018_v40 = vld [vmem:[%s2561_s1 + $0x210] sm:$0xff]  ;;  %v2017_v44 = vld [vmem:[%s2561_s1 + $0x208] sm:$0xff] }
  0x25   :  { %1203 = vmatpush.bf16.msrb.mxu3 %v2015_v41  ;;  %v2026_v41 = vld [vmem:[%s2561_s1 + $0x250] sm:$0xff] }
  0x26   :  { %1165 = vmatpush.bf16.msrb.mxu0 %v1990_v46  ;;  %v2033_v46 = vld [vmem:[%s2561_s1 + $0x288] sm:$0xff] }
  0x27   :  { %1178 = vmatpush.bf16.msrb.mxu1 %v1998_v47  ;;  %v2041_v47 = vld [vmem:[%s2561_s1 + $0x2c8] sm:$0xff] }
  0x28   :  { %1191 = vmatpush.bf16.msrb.mxu2 %v2006_v48  ;;  %v24_v48 = vld [vmem:[%s2563_s0 + $0x20] sm:$0xff] }
  0x29   :  { %1204 = vmatpush.bf16.msrb.mxu3 %v2014_v49  ;;  %v25_v49 = vld [vmem:[%s2563_s0 + $0x28] sm:$0xff] }
  0x2a   :  { %1166 = vmatpush.bf16.msrb.mxu0 %v1989_v50  ;;  %v2016_v50 = vld [vmem:[%s2561_s1 + $0x200] sm:$0xff] }
  0x2b   :  { %1179 = vmatpush.bf16.msrb.mxu1 %v1997_v51  ;;  %v2024_v51 = vld [vmem:[%s2561_s1 + $0x240] sm:$0xff] }
  0x2c   :  { %1192 = vmatpush.bf16.msrb.mxu2 %v2005_v52  ;;  %v304_v52 = vunpack.c.l.b16 %v24_v48 }
  0x2d   :  { %1205 = vmatpush.bf16.msrb.mxu3 %v2013_v53  ;;  %v306_v53 = vunpack.c.l.b16 %v25_v49 }
  0x2e   :  { %1167 = vmatpush.bf16.msrb.mxu0 %v1988_v54  ;;  %v2032_v54 = vld [vmem:[%s2561_s1 + $0x280] sm:$0xff] }
  0x2f   :  { %1180 = vmatpush.bf16.msrb.mxu1 %v1996_v55  ;;  %v2040_v55 = vld [vmem:[%s2561_s1 + $0x2c0] sm:$0xff] }
  0x30   :  { %1193 = vmatpush.bf16.msrb.mxu2 %v2004_v56  ;;  %v305_v56 = vunpack.c.h.b16 %v24_v48 }
  0x31   :  { %1206 = vmatpush.bf16.msrb.mxu3 %v2012_v57  ;;  %v307_v57 = vunpack.c.h.b16 %v25_v49 }
  0x32   :  { %1168 = vmatpush.bf16.msrb.mxu0 %v1987_v58  ;;  %v2055_v58 = vld [vmem:[%s2561_s1 + $0x338] sm:$0xff] }
  0x33   :  { %1181 = vmatpush.bf16.msrb.mxu1 %v1995_v59  ;;  %v2063_v59 = vld [vmem:[%s2561_s1 + $0x378] sm:$0xff] }
  0x34   :  { %1194 = vmatpush.bf16.msrb.mxu2 %v2003_v60  ;;  %v2071_v60 = vld [vmem:[%s2561_s1 + $0x3b8] sm:$0xff] }
  0x35   :  { %1207 = vmatpush.bf16.msrb.mxu3 %v2011_v61  ;;  %v2079_v61 = vld [vmem:[%s2561_s1 + $0x3f8] sm:$0xff] }
  0x36   :  { %1169 = vmatpush.bf16.msrb.mxu0 %v1986_v62  ;;  %v320_v62 = vpack.c.b16 %v304_v52, %v304_v52 }
  0x37   :  { %1182 = vmatpush.bf16.msrb.mxu1 %v1994_v63  ;;  %v322_v63 = vpack.c.b16 %v306_v53, %v306_v53 }
  0x38   :  { %1195 = vmatpush.bf16.msrb.mxu2 %v2002_v0  ;;  %v321_v0 = vpack.c.b16 %v305_v56, %v305_v56 }
  0x39   :  { %1208 = vmatpush.bf16.msrb.mxu3 %v2010_v1  ;;  %v323_v1 = vpack.c.b16 %v307_v57, %v307_v57  ;;  %v2087_v57 = vld [vmem:[%s2565_s3 + $0x38] sm:$0xff] }
  0x3a   :  { %1170 = vmatpush.bf16.msrb.mxu0 %v1985_v2  ;;  %v2054_v2 = vld [vmem:[%s2561_s1 + $0x330] sm:$0xff] }
  0x3b   :  { %1183 = vmatpush.bf16.msrb.mxu1 %v1993_v3  ;;  %v2062_v3 = vld [vmem:[%s2561_s1 + $0x370] sm:$0xff] }
  0x3c   :  { %1196 = vmatpush.bf16.msrb.mxu2 %v2001_v4  ;;  %v2070_v4 = vld [vmem:[%s2561_s1 + $0x3b0] sm:$0xff] }
  0x3d   :  { %1209 = vmatpush.bf16.msrb.mxu3 %v2009_v5  ;;  %v2078_v5 = vld [vmem:[%s2561_s1 + $0x3f0] sm:$0xff] }
  0x3e   :  { %1171 = vmatpush.bf16.msrb.mxu0 %v1984_v8  ;;  %v2069_v8 = vld [vmem:[%s2561_s1 + $0x3a8] sm:$0xff] }
  0x3f   :  { %1184 = vmatpush.bf16.msrb.mxu1 %v1992_v9  ;;  %v2077_v9 = vld [vmem:[%s2561_s1 + $0x3e8] sm:$0xff] }
  0x40   :  { %1197 = vmatpush.bf16.msrb.mxu2 %v2000_v12  ;;  %v2068_v12 = vld [vmem:[%s2561_s1 + $0x3a0] sm:$0xff] }
  0x41   :  { %1210 = vmatpush.bf16.msrb.mxu3 %v2008_v13  ;;  %1172 = vmatmul.bf16.vlgmr.msrb.gmra.mxu0 %v316_v21  ;;  %v2076_v13 = vld [vmem:[%s2561_s1 + $0x3e0] sm:$0xff]  ;;  %v2074_v21 = vld [vmem:[%s2561_s1 + $0x3d0] sm:$0xff] }
  0x42   :  { %1216 = vmatpush.bf16.msra.mxu0 %v2023_v16  ;;  %1185 = vmatmul.bf16.vlgmr.msrb.gmra.mxu1 %v317_v23  ;;  %v2067_v16 = vld [vmem:[%s2561_s1 + $0x398] sm:$0xff]  ;;  %v2057_v23 = vld [vmem:[%s2561_s1 + $0x348] sm:$0xff] }
  0x43   :  { %1229 = vmatpush.bf16.msra.mxu1 %v2031_v17  ;;  %1198 = vmatmul.bf16.vlgmr.msrb.gmra.mxu2 %v318_v20  ;;  %v2075_v17 = vld [vmem:[%s2561_s1 + $0x3d8] sm:$0xff]  ;;  %v2066_v20 = vld [vmem:[%s2561_s1 + $0x390] sm:$0xff] }
  0x44   :  { %1242 = vmatpush.bf16.msra.mxu2 %v2039_v18  ;;  %1211 = vmatmul.bf16.vlgmr.msrb.gmra.mxu3 %v319_v22  ;;  %v2050_v18 = vld [vmem:[%s2561_s1 + $0x310] sm:$0xff]  ;;  %v2049_v22 = vld [vmem:[%s2561_s1 + $0x308] sm:$0xff] }
  0x45   :  { %1255 = vmatpush.bf16.msra.mxu3 %v2047_v19  ;;  %v2058_v19 = vld [vmem:[%s2561_s1 + $0x350] sm:$0xff] }
  0x46   :  { %1217 = vmatpush.bf16.msra.mxu0 %v2022_v24  ;;  %v26_v24 = vld [vmem:[%s2563_s0 + $0x30] sm:$0xff] }
  0x47   :  { %1230 = vmatpush.bf16.msra.mxu1 %v2030_v25  ;;  %v2065_v25 = vld [vmem:[%s2561_s1 + $0x388] sm:$0xff] }
  0x48   :  { %1243 = vmatpush.bf16.msra.mxu2 %v2038_v26  ;;  %v2073_v26 = vld [vmem:[%s2561_s1 + $0x3c8] sm:$0xff] }
  0x49   :  { %1256 = vmatpush.bf16.msra.mxu3 %v2046_v27  ;;  %v27_v27 = vld [vmem:[%s2563_s0 + $0x38] sm:$0xff] }
  0x4a   :  { %1218 = vmatpush.bf16.msra.mxu0 %v2021_v28  ;;  %v308_v28 = vunpack.c.l.b16 %v26_v24 }
  0x4b   :  { %1231 = vmatpush.bf16.msra.mxu1 %v2029_v29  ;;  %v309_v29 = vunpack.c.h.b16 %v26_v24 }
  0x4c   :  { %1244 = vmatpush.bf16.msra.mxu2 %v2037_v30  ;;  %v2048_v30 = vld [vmem:[%s2561_s1 + $0x300] sm:$0xff] }
  0x4d   :  { %1257 = vmatpush.bf16.msra.mxu3 %v2045_v31  ;;  %v2056_v31 = vld [vmem:[%s2561_s1 + $0x340] sm:$0xff] }
  0x4e   :  { %1219 = vmatpush.bf16.msra.mxu0 %v2020_v32  ;;  %v310_v32 = vunpack.c.l.b16 %v27_v27 }
  0x4f   :  { %1232 = vmatpush.bf16.msra.mxu1 %v2028_v33  ;;  %v311_v33 = vunpack.c.h.b16 %v27_v27 }
  0x50   :  { %1245 = vmatpush.bf16.msra.mxu2 %v2036_v34  ;;  %v2064_v34 = vld [vmem:[%s2561_s1 + $0x380] sm:$0xff] }
  0x51   :  { %1258 = vmatpush.bf16.msra.mxu3 %v2044_v35  ;;  %v2072_v35 = vld [vmem:[%s2561_s1 + $0x3c0] sm:$0xff] }
  0x52   :  { %1220 = vmatpush.bf16.msra.mxu0 %v2019_v36  ;;  %v324_v36 = vpack.c.b16 %v308_v28, %v308_v28 }
  0x53   :  { %1233 = vmatpush.bf16.msra.mxu1 %v2027_v37  ;;  %v325_v37 = vpack.c.b16 %v309_v29, %v309_v29 }
  0x54   :  { %1246 = vmatpush.bf16.msra.mxu2 %v2035_v38  ;;  %v326_v38 = vpack.c.b16 %v310_v32, %v310_v32 }
  0x55   :  { %1259 = vmatpush.bf16.msra.mxu3 %v2043_v39  ;;  %v327_v39 = vpack.c.b16 %v311_v33, %v311_v33 }
  0x56   :  { %1221 = vmatpush.bf16.msra.mxu0 %v2018_v40  ;;  %v2088_v40 = vld [vmem:[%s2562_s2] ss:$0 sm:$0xff] }
  0x57   :  { %1234 = vmatpush.bf16.msra.mxu1 %v2026_v41 }
  0x58   :  { %1247 = vmatpush.bf16.msra.mxu2 %v2034_v42 }
  0x59   :  { %1260 = vmatpush.bf16.msra.mxu3 %v2042_v43 }
  0x5a   :  { %1222 = vmatpush.bf16.msra.mxu0 %v2017_v44 }
  0x5b   :  { %1235 = vmatpush.bf16.msra.mxu1 %v2025_v45 }
  0x5c   :  { %1248 = vmatpush.bf16.msra.mxu2 %v2033_v46 }
  0x5d   :  { %1261 = vmatpush.bf16.msra.mxu3 %v2041_v47 }
  0x5e   :  { %1223 = vmatpush.bf16.msra.mxu0 %v2016_v50 }
  0x5f   :  { %1236 = vmatpush.bf16.msra.mxu1 %v2024_v51 }
  0x60   :  { %1249 = vmatpush.bf16.msra.mxu2 %v2032_v54 }
  0x61   :  { %1262 = vmatpush.bf16.msra.mxu3 %v2040_v55  ;;  %1224 = vmatmul.bf16.vlgmr.msra.gmra.mxu0 %v320_v62 }
  0x62   :  { %1268 = vmatpush.bf16.msrb.mxu0 %v2055_v58  ;;  %1237 = vmatmul.bf16.vlgmr.msra.gmra.mxu1 %v321_v0  ;;  %v2084_v0 = vld [vmem:[%s2565_s3 + $0x20] sm:$0xff] }
  0x63   :  { %1281 = vmatpush.bf16.msrb.mxu1 %v2063_v59  ;;  %1250 = vmatmul.bf16.vlgmr.msra.gmra.mxu2 %v322_v63 }
  0x64   :  { %1294 = vmatpush.bf16.msrb.mxu2 %v2071_v60  ;;  %1263 = vmatmul.bf16.vlgmr.msra.gmra.mxu3 %v323_v1  ;;  %v2086_v60 = vld [vmem:[%s2565_s3 + $0x30] sm:$0xff]  ;;  %v2083_v1 = vld [vmem:[%s2565_s3 + $0x18] sm:$0xff] }
  0x65   :  { %1307 = vmatpush.bf16.msrb.mxu3 %v2079_v61  ;;  %v2085_v61 = vld [vmem:[%s2565_s3 + $0x28] sm:$0xff] }
  0x66   :  { %1269 = vmatpush.bf16.msrb.mxu0 %v2054_v2 }
  0x67   :  { %1282 = vmatpush.bf16.msrb.mxu1 %v2062_v3  ;;  %v2082_v3 = vld [vmem:[%s2565_s3 + $0x10] sm:$0xff] }
  0x68   :  { %1295 = vmatpush.bf16.msrb.mxu2 %v2070_v4 }
  0x69   :  { %1308 = vmatpush.bf16.msrb.mxu3 %v2078_v5  ;;  %v2081_v5 = vld [vmem:[%s2565_s3 + $0x8] sm:$0xff] }
  0x6a   :  { %1270 = vmatpush.bf16.msrb.mxu0 %v2053_v6 }
  0x6b   :  { %1283 = vmatpush.bf16.msrb.mxu1 %v2061_v7 }
  0x6c   :  { %1296 = vmatpush.bf16.msrb.mxu2 %v2069_v8 }
  0x6d   :  { %1309 = vmatpush.bf16.msrb.mxu3 %v2077_v9 }
  0x6e   :  { %1271 = vmatpush.bf16.msrb.mxu0 %v2052_v10  ;;  %v2080_v10 = vld [vmem:[%s2565_s3] sm:$0xff] }
  0x6f   :  { %1284 = vmatpush.bf16.msrb.mxu1 %v2060_v11 }
  0x70   :  { %1297 = vmatpush.bf16.msrb.mxu2 %v2068_v12 }
  0x71   :  { %1310 = vmatpush.bf16.msrb.mxu3 %v2076_v13 }
  0x72   :  { %1272 = vmatpush.bf16.msrb.mxu0 %v2051_v14 }
  0x73   :  { %1285 = vmatpush.bf16.msrb.mxu1 %v2059_v15 }
  0x74   :  { %1298 = vmatpush.bf16.msrb.mxu2 %v2067_v16 }
  0x75   :  { %1311 = vmatpush.bf16.msrb.mxu3 %v2075_v17 }
  0x76   :  { %1273 = vmatpush.bf16.msrb.mxu0 %v2050_v18 }
  0x77   :  { %1286 = vmatpush.bf16.msrb.mxu1 %v2058_v19 }
  0x78   :  { %1299 = vmatpush.bf16.msrb.mxu2 %v2066_v20 }
  0x79   :  { %1312 = vmatpush.bf16.msrb.mxu3 %v2074_v21 }
  0x7a   :  { %1274 = vmatpush.bf16.msrb.mxu0 %v2049_v22 }
  0x7b   :  { %1287 = vmatpush.bf16.msrb.mxu1 %v2057_v23 }
  0x7c   :  { %1300 = vmatpush.bf16.msrb.mxu2 %v2065_v25 }
  0x7d   :  { %1313 = vmatpush.bf16.msrb.mxu3 %v2073_v26 }
  0x7e   :  { %1275 = vmatpush.bf16.msrb.mxu0 %v2048_v30 }
  0x7f   :  { %1288 = vmatpush.bf16.msrb.mxu1 %v2056_v31 }
  0x80   :  { %1301 = vmatpush.bf16.msrb.mxu2 %v2064_v34 }
  0x81   :  { %1314 = vmatpush.bf16.msrb.mxu3 %v2072_v35  ;;  %1276 = vmatmul.bf16.vlgmr.msrb.gmra.mxu0 %v324_v36  ;;  %v2089_v35 = vld [vmem:[%s2564_s4] ss:$0 sm:$0xff] }
  0x82   :  { %1289 = vmatmul.bf16.vlgmr.msrb.gmra.mxu1 %v325_v37  ;;  %1390 = vmatpush.bf16.msra.mxu0 %v2087_v57 }
  0x83   :  { %1302 = vmatmul.bf16.vlgmr.msrb.gmra.mxu2 %v326_v38 }
  0x84   :  { %1315 = vmatmul.bf16.vlgmr.msrb.gmra.mxu3 %v327_v39 }
  0x86   :  { %1391 = vmatpush.bf16.msra.mxu0 %v2086_v60 }
  0x8a   :  { %1392 = vmatpush.bf16.msra.mxu0 %v2085_v61 }
  0x8e   :  { %1393 = vmatpush.bf16.msra.mxu0 %v2084_v0 }
  0x92   :  { %1394 = vmatpush.bf16.msra.mxu0 %v2083_v1 }
  0x96   :  { %1395 = vmatpush.bf16.msra.mxu0 %v2082_v3 }
  0x9a   :  { %1396 = vmatpush.bf16.msra.mxu0 %v2081_v5 }
  0x9e   :  { %v1121_v41 = vpop.f32.mrf.mxu0  ;;  %1397 = vmatpush.bf16.msra.mxu0 %v2080_v10 }
  0x9f   :  { %v1122_v42 = vadd.f32 %v2088_v40, %v1121_v41  ;;  %v1134_v43 = vpop.f32.mrf.mxu1 }
  0xa1   :  { %v1135_v44 = vadd.f32 %v1134_v43, %v1122_v42 }
  0xa6   :  { %v1147_v45 = vpop.f32.mrf.mxu2  ;;  %v1123_v48 = vpop.f32.mrf.mxu0 }
  0xa7   :  { %v1148_v46 = vadd.f32 %v1147_v45, %v1135_v44  ;;  %v1160_v47 = vpop.f32.mrf.mxu3  ;;  %v1136_v50 = vpop.f32.mrf.mxu1 }
  0xa9   :  { %v1161_v49 = vadd.f32 %v1160_v47, %v1148_v46 }
  0xae   :  { %v1149_v51 = vpop.f32.mrf.mxu2 }
  0xaf   :  { %v1162_v52 = vpop.f32.mrf.mxu3 }
  0xbe   :  { %v1173_v53 = vpop.f32.mrf.mxu0 }
  0xbf   :  { %v1186_v54 = vpop.f32.mrf.mxu1  ;;  %v1174_v6 = vadd.f32 %v1173_v53, %v1161_v49 }
  0xc1   :  { %v1187_v11 = vadd.f32 %v1186_v54, %v1174_v6 }
  0xc6   :  { %v1199_v55 = vpop.f32.mrf.mxu2  ;;  %v1175_v58 = vpop.f32.mrf.mxu0 }
  0xc7   :  { %v1212_v56 = vpop.f32.mrf.mxu3  ;;  %v1188_v59 = vpop.f32.mrf.mxu1  ;;  %v1200_v13 = vadd.f32 %v1199_v55, %v1187_v11 }
  0xc9   :  { %v1213_v16 = vadd.f32 %v1212_v56, %v1200_v13 }
  0xce   :  { %v1201_v62 = vpop.f32.mrf.mxu2 }
  0xcf   :  { %v1214_v63 = vpop.f32.mrf.mxu3 }
  0xde   :  { %v1225_v2 = vpop.f32.mrf.mxu0 }
  0xdf   :  { %v1238_v4 = vpop.f32.mrf.mxu1  ;;  %v1226_v17 = vadd.f32 %v1225_v2, %v1213_v16 }
  0xe1   :  { %v1239_v18 = vadd.f32 %v1238_v4, %v1226_v17 }
  0xe6   :  { %v1251_v7 = vpop.f32.mrf.mxu2  ;;  %v1227_v9 = vpop.f32.mrf.mxu0 }
  0xe7   :  { %v1264_v8 = vpop.f32.mrf.mxu3  ;;  %v1240_v12 = vpop.f32.mrf.mxu1  ;;  %v1252_v19 = vadd.f32 %v1251_v7, %v1239_v18 }
  0xe9   :  { %v1265_v20 = vadd.f32 %v1264_v8, %v1252_v19 }
  0xee   :  { %v1253_v14 = vpop.f32.mrf.mxu2 }
  0xef   :  { %v1266_v15 = vpop.f32.mrf.mxu3 }
  0xfe   :  { %v1277_v21 = vpop.f32.mrf.mxu0 }
  0xff   :  { %v1290_v22 = vpop.f32.mrf.mxu1  ;;  %v1278_v23 = vadd.f32 %v1277_v21, %v1265_v20 }
 0x101   :  { %v1291_v24 = vadd.f32 %v1290_v22, %v1278_v23 }
 0x106   :  { %v1303_v25 = vpop.f32.mrf.mxu2  ;;  %v1279_v28 = vpop.f32.mrf.mxu0 }
 0x107   :  { %v1316_v26 = vpop.f32.mrf.mxu3  ;;  %v1304_v27 = vadd.f32 %v1303_v25, %v1291_v24  ;;  %v1292_v29 = vpop.f32.mrf.mxu1 }
 0x109   :  { %v1317_v30 = vadd.f32 %v1316_v26, %v1304_v27 }
 0x10b   :  { %v1320_v31 = vmax.f32 %v1317_v30, 0.0 }
 0x10d   :  { %v1321_v32 = vpack.c.bf16 %v1320_v31, %v1320_v31 }
 0x10e   :  { %v1305_v33 = vpop.f32.mrf.mxu2 }
 0x10f   :  { %v1318_v34 = vpop.f32.mrf.mxu3  ;;  %1398 = vmatmul.bf16.vlgmr.msra.gmra.mxu0 %v1321_v32 }
 0x18c   :  { %v1399_v36 = vpop.f32.mrf.mxu0 }
 0x18d   :  { %v1400_v37 = vadd.f32 %v2089_v35, %v1399_v36 }
 0x18f   :  { %1403 = vst [vmem:[%s2566_s5] sm:$0xff] %v1400_v37 }
 0x194   :  { %v1401_v38 = vpop.f32.mrf.mxu0 }

// kernel: forward.4
= control target key start
LH: loop header
LB: loop body
LE: loop exit
PB: predicated region body
PF: predicated region fallthrough
CT: control target
= control target key end

     0   :  { %9 = vsyncpa [#allocation3], 0  ;;  %s8749_s0 = inlined_call_operand.vmem [shape: bf16[2,10,320], index: 0, kind: input, shape index: {}]   ;;  %s8750_s1 = inlined_call_operand.vmem [shape: bf16[2,10,320], index: 1, kind: input, shape index: {}]   ;;  %s8751_s2 = inlined_call_operand.hbm [shape: bf16[5,320,512], index: 2, kind: input, shape index: {}]   ;;  %s8752_s3 = inlined_call_operand.hbm [shape: f32[1,256], index: 3, kind: input, shape index: {}]   ;;  %s8753_s4 = inlined_call_operand.vmem [shape: bf16[16,256], index: 4, kind: output, shape index: {}]  }
   0x1   :  { %10 = vsyncpa [#allocation5], 0  ;;  %s6692_s15 = smov 0  }
   0x2 LB: > { %s152_s18 = sshll.u32 %s8751_s2, 4  ;;  %s4499_s19 = sadd.s32 4294967295, %s6661_s15   ;;  %s6661_s15 = sphi %s6692_s15, %s16_s15   ;;  %s153_s18 = int_to_ptr.hbm [resolvable:$true] %s152_s18 }
   0x3   : > { %p4501_p0 = scmp.ge.s32.totalorder %s6661_s15, 1  ;;  %p141_p1 = scmp.lt.s32.totalorder %s6661_s15, 3 }
   0x4   : > { %p6571_p2 = scmp.eq.s32.totalorder %s4499_s19, 0  ;;  %s6663_s21 = smov [#allocation2]  }
   0x5   : > { %p6703_p3 = pnand %p4501_p0, %p141_p1  ;;  %s154_s22 = sshll.u32 %s6663_s21, 4  ;;  %s155_s22 = int_to_ptr.vmem [resolvable:$true] %s154_s22 }
   0x6   : > { %s167_s25 = sshll.u32 %s8752_s3, 4  ;;  %s6664_s26 = smov [#allocation4]   ;;  %s168_s25 = int_to_ptr.hbm [resolvable:$true] %s167_s25 }
   0x7   : > { %p6564_p4 = pneg %p6703_p3  ;;  %s169_s27 = sshll.u32 %s6664_s26, 4  ;;  %s170_s27 = int_to_ptr.vmem [resolvable:$true] %s169_s27 }
   0x8   : > { %s6665_s28 = smov 256   ;;  %s6666_s29 = smov 16  }
   0x9   : > { %p6565_p5 = pnand %p6571_p2, %p6564_p4  ;;  %198 = sbr.rel (%p6703_p3) target bundleno = 971 (0x3cb), region = 36 }
   0xb   : > { %6567 = dma.hbm_to_vmem [thread:$0]  (!%p6565_p5), %s153_s18, 51200, %s155_s22, [#allocation3], %s6665_s28, %s6665_s28, %s6666_s29  }
   0xc   : > { %6570 = dma.hbm_to_vmem [thread:$0]  (!%p6565_p5), %s168_s25, 32, %s170_s27, [#allocation5]  }
   0xe   : > { %6652 = dma.done.wait (%p6571_p2), [#allocation3], 51200  }
   0xf   : > { %6654 = vsyncadd (%p6571_p2), [#allocation3], 4294916096 }
  0x10   : > { %6656 = dma.done.wait (%p6571_p2), [#allocation5], 32  }
  0x11   : > { %6658 = vsyncadd (%p6571_p2), [#allocation5], 4294967264  ;;  %p235_p6 = scmp.lt.s32.totalorder %s4499_s19, 1  ;;  %v4626_v0 = vld [vmem:[#allocation2 + $0x360] sm:$0xf]  ;;  %vm826_vm0 = vcmask 523264  }
  0x12   : > { %v6265_v1 = vld [vmem:[#allocation2 + $0x36c] sm:$0xf0]  ;;  %v4754_v2 = vld [vmem:[#allocation2 + $0x460] sm:$0xf]  ;;  %v6263_v9 = vld [vmem:[#allocation2 + $0x364] sm:$0xf] }
  0x13   : > { %s9885_s19 = smov (!%p235_p6, %s4499_s19), 1  ;;  %v6721_v3 = vor.u32 %v6265_v1, %v4626_v0  ;;  %v6297_v4 = vld [vmem:[#allocation2 + $0x46c] sm:$0xf0]  ;;  %v4818_v5 = vld [vmem:[#allocation2 + $0x4e0] sm:$0xf] }
  0x14   : > { %v6313_v6 = vld [vmem:[#allocation2 + $0x4ec] sm:$0xf0]  ;;  %v6723_v7 = vor.u32 %v6297_v4, %v4754_v2  ;;  %v4628_v10 = vld [vmem:[#allocation2 + $0x370] sm:$0xf0]  ;;  %v4610_v11 = vld [vmem:[#allocation2 + $0x340] sm:$0xf] }
  0x15   : > { %v6725_v8 = vor.u32 %v6313_v6, %v4818_v5  ;;  %830 = vmatpush.bf16.msra.mxu0 %v6721_v3  ;;  %v6728_v12 = vor.u32 %v6263_v9, %v4628_v10  ;;  %v6261_v13 = vld [vmem:[#allocation2 + $0x34c] sm:$0xf0]  ;;  %v4738_v14 = vld [vmem:[#allocation2 + $0x440] sm:$0xf]  ;;  %v6259_v20 = vld [vmem:[#allocation2 + $0x344] sm:$0xf] }
  0x16   : > { %v6293_v15 = vld [vmem:[#allocation2 + $0x44c] sm:$0xf0]  ;;  %843 = vmatpush.bf16.msra.mxu1 %v6723_v7  ;;  %v6732_v16 = vor.u32 %v6261_v13, %v4610_v11  ;;  %v4802_v18 = vld [vmem:[#allocation2 + $0x4c0] sm:$0xf]  ;;  %v4612_v22 = vld [vmem:[#allocation2 + $0x350] sm:$0xf0] }
  0x17   : > { %860 = vmatpush.bf16.msra.mxu2 %v6725_v8  ;;  %v6734_v17 = vor.u32 %v6293_v15, %v4738_v14  ;;  %v6309_v19 = vld [vmem:[#allocation2 + $0x4cc] sm:$0xf0]  ;;  %869 = vmatpush.bf16.msra.mxu3 %v6728_v12  ;;  %v4594_v23 = vld [vmem:[#allocation2 + $0x320] sm:$0xf]  ;;  %v6739_v25 = vor.u32 %v6259_v20, %v4612_v22  ;;  %v6255_v31 = vld [vmem:[#allocation2 + $0x324] sm:$0xf] }
  0x18   : > { %v6737_v21 = vor.u32 %v6309_v19, %v4802_v18  ;;  %v6257_v24 = vld [vmem:[#allocation2 + $0x32c] sm:$0xf0]  ;;  %v4722_v26 = vld [vmem:[#allocation2 + $0x420] sm:$0xf]  ;;  %v4596_v32 = vld [vmem:[#allocation2 + $0x330] sm:$0xf0] }
  0x19   : > { %v6289_v27 = vld [vmem:[#allocation2 + $0x42c] sm:$0xf0]  ;;  %v4786_v28 = vld [vmem:[#allocation2 + $0x4a0] sm:$0xf]  ;;  %831 = vmatpush.bf16.msra.mxu0 %v6732_v16  ;;  %v6742_v29 = vor.u32 %v6257_v24, %v4594_v23  ;;  %v6751_v38 = vor.u32 %v6255_v31, %v4596_v32  ;;  %v6251_v42 = vld [vmem:[#allocation2 + $0x304] sm:$0xf] }
  0x1a   : > { %v6305_v30 = vld [vmem:[#allocation2 + $0x4ac] sm:$0xf0]  ;;  %844 = vmatpush.bf16.msra.mxu1 %v6734_v17  ;;  %v6746_v33 = vor.u32 %v6289_v27, %v4722_v26  ;;  %v4578_v35 = vld [vmem:[#allocation2 + $0x300] sm:$0xf]  ;;  %v4580_v43 = vld [vmem:[#allocation2 + $0x310] sm:$0xf0] }
  0x1b   : > { %861 = vmatpush.bf16.msra.mxu2 %v6737_v21  ;;  %v6748_v34 = vor.u32 %v6305_v30, %v4786_v28  ;;  %v6253_v36 = vld [vmem:[#allocation2 + $0x30c] sm:$0xf0]  ;;  %v4706_v37 = vld [vmem:[#allocation2 + $0x400] sm:$0xf]  ;;  %870 = vmatpush.bf16.msra.mxu3 %v6739_v25  ;;  %v6295_v44 = vld [vmem:[#allocation2 + $0x464] sm:$0xf]  ;;  %v6764_v51 = vor.u32 %v6251_v42, %v4580_v43 }
  0x1c   : > { %v6285_v39 = vld [vmem:[#allocation2 + $0x40c] sm:$0xf0]  ;;  %v4770_v40 = vld [vmem:[#allocation2 + $0x480] sm:$0xf]  ;;  %v6754_v45 = vor.u32 %v6253_v36, %v4578_v35  ;;  %v4756_v46 = vld [vmem:[#allocation2 + $0x470] sm:$0xf0] }
  0x1d   : > { %v6301_v41 = vld [vmem:[#allocation2 + $0x48c] sm:$0xf0]  ;;  %832 = vmatpush.bf16.msra.mxu0 %v6742_v29  ;;  %v6758_v47 = vor.u32 %v6285_v39, %v4706_v37  ;;  %v4562_v49 = vld [vmem:[#allocation2 + $0x2e0] sm:$0xf]  ;;  %s6555_s30 = smul.u32 24, %s9885_s19  ;;  %v6766_v52 = vor.u32 %v6295_v44, %v4756_v46  ;;  %s6154_s11 = sshll.u32 %s9885_s19, 3 }
  0x1e   : > { %845 = vmatpush.bf16.msra.mxu1 %v6746_v33  ;;  %v6760_v48 = vor.u32 %v6301_v41, %v4770_v40  ;;  %v6249_v50 = vld [vmem:[#allocation2 + $0x2ec] sm:$0xf0]  ;;  %v4690_v53 = vld [vmem:[#allocation2 + $0x3e0] sm:$0xf]  ;;  %v6247_v55 = vld [vmem:[#allocation2 + $0x2e4] sm:$0xf]  ;;  %s249_s14 = scalar_lea.vmem %s8753_s4, %s6154_s11 }
  0x1f   : > { %862 = vmatpush.bf16.msra.mxu2 %v6748_v34  ;;  %871 = vmatpush.bf16.msra.mxu3 %v6751_v38  ;;  %v6281_v54 = vld [vmem:[#allocation2 + $0x3ec] sm:$0xf0]  ;;  %v4564_v56 = vld [vmem:[#allocation2 + $0x2f0] sm:$0xf0]  ;;  %v6291_v57 = vld [vmem:[#allocation2 + $0x444] sm:$0xf]  ;;  %v6769_v59 = vor.u32 %v6249_v50, %v4562_v49  ;;  %s6786_s7 = scalar_lea.vmem %s8750_s1, %s6555_s30  ;;  %s7028_s10 = scalar_lea.vmem %s8749_s0, %s6555_s30 }
  0x20   : > { %v4740_v58 = vld [vmem:[#allocation2 + $0x450] sm:$0xf0]  ;;  %v6773_v60 = vor.u32 %v6281_v54, %v4690_v53  ;;  %v4546_v61 = vld [vmem:[#allocation2 + $0x2c0] sm:$0xf]  ;;  %v6245_v62 = vld [vmem:[#allocation2 + $0x2cc] sm:$0xf0]  ;;  %v6777_v63 = vor.u32 %v6247_v55, %v4564_v56 }
  0x21   : > { %833 = vmatpush.bf16.msra.mxu0 %v6754_v45  ;;  %v6779_v0 = vor.u32 %v6291_v57, %v4740_v58  ;;  %v4674_v1 = vld [vmem:[#allocation2 + $0x3c0] sm:$0xf]  ;;  %v6277_v2 = vld [vmem:[#allocation2 + $0x3cc] sm:$0xf0]  ;;  %v6243_v4 = vld [vmem:[#allocation2 + $0x2c4] sm:$0xf]  ;;  %v6789_v10 = vor.u32 %v6245_v62, %v4546_v61 }
  0x22   : > { %846 = vmatpush.bf16.msra.mxu1 %v6758_v47  ;;  %v4548_v5 = vld [vmem:[#allocation2 + $0x2d0] sm:$0xf0]  ;;  %v6287_v6 = vld [vmem:[#allocation2 + $0x424] sm:$0xf]  ;;  %v4530_v11 = vld [vmem:[#allocation2 + $0x2a0] sm:$0xf]  ;;  %v6792_v13 = vor.u32 %v6277_v2, %v4674_v1 }
  0x23   : > { %863 = vmatpush.bf16.msra.mxu2 %v6760_v48  ;;  %872 = vmatpush.bf16.msra.mxu3 %v6764_v51  ;;  %v4724_v9 = vld [vmem:[#allocation2 + $0x430] sm:$0xf0]  ;;  %v6241_v14 = vld [vmem:[#allocation2 + $0x2ac] sm:$0xf0]  ;;  %v4658_v15 = vld [vmem:[#allocation2 + $0x3a0] sm:$0xf]  ;;  %v6797_v19 = vor.u32 %v6243_v4, %v4548_v5 }
  0x24   : > { %v334_v18 = vld [vmem:[%s6786_s7 + $0x8] sm:$0xf]  ;;  %v6799_v20 = vor.u32 %v6287_v6, %v4724_v9  ;;  %v6273_v22 = vld [vmem:[#allocation2 + $0x3ac] sm:$0xf0]  ;;  %v6239_v23 = vld [vmem:[#allocation2 + $0x2a4] sm:$0xf]  ;;  %v6802_v31 = vor.u32 %v6241_v14, %v4530_v11 }
  0x25   : > { %834 = vmatpush.bf16.msra.mxu0 %v6769_v59  ;;  %v4532_v24 = vld [vmem:[#allocation2 + $0x2b0] sm:$0xf0]  ;;  %v420_v26 = vunpack.c.l.b16 %v334_v18  ;;  %v6283_v27 = vld [vmem:[#allocation2 + $0x404] sm:$0xf]  ;;  %v4514_v30 = vld [vmem:[#allocation2 + $0x280] sm:$0xf]  ;;  %v6807_v37 = vor.u32 %v6273_v22, %v4658_v15 }
  0x26   : > { %847 = vmatpush.bf16.msra.mxu1 %v6773_v60  ;;  %v4708_v28 = vld [vmem:[#allocation2 + $0x410] sm:$0xf0]  ;;  %9132 = vst [vmem:[#allocation8_spill] sm:$0xff] %v6802_v31  ;;  %v6237_v32 = vld [vmem:[#allocation2 + $0x28c] sm:$0xf0]  ;;  %v6811_v42 = vor.u32 %v6239_v23, %v4532_v24  ;;  %v333_v49 = vld [vmem:[%s6786_s7] sm:$0xff] }
  0x27   : > { %882 = vmatpush.bf16.msrb.mxu2 %v6766_v52  ;;  %873 = vmatpush.bf16.msra.mxu3 %v6777_v63  ;;  %v4642_v35 = vld [vmem:[#allocation2 + $0x380] sm:$0xf]  ;;  %v6804_v36 = vpack.c.b16 %v420_v26, %v420_v26  ;;  %9134 = vst [vmem:[#allocation10_spill] sm:$0xff] %v6807_v37  ;;  %v6269_v39 = vld [vmem:[#allocation2 + $0x38c] sm:$0xf0]  ;;  %v6813_v43 = vor.u32 %v6283_v27, %v4708_v28  ;;  %v418_v1 = vunpack.c.l.b16 %v333_v49  ;;  %v419_v9 = vunpack.c.h.b16 %v333_v49 }
  0x28   : > { %v6235_v40 = vld [vmem:[#allocation2 + $0x284] sm:$0xf]  ;;  %v4516_v41 = vld [vmem:[#allocation2 + $0x290] sm:$0xf0]  ;;  %9135 = vst [vmem:[#allocation11_spill] sm:$0xff] %v6811_v42  ;;  %v6819_v55 = vor.u32 %v6237_v32, %v4514_v30  ;;  %v6822_v61 = vor.u32 %v6269_v39, %v4642_v35 }
  0x29   : > { %835 = vmatpush.bf16.msra.mxu0 %v6789_v10  ;;  %9133 = vst [vmem:[#allocation9_spill] sm:$0xff] %v6804_v36  ;;  %v4826_v44 = vld [vmem:[#allocation2 + $0x4e8] sm:$0xf]  ;;  %v6314_v46 = vld [vmem:[#allocation2 + $0x4f4] sm:$0xf0]  ;;  %4832 = vmatmul.msk.bf16.vlgmr.msra.gmra.mxu2 %vm826_vm0, %v6804_v36  ;;  %v6828_v2 = vor.u32 %v6235_v40, %v4516_v41  ;;  %v6839_v27 = vpack.c.b16 %v418_v1, %v418_v1 }
  0x2a   : > { %848 = vmatpush.bf16.msra.mxu1 %v6792_v13  ;;  %9136 = vst [vmem:[#allocation12_spill] sm:$0xff] %v6813_v43  ;;  %v6279_v50 = vld [vmem:[#allocation2 + $0x3e4] sm:$0xf]  ;;  %v4692_v53 = vld [vmem:[#allocation2 + $0x3f0] sm:$0xf0]  ;;  %v6824_v62 = vor.u32 %v6314_v46, %v4826_v44  ;;  %v6847_v39 = vpack.c.b16 %v419_v9, %v419_v9 }
  0x2b   : > { %883 = vmatpush.bf16.msrb.mxu2 %v6779_v0  ;;  %874 = vmatpush.bf16.msra.mxu3 %v6797_v19  ;;  %v6311_v54 = vld [vmem:[#allocation2 + $0x4e4] sm:$0xf]  ;;  %9137 = vst [vmem:[#allocation13_spill] sm:$0xff] %v6819_v55  ;;  %v4820_v56 = vld [vmem:[#allocation2 + $0x4f0] sm:$0xf0]  ;;  %v6830_v4 = vor.u32 %v6279_v50, %v4692_v53 }
  0x2c   : > { %v4634_v57 = vld [vmem:[#allocation2 + $0x368] sm:$0xf]  ;;  %v6266_v58 = vld [vmem:[#allocation2 + $0x374] sm:$0xf0]  ;;  %9138 = vst [vmem:[#allocation14_spill] sm:$0xff] %v6822_v61  ;;  %v6832_v11 = vor.u32 %v6311_v54, %v4820_v56 }
  0x2d   : > { %836 = vmatpush.bf16.msra.mxu0 %v6802_v31  ;;  %9139 = vst [vmem:[#allocation15_spill] sm:$0xff] %v6824_v62  ;;  %v4810_v5 = vld [vmem:[#allocation2 + $0x4c8] sm:$0xf]  ;;  %v6310_v6 = vld [vmem:[#allocation2 + $0x4d4] sm:$0xf0]  ;;  %v6834_v14 = vor.u32 %v6266_v58, %v4634_v57 }
  0x2e   : > { %849 = vmatpush.bf16.msra.mxu1 %v6807_v37  ;;  %9140 = vst [vmem:[#allocation16_spill] sm:$0xff] %v6828_v2  ;;  %v6275_v15 = vld [vmem:[#allocation2 + $0x3c4] sm:$0xf]  ;;  %v4676_v18 = vld [vmem:[#allocation2 + $0x3d0] sm:$0xf0]  ;;  %v6841_v28 = vor.u32 %v6310_v6, %v4810_v5 }
  0x2f   : > { %884 = vmatpush.bf16.msrb.mxu2 %v6799_v20  ;;  %875 = vmatpush.bf16.msra.mxu3 %v6811_v42  ;;  %9141 = vst [vmem:[#allocation17_spill] sm:$0xff] %v6830_v4  ;;  %v6307_v22 = vld [vmem:[#allocation2 + $0x4c4] sm:$0xf]  ;;  %v4804_v23 = vld [vmem:[#allocation2 + $0x4d0] sm:$0xf0]  ;;  %v6845_v30 = vor.u32 %v6275_v15, %v4676_v18 }
  0x30   : > { %9142 = vst [vmem:[#allocation18_spill] sm:$0xff] %v6832_v11  ;;  %v4618_v24 = vld [vmem:[#allocation2 + $0x348] sm:$0xf]  ;;  %v6262_v26 = vld [vmem:[#allocation2 + $0x354] sm:$0xf0]  ;;  %v6851_v40 = vor.u32 %v6307_v22, %v4804_v23 }
  0x31   : > { %9143 = vst [vmem:[#allocation19_spill] sm:$0xff] %v6834_v14  ;;  %837 = vmatpush.bf16.msra.mxu0 %v6819_v55  ;;  %v4794_v32 = vld [vmem:[#allocation2 + $0x4a8] sm:$0xf]  ;;  %v6306_v35 = vld [vmem:[#allocation2 + $0x4b4] sm:$0xf0]  ;;  %v6853_v41 = vor.u32 %v6262_v26, %v4618_v24 }
  0x32   : > { %850 = vmatpush.bf16.msra.mxu1 %v6822_v61  ;;  %9144 = vst [vmem:[#allocation20_spill] sm:$0xff] %v6839_v27  ;;  %v6271_v44 = vld [vmem:[#allocation2 + $0x3a4] sm:$0xf]  ;;  %v4660_v46 = vld [vmem:[#allocation2 + $0x3b0] sm:$0xf0]  ;;  %v6859_v56 = vor.u32 %v6306_v35, %v4794_v32 }
  0x33   : > { %885 = vmatpush.bf16.msrb.mxu2 %v6813_v43  ;;  %9145 = vst [vmem:[#allocation21_spill] sm:$0xff] %v6841_v28  ;;  %876 = vmatpush.bf16.msra.mxu3 %v6828_v2  ;;  %v6303_v49 = vld [vmem:[#allocation2 + $0x4a4] sm:$0xf]  ;;  %v4788_v50 = vld [vmem:[#allocation2 + $0x4b0] sm:$0xf0]  ;;  %v6862_v1 = vor.u32 %v6271_v44, %v4660_v46 }
  0x34   : > { %9146 = vst [vmem:[#allocation22_spill] sm:$0xff] %v6845_v30  ;;  %v4602_v53 = vld [vmem:[#allocation2 + $0x328] sm:$0xf]  ;;  %v6258_v54 = vld [vmem:[#allocation2 + $0x334] sm:$0xf0]  ;;  %838 = vmatmul.bf16.vlgmr.msra.gmra.mxu0 %v6839_v27  ;;  %v6866_v15 = vor.u32 %v6303_v49, %v4788_v50 }
  0x35   : > { %938 = vmatpush.bf16.msrb.mxu0 %v6824_v62  ;;  %9147 = vst [vmem:[#allocation23_spill] sm:$0xff] %v6847_v39  ;;  %851 = vmatmul.bf16.vlgmr.msra.gmra.mxu1 %v6847_v39  ;;  %v6267_v57 = vld [vmem:[#allocation2 + $0x384] sm:$0xf]  ;;  %v4644_v58 = vld [vmem:[#allocation2 + $0x390] sm:$0xf0]  ;;  %v6868_v18 = vor.u32 %v6258_v54, %v4602_v53 }
  0x36   : > { %908 = vmatpush.bf16.msrb.mxu1 %v6834_v14  ;;  %9148 = vst [vmem:[#allocation24_spill] sm:$0xff] %v6851_v40  ;;  %877 = vmatmul.bf16.vlgmr.msra.gmra.mxu3 %v6839_v27  ;;  %v6299_v5 = vld [vmem:[#allocation2 + $0x484] sm:$0xf]  ;;  %v4778_v6 = vld [vmem:[#allocation2 + $0x488] sm:$0xf] }
  0x37   : > { %886 = vmatpush.bf16.msrb.mxu2 %v6830_v4  ;;  %899 = vmatpush.bf16.msrb.mxu3 %v6832_v11  ;;  %9149 = vst [vmem:[#allocation25_spill] sm:$0xff] %v6853_v41  ;;  %v6302_v9 = vld [vmem:[#allocation2 + $0x494] sm:$0xf0]  ;;  %v4772_v22 = vld [vmem:[#allocation2 + $0x490] sm:$0xf0] }
  0x38   : > { %9150 = vst [vmem:[#allocation26_spill] sm:$0xff] %v6859_v56  ;;  %v6296_v23 = vld [vmem:[#allocation2 + $0x46c] sm:$0xf]  ;;  %v4764_v24 = vld [vmem:[#allocation2 + $0x478] sm:$0xf0]  ;;  %v6871_v44 = vor.u32 %v6302_v9, %v4778_v6  ;;  %v6880_v50 = vor.u32 %v6299_v5, %v4772_v22 }
  0x39   : > { %939 = vmatpush.bf16.msrb.mxu0 %v6841_v28  ;;  %9151 = vst [vmem:[#allocation27_spill] sm:$0xff] %v6862_v1  ;;  %v4586_v26 = vld [vmem:[#allocation2 + $0x308] sm:$0xf]  ;;  %v6254_v32 = vld [vmem:[#allocation2 + $0x314] sm:$0xf0]  ;;  %v6876_v49 = vor.u32 %v6296_v23, %v4764_v24 }
  0x3a   : > { %909 = vmatpush.bf16.msrb.mxu1 %v6853_v41  ;;  %9152 = vst [vmem:[#allocation28_spill] sm:$0xff] %v6866_v15  ;;  %v4762_v35 = vld [vmem:[#allocation2 + $0x468] sm:$0xf]  ;;  %v6298_v46 = vld [vmem:[#allocation2 + $0x474] sm:$0xf0]  ;;  %v6874_v41 = vor.u32 %v6267_v57, %v4644_v58  ;;  %v6882_v53 = vor.u32 %v6254_v32, %v4586_v26 }
  0x3b   : > { %887 = vmatpush.bf16.msrb.mxu2 %v6845_v30  ;;  %900 = vmatpush.bf16.msrb.mxu3 %v6851_v40  ;;  %9153 = vst [vmem:[#allocation29_spill] sm:$0xff] %v6868_v18  ;;  %v6264_v30 = vld [vmem:[#allocation2 + $0x36c] sm:$0xf]  ;;  %v4636_v28 = vld [vmem:[#allocation2 + $0x378] sm:$0xf0]  ;;  %v6884_v9 = vor.u32 %v6298_v46, %v4762_v35 }
  0x3c   : > { %9154 = vst [vmem:[#allocation30_spill] sm:$0xff] %v6871_v44  ;;  %v6292_v54 = vld [vmem:[#allocation2 + $0x44c] sm:$0xf]  ;;  %v4748_v6 = vld [vmem:[#allocation2 + $0x458] sm:$0xf0] }
  0x3d   : > { %940 = vmatpush.bf16.msrb.mxu0 %v6859_v56  ;;  %9155 = vst [vmem:[#allocation31_spill] sm:$0xff] %v6874_v41  ;;  %v6886_v56 = vor.u32 %v6264_v30, %v4636_v28  ;;  %v4570_v40 = vld [vmem:[#allocation2 + $0x2e8] sm:$0xf]  ;;  %v6294_v58 = vld [vmem:[#allocation2 + $0x454] sm:$0xf0]  ;;  %v6891_v5 = vor.u32 %v6292_v54, %v4748_v6 }
  0x3e   : > { %9156 = vst [vmem:[#allocation32_spill] sm:$0xff] %v6876_v49  ;;  %910 = vmatpush.bf16.msrb.mxu1 %v6868_v18  ;;  %v4746_v57 = vld [vmem:[#allocation2 + $0x448] sm:$0xf]  ;;  %v6260_v23 = vld [vmem:[#allocation2 + $0x34c] sm:$0xf] }
  0x3f   : > { %888 = vmatpush.bf16.msrb.mxu2 %v6862_v1  ;;  %901 = vmatpush.bf16.msrb.mxu3 %v6866_v15  ;;  %9157 = vst [vmem:[#allocation33_spill] sm:$0xff] %v6880_v50  ;;  %v6250_v1 = vld [vmem:[#allocation2 + $0x2f4] sm:$0xf0]  ;;  %v4620_v24 = vld [vmem:[#allocation2 + $0x358] sm:$0xf0]  ;;  %v6899_v26 = vor.u32 %v6294_v58, %v4746_v57 }
  0x40   : > { %9158 = vst [vmem:[#allocation34_spill] sm:$0xff] %v6882_v53  ;;  %v6895_v28 = vor.u32 %v6250_v1, %v4570_v40  ;;  %v6288_v30 = vld [vmem:[#allocation2 + $0x42c] sm:$0xf]  ;;  %v4732_v22 = vld [vmem:[#allocation2 + $0x438] sm:$0xf0]  ;;  %v6901_v32 = vor.u32 %v6260_v23, %v4620_v24 }
  0x41   : > { %9159 = vst [vmem:[#allocation35_spill] sm:$0xff] %v6884_v9  ;;  %941 = vmatpush.bf16.msrb.mxu0 %v6871_v44  ;;  %v4554_v35 = vld [vmem:[#allocation2 + $0x2c8] sm:$0xf]  ;;  %v6246_v46 = vld [vmem:[#allocation2 + $0x2d4] sm:$0xf0]  ;;  %v6905_v40 = vor.u32 %v6288_v30, %v4732_v22 }
  0x42   : > { %9160 = vst [vmem:[#allocation36_spill] sm:$0xff] %v6886_v56  ;;  %911 = vmatpush.bf16.msrb.mxu1 %v6882_v53  ;;  %v4730_v54 = vld [vmem:[#allocation2 + $0x428] sm:$0xf]  ;;  %v6290_v6 = vld [vmem:[#allocation2 + $0x434] sm:$0xf0]  ;;  %v6908_v1 = vor.u32 %v6246_v46, %v4554_v35 }
  0x43   : > { %889 = vmatpush.bf16.msrb.mxu2 %v6874_v41  ;;  %9161 = vst [vmem:[#allocation37_spill] sm:$0xff] %v6891_v5  ;;  %902 = vmatpush.bf16.msrb.mxu3 %v6880_v50  ;;  %v6256_v41 = vld [vmem:[#allocation2 + $0x32c] sm:$0xf]  ;;  %v4604_v53 = vld [vmem:[#allocation2 + $0x338] sm:$0xf0]  ;;  %v6912_v23 = vor.u32 %v6290_v6, %v4730_v54 }
  0x44   : > { %9162 = vst [vmem:[#allocation38_spill] sm:$0xff] %v6895_v28  ;;  %v6284_v57 = vld [vmem:[#allocation2 + $0x40c] sm:$0xf]  ;;  %v4716_v58 = vld [vmem:[#allocation2 + $0x418] sm:$0xf0]  ;;  %v6914_v24 = vor.u32 %v6256_v41, %v4604_v53  ;;  %4834 = vmatmul.msk.bf16.vlgmr.msrb.gmra.mxu0 %vm826_vm0, %v6804_v36 }
  0x45   : > { %960 = vmatpush.bf16.msra.mxu0 %v6876_v49  ;;  %9163 = vst [vmem:[#allocation39_spill] sm:$0xff] %v6899_v26  ;;  %v4714_v49 = vld [vmem:[#allocation2 + $0x408] sm:$0xf]  ;;  %v6286_v30 = vld [vmem:[#allocation2 + $0x414] sm:$0xf0]  ;;  %v6921_v46 = vor.u32 %v6284_v57, %v4716_v58 }
  0x46   : > { %9164 = vst [vmem:[#allocation40_spill] sm:$0xff] %v6901_v32  ;;  %890 = vmatmul.bf16.vlgmr.msrb.gmra.mxu2 %v6847_v39  ;;  %912 = vmatpush.bf16.msrb.mxu1 %v6895_v28  ;;  %v6252_v22 = vld [vmem:[#allocation2 + $0x30c] sm:$0xf]  ;;  %v4588_v35 = vld [vmem:[#allocation2 + $0x318] sm:$0xf0]  ;;  %v6928_v6 = vor.u32 %v6286_v30, %v4714_v49 }
  0x47   : > { %921 = vmatpush.bf16.msra.mxu3 %v6884_v9  ;;  %947 = vmatpush.bf16.msra.mxu2 %v6886_v56  ;;  %9165 = vst [vmem:[#allocation41_spill] sm:$0xff] %v6905_v40  ;;  %v4538_v56 = vld [vmem:[#allocation2 + $0x2a8] sm:$0xf]  ;;  %v6242_v9 = vld [vmem:[#allocation2 + $0x2b4] sm:$0xf0] }
  0x48   : > { %9166 = vst [vmem:[#allocation42_spill] sm:$0xff] %v6908_v1  ;;  %4833 = vmatmul.msk.bf16.vlgmr.msrb.gmra.mxu3 %vm826_vm0, %v6804_v36  ;;  %v6924_v41 = vor.u32 %v6242_v9, %v4538_v56  ;;  %v6280_v53 = vld [vmem:[#allocation2 + $0x3ec] sm:$0xf]  ;;  %v4700_v54 = vld [vmem:[#allocation2 + $0x3f8] sm:$0xf0] }
  0x49   : > { %961 = vmatpush.bf16.msra.mxu0 %v6891_v5  ;;  %9167 = vst [vmem:[#allocation43_spill] sm:$0xff] %v6912_v23  ;;  %v6238_v28 = vld [vmem:[#allocation2 + $0x294] sm:$0xf0]  ;;  %v4698_v5 = vld [vmem:[#allocation2 + $0x3e8] sm:$0xf]  ;;  %v6933_v56 = vor.u32 %v6280_v53, %v4700_v54 }
  0x4a   : > { %9168 = vst [vmem:[#allocation44_spill] sm:$0xff] %v6914_v24  ;;  %913 = vmatpush.bf16.msrb.mxu1 %v6908_v1  ;;  %v6248_v57 = vld [vmem:[#allocation2 + $0x2ec] sm:$0xf]  ;;  %v4572_v58 = vld [vmem:[#allocation2 + $0x2f8] sm:$0xf0] }
  0x4b   : > { %922 = vmatpush.bf16.msra.mxu3 %v6899_v26  ;;  %948 = vmatpush.bf16.msra.mxu2 %v6901_v32  ;;  %9169 = vst [vmem:[#allocation45_spill] sm:$0xff] %v6921_v46  ;;  %v6930_v32 = vor.u32 %v6252_v22, %v4588_v35  ;;  %v4522_v26 = vld [vmem:[#allocation2 + $0x288] sm:$0xf]  ;;  %v6312_v9 = vld [vmem:[#allocation2 + $0x4ec] sm:$0xf]  ;;  %v6942_v35 = vor.u32 %v6248_v57, %v4572_v58 }
  0x4c   : > { %9170 = vst [vmem:[#allocation46_spill] sm:$0xff] %v6924_v41  ;;  %v4828_v1 = vld [vmem:[#allocation2 + $0x4f8] sm:$0xf0]  ;;  %v6276_v49 = vld [vmem:[#allocation2 + $0x3cc] sm:$0xf] }
  0x4d   : > { %962 = vmatpush.bf16.msra.mxu0 %v6905_v40  ;;  %9171 = vst [vmem:[#allocation47_spill] sm:$0xff] %v6928_v6  ;;  %v6282_v40 = vld [vmem:[#allocation2 + $0x3f4] sm:$0xf0]  ;;  %v4684_v30 = vld [vmem:[#allocation2 + $0x3d8] sm:$0xf0] }
  0x4e   : > { %9172 = vst [vmem:[#allocation48_spill] sm:$0xff] %v6930_v32  ;;  %914 = vmatpush.bf16.msrb.mxu1 %v6924_v41  ;;  %v6940_v22 = vor.u32 %v6282_v40, %v4698_v5  ;;  %v6278_v53 = vld [vmem:[#allocation2 + $0x3d4] sm:$0xf0]  ;;  %v6244_v54 = vld [vmem:[#allocation2 + $0x2cc] sm:$0xf] }
  0x4f   : > { %923 = vmatpush.bf16.msra.mxu3 %v6912_v23  ;;  %949 = vmatpush.bf16.msra.mxu2 %v6914_v24  ;;  %9173 = vst [vmem:[#allocation49_spill] sm:$0xff] %v6933_v56  ;;  %v6936_v23 = vor.u32 %v6238_v28, %v4522_v26  ;;  %v4682_v24 = vld [vmem:[#allocation2 + $0x3c8] sm:$0xf]  ;;  %v4556_v50 = vld [vmem:[#allocation2 + $0x2d8] sm:$0xf0]  ;;  %v6947_v28 = vor.u32 %v6276_v49, %v4684_v30 }
  0x50   : > { %9175 = vst [vmem:[#allocation51_spill] sm:$0xff] %v6940_v22  ;;  %v6308_v26 = vld [vmem:[#allocation2 + $0x4cc] sm:$0xf]  ;;  %v4812_v41 = vld [vmem:[#allocation2 + $0x4d8] sm:$0xf0]  ;;  %v6952_v5 = vor.u32 %v6278_v53, %v4682_v24  ;;  %v6954_v40 = vor.u32 %v6244_v54, %v4556_v50 }
  0x51   : > { %963 = vmatpush.bf16.msra.mxu0 %v6921_v46  ;;  %9174 = vst [vmem:[#allocation50_spill] sm:$0xff] %v6936_v23  ;;  %v6944_v46 = vor.u32 %v6312_v9, %v4828_v1  ;;  %v4666_v1 = vld [vmem:[#allocation2 + $0x3a8] sm:$0xf]  ;;  %v6957_v57 = vor.u32 %v6308_v26, %v4812_v41  ;;  %v6274_v58 = vld [vmem:[#allocation2 + $0x3b4] sm:$0xf0] }
  0x52   : > { %9176 = vst [vmem:[#allocation52_spill] sm:$0xff] %v6942_v35  ;;  %915 = vmatpush.bf16.msrb.mxu1 %v6936_v23  ;;  %v6240_v9 = vld [vmem:[#allocation2 + $0x2ac] sm:$0xf]  ;;  %v4540_v49 = vld [vmem:[#allocation2 + $0x2b8] sm:$0xf0]  ;;  %v6965_v41 = vor.u32 %v6274_v58, %v4666_v1 }
  0x53   : > { %924 = vmatpush.bf16.msra.mxu3 %v6928_v6  ;;  %950 = vmatpush.bf16.msra.mxu2 %v6930_v32  ;;  %9177 = vst [vmem:[#allocation53_spill] sm:$0xff] %v6944_v46  ;;  %v6272_v6 = vld [vmem:[#allocation2 + $0x3ac] sm:$0xf]  ;;  %v4668_v32 = vld [vmem:[#allocation2 + $0x3b8] sm:$0xf0]  ;;  %v6967_v26 = vor.u32 %v6240_v9, %v4540_v49 }
  0x54   : > { %9178 = vst [vmem:[#allocation54_spill] sm:$0xff] %v6947_v28  ;;  %v6960_v30 = vor.u32 %v6272_v6, %v4668_v32  ;;  %v6304_v23 = vld [vmem:[#allocation2 + $0x4ac] sm:$0xf]  ;;  %v4650_v24 = vld [vmem:[#allocation2 + $0x388] sm:$0xf] }
  0x55   : > { %964 = vmatpush.bf16.msra.mxu0 %v6933_v56  ;;  %9179 = vst [vmem:[#allocation55_spill] sm:$0xff] %v6952_v5  ;;  %916 = vmatmul.bf16.vlgmr.msrb.gmra.mxu1 %v6839_v27  ;;  %v6270_v53 = vld [vmem:[#allocation2 + $0x394] sm:$0xf0]  ;;  %v6268_v50 = vld [vmem:[#allocation2 + $0x38c] sm:$0xf] }
  0x56   : > { %9180 = vst [vmem:[#allocation56_spill] sm:$0xff] %v6954_v40  ;;  %977 = vmatpush.bf16.msra.mxu1 %v6944_v46  ;;  %v4652_v54 = vld [vmem:[#allocation2 + $0x398] sm:$0xf0]  ;;  %v6236_v46 = vld [vmem:[#allocation2 + $0x28c] sm:$0xf] }
  0x57   : > { %925 = vmatpush.bf16.msra.mxu3 %v6940_v22  ;;  %951 = vmatpush.bf16.msra.mxu2 %v6942_v35  ;;  %9181 = vst [vmem:[#allocation57_spill] sm:$0xff] %v6957_v57  ;;  %v4796_v22 = vld [vmem:[#allocation2 + $0x4b8] sm:$0xf0]  ;;  %v4952_v32 = vld [vmem:[#allocation2 + $0xf0] sm:$0xf0]  ;;  %v6973_v18 = vor.u32 %v6268_v50, %v4652_v54 }
  0x58   : > { %9182 = vst [vmem:[#allocation58_spill] sm:$0xff] %v6960_v30  ;;  %v6970_v6 = vor.u32 %v6304_v23, %v4796_v22  ;;  %v4524_v35 = vld [vmem:[#allocation2 + $0x298] sm:$0xf0]  ;;  %v6300_v56 = vld [vmem:[#allocation2 + $0x48c] sm:$0xf]  ;;  %v6979_v23 = vor.u32 %v6270_v53, %v4650_v24 }
  0x59   : > { %965 = vmatpush.bf16.msra.mxu0 %v6947_v28  ;;  %9183 = vst [vmem:[#allocation59_spill] sm:$0xff] %v6965_v41  ;;  %v6183_v28 = vld [vmem:[#allocation2 + $0xe4] sm:$0xf]  ;;  %v4780_v44 = vld [vmem:[#allocation2 + $0x498] sm:$0xf0]  ;;  %v6981_v22 = vor.u32 %v6236_v46, %v4524_v35 }
  0x5a   : > { %9184 = vst [vmem:[#allocation60_spill] sm:$0xff] %v6967_v26  ;;  %978 = vmatpush.bf16.msra.mxu1 %v6957_v57  ;;  %v5078_v1 = vld [vmem:[#allocation2 + $0x1e0] sm:$0xf]  ;;  %v6217_v58 = vld [vmem:[#allocation2 + $0x1ec] sm:$0xf0]  ;;  %v6975_v15 = vor.u32 %v6183_v28, %v4952_v32  ;;  %v6984_v50 = vor.u32 %v6300_v56, %v4780_v44 }
  0x5b   : > { %926 = vmatpush.bf16.msra.mxu3 %v6952_v5  ;;  %952 = vmatpush.bf16.msra.mxu2 %v6954_v40  ;;  %9185 = vst [vmem:[#allocation61_spill] sm:$0xff] %v6970_v6  ;;  %v4950_v5 = vld [vmem:[#allocation2 + $0xe0] sm:$0xf]  ;;  %v6185_v40 = vld [vmem:[#allocation2 + $0xec] sm:$0xf0]  ;;  %v6989_v28 = vor.u32 %v6217_v58, %v5078_v1 }
  0x5c   : > { %9186 = vst [vmem:[#allocation62_spill] sm:$0xff] %v6973_v18  ;;  %v5142_v9 = vld [vmem:[#allocation2 + $0x260] sm:$0xf]  ;;  %v6233_v49 = vld [vmem:[#allocation2 + $0x26c] sm:$0xf0]  ;;  %v6986_v54 = vor.u32 %v6185_v40, %v4950_v5 }
  0x5d   : > { %966 = vmatpush.bf16.msra.mxu0 %v6960_v30  ;;  %9187 = vst [vmem:[#allocation63_spill] sm:$0xff] %v6975_v15  ;;  %v6179_v57 = vld [vmem:[#allocation2 + $0xc4] sm:$0xf]  ;;  %v4936_v30 = vld [vmem:[#allocation2 + $0xd0] sm:$0xf0]  ;;  %v6991_v32 = vor.u32 %v6233_v49, %v5142_v9 }
  0x5e   : > { %9188 = vst [vmem:[#allocation64_spill] sm:$0xff] %v6979_v23  ;;  %979 = vmatpush.bf16.msra.mxu1 %v6970_v6  ;;  %v5062_v24 = vld [vmem:[#allocation2 + $0x1c0] sm:$0xf]  ;;  %v6213_v46 = vld [vmem:[#allocation2 + $0x1cc] sm:$0xf0]  ;;  %v6994_v14 = vor.u32 %v6179_v57, %v4936_v30 }
  0x5f   : > { %927 = vmatpush.bf16.msra.mxu3 %v6965_v41  ;;  %953 = vmatpush.bf16.msra.mxu2 %v6967_v26  ;;  %9189 = vst [vmem:[#allocation65_spill] sm:$0xff] %v6981_v22  ;;  %v4934_v41 = vld [vmem:[#allocation2 + $0xc0] sm:$0xf]  ;;  %v6181_v26 = vld [vmem:[#allocation2 + $0xcc] sm:$0xf0]  ;;  %v7004_v40 = vor.u32 %v6213_v46, %v5062_v24 }
  0x60   : > { %9190 = vst [vmem:[#allocation66_spill] sm:$0xff] %v6984_v50  ;;  %v5126_v35 = vld [vmem:[#allocation2 + $0x240] sm:$0xf]  ;;  %v6229_v53 = vld [vmem:[#allocation2 + $0x24c] sm:$0xf0]  ;;  %v7000_v5 = vor.u32 %v6181_v26, %v4934_v41 }
  0x61   : > { %9191 = vst [vmem:[#allocation67_spill] sm:$0xff] %v6986_v54  ;;  %967 = vmatpush.bf16.msra.mxu0 %v6973_v18  ;;  %v6175_v44 = vld [vmem:[#allocation2 + $0xa4] sm:$0xf]  ;;  %v4920_v56 = vld [vmem:[#allocation2 + $0xb0] sm:$0xf0]  ;;  %v7006_v57 = vor.u32 %v6229_v53, %v5126_v35 }
  0x62   : > { %9192 = vst [vmem:[#allocation68_spill] sm:$0xff] %v6989_v28  ;;  %980 = vmatpush.bf16.msra.mxu1 %v6984_v50  ;;  %v4918_v30 = vld [vmem:[#allocation2 + $0xa0] sm:$0xf]  ;;  %v6177_v1 = vld [vmem:[#allocation2 + $0xac] sm:$0xf0]  ;;  %v7010_v41 = vor.u32 %v6175_v44, %v4920_v56 }
  0x63   : > { %9193 = vst [vmem:[#allocation69_spill] sm:$0xff] %v6991_v32  ;;  %928 = vmatpush.bf16.msra.mxu3 %v6979_v23  ;;  %954 = vmatpush.bf16.msra.mxu2 %v6981_v22  ;;  %v5046_v58 = vld [vmem:[#allocation2 + $0x1a0] sm:$0xf]  ;;  %v6209_v9 = vld [vmem:[#allocation2 + $0x1ac] sm:$0xf0]  ;;  %v7015_v46 = vor.u32 %v6177_v1, %v4918_v30 }
  0x64   : > { %9194 = vst [vmem:[#allocation70_spill] sm:$0xff] %v6994_v14  ;;  %v5110_v49 = vld [vmem:[#allocation2 + $0x220] sm:$0xf]  ;;  %v6171_v26 = vld [vmem:[#allocation2 + $0x84] sm:$0xf]  ;;  %968 = vmatmul.bf16.vlgmr.msra.gmra.mxu0 %v6847_v39  ;;  %v7019_v53 = vor.u32 %v6209_v9, %v5046_v58 }
  0x65   : > { %1438 = vmatpush.bf16.msrb.mxu0 %v6975_v15  ;;  %9195 = vst [vmem:[#allocation71_spill] sm:$0xff] %v7000_v5  ;;  %v4904_v24 = vld [vmem:[#allocation2 + $0x90] sm:$0xf0]  ;;  %v4902_v35 = vld [vmem:[#allocation2 + $0x80] sm:$0xf]  ;;  %4835 = vmatmul.msk.bf16.vlgmr.msra.gmra.mxu1 %vm826_vm0, %v6804_v36 }
  0x66   : > { %1412 = vmatpush.bf16.msrb.mxu1 %v6989_v28  ;;  %9196 = vst [vmem:[#allocation72_spill] sm:$0xff] %v7004_v40  ;;  %929 = vmatmul.bf16.vlgmr.msra.gmra.mxu3 %v6847_v39  ;;  %v6173_v44 = vld [vmem:[#allocation2 + $0x8c] sm:$0xf0]  ;;  %v5030_v56 = vld [vmem:[#allocation2 + $0x180] sm:$0xf]  ;;  %v7031_v39 = vor.u32 %v6171_v26, %v4904_v24 }
  0x67   : > { %1399 = vmatpush.bf16.msrb.mxu3 %v6986_v54  ;;  %1429 = vmatpush.bf16.msrb.mxu2 %v6991_v32  ;;  %9197 = vst [vmem:[#allocation73_spill] sm:$0xff] %v7006_v57  ;;  %v6225_v54 = vld [vmem:[#allocation2 + $0x22c] sm:$0xf0]  ;;  %v5094_v30 = vld [vmem:[#allocation2 + $0x200] sm:$0xf] }
  0x68   : > { %9198 = vst [vmem:[#allocation74_spill] sm:$0xff] %v7010_v41  ;;  %955 = vmatmul.bf16.vlgmr.msra.gmra.mxu2 %v6839_v27  ;;  %v6205_v27 = vld [vmem:[#allocation2 + $0x18c] sm:$0xf0]  ;;  %v6215_v58 = vld [vmem:[#allocation2 + $0x1e4] sm:$0xf] }
  0x69   : > { %1439 = vmatpush.bf16.msrb.mxu0 %v6994_v14  ;;  %9199 = vst [vmem:[#allocation75_spill] sm:$0xff] %v7015_v46  ;;  %v7021_v14 = vor.u32 %v6225_v54, %v5110_v49  ;;  %v6221_v1 = vld [vmem:[#allocation2 + $0x20c] sm:$0xf0]  ;;  %v5080_v54 = vld [vmem:[#allocation2 + $0x1f0] sm:$0xf0] }
  0x6a   : > { %1413 = vmatpush.bf16.msrb.mxu1 %v7004_v40  ;;  %9200 = vst [vmem:[#allocation76_spill] sm:$0xff] %v7019_v53  ;;  %v6167_v9 = vld [vmem:[#allocation2 + $0x64] sm:$0xf]  ;;  %v4888_v49 = vld [vmem:[#allocation2 + $0x70] sm:$0xf0]  ;;  %v7043_v26 = vor.u32 %v6221_v1, %v5094_v30  ;;  %v7046_v36 = vor.u32 %v6215_v58, %v5080_v54 }
  0x6b   : > { %1400 = vmatpush.bf16.msrb.mxu3 %v7000_v5  ;;  %1430 = vmatpush.bf16.msrb.mxu2 %v7006_v57  ;;  %9201 = vst [vmem:[#allocation77_spill] sm:$0xff] %v7021_v14  ;;  %v7036_v57 = vor.u32 %v6173_v44, %v4902_v35  ;;  %v252_v40 = vld [vmem:[%s7028_s10 + $0x8] sm:$0xf]  ;;  %v4886_v24 = vld [vmem:[#allocation2 + $0x60] sm:$0xf] }
  0x6c   : > { %9202 = vst [vmem:[#allocation78_spill] sm:$0xff] %v7031_v39  ;;  %v6169_v5 = vld [vmem:[#allocation2 + $0x6c] sm:$0xf0]  ;;  %v5014_v32 = vld [vmem:[#allocation2 + $0x160] sm:$0xf]  ;;  %v990_v22 = vunpack.c.l.b16 %v252_v40 }
  0x6d   : > { %1440 = vmatpush.bf16.msrb.mxu0 %v7010_v41  ;;  %9203 = vst [vmem:[#allocation79_spill] sm:$0xff] %v7036_v57  ;;  %v7041_v41 = vor.u32 %v6205_v27, %v5030_v56  ;;  %v6201_v28 = vld [vmem:[#allocation2 + $0x16c] sm:$0xf0]  ;;  %v6211_v35 = vld [vmem:[#allocation2 + $0x1c4] sm:$0xf]  ;;  %v7051_v27 = vor.u32 %v6169_v5, %v4886_v24 }
  0x6e   : > { %1414 = vmatpush.bf16.msrb.mxu1 %v7019_v53  ;;  %9205 = vst [vmem:[#allocation81_spill] sm:$0xff] %v7043_v26  ;;  %v5064_v44 = vld [vmem:[#allocation2 + $0x1d0] sm:$0xf0]  ;;  %v6163_v50 = vld [vmem:[#allocation2 + $0x44] sm:$0xf]  ;;  %v7055_v56 = vor.u32 %v6201_v28, %v5014_v32 }
  0x6f   : > { %1401 = vmatpush.bf16.msrb.mxu3 %v7015_v46  ;;  %1431 = vmatpush.bf16.msrb.mxu2 %v7021_v14  ;;  %9204 = vst [vmem:[#allocation80_spill] sm:$0xff] %v7041_v41  ;;  %v7048_v46 = vor.u32 %v6167_v9, %v4888_v49  ;;  %v4872_v53 = vld [vmem:[#allocation2 + $0x50] sm:$0xf0]  ;;  %v4870_v30 = vld [vmem:[#allocation2 + $0x40] sm:$0xf]  ;;  %v7059_v58 = vor.u32 %v6211_v35, %v5064_v44 }
  0x70   : > { %9206 = vst [vmem:[#allocation82_spill] sm:$0xff] %v7046_v36  ;;  %v6165_v1 = vld [vmem:[#allocation2 + $0x4c] sm:$0xf0]  ;;  %v4998_v54 = vld [vmem:[#allocation2 + $0x140] sm:$0xf]  ;;  %v7061_v9 = vor.u32 %v6163_v50, %v4872_v53 }
  0x71   : > { %1441 = vmatpush.bf16.msrb.mxu0 %v7031_v39  ;;  %9207 = vst [vmem:[#allocation83_spill] sm:$0xff] %v7048_v46  ;;  %v6197_v40 = vld [vmem:[#allocation2 + $0x14c] sm:$0xf0]  ;;  %v6207_v5 = vld [vmem:[#allocation2 + $0x1a4] sm:$0xf]  ;;  %v7066_v28 = vor.u32 %v6165_v1, %v4870_v30 }
  0x72   : > { %9208 = vst [vmem:[#allocation84_spill] sm:$0xff] %v7051_v27  ;;  %1415 = vmatpush.bf16.msrb.mxu1 %v7041_v41  ;;  %v5048_v49 = vld [vmem:[#allocation2 + $0x1b0] sm:$0xf0]  ;;  %v6159_v24 = vld [vmem:[#allocation2 + $0x24] sm:$0xf]  ;;  %v7069_v32 = vor.u32 %v6197_v40, %v4998_v54 }
  0x73   : > { %1402 = vmatpush.bf16.msrb.mxu3 %v7036_v57  ;;  %1432 = vmatpush.bf16.msrb.mxu2 %v7043_v26  ;;  %9209 = vst [vmem:[#allocation85_spill] sm:$0xff] %v7055_v56  ;;  %v4856_v41 = vld [vmem:[#allocation2 + $0x30] sm:$0xf0]  ;;  %v7063_v57 = vpack.c.b16 %v990_v22, %v990_v22  ;;  %v4854_v35 = vld [vmem:[#allocation2 + $0x20] sm:$0xf]  ;;  %v7073_v50 = vor.u32 %v6207_v5, %v5048_v49 }
  0x74   : > { %9210 = vst [vmem:[#allocation86_spill] sm:$0xff] %v7059_v58  ;;  %v6161_v44 = vld [vmem:[#allocation2 + $0x2c] sm:$0xf0]  ;;  %v7075_v53 = vor.u32 %v6159_v24, %v4856_v41  ;;  %v5032_v30 = vld [vmem:[#allocation2 + $0x190] sm:$0xf0] }
  0x75   : > { %1442 = vmatpush.bf16.msrb.mxu0 %v7048_v46  ;;  %9211 = vst [vmem:[#allocation87_spill] sm:$0xff] %v7061_v9  ;;  %v4982_v46 = vld [vmem:[#allocation2 + $0x120] sm:$0xf]  ;;  %v6193_v22 = vld [vmem:[#allocation2 + $0x12c] sm:$0xf0] }
  0x76   : > { %9212 = vst [vmem:[#allocation88_spill] sm:$0xff] %v7066_v28  ;;  %1416 = vmatpush.bf16.msrb.mxu1 %v7055_v56  ;;  %v4838_v1 = vld [vmem:[#allocation2] sm:$0xf]  ;;  %v6155_v54 = vld [vmem:[#allocation2 + $0x4] sm:$0xf]  ;;  %v7080_v56 = vor.u32 %v6161_v44, %v4854_v35  ;;  %v7084_v5 = vor.u32 %v6193_v22, %v4982_v46 }
  0x77   : > { %1451 = vmatpush.bf16.msra.mxu2 %v7046_v36  ;;  %1403 = vmatpush.bf16.msrb.mxu3 %v7051_v27  ;;  %9213 = vst [vmem:[#allocation89_spill] sm:$0xff] %v7069_v32  ;;  %v6203_v27 = vld [vmem:[#allocation2 + $0x184] sm:$0xf]  ;;  %v4840_v40 = vld [vmem:[#allocation2 + $0x10] sm:$0xf0] }
  0x78   : > { %9214 = vst [vmem:[#allocation90_spill] sm:$0xff] %v7073_v50  ;;  %5156 = vmatmul.msk.bf16.vlgmr.msrb.gmra.mxu2 %vm826_vm0, %v7063_v57  ;;  %v6234_v36 = vld [vmem:[#allocation2 + $0x274] sm:$0xf0]  ;;  %v6157_v41 = vld [vmem:[#allocation2 + $0xc] sm:$0xf0]  ;;  %v7088_v26 = vor.u32 %v6203_v27, %v5032_v30  ;;  %v7090_v39 = vor.u32 %v6155_v54, %v4840_v40 }
  0x79   : > { %1443 = vmatpush.bf16.msrb.mxu0 %v7061_v9  ;;  %9215 = vst [vmem:[#allocation91_spill] sm:$0xff] %v7075_v53  ;;  %v251_v9 = vld [vmem:[%s7028_s10] sm:$0xff]  ;;  %v6189_v24 = vld [vmem:[#allocation2 + $0x10c] sm:$0xf0]  ;;  %v5016_v14 = vld [vmem:[#allocation2 + $0x170] sm:$0xf0]  ;;  %v7097_v22 = vor.u32 %v6157_v41, %v4838_v1 }
  0x7a   : > { %9216 = vst [vmem:[#allocation92_spill] sm:$0xff] %v7080_v56  ;;  %1417 = vmatpush.bf16.msrb.mxu1 %v7069_v32  ;;  %v4966_v49 = vld [vmem:[#allocation2 + $0x100] sm:$0xf]  ;;  %v6199_v35 = vld [vmem:[#allocation2 + $0x164] sm:$0xf]  ;;  %v7094_v46 = vunpack.c.l.b16 %v251_v9 }
  0x7b   : > { %1452 = vmatpush.bf16.msra.mxu2 %v7059_v58  ;;  %1404 = vmatpush.bf16.msrb.mxu3 %v7066_v28  ;;  %v5150_v58 = vld [vmem:[#allocation2 + $0x268] sm:$0xf]  ;;  %9217 = vst [vmem:[#allocation93_spill] sm:$0xff] %v7084_v5  ;;  %v6231_v44 = vld [vmem:[#allocation2 + $0x264] sm:$0xf]  ;;  %v7102_v27 = vor.u32 %v6189_v24, %v4966_v49 }
  0x7c   : > { %9218 = vst [vmem:[#allocation94_spill] sm:$0xff] %v7088_v26  ;;  %v5144_v28 = vld [vmem:[#allocation2 + $0x270] sm:$0xf0]  ;;  %v4958_v23 = vld [vmem:[#allocation2 + $0xe8] sm:$0xf]  ;;  %v7092_v32 = vor.u32 %v6234_v36, %v5150_v58  ;;  %v7108_v36 = vor.u32 %v6199_v35, %v5016_v14  ;;  %v7115_v49 = vpack.c.b16 %v7094_v46, %v7094_v46 }
  0x7d   : > { %1444 = vmatpush.bf16.msrb.mxu0 %v7075_v53  ;;  %9219 = vst [vmem:[#allocation95_spill] sm:$0xff] %v7090_v39  ;;  %v6186_v15 = vld [vmem:[#allocation2 + $0xf4] sm:$0xf0]  ;;  %v7104_v30 = vor.u32 %v6231_v44, %v5144_v28  ;;  %v5134_v54 = vld [vmem:[#allocation2 + $0x248] sm:$0xf] }
  0x7e   : > { %9220 = vst [vmem:[#allocation96_spill] sm:$0xff] %v7092_v32  ;;  %1418 = vmatpush.bf16.msrb.mxu1 %v7084_v5  ;;  %v6230_v40 = vld [vmem:[#allocation2 + $0x254] sm:$0xf0]  ;;  %v7110_v58 = vor.u32 %v6186_v15, %v4958_v23  ;;  %v6195_v1 = vld [vmem:[#allocation2 + $0x144] sm:$0xf] }
  0x7f   : > { %1453 = vmatpush.bf16.msra.mxu2 %v7073_v50  ;;  %1405 = vmatpush.bf16.msrb.mxu3 %v7080_v56  ;;  %9221 = vst [vmem:[#allocation97_spill] sm:$0xff] %v7097_v22  ;;  %v7099_v50 = vunpack.c.h.b16 %v251_v9  ;;  %v6227_v41 = vld [vmem:[#allocation2 + $0x244] sm:$0xf]  ;;  %v5128_v9 = vld [vmem:[#allocation2 + $0x250] sm:$0xf0] }
  0x80   : > { %9222 = vst [vmem:[#allocation98_spill] sm:$0xff] %v7102_v27  ;;  %v5000_v28 = vld [vmem:[#allocation2 + $0x150] sm:$0xf0]  ;;  %v4942_v24 = vld [vmem:[#allocation2 + $0xc8] sm:$0xf]  ;;  %v7126_v15 = vor.u32 %v6227_v41, %v5128_v9 }
  0x81   : > { %9223 = vst [vmem:[#allocation99_spill] sm:$0xff] %v7104_v30  ;;  %1445 = vmatpush.bf16.msrb.mxu0 %v7090_v39  ;;  %v6182_v44 = vld [vmem:[#allocation2 + $0xd4] sm:$0xf0]  ;;  %v7122_v14 = vpack.c.b16 %v7099_v50, %v7099_v50  ;;  %v5118_v23 = vld [vmem:[#allocation2 + $0x228] sm:$0xf] }
  0x82   : > { %9224 = vst [vmem:[#allocation100_spill] sm:$0xff] %v7108_v36  ;;  %1419 = vmatpush.bf16.msrb.mxu1 %v7102_v27  ;;  %v6226_v35 = vld [vmem:[#allocation2 + $0x234] sm:$0xf0]  ;;  %v5112_v39 = vld [vmem:[#allocation2 + $0x230] sm:$0xf0] }
  0x83   : > { %1454 = vmatpush.bf16.msra.mxu2 %v7088_v26  ;;  %9225 = vst [vmem:[#allocation101_spill] sm:$0xff] %v7110_v58  ;;  %1406 = vmatpush.bf16.msrb.mxu3 %v7097_v22  ;;  %v7118_v26 = vor.u32 %v6230_v40, %v5134_v54  ;;  %v7132_v54 = vor.u32 %v6182_v44, %v4942_v24  ;;  %v6191_v40 = vld [vmem:[#allocation2 + $0x124] sm:$0xf]  ;;  %v4926_v41 = vld [vmem:[#allocation2 + $0xa8] sm:$0xf] }
  0x84   : > { %9227 = vst [vmem:[#allocation103_spill] sm:$0xff] %v7126_v15  ;;  %v6223_v22 = vld [vmem:[#allocation2 + $0x224] sm:$0xf]  ;;  %1446 = vmatmul.bf16.vlgmr.msrb.gmra.mxu0 %v7115_v49  ;;  %v6178_v9 = vld [vmem:[#allocation2 + $0xb4] sm:$0xf0]  ;;  %v7137_v27 = vor.u32 %v6226_v35, %v5118_v23 }
  0x85   : > { %1507 = vmatpush.bf16.msra.mxu0 %v7092_v32  ;;  %9226 = vst [vmem:[#allocation102_spill] sm:$0xff] %v7118_v26  ;;  %v7130_v32 = vor.u32 %v6195_v1, %v5000_v28  ;;  %1420 = vmatmul.bf16.vlgmr.msrb.gmra.mxu1 %v7122_v14  ;;  %v7141_v1 = vor.u32 %v6223_v22, %v5112_v39  ;;  %v6187_v28 = vld [vmem:[#allocation2 + $0x104] sm:$0xf]  ;;  %v4968_v24 = vld [vmem:[#allocation2 + $0x110] sm:$0xf0] }
  0x86   : > { %1477 = vmatpush.bf16.msra.mxu1 %v7110_v58  ;;  %9229 = vst [vmem:[#allocation105_spill] sm:$0xff] %v7132_v54  ;;  %1407 = vmatmul.bf16.vlgmr.msrb.gmra.mxu3 %v7115_v49  ;;  %v6219_v44 = vld [vmem:[#allocation2 + $0x204] sm:$0xf]  ;;  %v5102_v58 = vld [vmem:[#allocation2 + $0x208] sm:$0xf] }
  0x87   : > { %1468 = vmatpush.bf16.msra.mxu3 %v7104_v30  ;;  %1455 = vmatpush.bf16.msra.mxu2 %v7108_v36  ;;  %9228 = vst [vmem:[#allocation104_spill] sm:$0xff] %v7130_v32  ;;  %v4984_v30 = vld [vmem:[#allocation2 + $0x130] sm:$0xf0]  ;;  %v6222_v36 = vld [vmem:[#allocation2 + $0x214] sm:$0xf0] }
  0x88   : > { %9230 = vst [vmem:[#allocation106_spill] sm:$0xff] %v7137_v27  ;;  %v7145_v5 = vor.u32 %v6191_v40, %v4984_v30  ;;  %v5096_v23 = vld [vmem:[#allocation2 + $0x210] sm:$0xf0]  ;;  %v6216_v35 = vld [vmem:[#allocation2 + $0x1ec] sm:$0xf]  ;;  %v7150_v22 = vor.u32 %v6222_v36, %v5102_v58  ;;  %v7159_v40 = vor.u32 %v6187_v28, %v4968_v24 }
  0x89   : > { %1508 = vmatpush.bf16.msra.mxu0 %v7118_v26  ;;  %9231 = vst [vmem:[#allocation107_spill] sm:$0xff] %v7141_v1  ;;  %v7147_v26 = vor.u32 %v6178_v9, %v4926_v41  ;;  %v5088_v56 = vld [vmem:[#allocation2 + $0x1f8] sm:$0xf0]  ;;  %v4910_v53 = vld [vmem:[#allocation2 + $0x88] sm:$0xf] }
  0x8a   : > { %1478 = vmatpush.bf16.msra.mxu1 %v7132_v54  ;;  %9232 = vst [vmem:[#allocation108_spill] sm:$0xff] %v7145_v5  ;;  %v5086_v39 = vld [vmem:[#allocation2 + $0x1e8] sm:$0xf]  ;;  %v6218_v18 = vld [vmem:[#allocation2 + $0x1f4] sm:$0xf0]  ;;  %v7153_v54 = vor.u32 %v6219_v44, %v5096_v23  ;;  %v7155_v30 = vor.u32 %v6216_v35, %v5088_v56 }
  0x8b   : > { %1469 = vmatpush.bf16.msra.mxu3 %v7126_v15  ;;  %1456 = vmatpush.bf16.msra.mxu2 %v7130_v32  ;;  %9233 = vst [vmem:[#allocation109_spill] sm:$0xff] %v7147_v26  ;;  %v6174_v15 = vld [vmem:[#allocation2 + $0x94] sm:$0xf0]  ;;  %v6184_v6 = vld [vmem:[#allocation2 + $0xec] sm:$0xf]  ;;  %v7163_v58 = vor.u32 %v6218_v18, %v5086_v39 }
  0x8c   : > { %9234 = vst [vmem:[#allocation110_spill] sm:$0xff] %v7150_v22  ;;  %v4960_v4 = vld [vmem:[#allocation2 + $0xf8] sm:$0xf0]  ;;  %v7161_v41 = vor.u32 %v6174_v15, %v4910_v53  ;;  %v6212_v9 = vld [vmem:[#allocation2 + $0x1cc] sm:$0xf] }
  0x8d   : > { %1509 = vmatpush.bf16.msra.mxu0 %v7137_v27  ;;  %9235 = vst [vmem:[#allocation111_spill] sm:$0xff] %v7153_v54  ;;  %v5072_v36 = vld [vmem:[#allocation2 + $0x1d8] sm:$0xf0]  ;;  %v7165_v27 = vor.u32 %v6184_v6, %v4960_v4  ;;  %v4894_v32 = vld [vmem:[#allocation2 + $0x68] sm:$0xf] }
  0x8e   : > { %9236 = vst [vmem:[#allocation112_spill] sm:$0xff] %v7155_v30  ;;  %1479 = vmatpush.bf16.msra.mxu1 %v7147_v26  ;;  %v5070_v44 = vld [vmem:[#allocation2 + $0x1c8] sm:$0xf]  ;;  %v6214_v56 = vld [vmem:[#allocation2 + $0x1d4] sm:$0xf0]  ;;  %v7170_v53 = vor.u32 %v6212_v9, %v5072_v36 }
  0x8f   : > { %1470 = vmatpush.bf16.msra.mxu3 %v7141_v1  ;;  %1457 = vmatpush.bf16.msra.mxu2 %v7145_v5  ;;  %9237 = vst [vmem:[#allocation113_spill] sm:$0xff] %v7159_v40  ;;  %v6170_v1 = vld [vmem:[#allocation2 + $0x74] sm:$0xf0]  ;;  %v6180_v23 = vld [vmem:[#allocation2 + $0xcc] sm:$0xf]  ;;  %v7178_v15 = vor.u32 %v6214_v56, %v5070_v44 }
  0x90   : > { %9238 = vst [vmem:[#allocation114_spill] sm:$0xff] %v7161_v41  ;;  %v4944_v35 = vld [vmem:[#allocation2 + $0xd8] sm:$0xf0]  ;;  %v7174_v4 = vor.u32 %v6170_v1, %v4894_v32  ;;  %v6208_v18 = vld [vmem:[#allocation2 + $0x1ac] sm:$0xf] }
  0x91   : > { %9239 = vst [vmem:[#allocation115_spill] sm:$0xff] %v7163_v58  ;;  %1510 = vmatpush.bf16.msra.mxu0 %v7150_v22  ;;  %v5056_v6 = vld [vmem:[#allocation2 + $0x1b8] sm:$0xf0]  ;;  %v7180_v28 = vor.u32 %v6180_v23, %v4944_v35  ;;  %v4878_v24 = vld [vmem:[#allocation2 + $0x48] sm:$0xf] }
  0x92   : > { %9240 = vst [vmem:[#allocation116_spill] sm:$0xff] %v7165_v27  ;;  %1480 = vmatpush.bf16.msra.mxu1 %v7161_v41  ;;  %v6166_v39 = vld [vmem:[#allocation2 + $0x54] sm:$0xf0]  ;;  %v5054_v9 = vld [vmem:[#allocation2 + $0x1a8] sm:$0xf]  ;;  %v7184_v32 = vor.u32 %v6208_v18, %v5056_v6 }
  0x93   : > { %1471 = vmatpush.bf16.msra.mxu3 %v7153_v54  ;;  %9241 = vst [vmem:[#allocation117_spill] sm:$0xff] %v7170_v53  ;;  %1458 = vmatpush.bf16.msra.mxu2 %v7159_v40  ;;  %v6210_v36 = vld [vmem:[#allocation2 + $0x1b4] sm:$0xf0]  ;;  %v4928_v40 = vld [vmem:[#allocation2 + $0xb8] sm:$0xf0]  ;;  %v7187_v1 = vor.u32 %v6166_v39, %v4878_v24 }
  0x94   : > { %9242 = vst [vmem:[#allocation118_spill] sm:$0xff] %v7174_v4  ;;  %v6204_v44 = vld [vmem:[#allocation2 + $0x18c] sm:$0xf]  ;;  %v5040_v56 = vld [vmem:[#allocation2 + $0x198] sm:$0xf0]  ;;  %v7191_v23 = vor.u32 %v6210_v36, %v5054_v9  ;;  %5158 = vmatmul.msk.bf16.vlgmr.msra.gmra.mxu0 %vm826_vm0, %v7063_v57 }
  0x95   : > { %1529 = vmatpush.bf16.msrb.mxu0 %v7155_v30  ;;  %9243 = vst [vmem:[#allocation119_spill] sm:$0xff] %v7178_v15  ;;  %v6176_v30 = vld [vmem:[#allocation2 + $0xac] sm:$0xf]  ;;  %v5038_v41 = vld [vmem:[#allocation2 + $0x188] sm:$0xf]  ;;  %v7200_v39 = vor.u32 %v6204_v44, %v5040_v56 }
  0x96   : > { %9244 = vst [vmem:[#allocation120_spill] sm:$0xff] %v7180_v28  ;;  %1459 = vmatmul.bf16.vlgmr.msra.gmra.mxu2 %v7122_v14  ;;  %1481 = vmatpush.bf16.msra.mxu1 %v7174_v4  ;;  %v7193_v35 = vor.u32 %v6176_v30, %v4928_v40  ;;  %v6206_v18 = vld [vmem:[#allocation2 + $0x194] sm:$0xf0]  ;;  %v6172_v6 = vld [vmem:[#allocation2 + $0x8c] sm:$0xf] }
  0x97   : > { %1490 = vmatpush.bf16.msrb.mxu3 %v7163_v58  ;;  %1516 = vmatpush.bf16.msrb.mxu2 %v7165_v27  ;;  %9245 = vst [vmem:[#allocation121_spill] sm:$0xff] %v7184_v32  ;;  %v4862_v27 = vld [vmem:[#allocation2 + $0x28] sm:$0xf]  ;;  %v6162_v58 = vld [vmem:[#allocation2 + $0x34] sm:$0xf0]  ;;  %v7207_v36 = vor.u32 %v6206_v18, %v5038_v41 }
  0x98   : > { %9246 = vst [vmem:[#allocation122_spill] sm:$0xff] %v7187_v1  ;;  %5157 = vmatmul.msk.bf16.vlgmr.msra.gmra.mxu3 %vm826_vm0, %v7063_v57  ;;  %v4912_v24 = vld [vmem:[#allocation2 + $0x98] sm:$0xf0]  ;;  %v7203_v30 = vor.u32 %v6162_v58, %v4862_v27  ;;  %v6200_v40 = vld [vmem:[#allocation2 + $0x16c] sm:$0xf] }
  0x99   : > { %1530 = vmatpush.bf16.msrb.mxu0 %v7170_v53  ;;  %9247 = vst [vmem:[#allocation123_spill] sm:$0xff] %v7191_v23  ;;  %v5024_v9 = vld [vmem:[#allocation2 + $0x178] sm:$0xf0]  ;;  %v6158_v4 = vld [vmem:[#allocation2 + $0x14] sm:$0xf0] }
  0x9a   : > { %9248 = vst [vmem:[#allocation124_spill] sm:$0xff] %v7193_v35  ;;  %1482 = vmatpush.bf16.msra.mxu1 %v7187_v1  ;;  %v5022_v53 = vld [vmem:[#allocation2 + $0x168] sm:$0xf]  ;;  %v6168_v44 = vld [vmem:[#allocation2 + $0x6c] sm:$0xf]  ;;  %v7212_v27 = vor.u32 %v6200_v40, %v5024_v9 }
  0x9b   : > { %1491 = vmatpush.bf16.msrb.mxu3 %v7178_v15  ;;  %1517 = vmatpush.bf16.msrb.mxu2 %v7180_v28  ;;  %9249 = vst [vmem:[#allocation125_spill] sm:$0xff] %v7200_v39  ;;  %v7209_v28 = vor.u32 %v6172_v6, %v4912_v24  ;;  %v4846_v15 = vld [vmem:[#allocation2 + $0x8] sm:$0xf]  ;;  %v4896_v56 = vld [vmem:[#allocation2 + $0x78] sm:$0xf0] }
  0x9c   : > { %9250 = vst [vmem:[#allocation126_spill] sm:$0xff] %v7203_v30  ;;  %v6232_v58 = vld [vmem:[#allocation2 + $0x26c] sm:$0xf]  ;;  %v5152_v1 = vld [vmem:[#allocation2 + $0x278] sm:$0xf0]  ;;  %v7221_v24 = vor.u32 %v6168_v44, %v4896_v56 }
  0x9d   : > { %1531 = vmatpush.bf16.msrb.mxu0 %v7184_v32  ;;  %9251 = vst [vmem:[#allocation127_spill] sm:$0xff] %v7207_v36  ;;  %v6202_v32 = vld [vmem:[#allocation2 + $0x174] sm:$0xf0]  ;;  %v6196_v41 = vld [vmem:[#allocation2 + $0x14c] sm:$0xf] }
  0x9e   : > { %9252 = vst [vmem:[#allocation128_spill] sm:$0xff] %v7209_v28  ;;  %1483 = vmatpush.bf16.msra.mxu1 %v7203_v30  ;;  %v5008_v18 = vld [vmem:[#allocation2 + $0x158] sm:$0xf0]  ;;  %v7219_v6 = vor.u32 %v6202_v32, %v5022_v53  ;;  %v6198_v40 = vld [vmem:[#allocation2 + $0x154] sm:$0xf0] }
  0x9f   : > { %1492 = vmatpush.bf16.msrb.mxu3 %v7191_v23  ;;  %1518 = vmatpush.bf16.msrb.mxu2 %v7193_v35  ;;  %9253 = vst [vmem:[#allocation129_spill] sm:$0xff] %v7212_v27  ;;  %v7215_v23 = vor.u32 %v6158_v4, %v4846_v15  ;;  %v5006_v35 = vld [vmem:[#allocation2 + $0x148] sm:$0xf]  ;;  %v6164_v9 = vld [vmem:[#allocation2 + $0x4c] sm:$0xf]  ;;  %v7226_v4 = vor.u32 %v6196_v41, %v5008_v18 }
  0xa0   : > { %9255 = vst [vmem:[#allocation131_spill] sm:$0xff] %v7219_v6  ;;  %v4880_v54 = vld [vmem:[#allocation2 + $0x58] sm:$0xf0]  ;;  %v6228_v15 = vld [vmem:[#allocation2 + $0x24c] sm:$0xf]  ;;  %v7231_v53 = vor.u32 %v6198_v40, %v5006_v35 }
  0xa1   : > { %1532 = vmatpush.bf16.msrb.mxu0 %v7200_v39  ;;  %9254 = vst [vmem:[#allocation130_spill] sm:$0xff] %v7215_v23  ;;  %v7223_v39 = vor.u32 %v6232_v58, %v5152_v1  ;;  %v5136_v30 = vld [vmem:[#allocation2 + $0x258] sm:$0xf0]  ;;  %v7233_v32 = vor.u32 %v6164_v9, %v4880_v54  ;;  %v4990_v1 = vld [vmem:[#allocation2 + $0x128] sm:$0xf] }
  0xa2   : > { %9256 = vst [vmem:[#allocation132_spill] sm:$0xff] %v7221_v24  ;;  %1484 = vmatpush.bf16.msra.mxu1 %v7215_v23  ;;  %v7236_v44 = vor.u32 %v6228_v15, %v5136_v30  ;;  %v6194_v56 = vld [vmem:[#allocation2 + $0x134] sm:$0xf0]  ;;  %v6160_v58 = vld [vmem:[#allocation2 + $0x2c] sm:$0xf] }
  0xa3   : > { %1493 = vmatpush.bf16.msrb.mxu3 %v7207_v36  ;;  %1519 = vmatpush.bf16.msrb.mxu2 %v7209_v28  ;;  %9257 = vst [vmem:[#allocation133_spill] sm:$0xff] %v7223_v39  ;;  %v6192_v36 = vld [vmem:[#allocation2 + $0x12c] sm:$0xf]  ;;  %v4992_v28 = vld [vmem:[#allocation2 + $0x138] sm:$0xf0]  ;;  %v7244_v30 = vor.u32 %v6194_v56, %v4990_v1 }
  0xa4   : > { %9258 = vst [vmem:[#allocation134_spill] sm:$0xff] %v7226_v4  ;;  %v4864_v41 = vld [vmem:[#allocation2 + $0x38] sm:$0xf0]  ;;  %v7240_v18 = vor.u32 %v6192_v36, %v4992_v28  ;;  %v4974_v35 = vld [vmem:[#allocation2 + $0x108] sm:$0xf] }
  0xa5   : > { %1533 = vmatpush.bf16.msrb.mxu0 %v7212_v27  ;;  %9259 = vst [vmem:[#allocation135_spill] sm:$0xff] %v7231_v53  ;;  %1485 = vmatmul.bf16.vlgmr.msra.gmra.mxu1 %v7115_v49  ;;  %v6190_v40 = vld [vmem:[#allocation2 + $0x114] sm:$0xf0]  ;;  %v6188_v54 = vld [vmem:[#allocation2 + $0x10c] sm:$0xf]  ;;  %v7246_v15 = vor.u32 %v6160_v58, %v4864_v41 }
  0xa6   : > { %9260 = vst [vmem:[#allocation136_spill] sm:$0xff] %v7233_v32  ;;  %1546 = vmatpush.bf16.msrb.mxu1 %v7223_v39  ;;  %v4976_v9 = vld [vmem:[#allocation2 + $0x118] sm:$0xf0]  ;;  %v6156_v39 = vld [vmem:[#allocation2 + $0xc] sm:$0xf] }
  0xa7   : > { %1494 = vmatpush.bf16.msrb.mxu3 %v7219_v6  ;;  %1520 = vmatpush.bf16.msrb.mxu2 %v7221_v24  ;;  %9261 = vst [vmem:[#allocation137_spill] sm:$0xff] %v7236_v44  ;;  %v6224_v6 = vld [vmem:[#allocation2 + $0x22c] sm:$0xf]  ;;  %v5120_v24 = vld [vmem:[#allocation2 + $0x238] sm:$0xf0]  ;;  %v7252_v26 = vor.u32 %v6188_v54, %v4976_v9 }
  0xa8   : > { %9262 = vst [vmem:[#allocation138_spill] sm:$0xff] %v7240_v18  ;;  %v6343_v23 = vld [vmem:[#allocation2 + $0x5e4] sm:$0xf]  ;;  %v5276_v27 = vld [vmem:[#allocation2 + $0x5f0] sm:$0xf0]  ;;  %v7249_v28 = vor.u32 %v6224_v6, %v5120_v24  ;;  %v7258_v6 = vor.u32 %v6190_v40, %v4974_v35 }
  0xa9   : > { %1534 = vmatpush.bf16.msrb.mxu0 %v7226_v4  ;;  %9263 = vst [vmem:[#allocation139_spill] sm:$0xff] %v7244_v30  ;;  %v4848_v36 = vld [vmem:[#allocation2 + $0x18] sm:$0xf0]  ;;  %v6220_v4 = vld [vmem:[#allocation2 + $0x20c] sm:$0xf]  ;;  %v7254_v5 = vor.u32 %v6343_v23, %v5276_v27 }
  0xaa   : > { %9264 = vst [vmem:[#allocation140_spill] sm:$0xff] %v7246_v15  ;;  %1547 = vmatpush.bf16.msrb.mxu1 %v7236_v44  ;;  %v5104_v22 = vld [vmem:[#allocation2 + $0x218] sm:$0xf0]  ;;  %v6345_v1 = vld [vmem:[#allocation2 + $0x5ec] sm:$0xf0]  ;;  %v7260_v24 = vor.u32 %v6156_v39, %v4848_v36 }
  0xab   : > { %1495 = vmatpush.bf16.msrb.mxu3 %v7231_v53  ;;  %1521 = vmatpush.bf16.msrb.mxu2 %v7233_v32  ;;  %9265 = vst [vmem:[#allocation141_spill] sm:$0xff] %v7249_v28  ;;  %v5274_v53 = vld [vmem:[#allocation2 + $0x5e0] sm:$0xf]  ;;  %v6377_v58 = vld [vmem:[#allocation2 + $0x6ec] sm:$0xf0]  ;;  %v7263_v9 = vor.u32 %v6220_v4, %v5104_v22 }
  0xac   : > { %9266 = vst [vmem:[#allocation142_spill] sm:$0xff] %v7252_v26  ;;  %v5402_v56 = vld [vmem:[#allocation2 + $0x6e0] sm:$0xf]  ;;  %v6393_v32 = vld [vmem:[#allocation2 + $0x76c] sm:$0xf0] }
  0xad   : > { %1535 = vmatpush.bf16.msrb.mxu0 %v7240_v18  ;;  %v5466_v41 = vld [vmem:[#allocation2 + $0x760] sm:$0xf]  ;;  %9267 = vst [vmem:[#allocation143_spill] sm:$0xff] %v7254_v5  ;;  %v6339_v54 = vld [vmem:[#allocation2 + $0x5c4] sm:$0xf]  ;;  %v7265_v18 = vor.u32 %v6345_v1, %v5274_v53  ;;  %v7272_v23 = vor.u32 %v6377_v58, %v5402_v56 }
  0xae   : > { %9268 = vst [vmem:[#allocation144_spill] sm:$0xff] %v7258_v6  ;;  %1548 = vmatpush.bf16.msrb.mxu1 %v7249_v28  ;;  %v5260_v44 = vld [vmem:[#allocation2 + $0x5d0] sm:$0xf0]  ;;  %v1556_v11 = vld [vmem:[%s7028_s10 + $0x8] sm:$0xf]  ;;  %v7274_v27 = vor.u32 %v6393_v32, %v5466_v41 }
  0xaf   : > { %1496 = vmatpush.bf16.msrb.mxu3 %v7244_v30  ;;  %1522 = vmatpush.bf16.msrb.mxu2 %v7246_v15  ;;  %9269 = vst [vmem:[#allocation145_spill] sm:$0xff] %v7260_v24  ;;  %v7269_v61 = vld [vmem:[%s7028_s10 + $0x14] sm:$0x1]  ;;  %v5258_v35 = vld [vmem:[#allocation2 + $0x5c0] sm:$0xf]  ;;  %v7279_v53 = vor.u32 %v6339_v54, %v5260_v44  ;;  %v1646_v1 = vunpack.c.l.b16 %v1556_v11 }
  0xb0   : > { %9270 = vst [vmem:[#allocation146_spill] sm:$0xff] %v7263_v9  ;;  %v6341_v39 = vld [vmem:[#allocation2 + $0x5cc] sm:$0xf0]  ;;  %v5386_v40 = vld [vmem:[#allocation2 + $0x6c0] sm:$0xf] }
  0xb1   : > { %9271 = vst [vmem:[#allocation147_spill] sm:$0xff] %v7265_v18  ;;  %1536 = vmatpush.bf16.msrb.mxu0 %v7252_v26  ;;  %v6373_v36 = vld [vmem:[#allocation2 + $0x6cc] sm:$0xf0]  ;;  %v5450_v22 = vld [vmem:[#allocation2 + $0x740] sm:$0xf]  ;;  %v7284_v32 = vor.u32 %v6341_v39, %v5258_v35 }
  0xb2   : > { %9272 = vst [vmem:[#allocation148_spill] sm:$0xff] %v7272_v23  ;;  %v6389_v4 = vld [vmem:[#allocation2 + $0x74c] sm:$0xf0]  ;;  %1549 = vmatpush.bf16.msrb.mxu1 %v7263_v9  ;;  %v6335_v58 = vld [vmem:[#allocation2 + $0x5a4] sm:$0xf] }
  0xb3   : > { %9273 = vst [vmem:[#allocation149_spill] sm:$0xff] %v7274_v27  ;;  %1497 = vmatpush.bf16.msrb.mxu3 %v7258_v6  ;;  %1523 = vmatpush.bf16.msrb.mxu2 %v7260_v24  ;;  %v5244_v41 = vld [vmem:[#allocation2 + $0x5b0] sm:$0xf0]  ;;  %v7288_v6 = vor.u32 %v6373_v36, %v5386_v40  ;;  %v7290_v24 = vor.u32 %v6389_v4, %v5450_v22  ;;  %v5242_v44 = vld [vmem:[#allocation2 + $0x5a0] sm:$0xf] }
  0xb4   : > { %9274 = vst [vmem:[#allocation150_spill] sm:$0xff] %v7279_v53  ;;  %v6337_v11 = vld [vmem:[#allocation2 + $0x5ac] sm:$0xf0]  ;;  %v5370_v54 = vld [vmem:[#allocation2 + $0x6a0] sm:$0xf]  ;;  %1537 = vmatmul.bf16.vlgmr.msrb.gmra.mxu0 %v7122_v14 }
  0xb5   : > { %2118 = vmatpush.bf16.msra.mxu0 %v7254_v5  ;;  %9275 = vst [vmem:[#allocation151_spill] sm:$0xff] %v7284_v32  ;;  %v6369_v56 = vld [vmem:[#allocation2 + $0x6ac] sm:$0xf0]  ;;  %v5434_v35 = vld [vmem:[#allocation2 + $0x720] sm:$0xf]  ;;  %v7302_v36 = vor.u32 %v6337_v11, %v5242_v44  ;;  %5159 = vmatmul.msk.bf16.vlgmr.msrb.gmra.mxu1 %vm826_vm0, %v7063_v57 }
  0xb6   : > { %2092 = vmatpush.bf16.msra.mxu1 %v7272_v23  ;;  %9276 = vst [vmem:[#allocation152_spill] sm:$0xff] %v7288_v6  ;;  %1498 = vmatmul.bf16.vlgmr.msrb.gmra.mxu3 %v7122_v14  ;;  %v6385_v39 = vld [vmem:[#allocation2 + $0x72c] sm:$0xf0]  ;;  %v6331_v22 = vld [vmem:[#allocation2 + $0x584] sm:$0xf]  ;;  %v865_v23 = vpop.f32.mrf.mxu2 }
  0xb7   : > { %2079 = vmatpush.bf16.msra.mxu3 %v7265_v18  ;;  %2109 = vmatpush.bf16.msra.mxu2 %v7274_v27  ;;  %9277 = vst [vmem:[#allocation153_spill] sm:$0xff] %v7290_v24  ;;  %v7295_v18 = vor.u32 %v6335_v58, %v5244_v41  ;;  %v9279_v27 = vunpack.c.l.b16 %v7269_v61  ;;  %v5228_v4 = vld [vmem:[#allocation2 + $0x590] sm:$0xf0]  ;;  %v7309_v58 = vor.u32 %v6385_v39, %v5434_v35  ;;  %v5226_v41 = vld [vmem:[#allocation2 + $0x580] sm:$0xf] }
  0xb8   : > { %1524 = vmatmul.bf16.vlgmr.msrb.gmra.mxu2 %v7115_v49  ;;  %9280 = vst [vmem:[#allocation155_spill] sm:$0xff] %v7302_v36  ;;  %v7307_v49 = vor.u32 %v6369_v56, %v5370_v54  ;;  %v6365_v44 = vld [vmem:[#allocation2 + $0x68c] sm:$0xf0]  ;;  %v5418_v11 = vld [vmem:[#allocation2 + $0x700] sm:$0xf] }
  0xb9   : > { %2119 = vmatpush.bf16.msra.mxu0 %v7279_v53  ;;  %9278 = vst [vmem:[#allocation154_spill] sm:$0xff] %v7295_v18  ;;  %v7299_v40 = vpack.c.b16 %v9279_v27, %v1646_v1  ;;  %v6333_v27 = vld [vmem:[#allocation2 + $0x58c] sm:$0xf0]  ;;  %v5354_v1 = vld [vmem:[#allocation2 + $0x680] sm:$0xf] }
  0xba   : > { %2093 = vmatpush.bf16.msra.mxu1 %v7288_v6  ;;  %9281 = vst [vmem:[#allocation156_spill] sm:$0xff] %v7307_v49  ;;  %v6381_v14 = vld [vmem:[#allocation2 + $0x70c] sm:$0xf0]  ;;  %v6375_v6 = vld [vmem:[#allocation2 + $0x6e4] sm:$0xf]  ;;  %v7318_v54 = vor.u32 %v6333_v27, %v5226_v41  ;;  %v7325_v57 = vor.u32 %v6365_v44, %v5354_v1 }
  0xbb   : > { %2080 = vmatpush.bf16.msra.mxu3 %v7284_v32  ;;  %2110 = vmatpush.bf16.msra.mxu2 %v7290_v24  ;;  %9282 = vst [vmem:[#allocation157_spill] sm:$0xff] %v7309_v58  ;;  %v7314_v32 = vor.u32 %v6331_v22, %v5228_v4  ;;  %v5404_v24 = vld [vmem:[#allocation2 + $0x6f0] sm:$0xf0]  ;;  %v1670_v56 = vshll.u32 %v7299_v40, 16  ;;  %v6327_v35 = vld [vmem:[#allocation2 + $0x564] sm:$0xf]  ;;  %v7327_v22 = vor.u32 %v6381_v14, %v5418_v11  ;;  %v852_v14 = vpop.f32.mrf.mxu1 }
  0xbc   : > { %9284 = vst [vmem:[#allocation159_spill] sm:$0xff] %v7318_v54  ;;  %v5212_v39 = vld [vmem:[#allocation2 + $0x570] sm:$0xf0]  ;;  %v7321_v53 = vld [vmem:[%s7028_s10 + $0xc] sm:$0x11]  ;;  %v7329_v9 = vor.u32 %v6375_v6, %v5404_v24  ;;  %v839_v24 = vpop.f32.mrf.mxu0 }
  0xbd   : > { %2120 = vmatpush.bf16.msra.mxu0 %v7295_v18  ;;  %9283 = vst [vmem:[#allocation158_spill] sm:$0xff] %v7314_v32  ;;  %v5210_v4 = vld [vmem:[#allocation2 + $0x560] sm:$0xf]  ;;  %v6329_v18 = vld [vmem:[#allocation2 + $0x56c] sm:$0xf0]  ;;  %v7332_v27 = vor.u32 %v6327_v35, %v5212_v39  ;;  %v853_v39 = vadd.f32 %v852_v14, %v839_v24 }
  0xbe   : > { %2094 = vmatpush.bf16.msra.mxu1 %v7307_v49  ;;  %9285 = vst [vmem:[#allocation160_spill] sm:$0xff] %v7325_v57  ;;  %v6361_v41 = vld [vmem:[#allocation2 + $0x66c] sm:$0xf0]  ;;  %v6371_v5 = vld [vmem:[#allocation2 + $0x6c4] sm:$0xf]  ;;  %v1668_v49 = vshrl.u32 %v7299_v40, 16  ;;  %v7337_v44 = vor.u32 %v6329_v18, %v5210_v4 }
  0xbf   : > { %2081 = vmatpush.bf16.msra.mxu3 %v7302_v36  ;;  %2111 = vmatpush.bf16.msra.mxu2 %v7309_v58  ;;  %9286 = vst [vmem:[#allocation161_spill] sm:$0xff] %v7327_v22  ;;  %v5338_v36 = vld [vmem:[#allocation2 + $0x660] sm:$0xf]  ;;  %v5388_v26 = vld [vmem:[#allocation2 + $0x6d0] sm:$0xf0]  ;;  %v1672_v58 = vrot.slane %v1670_v56, 1  ;;  %v7357_v24 = vadd.f32 %v865_v23, %v853_v39  ;;  %v867_v23 = vpop.f32.mrf.mxu2 }
  0xc0   : > { %9287 = vst [vmem:[#allocation162_spill] sm:$0xff] %v7329_v9  ;;  %v6323_v11 = vld [vmem:[#allocation2 + $0x544] sm:$0xf]  ;;  %v5196_v6 = vld [vmem:[#allocation2 + $0x550] sm:$0xf0]  ;;  %v7342_v35 = vor.u32 %v6361_v41, %v5338_v36  ;;  %v7345_v1 = vor.u32 %v6371_v5, %v5388_v26  ;;  %v9293_v36 = vunpack.c.l.b16 %v7321_v53 }
  0xc1   : > { %2121 = vmatpush.bf16.msra.mxu0 %v7314_v32  ;;  %9288 = vst [vmem:[#allocation163_spill] sm:$0xff] %v7332_v27  ;;  %v5194_v40 = vld [vmem:[#allocation2 + $0x540] sm:$0xf]  ;;  %v6325_v56 = vld [vmem:[#allocation2 + $0x54c] sm:$0xf0] }
  0xc2   : > { %9289 = vst [vmem:[#allocation164_spill] sm:$0xff] %v7337_v44  ;;  %2095 = vmatpush.bf16.msra.mxu1 %v7325_v57  ;;  %v5322_v18 = vld [vmem:[#allocation2 + $0x640] sm:$0xf]  ;;  %v6357_v4 = vld [vmem:[#allocation2 + $0x64c] sm:$0xf0]  ;;  %v7350_v57 = vor.u32 %v1672_v58, %v1668_v49  ;;  %v7355_v41 = vpack.c.b16 %v9293_v36, %v7094_v46  ;;  %v7360_v26 = vor.u32 %v6325_v56, %v5194_v40 }
  0xc3   : > { %2082 = vmatpush.bf16.msra.mxu3 %v7318_v54  ;;  %2112 = vmatpush.bf16.msra.mxu2 %v7327_v22  ;;  %9290 = vst [vmem:[#allocation165_spill] sm:$0xff] %v7342_v35  ;;  %v7348_v54 = vor.u32 %v6323_v11, %v5196_v6  ;;  %v6367_v28 = vld [vmem:[#allocation2 + $0x6a4] sm:$0xf]  ;;  %v5372_v32 = vld [vmem:[#allocation2 + $0x6b0] sm:$0xf0]  ;;  %v9295_v11 = vunpack.c.h.b16 %v7321_v53  ;;  %v7368_v49 = vor.u32 %v6357_v4, %v5322_v18 }
  0xc4   : > { %9291 = vst [vmem:[#allocation166_spill] sm:$0xff] %v7345_v1  ;;  %v6319_v5 = vld [vmem:[#allocation2 + $0x524] sm:$0xf]  ;;  %v5180_v14 = vld [vmem:[#allocation2 + $0x530] sm:$0xf0]  ;;  %v7371_v39 = vor.u32 %v6367_v28, %v5372_v32  ;;  %v1656_v4 = vshll.u32 %v7355_v41, 16 }
  0xc5   : > { %2122 = vmatpush.bf16.msra.mxu0 %v7332_v27  ;;  %9292 = vst [vmem:[#allocation167_spill] sm:$0xff] %v7348_v54  ;;  %v7365_v6 = vpack.c.b16 %v9295_v11, %v7099_v50  ;;  %v5178_v58 = vld [vmem:[#allocation2 + $0x520] sm:$0xf]  ;;  %v6321_v46 = vld [vmem:[#allocation2 + $0x52c] sm:$0xf0]  ;;  %v7373_v27 = vpop.f32.mrf.mxu3  ;;  %v7376_v50 = vor.u32 %v6319_v5, %v5180_v14  ;;  %v854_v5 = vpop.f32.mrf.mxu1 }
  0xc6   : > { %9294 = vst [vmem:[#allocation168_spill] sm:$0xff] %v7360_v26  ;;  %2096 = vmatpush.bf16.msra.mxu1 %v7342_v35  ;;  %v5306_v36 = vld [vmem:[#allocation2 + $0x620] sm:$0xf]  ;;  %v6353_v40 = vld [vmem:[#allocation2 + $0x62c] sm:$0xf0]  ;;  %v7382_v28 = vor.u32 %v6321_v46, %v5178_v58 }
  0xc7   : > { %2131 = vmatpush.bf16.msrb.mxu2 %v7329_v9  ;;  %2083 = vmatpush.bf16.msra.mxu3 %v7337_v44  ;;  %9296 = vst [vmem:[#allocation169_spill] sm:$0xff] %v7368_v49  ;;  %v6363_v56 = vld [vmem:[#allocation2 + $0x684] sm:$0xf]  ;;  %v5356_v44 = vld [vmem:[#allocation2 + $0x690] sm:$0xf0]  ;;  %v841_v9 = vpop.f32.mrf.mxu0  ;;  %v7386_v14 = vor.u32 %v6353_v40, %v5306_v36  ;;  %v1658_v36 = vrot.slane %v1656_v4, 1 }
  0xc8   : > { %9297 = vst [vmem:[#allocation170_spill] sm:$0xff] %v7371_v39  ;;  %v5162_v11 = vld [vmem:[#allocation2 + $0x500] sm:$0xf]  ;;  %v6317_v18 = vld [vmem:[#allocation2 + $0x50c] sm:$0xf0]  ;;  %5480 = vmatmul.msk.bf16.vlgmr.msra.gmra.mxu2 %vm826_vm0, %v7350_v57 }
  0xc9   : > { %2123 = vmatpush.bf16.msra.mxu0 %v7348_v54  ;;  %9298 = vst [vmem:[#allocation171_spill] sm:$0xff] %v7376_v50  ;;  %v5290_v32 = vld [vmem:[#allocation2 + $0x600] sm:$0xf]  ;;  %v6349_v23 = vld [vmem:[#allocation2 + $0x60c] sm:$0xf0]  ;;  %v1663_v54 = vshll.u32 %v7365_v6, 16  ;;  %v7396_v40 = vor.u32 %v6317_v18, %v5162_v11 }
  0xca   : > { %9299 = vst [vmem:[#allocation172_spill] sm:$0xff] %v7382_v28  ;;  %v5164_v35 = vld [vmem:[#allocation2 + $0x510] sm:$0xf0]  ;;  %2097 = vmatpush.bf16.msra.mxu1 %v7368_v49  ;;  %v6359_v22 = vld [vmem:[#allocation2 + $0x664] sm:$0xf]  ;;  %v1654_v49 = vshrl.u32 %v7355_v41, 16 }
  0xcb   : > { %2132 = vmatpush.bf16.msrb.mxu2 %v7345_v1  ;;  %2084 = vmatpush.bf16.msra.mxu3 %v7360_v26  ;;  %v6315_v1 = vld [vmem:[#allocation2 + $0x504] sm:$0xf]  ;;  %9300 = vst [vmem:[#allocation173_spill] sm:$0xff] %v7386_v14  ;;  %v5474_v15 = vld [vmem:[#allocation2 + $0x768] sm:$0xf]  ;;  %v7389_v26 = vor.u32 %v6363_v56, %v5356_v44  ;;  %v1661_v44 = vshrl.u32 %v7365_v6, 16 }
  0xcc   : > { %v6394_v30 = vld [vmem:[#allocation2 + $0x774] sm:$0xf0]  ;;  %v5340_v58 = vld [vmem:[#allocation2 + $0x670] sm:$0xf0]  ;;  %v6391_v46 = vld [vmem:[#allocation2 + $0x764] sm:$0xf]  ;;  %v7392_v9 = vor.u32 %v6315_v1, %v5164_v35 }
  0xcd   : > { %9301 = vst [vmem:[#allocation174_spill] sm:$0xff] %v7389_v26  ;;  %v5468_v62 = vld [vmem:[#allocation2 + $0x770] sm:$0xf0]  ;;  %2124 = vmatpush.bf16.msra.mxu0 %v7376_v50  ;;  %v5282_v55 = vld [vmem:[#allocation2 + $0x5e8] sm:$0xf]  ;;  %v7398_v2 = vor.u32 %v6394_v30, %v5474_v15  ;;  %v1665_v56 = vrot.slane %v1663_v54, 1  ;;  %v7407_v41 = vor.u32 %v6359_v22, %v5340_v58  ;;  %v880_v18 = vpop.f32.mrf.mxu3  ;;  %v7412_v54 = vor.u32 %v1658_v36, %v1654_v49 }
  0xce   : > { %9302 = vst [vmem:[#allocation175_spill] sm:$0xff] %v7392_v9  ;;  %v6346_v5 = vld [vmem:[#allocation2 + $0x5f4] sm:$0xf0]  ;;  %2098 = vmatpush.bf16.msra.mxu1 %v7386_v14  ;;  %v7404_v1 = vor.u32 %v6391_v46, %v5468_v62  ;;  %v5458_v35 = vld [vmem:[#allocation2 + $0x748] sm:$0xf] }
  0xcf   : > { %2133 = vmatpush.bf16.msrb.mxu2 %v7371_v39  ;;  %2085 = vmatpush.bf16.msra.mxu3 %v7382_v28  ;;  %9303 = vst [vmem:[#allocation176_spill] sm:$0xff] %v7396_v40  ;;  %v7402_v39 = vor.u32 %v6349_v23, %v5290_v32  ;;  %v6390_v50 = vld [vmem:[#allocation2 + $0x754] sm:$0xf0]  ;;  %v7409_v4 = vor.u32 %v6346_v5, %v5282_v55  ;;  %v6355_v11 = vld [vmem:[#allocation2 + $0x644] sm:$0xf]  ;;  %v7424_v46 = vpop.f32.mrf.mxu0 }
  0xd0   : > { %9304 = vst [vmem:[#allocation177_spill] sm:$0xff] %v7398_v2  ;;  %v6387_v30 = vld [vmem:[#allocation2 + $0x744] sm:$0xf]  ;;  %v5452_v15 = vld [vmem:[#allocation2 + $0x750] sm:$0xf0]  ;;  %v7416_v23 = vor.u32 %v6390_v50, %v5458_v35  ;;  %v7418_v22 = vor.u32 %v1665_v56, %v1661_v44  ;;  %v891_v35 = vpop.f32.mrf.mxu2 }
  0xd1   : > { %9305 = vst [vmem:[#allocation178_spill] sm:$0xff] %v7402_v39  ;;  %2125 = vmatpush.bf16.msra.mxu0 %v7392_v9  ;;  %v5324_v6 = vld [vmem:[#allocation2 + $0x650] sm:$0xf0]  ;;  %v5266_v32 = vld [vmem:[#allocation2 + $0x5c8] sm:$0xf]  ;;  %v7422_v55 = vor.u32 %v6387_v30, %v5452_v15 }
  0xd2   : > { %9306 = vst [vmem:[#allocation179_spill] sm:$0xff] %v7404_v1  ;;  %v6342_v62 = vld [vmem:[#allocation2 + $0x5d4] sm:$0xf0]  ;;  %2099 = vmatpush.bf16.msra.mxu1 %v7402_v39  ;;  %v5442_v58 = vld [vmem:[#allocation2 + $0x728] sm:$0xf]  ;;  %v7428_v5 = vor.u32 %v6355_v11, %v5324_v6 }
  0xd3   : > { %2134 = vmatpush.bf16.msrb.mxu2 %v7389_v26  ;;  %9307 = vst [vmem:[#allocation180_spill] sm:$0xff] %v7407_v41  ;;  %2086 = vmatpush.bf16.msra.mxu3 %v7396_v40  ;;  %v6386_v49 = vld [vmem:[#allocation2 + $0x734] sm:$0xf0]  ;;  %v7430_v50 = vor.u32 %v6342_v62, %v5266_v32  ;;  %v6351_v36 = vld [vmem:[#allocation2 + $0x624] sm:$0xf] }
  0xd4   : > { %9308 = vst [vmem:[#allocation181_spill] sm:$0xff] %v7409_v4  ;;  %v6383_v44 = vld [vmem:[#allocation2 + $0x724] sm:$0xf]  ;;  %v5436_v56 = vld [vmem:[#allocation2 + $0x730] sm:$0xf0]  ;;  %2126 = vmatmul.bf16.vlgmr.msra.gmra.mxu0 %v7412_v54  ;;  %v7437_v11 = vor.u32 %v6386_v49, %v5442_v58 }
  0xd5   : > { %9309 = vst [vmem:[#allocation182_spill] sm:$0xff] %v7412_v54  ;;  %2187 = vmatpush.bf16.msrb.mxu0 %v7398_v2  ;;  %v5308_v30 = vld [vmem:[#allocation2 + $0x630] sm:$0xf0]  ;;  %v5250_v15 = vld [vmem:[#allocation2 + $0x5a8] sm:$0xf]  ;;  %2100 = vmatmul.bf16.vlgmr.msra.gmra.mxu1 %v7418_v22  ;;  %v7440_v6 = vor.u32 %v6383_v44, %v5436_v56  ;;  %v904_v2 = vpop.f32.mrf.mxu3 }
  0xd6   : > { %9310 = vst [vmem:[#allocation183_spill] sm:$0xff] %v7416_v23  ;;  %2157 = vmatpush.bf16.msrb.mxu1 %v7409_v4  ;;  %2087 = vmatmul.bf16.vlgmr.msra.gmra.mxu3 %v7412_v54  ;;  %v6338_v18 = vld [vmem:[#allocation2 + $0x5b4] sm:$0xf0]  ;;  %v6347_v32 = vld [vmem:[#allocation2 + $0x604] sm:$0xf] }
  0xd7   : > { %9311 = vst [vmem:[#allocation184_spill] sm:$0xff] %v7418_v22  ;;  %2148 = vmatpush.bf16.msrb.mxu3 %v7404_v1  ;;  %2135 = vmatpush.bf16.msrb.mxu2 %v7407_v41  ;;  %v892_v1 = vadd.f32 %v891_v35, %v7373_v27  ;;  %v5292_v62 = vld [vmem:[#allocation2 + $0x610] sm:$0xf0]  ;;  %v6379_v4 = vld [vmem:[#allocation2 + $0x704] sm:$0xf]  ;;  %v7444_v27 = vor.u32 %v6351_v36, %v5308_v30 }
  0xd8   : > { %9312 = vst [vmem:[#allocation185_spill] sm:$0xff] %v7422_v55  ;;  %v5426_v41 = vld [vmem:[#allocation2 + $0x708] sm:$0xf]  ;;  %v6382_v39 = vld [vmem:[#allocation2 + $0x714] sm:$0xf0]  ;;  %v7446_v35 = vor.u32 %v6338_v18, %v5250_v15  ;;  %v945_v15 = vpop.f32.mrf.mxu0 }
  0xd9   : > { %9313 = vst [vmem:[#allocation186_spill] sm:$0xff] %v7428_v5  ;;  %2188 = vmatpush.bf16.msrb.mxu0 %v7416_v23  ;;  %v5420_v23 = vld [vmem:[#allocation2 + $0x710] sm:$0xf0]  ;;  %v6376_v58 = vld [vmem:[#allocation2 + $0x6ec] sm:$0xf]  ;;  %v7448_v40 = vadd.f32 %v904_v2, %v892_v1  ;;  %v7451_v9 = vor.u32 %v6382_v39, %v5426_v41  ;;  %v7460_v2 = vor.u32 %v6347_v32, %v5292_v62  ;;  %v7477_v32 = vpop.f32.mrf.mxu1 }
  0xda   : > { %9314 = vst [vmem:[#allocation187_spill] sm:$0xff] %v7430_v50  ;;  %2158 = vmatpush.bf16.msrb.mxu1 %v7430_v50  ;;  %v5412_v49 = vld [vmem:[#allocation2 + $0x6f8] sm:$0xf0]  ;;  %v6334_v44 = vld [vmem:[#allocation2 + $0x594] sm:$0xf0]  ;;  %v7454_v36 = vor.u32 %v6379_v4, %v5420_v23 }
  0xdb   : > { %9315 = vst [vmem:[#allocation188_spill] sm:$0xff] %v7437_v11  ;;  %2149 = vmatpush.bf16.msrb.mxu3 %v7422_v55  ;;  %2136 = vmatpush.bf16.msrb.mxu2 %v7428_v5  ;;  %v5234_v55 = vld [vmem:[#allocation2 + $0x588] sm:$0xf]  ;;  %v6378_v5 = vld [vmem:[#allocation2 + $0x6f4] sm:$0xf0]  ;;  %v7456_v30 = vor.u32 %v6376_v58, %v5412_v49  ;;  %v893_v58 = vpop.f32.mrf.mxu2 }
  0xdc   : > { %9316 = vst [vmem:[#allocation189_spill] sm:$0xff] %v7440_v6  ;;  %v5410_v56 = vld [vmem:[#allocation2 + $0x6e8] sm:$0xf]  ;;  %v6344_v26 = vld [vmem:[#allocation2 + $0x5ec] sm:$0xf]  ;;  %v7462_v1 = vor.u32 %v6334_v44, %v5234_v55 }
  0xdd   : > { %9317 = vst [vmem:[#allocation190_spill] sm:$0xff] %v7444_v27  ;;  %2189 = vmatpush.bf16.msrb.mxu0 %v7437_v11  ;;  %v5284_v50 = vld [vmem:[#allocation2 + $0x5f8] sm:$0xf0]  ;;  %v6372_v39 = vld [vmem:[#allocation2 + $0x6cc] sm:$0xf]  ;;  %v7464_v18 = vor.u32 %v6378_v5, %v5410_v56  ;;  %v906_v58 = vpop.f32.mrf.mxu3 }
  0xde   : > { %9318 = vst [vmem:[#allocation191_spill] sm:$0xff] %v7446_v35  ;;  %2159 = vmatpush.bf16.msrb.mxu1 %v7446_v35  ;;  %v5396_v41 = vld [vmem:[#allocation2 + $0x6d8] sm:$0xf0]  ;;  %v7466_v11 = vor.u32 %v6344_v26, %v5284_v50  ;;  %v6330_v4 = vld [vmem:[#allocation2 + $0x574] sm:$0xf0] }
  0xdf   : > { %9319 = vst [vmem:[#allocation192_spill] sm:$0xff] %v7451_v9  ;;  %2150 = vmatpush.bf16.msrb.mxu3 %v7440_v6  ;;  %2137 = vmatpush.bf16.msrb.mxu2 %v7444_v27  ;;  %v5218_v6 = vld [vmem:[#allocation2 + $0x568] sm:$0xf]  ;;  %v6374_v49 = vld [vmem:[#allocation2 + $0x6d4] sm:$0xf0]  ;;  %v7471_v55 = vor.u32 %v6372_v39, %v5396_v41 }
  0xe0   : > { %9320 = vst [vmem:[#allocation193_spill] sm:$0xff] %v7454_v36  ;;  %v5394_v23 = vld [vmem:[#allocation2 + $0x6c8] sm:$0xf]  ;;  %v6340_v15 = vld [vmem:[#allocation2 + $0x5cc] sm:$0xf]  ;;  %v7475_v26 = vor.u32 %v6330_v4, %v5218_v6 }
  0xe1   : > { %9321 = vst [vmem:[#allocation194_spill] sm:$0xff] %v7456_v30  ;;  %2190 = vmatpush.bf16.msrb.mxu0 %v7451_v9  ;;  %v5268_v27 = vld [vmem:[#allocation2 + $0x5d8] sm:$0xf0]  ;;  %v6368_v5 = vld [vmem:[#allocation2 + $0x6ac] sm:$0xf]  ;;  %v7481_v62 = vor.u32 %v6374_v49, %v5394_v23  ;;  %v969_v9 = vpop.f32.mrf.mxu0 }
  0xe2   : > { %9322 = vst [vmem:[#allocation195_spill] sm:$0xff] %v7460_v2  ;;  %2160 = vmatpush.bf16.msrb.mxu1 %v7462_v1  ;;  %v5380_v50 = vld [vmem:[#allocation2 + $0x6b8] sm:$0xf0]  ;;  %v7483_v44 = vor.u32 %v6340_v15, %v5268_v27  ;;  %v5202_v56 = vld [vmem:[#allocation2 + $0x548] sm:$0xf] }
  0xe3   : > { %9323 = vst [vmem:[#allocation196_spill] sm:$0xff] %v7462_v1  ;;  %2151 = vmatpush.bf16.msrb.mxu3 %v7454_v36  ;;  %2138 = vmatpush.bf16.msrb.mxu2 %v7460_v2  ;;  %v6326_v39 = vld [vmem:[#allocation2 + $0x554] sm:$0xf0]  ;;  %v5378_v41 = vld [vmem:[#allocation2 + $0x6a8] sm:$0xf]  ;;  %v7487_v4 = vor.u32 %v6368_v5, %v5380_v50 }
  0xe4   : > { %9324 = vst [vmem:[#allocation197_spill] sm:$0xff] %v7464_v18  ;;  %v6370_v2 = vld [vmem:[#allocation2 + $0x6b4] sm:$0xf0]  ;;  %v6336_v1 = vld [vmem:[#allocation2 + $0x5ac] sm:$0xf]  ;;  %5482 = vmatmul.msk.bf16.vlgmr.msrb.gmra.mxu0 %vm826_vm0, %v7350_v57 }
  0xe5   : > { %9325 = vst [vmem:[#allocation198_spill] sm:$0xff] %v7466_v11  ;;  %2209 = vmatpush.bf16.msra.mxu0 %v7456_v30  ;;  %v5252_v6 = vld [vmem:[#allocation2 + $0x5b8] sm:$0xf0]  ;;  %v6364_v23 = vld [vmem:[#allocation2 + $0x68c] sm:$0xf]  ;;  %v7494_v49 = vor.u32 %v6370_v2, %v5378_v41 }
  0xe6   : > { %9326 = vst [vmem:[#allocation199_spill] sm:$0xff] %v7471_v55  ;;  %2139 = vmatmul.bf16.vlgmr.msrb.gmra.mxu2 %v7418_v22  ;;  %2161 = vmatpush.bf16.msrb.mxu1 %v7475_v26  ;;  %v5364_v27 = vld [vmem:[#allocation2 + $0x698] sm:$0xf0]  ;;  %v7496_v15 = vor.u32 %v6336_v1, %v5252_v6  ;;  %v5186_v58 = vld [vmem:[#allocation2 + $0x528] sm:$0xf]  ;;  %v919_v6 = vpop.f32.mrf.mxu1 }
  0xe7   : > { %9327 = vst [vmem:[#allocation200_spill] sm:$0xff] %v7475_v26  ;;  %2170 = vmatpush.bf16.msra.mxu3 %v7464_v18  ;;  %2196 = vmatpush.bf16.msra.mxu2 %v7466_v11  ;;  %v7490_v11 = vor.u32 %v6326_v39, %v5202_v56  ;;  %v6322_v18 = vld [vmem:[#allocation2 + $0x534] sm:$0xf0]  ;;  %v5362_v30 = vld [vmem:[#allocation2 + $0x688] sm:$0xf]  ;;  %v7503_v39 = vor.u32 %v6364_v23, %v5364_v27 }
  0xe8   : > { %9328 = vst [vmem:[#allocation201_spill] sm:$0xff] %v7481_v62  ;;  %5481 = vmatmul.msk.bf16.vlgmr.msrb.gmra.mxu3 %vm826_vm0, %v7350_v57  ;;  %v6366_v5 = vld [vmem:[#allocation2 + $0x694] sm:$0xf0]  ;;  %v6332_v50 = vld [vmem:[#allocation2 + $0x58c] sm:$0xf]  ;;  %v7506_v2 = vor.u32 %v6322_v18, %v5186_v58 }
  0xe9   : > { %9329 = vst [vmem:[#allocation202_spill] sm:$0xff] %v7483_v44  ;;  %2210 = vmatpush.bf16.msra.mxu0 %v7471_v55  ;;  %v5236_v56 = vld [vmem:[#allocation2 + $0x598] sm:$0xf0]  ;;  %v6360_v1 = vld [vmem:[#allocation2 + $0x66c] sm:$0xf]  ;;  %v971_v37 = vpop.f32.mrf.mxu0 }
  0xea   : > { %9330 = vst [vmem:[#allocation203_spill] sm:$0xff] %v7487_v4  ;;  %2162 = vmatpush.bf16.msrb.mxu1 %v7490_v11  ;;  %v5348_v41 = vld [vmem:[#allocation2 + $0x678] sm:$0xf0]  ;;  %v5170_v26 = vld [vmem:[#allocation2 + $0x508] sm:$0xf] }
  0xeb   : > { %9331 = vst [vmem:[#allocation204_spill] sm:$0xff] %v7490_v11  ;;  %2171 = vmatpush.bf16.msra.mxu3 %v7481_v62  ;;  %2197 = vmatpush.bf16.msra.mxu2 %v7483_v44  ;;  %v7510_v44 = vor.u32 %v6366_v5, %v5362_v30  ;;  %v7512_v62 = vor.u32 %v6332_v50, %v5236_v56  ;;  %v6318_v55 = vld [vmem:[#allocation2 + $0x514] sm:$0xf0]  ;;  %v6328_v27 = vld [vmem:[#allocation2 + $0x56c] sm:$0xf] }
  0xec   : > { %9332 = vst [vmem:[#allocation205_spill] sm:$0xff] %v7494_v49  ;;  %v6362_v23 = vld [vmem:[#allocation2 + $0x674] sm:$0xf0]  ;;  %v5220_v36 = vld [vmem:[#allocation2 + $0x578] sm:$0xf0]  ;;  %v7515_v18 = vor.u32 %v6360_v1, %v5348_v41 }
  0xed   : > { %9333 = vst [vmem:[#allocation206_spill] sm:$0xff] %v7496_v15  ;;  %2211 = vmatpush.bf16.msra.mxu0 %v7487_v4  ;;  %v5346_v4 = vld [vmem:[#allocation2 + $0x668] sm:$0xf]  ;;  %v6392_v58 = vld [vmem:[#allocation2 + $0x76c] sm:$0xf]  ;;  %v7524_v56 = vor.u32 %v6328_v27, %v5220_v36 }
  0xee   : > { %9334 = vst [vmem:[#allocation207_spill] sm:$0xff] %v7503_v39  ;;  %v5476_v6 = vld [vmem:[#allocation2 + $0x778] sm:$0xf0]  ;;  %2163 = vmatpush.bf16.msrb.mxu1 %v7506_v2  ;;  %v6356_v30 = vld [vmem:[#allocation2 + $0x64c] sm:$0xf]  ;;  %v7522_v50 = vor.u32 %v6362_v23, %v5346_v4 }
  0xef   : > { %9335 = vst [vmem:[#allocation208_spill] sm:$0xff] %v7506_v2  ;;  %2172 = vmatpush.bf16.msra.mxu3 %v7494_v49  ;;  %2198 = vmatpush.bf16.msra.mxu2 %v7496_v15  ;;  %v7518_v49 = vor.u32 %v6318_v55, %v5170_v26  ;;  %v5332_v5 = vld [vmem:[#allocation2 + $0x658] sm:$0xf0]  ;;  %v5330_v15 = vld [vmem:[#allocation2 + $0x648] sm:$0xf] }
  0xf0   : > { %9336 = vst [vmem:[#allocation209_spill] sm:$0xff] %v7510_v44  ;;  %v6358_v1 = vld [vmem:[#allocation2 + $0x654] sm:$0xf0]  ;;  %v6324_v41 = vld [vmem:[#allocation2 + $0x54c] sm:$0xf]  ;;  %v7529_v55 = vor.u32 %v6356_v30, %v5332_v5 }
  0xf1   : > { %9337 = vst [vmem:[#allocation210_spill] sm:$0xff] %v7512_v62  ;;  %2212 = vmatpush.bf16.msra.mxu0 %v7503_v39  ;;  %v7526_v39 = vor.u32 %v6392_v58, %v5476_v6  ;;  %v5204_v11 = vld [vmem:[#allocation2 + $0x558] sm:$0xf0]  ;;  %v6388_v26 = vld [vmem:[#allocation2 + $0x74c] sm:$0xf]  ;;  %v7534_v36 = vor.u32 %v6358_v1, %v5330_v15  ;;  %v982_v58 = vpop.f32.mrf.mxu1 }
  0xf2   : > { %9338 = vst [vmem:[#allocation211_spill] sm:$0xff] %v7515_v18  ;;  %v5460_v2 = vld [vmem:[#allocation2 + $0x758] sm:$0xf0]  ;;  %2164 = vmatpush.bf16.msrb.mxu1 %v7518_v49  ;;  %v7536_v23 = vor.u32 %v6324_v41, %v5204_v11  ;;  %v5314_v27 = vld [vmem:[#allocation2 + $0x628] sm:$0xf]  ;;  %v956_v41 = vpop.f32.mrf.mxu2 }
  0xf3   : > { %9339 = vst [vmem:[#allocation212_spill] sm:$0xff] %v7518_v49  ;;  %2173 = vmatpush.bf16.msra.mxu3 %v7510_v44  ;;  %2199 = vmatpush.bf16.msra.mxu2 %v7512_v62  ;;  %v6352_v62 = vld [vmem:[#allocation2 + $0x62c] sm:$0xf]  ;;  %v5316_v4 = vld [vmem:[#allocation2 + $0x638] sm:$0xf0]  ;;  %v7539_v6 = vor.u32 %v6388_v26, %v5460_v2  ;;  %v930_v49 = vpop.f32.mrf.mxu3  ;;  %v970_v35 = vadd.f32 %v969_v9, %v956_v41 }
  0xf4   : > { %9340 = vst [vmem:[#allocation213_spill] sm:$0xff] %v7522_v50  ;;  %v6354_v30 = vld [vmem:[#allocation2 + $0x634] sm:$0xf0]  ;;  %v6320_v5 = vld [vmem:[#allocation2 + $0x52c] sm:$0xf]  ;;  %v931_v11 = vadd.f32 %v930_v49, %v7477_v32 }
  0xf5   : > { %9341 = vst [vmem:[#allocation214_spill] sm:$0xff] %v7524_v56  ;;  %2213 = vmatpush.bf16.msra.mxu0 %v7515_v18  ;;  %v5188_v18 = vld [vmem:[#allocation2 + $0x538] sm:$0xf0]  ;;  %2165 = vmatmul.bf16.vlgmr.msrb.gmra.mxu1 %v7412_v54  ;;  %v6384_v15 = vld [vmem:[#allocation2 + $0x72c] sm:$0xf]  ;;  %v7548_v26 = vor.u32 %v6354_v30, %v5314_v27 }
  0xf6   : > { %9342 = vst [vmem:[#allocation215_spill] sm:$0xff] %v7526_v39  ;;  %2226 = vmatpush.bf16.msra.mxu1 %v7526_v39  ;;  %v5444_v1 = vld [vmem:[#allocation2 + $0x738] sm:$0xf0]  ;;  %v6350_v44 = vld [vmem:[#allocation2 + $0x614] sm:$0xf0]  ;;  %v7561_v9 = vadd.f32 %v7424_v46, %v931_v11 }
  0xf7   : > { %9343 = vst [vmem:[#allocation216_spill] sm:$0xff] %v7529_v55  ;;  %2174 = vmatpush.bf16.msra.mxu3 %v7522_v50  ;;  %2200 = vmatpush.bf16.msra.mxu2 %v7524_v56  ;;  %v7543_v50 = vor.u32 %v6352_v62, %v5316_v4  ;;  %v5298_v56 = vld [vmem:[#allocation2 + $0x608] sm:$0xf]  ;;  %v6348_v39 = vld [vmem:[#allocation2 + $0x60c] sm:$0xf]  ;;  %v7553_v32 = vor.u32 %v6384_v15, %v5444_v1 }
  0xf8   : > { %9344 = vst [vmem:[#allocation217_spill] sm:$0xff] %v7534_v36  ;;  %v5300_v2 = vld [vmem:[#allocation2 + $0x618] sm:$0xf0]  ;;  %v6316_v62 = vld [vmem:[#allocation2 + $0x50c] sm:$0xf]  ;;  %v7567_v37 = vor.u32 %v6350_v44, %v5298_v56 }
  0xf9   : > { %9345 = vst [vmem:[#allocation218_spill] sm:$0xff] %v7536_v23  ;;  %2214 = vmatpush.bf16.msra.mxu0 %v7529_v55  ;;  %v7550_v55 = vor.u32 %v6320_v5, %v5188_v18  ;;  %v6423_v4 = vld [vmem:[#allocation2 + $0x864] sm:$0xf]  ;;  %v5600_v14 = vld [vmem:[#allocation2 + $0x870] sm:$0xf0]  ;;  %v7558_v5 = vadd.f32 %v982_v58, %v970_v35  ;;  %v984_v58 = vpop.f32.mrf.mxu1 }
  0xfa   : > { %9346 = vst [vmem:[#allocation219_spill] sm:$0xff] %v7539_v6  ;;  %2227 = vmatpush.bf16.msra.mxu1 %v7539_v6  ;;  %v5172_v49 = vld [vmem:[#allocation2 + $0x518] sm:$0xf0]  ;;  %v6380_v28 = vld [vmem:[#allocation2 + $0x70c] sm:$0xf]  ;;  %v7563_v6 = vor.u32 %v6423_v4, %v5600_v14 }
  0xfb   : > { %9347 = vst [vmem:[#allocation220_spill] sm:$0xff] %v7543_v50  ;;  %2175 = vmatpush.bf16.msra.mxu3 %v7534_v36  ;;  %2201 = vmatpush.bf16.msra.mxu2 %v7536_v23  ;;  %v5428_v43 = vld [vmem:[#allocation2 + $0x718] sm:$0xf0]  ;;  %v7556_v36 = vor.u32 %v6348_v39, %v5300_v2  ;;  %v5598_v27 = vld [vmem:[#allocation2 + $0x860] sm:$0xf]  ;;  %v7569_v39 = vor.u32 %v6316_v62, %v5172_v49  ;;  %v932_v58 = vpop.f32.mrf.mxu3 }
  0xfc   : > { %9348 = vst [vmem:[#allocation221_spill] sm:$0xff] %v7548_v26  ;;  %v6425_v30 = vld [vmem:[#allocation2 + $0x86c] sm:$0xf0]  ;;  %v5726_v18 = vld [vmem:[#allocation2 + $0x960] sm:$0xf]  ;;  %v7572_v46 = vor.u32 %v6380_v28, %v5428_v43  ;;  %v958_v43 = vpop.f32.mrf.mxu2 }
  0xfd   : > { %9349 = vst [vmem:[#allocation222_spill] sm:$0xff] %v7550_v55  ;;  %2215 = vmatpush.bf16.msra.mxu0 %v7543_v50  ;;  %v6457_v15 = vld [vmem:[#allocation2 + $0x96c] sm:$0xf0]  ;;  %v5790_v1 = vld [vmem:[#allocation2 + $0x9e0] sm:$0xf]  ;;  %v7574_v11 = vor.u32 %v6425_v30, %v5598_v27 }
  0xfe   : > { %9350 = vst [vmem:[#allocation223_spill] sm:$0xff] %v7553_v32  ;;  %v6473_v41 = vld [vmem:[#allocation2 + $0x9ec] sm:$0xf0]  ;;  %v6419_v35 = vld [vmem:[#allocation2 + $0x844] sm:$0xf]  ;;  %2228 = vmatpush.bf16.msra.mxu1 %v7553_v32  ;;  %v7581_v4 = vor.u32 %v6457_v15, %v5726_v18 }
  0xff   : > { %9351 = vst [vmem:[#allocation224_spill] sm:$0xff] %v7556_v36  ;;  %2176 = vmatpush.bf16.msra.mxu3 %v7548_v26  ;;  %2202 = vmatpush.bf16.msra.mxu2 %v7550_v55  ;;  %v5584_v2 = vld [vmem:[#allocation2 + $0x850] sm:$0xf0]  ;;  %v2240_v50 = vld [vmem:[%s6786_s7 + $0x8] sm:$0xf]  ;;  %v7583_v44 = vor.u32 %v6473_v41, %v5790_v1 }
 0x100   : > { %9352 = vst [vmem:[#allocation225_spill] sm:$0xff] %v7563_v6  ;;  %v7578_v14 = vld [vmem:[%s6786_s7 + $0x14] sm:$0x1]  ;;  %v5582_v56 = vld [vmem:[#allocation2 + $0x840] sm:$0xf]  ;;  %v7588_v32 = vor.u32 %v6419_v35, %v5584_v2  ;;  %v2330_v18 = vunpack.c.l.b16 %v2240_v50 }
 0x101   : > { %9353 = vst [vmem:[#allocation226_spill] sm:$0xff] %v7567_v37  ;;  %2216 = vmatpush.bf16.msra.mxu0 %v7556_v36  ;;  %v6421_v62 = vld [vmem:[#allocation2 + $0x84c] sm:$0xf0]  ;;  %v5710_v49 = vld [vmem:[#allocation2 + $0x940] sm:$0xf] }
 0x102   : > { %9354 = vst [vmem:[#allocation227_spill] sm:$0xff] %v7569_v39  ;;  %v6453_v28 = vld [vmem:[#allocation2 + $0x94c] sm:$0xf0]  ;;  %v5774_v27 = vld [vmem:[#allocation2 + $0x9c0] sm:$0xf]  ;;  %2229 = vmatpush.bf16.msra.mxu1 %v7572_v46  ;;  %v7593_v1 = vor.u32 %v6421_v62, %v5582_v56 }
 0x103   : > { %9355 = vst [vmem:[#allocation228_spill] sm:$0xff] %v7572_v46  ;;  %v6469_v30 = vld [vmem:[#allocation2 + $0x9cc] sm:$0xf0]  ;;  %2177 = vmatpush.bf16.msra.mxu3 %v7567_v37  ;;  %2203 = vmatpush.bf16.msra.mxu2 %v7569_v39  ;;  %v6415_v41 = vld [vmem:[#allocation2 + $0x824] sm:$0xf]  ;;  %v7597_v43 = vor.u32 %v6453_v28, %v5710_v49  ;;  %v9365_v49 = vunpack.c.l.b16 %v7578_v14 }
 0x104   : > { %9356 = vst [vmem:[#allocation229_spill] sm:$0xff] %v7574_v11  ;;  %v5568_v58 = vld [vmem:[#allocation2 + $0x830] sm:$0xf0]  ;;  %v7599_v39 = vor.u32 %v6469_v30, %v5774_v27  ;;  %v5566_v35 = vld [vmem:[#allocation2 + $0x820] sm:$0xf]  ;;  %2217 = vmatmul.bf16.vlgmr.msra.gmra.mxu0 %v7418_v22 }
 0x105   : > { %9357 = vst [vmem:[#allocation230_spill] sm:$0xff] %v7578_v14  ;;  %2802 = vmatpush.bf16.msrb.mxu0 %v7563_v6  ;;  %v6417_v50 = vld [vmem:[#allocation2 + $0x82c] sm:$0xf0]  ;;  %v5694_v2 = vld [vmem:[#allocation2 + $0x920] sm:$0xf]  ;;  %v7608_v28 = vpack.c.b16 %v9365_v49, %v2330_v18  ;;  %5483 = vmatmul.msk.bf16.vlgmr.msra.gmra.mxu1 %vm826_vm0, %v7350_v57 }
 0x106   : > { %9358 = vst [vmem:[#allocation231_spill] sm:$0xff] %v7581_v4  ;;  %2776 = vmatpush.bf16.msrb.mxu1 %v7581_v4  ;;  %2178 = vmatmul.bf16.vlgmr.msra.gmra.mxu3 %v7418_v22  ;;  %v6449_v15 = vld [vmem:[#allocation2 + $0x92c] sm:$0xf0]  ;;  %v5758_v56 = vld [vmem:[#allocation2 + $0x9a0] sm:$0xf]  ;;  %v7612_v27 = vor.u32 %v6417_v50, %v5566_v35 }
 0x107   : > { %9359 = vst [vmem:[#allocation232_spill] sm:$0xff] %v7583_v44  ;;  %2763 = vmatpush.bf16.msrb.mxu3 %v7574_v11  ;;  %2793 = vmatpush.bf16.msrb.mxu2 %v7583_v44  ;;  %v6465_v62 = vld [vmem:[#allocation2 + $0x9ac] sm:$0xf0]  ;;  %v7604_v11 = vor.u32 %v6415_v41, %v5568_v58  ;;  %v5550_v4 = vld [vmem:[#allocation2 + $0x800] sm:$0xf]  ;;  %v7616_v41 = vor.u32 %v6449_v15, %v5694_v2 }
 0x108   : > { %9360 = vst [vmem:[#allocation233_spill] sm:$0xff] %v7588_v32  ;;  %2204 = vmatmul.bf16.vlgmr.msra.gmra.mxu2 %v7412_v54  ;;  %v6413_v30 = vld [vmem:[#allocation2 + $0x80c] sm:$0xf0]  ;;  %v6411_v44 = vld [vmem:[#allocation2 + $0x804] sm:$0xf]  ;;  %v7618_v58 = vor.u32 %v6465_v62, %v5758_v56  ;;  %v2354_v56 = vshll.u32 %v7608_v28, 16 }
 0x109   : > { %9361 = vst [vmem:[#allocation234_spill] sm:$0xff] %v7593_v1  ;;  %2803 = vmatpush.bf16.msrb.mxu0 %v7588_v32  ;;  %v5552_v46 = vld [vmem:[#allocation2 + $0x810] sm:$0xf0]  ;;  %v5678_v18 = vld [vmem:[#allocation2 + $0x900] sm:$0xf]  ;;  %v7622_v32 = vpop.f32.mrf.mxu2  ;;  %v7629_v62 = vor.u32 %v6413_v30, %v5550_v4 }
 0x10a   : > { %9362 = vst [vmem:[#allocation235_spill] sm:$0xff] %v7597_v43  ;;  %2777 = vmatpush.bf16.msrb.mxu1 %v7597_v43  ;;  %v6445_v49 = vld [vmem:[#allocation2 + $0x90c] sm:$0xf0]  ;;  %v5742_v14 = vld [vmem:[#allocation2 + $0x980] sm:$0xf]  ;;  %v2356_v23 = vrot.slane %v2354_v56, 1 }
 0x10b   : > { %9363 = vst [vmem:[#allocation236_spill] sm:$0xff] %v7599_v39  ;;  %2764 = vmatpush.bf16.msrb.mxu3 %v7593_v1  ;;  %2794 = vmatpush.bf16.msrb.mxu2 %v7599_v39  ;;  %v6461_v35 = vld [vmem:[#allocation2 + $0x98c] sm:$0xf0]  ;;  %v6455_v50 = vld [vmem:[#allocation2 + $0x964] sm:$0xf]  ;;  %v7625_v39 = vor.u32 %v6411_v44, %v5552_v46  ;;  %v7637_v6 = vor.u32 %v6445_v49, %v5678_v18 }
 0x10c   : > { %9364 = vst [vmem:[#allocation237_spill] sm:$0xff] %v7604_v11  ;;  %v5728_v1 = vld [vmem:[#allocation2 + $0x970] sm:$0xf0]  ;;  %v6407_v15 = vld [vmem:[#allocation2 + $0x7e4] sm:$0xf] }
 0x10d   : > { %9366 = vst [vmem:[#allocation238_spill] sm:$0xff] %v7612_v27  ;;  %2804 = vmatpush.bf16.msrb.mxu0 %v7604_v11  ;;  %v5536_v2 = vld [vmem:[#allocation2 + $0x7f0] sm:$0xf0]  ;;  %v2239_v43 = vld [vmem:[%s6786_s7] sm:$0xff]  ;;  %v7633_v37 = vld [vmem:[%s6786_s7 + $0xc] sm:$0x11]  ;;  %v7639_v11 = vor.u32 %v6461_v35, %v5742_v14  ;;  %v7641_v36 = vor.u32 %v6455_v50, %v5728_v1  ;;  %v1447_v14 = vpop.f32.mrf.mxu0 }
 0x10e   : > { %9367 = vst [vmem:[#allocation239_spill] sm:$0xff] %v7616_v41  ;;  %2778 = vmatpush.bf16.msrb.mxu1 %v7616_v41  ;;  %v5534_v46 = vld [vmem:[#allocation2 + $0x7e0] sm:$0xf]  ;;  %v6409_v44 = vld [vmem:[#allocation2 + $0x7ec] sm:$0xf0]  ;;  %v2352_v41 = vshrl.u32 %v7608_v28, 16  ;;  %v2329_v50 = vunpack.c.h.b16 %v2239_v43  ;;  %v7655_v28 = vadd.f32 %v1447_v14, %v7448_v40 }
 0x10f   : > { %9368 = vst [vmem:[#allocation240_spill] sm:$0xff] %v7618_v58  ;;  %2765 = vmatpush.bf16.msrb.mxu3 %v7612_v27  ;;  %2795 = vmatpush.bf16.msrb.mxu2 %v7618_v58  ;;  %v5662_v55 = vld [vmem:[#allocation2 + $0x8e0] sm:$0xf]  ;;  %v6441_v26 = vld [vmem:[#allocation2 + $0x8ec] sm:$0xf0]  ;;  %v7643_v27 = vor.u32 %v6407_v15, %v5536_v2  ;;  %v2328_v58 = vunpack.c.l.b16 %v2239_v43  ;;  %v7649_v49 = vor.u32 %v6409_v44, %v5534_v46 }
 0x110   : > { %9369 = vst [vmem:[#allocation241_spill] sm:$0xff] %v7625_v39  ;;  %v6451_v4 = vld [vmem:[#allocation2 + $0x944] sm:$0xf]  ;;  %v5712_v30 = vld [vmem:[#allocation2 + $0x950] sm:$0xf0]  ;;  %v7657_v2 = vor.u32 %v6441_v26, %v5662_v55  ;;  %v7665_v40 = vor.u32 %v2356_v23, %v2352_v41  ;;  %v9380_v55 = vunpack.c.l.b16 %v7633_v37 }
 0x111   : > { %9370 = vst [vmem:[#allocation242_spill] sm:$0xff] %v7629_v62  ;;  %2805 = vmatpush.bf16.msrb.mxu0 %v7625_v39  ;;  %v6403_v1 = vld [vmem:[#allocation2 + $0x7c4] sm:$0xf]  ;;  %v5520_v35 = vld [vmem:[#allocation2 + $0x7d0] sm:$0xf0]  ;;  %v7660_v46 = vor.u32 %v6451_v4, %v5712_v30  ;;  %v1436_v39 = vpop.f32.mrf.mxu2 }
 0x112   : > { %9371 = vst [vmem:[#allocation243_spill] sm:$0xff] %v7633_v37  ;;  %2779 = vmatpush.bf16.msrb.mxu1 %v7637_v6  ;;  %v5518_v56 = vld [vmem:[#allocation2 + $0x7c0] sm:$0xf]  ;;  %v6405_v18 = vld [vmem:[#allocation2 + $0x7cc] sm:$0xf0]  ;;  %v7663_v15 = vor.u32 %v6403_v1, %v5520_v35  ;;  %v7669_v26 = vpack.c.b16 %v9380_v55, %v2328_v58  ;;  %v9382_v39 = vunpack.c.h.b16 %v7633_v37  ;;  %v1408_v58 = vpop.f32.mrf.mxu3 }
 0x113   : > { %9372 = vst [vmem:[#allocation244_spill] sm:$0xff] %v7637_v6  ;;  %2766 = vmatpush.bf16.msrb.mxu3 %v7629_v62  ;;  %2796 = vmatpush.bf16.msrb.mxu2 %v7639_v11  ;;  %v1421_v62 = vpop.f32.mrf.mxu1  ;;  %v5646_v44 = vld [vmem:[#allocation2 + $0x8c0] sm:$0xf]  ;;  %v6437_v43 = vld [vmem:[#allocation2 + $0x8cc] sm:$0xf0]  ;;  %v7672_v14 = vor.u32 %v6405_v18, %v5518_v56 }
 0x114   : > { %9373 = vst [vmem:[#allocation245_spill] sm:$0xff] %v7639_v11  ;;  %v6447_v11 = vld [vmem:[#allocation2 + $0x924] sm:$0xf]  ;;  %v5696_v6 = vld [vmem:[#allocation2 + $0x930] sm:$0xf0]  ;;  %v7679_v1 = vor.u32 %v6437_v43, %v5646_v44  ;;  %v2340_v43 = vshll.u32 %v7669_v26, 16 }
 0x115   : > { %9374 = vst [vmem:[#allocation246_spill] sm:$0xff] %v7641_v36  ;;  %2806 = vmatpush.bf16.msrb.mxu0 %v7643_v27  ;;  %v6399_v4 = vld [vmem:[#allocation2 + $0x7a4] sm:$0xf]  ;;  %v5504_v30 = vld [vmem:[#allocation2 + $0x7b0] sm:$0xf0]  ;;  %v7682_v55 = vor.u32 %v6447_v11, %v5696_v6 }
 0x116   : > { %9375 = vst [vmem:[#allocation247_spill] sm:$0xff] %v7643_v27  ;;  %2780 = vmatpush.bf16.msrb.mxu1 %v7657_v2  ;;  %v5502_v23 = vld [vmem:[#allocation2 + $0x7a0] sm:$0xf]  ;;  %v6401_v41 = vld [vmem:[#allocation2 + $0x7ac] sm:$0xf0]  ;;  %v1409_v27 = vadd.f32 %v1408_v58, %v7357_v24  ;;  %v1449_v24 = vpop.f32.mrf.mxu0 }
 0x117   : > { %9376 = vst [vmem:[#allocation248_spill] sm:$0xff] %v7649_v49  ;;  %2815 = vmatpush.bf16.msra.mxu2 %v7641_v36  ;;  %2767 = vmatpush.bf16.msrb.mxu3 %v7649_v49  ;;  %v7676_v36 = vpack.c.b16 %v9382_v39, %v2329_v50  ;;  %v5630_v35 = vld [vmem:[#allocation2 + $0x8a0] sm:$0xf]  ;;  %v6433_v18 = vld [vmem:[#allocation2 + $0x8ac] sm:$0xf0]  ;;  %v7686_v50 = vor.u32 %v6399_v4, %v5504_v30 }
 0x118   : > { %9377 = vst [vmem:[#allocation249_spill] sm:$0xff] %v7657_v2  ;;  %v6443_v56 = vld [vmem:[#allocation2 + $0x904] sm:$0xf]  ;;  %v5680_v49 = vld [vmem:[#allocation2 + $0x910] sm:$0xf0]  ;;  %5804 = vmatmul.msk.bf16.vlgmr.msrb.gmra.mxu2 %vm826_vm0, %v7665_v40  ;;  %v7692_v6 = vor.u32 %v6401_v41, %v5502_v23  ;;  %v1422_v4 = vadd.f32 %v1421_v62, %v1409_v27  ;;  %v7696_v30 = vor.u32 %v6433_v18, %v5630_v35  ;;  %v2338_v35 = vshrl.u32 %v7669_v26, 16 }
 0x119   : > { %9378 = vst [vmem:[#allocation250_spill] sm:$0xff] %v7660_v46  ;;  %2807 = vmatpush.bf16.msrb.mxu0 %v7663_v15  ;;  %v5486_v39 = vld [vmem:[#allocation2 + $0x780] sm:$0xf]  ;;  %v6397_v44 = vld [vmem:[#allocation2 + $0x78c] sm:$0xf0]  ;;  %v2347_v58 = vshll.u32 %v7676_v36, 16  ;;  %v7699_v23 = vor.u32 %v6443_v56, %v5680_v49 }
 0x11a   : > { %9379 = vst [vmem:[#allocation251_spill] sm:$0xff] %v7663_v15  ;;  %v5614_v11 = vld [vmem:[#allocation2 + $0x880] sm:$0xf]  ;;  %v6429_v37 = vld [vmem:[#allocation2 + $0x88c] sm:$0xf0]  ;;  %2781 = vmatpush.bf16.msrb.mxu1 %v7679_v1  ;;  %v7702_v24 = vadd.f32 %v7622_v32, %v1422_v4  ;;  %v2342_v18 = vrot.slane %v2340_v43, 1  ;;  %v1410_v26 = vpop.f32.mrf.mxu3 }
 0x11b   : > { %9381 = vst [vmem:[#allocation252_spill] sm:$0xff] %v7672_v14  ;;  %2816 = vmatpush.bf16.msra.mxu2 %v7660_v46  ;;  %2768 = vmatpush.bf16.msrb.mxu3 %v7672_v14  ;;  %v6395_v46 = vld [vmem:[#allocation2 + $0x784] sm:$0xf]  ;;  %v5488_v2 = vld [vmem:[#allocation2 + $0x790] sm:$0xf0]  ;;  %v1423_v31 = vpop.f32.mrf.mxu1  ;;  %v2345_v56 = vshrl.u32 %v7676_v36, 16  ;;  %v7715_v32 = vor.u32 %v6429_v37, %v5614_v11 }
 0x11c   : > { %9383 = vst [vmem:[#allocation253_spill] sm:$0xff] %v7679_v1  ;;  %v6439_v15 = vld [vmem:[#allocation2 + $0x8e4] sm:$0xf]  ;;  %v5798_v22 = vld [vmem:[#allocation2 + $0x9e8] sm:$0xf]  ;;  %v7705_v1 = vor.u32 %v6395_v46, %v5488_v2  ;;  %v7709_v31 = vor.u32 %v6397_v44, %v5486_v39  ;;  %v7725_v36 = vor.u32 %v2342_v18, %v2338_v35 }
 0x11d   : > { %9384 = vst [vmem:[#allocation254_spill] sm:$0xff] %v7682_v55  ;;  %v6474_v54 = vld [vmem:[#allocation2 + $0x9f4] sm:$0xf0]  ;;  %v5664_v41 = vld [vmem:[#allocation2 + $0x8f0] sm:$0xf0]  ;;  %2808 = vmatpush.bf16.msrb.mxu0 %v7686_v50 }
 0x11e   : > { %9385 = vst [vmem:[#allocation255_spill] sm:$0xff] %v7686_v50  ;;  %v6471_v14 = vld [vmem:[#allocation2 + $0x9e4] sm:$0xf]  ;;  %v5792_v42 = vld [vmem:[#allocation2 + $0x9f0] sm:$0xf0]  ;;  %v7711_v49 = vor.u32 %v6474_v54, %v5798_v22  ;;  %2782 = vmatpush.bf16.msrb.mxu1 %v7696_v30  ;;  %v7720_v43 = vor.u32 %v6439_v15, %v5664_v41 }
 0x11f   : > { %9386 = vst [vmem:[#allocation256_spill] sm:$0xff] %v7692_v6  ;;  %2817 = vmatpush.bf16.msra.mxu2 %v7682_v55  ;;  %v5606_v27 = vld [vmem:[#allocation2 + $0x868] sm:$0xf]  ;;  %v6426_v62 = vld [vmem:[#allocation2 + $0x874] sm:$0xf0]  ;;  %2769 = vmatpush.bf16.msrb.mxu3 %v7692_v6  ;;  %v2349_v55 = vrot.slane %v2347_v58, 1  ;;  %v7717_v2 = vor.u32 %v6471_v14, %v5792_v42 }
 0x120   : > { %9387 = vst [vmem:[#allocation257_spill] sm:$0xff] %v7696_v30  ;;  %v5782_v46 = vld [vmem:[#allocation2 + $0x9c8] sm:$0xf]  ;;  %v6470_v4 = vld [vmem:[#allocation2 + $0x9d4] sm:$0xf0]  ;;  %v7722_v39 = vor.u32 %v6426_v62, %v5606_v27  ;;  %v7737_v62 = vpop.f32.mrf.mxu0 }
 0x121   : > { %9388 = vst [vmem:[#allocation258_spill] sm:$0xff] %v7699_v23  ;;  %v6435_v54 = vld [vmem:[#allocation2 + $0x8c4] sm:$0xf]  ;;  %v5776_v44 = vld [vmem:[#allocation2 + $0x9d0] sm:$0xf0]  ;;  %2809 = vmatpush.bf16.msrb.mxu0 %v7705_v1  ;;  %v7729_v14 = vor.u32 %v6470_v4, %v5782_v46  ;;  %v7731_v15 = vor.u32 %v2349_v55, %v2345_v56 }
 0x122   : > { %9389 = vst [vmem:[#allocation259_spill] sm:$0xff] %v7705_v1  ;;  %v6467_v22 = vld [vmem:[#allocation2 + $0x9c4] sm:$0xf]  ;;  %v5648_v37 = vld [vmem:[#allocation2 + $0x8d0] sm:$0xf0]  ;;  %2783 = vmatpush.bf16.msrb.mxu1 %v7715_v32 }
 0x123   : > { %9390 = vst [vmem:[#allocation260_spill] sm:$0xff] %v7709_v31  ;;  %2818 = vmatpush.bf16.msra.mxu2 %v7699_v23  ;;  %v5590_v11 = vld [vmem:[#allocation2 + $0x848] sm:$0xf]  ;;  %v6422_v42 = vld [vmem:[#allocation2 + $0x854] sm:$0xf0]  ;;  %2770 = vmatpush.bf16.msrb.mxu3 %v7709_v31  ;;  %v7735_v58 = vor.u32 %v6467_v22, %v5776_v44  ;;  %v7741_v35 = vor.u32 %v6435_v54, %v5648_v37  ;;  %v1460_v44 = vpop.f32.mrf.mxu2 }
 0x124   : > { %9391 = vst [vmem:[#allocation261_spill] sm:$0xff] %v7711_v49  ;;  %v5766_v41 = vld [vmem:[#allocation2 + $0x9a8] sm:$0xf]  ;;  %v6466_v27 = vld [vmem:[#allocation2 + $0x9b4] sm:$0xf0]  ;;  %v7743_v18 = vor.u32 %v6422_v42, %v5590_v11  ;;  %2810 = vmatmul.bf16.vlgmr.msrb.gmra.mxu0 %v7725_v36  ;;  %v1461_v54 = vadd.f32 %v1460_v44, %v7655_v28  ;;  %v1473_v44 = vpop.f32.mrf.mxu3 }
 0x125   : > { %9392 = vst [vmem:[#allocation262_spill] sm:$0xff] %v7715_v32  ;;  %2871 = vmatpush.bf16.msra.mxu0 %v7711_v49  ;;  %v6431_v55 = vld [vmem:[#allocation2 + $0x8a4] sm:$0xf]  ;;  %v5760_v46 = vld [vmem:[#allocation2 + $0x9b0] sm:$0xf0]  ;;  %2784 = vmatmul.bf16.vlgmr.msrb.gmra.mxu1 %v7731_v15 }
 0x126   : > { %9393 = vst [vmem:[#allocation263_spill] sm:$0xff] %v7717_v2  ;;  %2841 = vmatpush.bf16.msra.mxu1 %v7722_v39  ;;  %v6463_v56 = vld [vmem:[#allocation2 + $0x9a4] sm:$0xf]  ;;  %2771 = vmatmul.bf16.vlgmr.msrb.gmra.mxu3 %v7725_v36  ;;  %v5632_v4 = vld [vmem:[#allocation2 + $0x8b0] sm:$0xf0]  ;;  %v7761_v31 = vadd.f32 %v1473_v44, %v1461_v54 }
 0x127   : > { %9394 = vst [vmem:[#allocation264_spill] sm:$0xff] %v7720_v43  ;;  %2832 = vmatpush.bf16.msra.mxu3 %v7717_v2  ;;  %2819 = vmatpush.bf16.msra.mxu2 %v7720_v43  ;;  %v5574_v26 = vld [vmem:[#allocation2 + $0x828] sm:$0xf]  ;;  %v6418_v22 = vld [vmem:[#allocation2 + $0x834] sm:$0xf0]  ;;  %v7753_v37 = vor.u32 %v6463_v56, %v5760_v46 }
 0x128   : > { %9395 = vst [vmem:[#allocation265_spill] sm:$0xff] %v7722_v39  ;;  %v7749_v39 = vor.u32 %v6466_v27, %v5766_v41  ;;  %v6427_v11 = vld [vmem:[#allocation2 + $0x884] sm:$0xf]  ;;  %v5616_v42 = vld [vmem:[#allocation2 + $0x890] sm:$0xf0]  ;;  %v7759_v49 = vor.u32 %v6418_v22, %v5574_v26  ;;  %v1514_v26 = vpop.f32.mrf.mxu0 }
 0x129   : > { %9396 = vst [vmem:[#allocation266_spill] sm:$0xff] %v7729_v14  ;;  %2872 = vmatpush.bf16.msra.mxu0 %v7729_v14  ;;  %v6459_v43 = vld [vmem:[#allocation2 + $0x984] sm:$0xf]  ;;  %v5750_v2 = vld [vmem:[#allocation2 + $0x988] sm:$0xf]  ;;  %v7757_v14 = vor.u32 %v6431_v55, %v5632_v4  ;;  %v7773_v22 = vor.u32 %v6427_v11, %v5616_v42 }
 0x12a   : > { %9397 = vst [vmem:[#allocation267_spill] sm:$0xff] %v7731_v15  ;;  %v6462_v32 = vld [vmem:[#allocation2 + $0x994] sm:$0xf0]  ;;  %2842 = vmatpush.bf16.msra.mxu1 %v7743_v18  ;;  %v5744_v41 = vld [vmem:[#allocation2 + $0x990] sm:$0xf0] }
 0x12b   : > { %9398 = vst [vmem:[#allocation268_spill] sm:$0xff] %v7735_v58  ;;  %2833 = vmatpush.bf16.msra.mxu3 %v7735_v58  ;;  %2820 = vmatpush.bf16.msra.mxu2 %v7741_v35  ;;  %v6456_v27 = vld [vmem:[#allocation2 + $0x96c] sm:$0xf]  ;;  %v5736_v28 = vld [vmem:[#allocation2 + $0x978] sm:$0xf0]  ;;  %v7764_v1 = vor.u32 %v6462_v32, %v5750_v2  ;;  %v7767_v55 = vor.u32 %v6459_v43, %v5744_v41 }
 0x12c   : > { %9399 = vst [vmem:[#allocation269_spill] sm:$0xff] %v7741_v35  ;;  %v5558_v58 = vld [vmem:[#allocation2 + $0x808] sm:$0xf]  ;;  %v6414_v56 = vld [vmem:[#allocation2 + $0x814] sm:$0xf0]  ;;  %v7769_v4 = vor.u32 %v6456_v27, %v5736_v28 }
 0x12d   : > { %9400 = vst [vmem:[#allocation270_spill] sm:$0xff] %v7743_v18  ;;  %v5734_v46 = vld [vmem:[#allocation2 + $0x968] sm:$0xf]  ;;  %2873 = vmatpush.bf16.msra.mxu0 %v7749_v39  ;;  %v6458_v35 = vld [vmem:[#allocation2 + $0x974] sm:$0xf0]  ;;  %v7775_v54 = vor.u32 %v6414_v56, %v5558_v58 }
 0x12e   : > { %9401 = vst [vmem:[#allocation271_spill] sm:$0xff] %v7749_v39  ;;  %v6424_v23 = vld [vmem:[#allocation2 + $0x86c] sm:$0xf]  ;;  %v5608_v18 = vld [vmem:[#allocation2 + $0x878] sm:$0xf0]  ;;  %2843 = vmatpush.bf16.msra.mxu1 %v7759_v49  ;;  %v7777_v44 = vor.u32 %v6458_v35, %v5734_v46 }
 0x12f   : > { %9402 = vst [vmem:[#allocation272_spill] sm:$0xff] %v7753_v37  ;;  %2834 = vmatpush.bf16.msra.mxu3 %v7753_v37  ;;  %2821 = vmatpush.bf16.msra.mxu2 %v7757_v14  ;;  %v6452_v32 = vld [vmem:[#allocation2 + $0x94c] sm:$0xf]  ;;  %v5720_v2 = vld [vmem:[#allocation2 + $0x958] sm:$0xf0]  ;;  %v7779_v39 = vor.u32 %v6424_v23, %v5608_v18  ;;  %v1486_v23 = vpop.f32.mrf.mxu1 }
 0x130   : > { %9403 = vst [vmem:[#allocation273_spill] sm:$0xff] %v7757_v14  ;;  %v5542_v37 = vld [vmem:[#allocation2 + $0x7e8] sm:$0xf]  ;;  %v6410_v43 = vld [vmem:[#allocation2 + $0x7f4] sm:$0xf0]  ;;  %v1462_v14 = vpop.f32.mrf.mxu2  ;;  %v7784_v58 = vor.u32 %v6452_v32, %v5720_v2 }
 0x131   : > { %9404 = vst [vmem:[#allocation274_spill] sm:$0xff] %v7759_v49  ;;  %v5718_v41 = vld [vmem:[#allocation2 + $0x948] sm:$0xf]  ;;  %2874 = vmatpush.bf16.msra.mxu0 %v7764_v1  ;;  %v6454_v27 = vld [vmem:[#allocation2 + $0x954] sm:$0xf0]  ;;  %v7788_v35 = vor.u32 %v6410_v43, %v5542_v37  ;;  %v7793_v14 = vadd.f32 %v1486_v23, %v7561_v9 }
 0x132   : > { %9405 = vst [vmem:[#allocation275_spill] sm:$0xff] %v7764_v1  ;;  %v6420_v28 = vld [vmem:[#allocation2 + $0x84c] sm:$0xf]  ;;  %v5592_v26 = vld [vmem:[#allocation2 + $0x858] sm:$0xf0]  ;;  %2844 = vmatpush.bf16.msra.mxu1 %v7775_v54  ;;  %v7795_v42 = vor.u32 %v6454_v27, %v5718_v41 }
 0x133   : > { %9406 = vst [vmem:[#allocation276_spill] sm:$0xff] %v7767_v55  ;;  %2835 = vmatpush.bf16.msra.mxu3 %v7767_v55  ;;  %2822 = vmatpush.bf16.msra.mxu2 %v7773_v22  ;;  %v6448_v18 = vld [vmem:[#allocation2 + $0x92c] sm:$0xf]  ;;  %v5704_v11 = vld [vmem:[#allocation2 + $0x938] sm:$0xf0]  ;;  %v7797_v56 = vor.u32 %v6420_v28, %v5592_v26  ;;  %v1538_v55 = vpop.f32.mrf.mxu0 }
 0x134   : > { %9407 = vst [vmem:[#allocation277_spill] sm:$0xff] %v7769_v4  ;;  %v5526_v46 = vld [vmem:[#allocation2 + $0x7c8] sm:$0xf]  ;;  %v6406_v32 = vld [vmem:[#allocation2 + $0x7d4] sm:$0xf0]  ;;  %5806 = vmatmul.msk.bf16.vlgmr.msra.gmra.mxu0 %vm826_vm0, %v7665_v40 }
 0x135   : > { %9408 = vst [vmem:[#allocation278_spill] sm:$0xff] %v7773_v22  ;;  %2893 = vmatpush.bf16.msrb.mxu0 %v7769_v4  ;;  %v5702_v2 = vld [vmem:[#allocation2 + $0x928] sm:$0xf]  ;;  %v6450_v22 = vld [vmem:[#allocation2 + $0x934] sm:$0xf0]  ;;  %v7804_v9 = vor.u32 %v6406_v32, %v5526_v46 }
 0x136   : > { %9409 = vst [vmem:[#allocation279_spill] sm:$0xff] %v7775_v54  ;;  %v1475_v54 = vpop.f32.mrf.mxu3  ;;  %v6416_v37 = vld [vmem:[#allocation2 + $0x82c] sm:$0xf]  ;;  %v5576_v43 = vld [vmem:[#allocation2 + $0x838] sm:$0xf0]  ;;  %2823 = vmatmul.bf16.vlgmr.msra.gmra.mxu2 %v7731_v15  ;;  %2845 = vmatpush.bf16.msra.mxu1 %v7788_v35 }
 0x137   : > { %9410 = vst [vmem:[#allocation280_spill] sm:$0xff] %v7777_v44  ;;  %2854 = vmatpush.bf16.msrb.mxu3 %v7777_v44  ;;  %2880 = vmatpush.bf16.msrb.mxu2 %v7779_v39  ;;  %v7801_v44 = vor.u32 %v6448_v18, %v5704_v11  ;;  %v6444_v41 = vld [vmem:[#allocation2 + $0x90c] sm:$0xf]  ;;  %v5688_v27 = vld [vmem:[#allocation2 + $0x918] sm:$0xf0]  ;;  %v7808_v54 = vor.u32 %v6450_v22, %v5702_v2  ;;  %v1488_v2 = vpop.f32.mrf.mxu1 }
 0x138   : > { %9411 = vst [vmem:[#allocation281_spill] sm:$0xff] %v7779_v39  ;;  %v7810_v28 = vor.u32 %v6416_v37, %v5576_v43  ;;  %v5510_v26 = vld [vmem:[#allocation2 + $0x7a8] sm:$0xf]  ;;  %v6402_v23 = vld [vmem:[#allocation2 + $0x7b4] sm:$0xf0]  ;;  %5805 = vmatmul.msk.bf16.vlgmr.msra.gmra.mxu3 %vm826_vm0, %v7665_v40  ;;  %v7817_v32 = vor.u32 %v6444_v41, %v5688_v27 }
 0x139   : > { %9412 = vst [vmem:[#allocation282_spill] sm:$0xff] %v7784_v58  ;;  %2894 = vmatpush.bf16.msrb.mxu0 %v7784_v58  ;;  %v5686_v39 = vld [vmem:[#allocation2 + $0x908] sm:$0xf]  ;;  %v6446_v18 = vld [vmem:[#allocation2 + $0x914] sm:$0xf0]  ;;  %v7820_v22 = vor.u32 %v6402_v23, %v5510_v26 }
 0x13a   : > { %9413 = vst [vmem:[#allocation283_spill] sm:$0xff] %v7788_v35  ;;  %v6412_v11 = vld [vmem:[#allocation2 + $0x80c] sm:$0xf]  ;;  %v5560_v46 = vld [vmem:[#allocation2 + $0x818] sm:$0xf0]  ;;  %2846 = vmatpush.bf16.msra.mxu1 %v7804_v9 }
 0x13b   : > { %9414 = vst [vmem:[#allocation284_spill] sm:$0xff] %v7795_v42  ;;  %2855 = vmatpush.bf16.msrb.mxu3 %v7795_v42  ;;  %2881 = vmatpush.bf16.msrb.mxu2 %v7797_v56  ;;  %v6440_v37 = vld [vmem:[#allocation2 + $0x8ec] sm:$0xf]  ;;  %v5672_v43 = vld [vmem:[#allocation2 + $0x8f8] sm:$0xf0]  ;;  %v7826_v42 = vor.u32 %v6412_v11, %v5560_v46 }
 0x13c   : > { %9415 = vst [vmem:[#allocation285_spill] sm:$0xff] %v7797_v56  ;;  %v7824_v56 = vor.u32 %v6446_v18, %v5686_v39  ;;  %v5494_v35 = vld [vmem:[#allocation2 + $0x788] sm:$0xf]  ;;  %v6398_v58 = vld [vmem:[#allocation2 + $0x794] sm:$0xf0]  ;;  %v7829_v26 = vor.u32 %v6440_v37, %v5672_v43 }
 0x13d   : > { %9416 = vst [vmem:[#allocation286_spill] sm:$0xff] %v7801_v44  ;;  %2895 = vmatpush.bf16.msrb.mxu0 %v7801_v44  ;;  %v5670_v44 = vld [vmem:[#allocation2 + $0x8e8] sm:$0xf]  ;;  %v6442_v41 = vld [vmem:[#allocation2 + $0x8f4] sm:$0xf0] }
 0x13e   : > { %9417 = vst [vmem:[#allocation287_spill] sm:$0xff] %v7804_v9  ;;  %v6408_v27 = vld [vmem:[#allocation2 + $0x7ec] sm:$0xf]  ;;  %v5544_v4 = vld [vmem:[#allocation2 + $0x7f8] sm:$0xf0]  ;;  %2847 = vmatpush.bf16.msra.mxu1 %v7820_v22  ;;  %v7836_v11 = vor.u32 %v6442_v41, %v5670_v44 }
 0x13f   : > { %9418 = vst [vmem:[#allocation288_spill] sm:$0xff] %v7808_v54  ;;  %2856 = vmatpush.bf16.msrb.mxu3 %v7808_v54  ;;  %2882 = vmatpush.bf16.msrb.mxu2 %v7810_v28  ;;  %v6472_v23 = vld [vmem:[#allocation2 + $0x9ec] sm:$0xf]  ;;  %v5800_v2 = vld [vmem:[#allocation2 + $0x9f8] sm:$0xf0]  ;;  %v7832_v54 = vor.u32 %v6398_v58, %v5494_v35  ;;  %v7838_v46 = vor.u32 %v6408_v27, %v5544_v4  ;;  %v1551_v27 = vpop.f32.mrf.mxu1 }
 0x140   : > { %9419 = vst [vmem:[#allocation289_spill] sm:$0xff] %v7810_v28  ;;  %v6436_v39 = vld [vmem:[#allocation2 + $0x8cc] sm:$0xf]  ;;  %v5656_v18 = vld [vmem:[#allocation2 + $0x8d8] sm:$0xf0] }
 0x141   : > { %9420 = vst [vmem:[#allocation290_spill] sm:$0xff] %v7817_v32  ;;  %2896 = vmatpush.bf16.msrb.mxu0 %v7817_v32  ;;  %v5654_v28 = vld [vmem:[#allocation2 + $0x8c8] sm:$0xf]  ;;  %v7840_v32 = vor.u32 %v6472_v23, %v5800_v2  ;;  %v6438_v37 = vld [vmem:[#allocation2 + $0x8d4] sm:$0xf0]  ;;  %v7843_v58 = vor.u32 %v6436_v39, %v5656_v18 }
 0x142   : > { %9421 = vst [vmem:[#allocation291_spill] sm:$0xff] %v7820_v22  ;;  %v6404_v43 = vld [vmem:[#allocation2 + $0x7cc] sm:$0xf]  ;;  %v5528_v9 = vld [vmem:[#allocation2 + $0x7d8] sm:$0xf0]  ;;  %2848 = vmatpush.bf16.msra.mxu1 %v7832_v54  ;;  %v7848_v4 = vor.u32 %v6438_v37, %v5654_v28 }
 0x143   : > { %9422 = vst [vmem:[#allocation292_spill] sm:$0xff] %v7824_v56  ;;  %2857 = vmatpush.bf16.msrb.mxu3 %v7824_v56  ;;  %2883 = vmatpush.bf16.msrb.mxu2 %v7826_v42  ;;  %v6468_v35 = vld [vmem:[#allocation2 + $0x9cc] sm:$0xf]  ;;  %v5784_v22 = vld [vmem:[#allocation2 + $0x9d8] sm:$0xf0]  ;;  %v7850_v41 = vor.u32 %v6404_v43, %v5528_v9  ;;  %v1525_v56 = vpop.f32.mrf.mxu2 }
 0x144   : > { %9423 = vst [vmem:[#allocation293_spill] sm:$0xff] %v7826_v42  ;;  %v6432_v42 = vld [vmem:[#allocation2 + $0x8ac] sm:$0xf]  ;;  %v5640_v44 = vld [vmem:[#allocation2 + $0x8b8] sm:$0xf0]  ;;  %v7853_v2 = vor.u32 %v6468_v35, %v5784_v22  ;;  %v1526_v43 = vadd.f32 %v1525_v56, %v7558_v5 }
 0x145   : > { %9424 = vst [vmem:[#allocation294_spill] sm:$0xff] %v7829_v26  ;;  %2897 = vmatpush.bf16.msrb.mxu0 %v7829_v26  ;;  %v5638_v23 = vld [vmem:[#allocation2 + $0x8a8] sm:$0xf]  ;;  %v6434_v39 = vld [vmem:[#allocation2 + $0x8b4] sm:$0xf0]  ;;  %2849 = vmatmul.bf16.vlgmr.msra.gmra.mxu1 %v7725_v36 }
 0x146   : > { %9425 = vst [vmem:[#allocation295_spill] sm:$0xff] %v7832_v54  ;;  %2910 = vmatpush.bf16.msrb.mxu1 %v7840_v32  ;;  %v6400_v18 = vld [vmem:[#allocation2 + $0x7ac] sm:$0xf]  ;;  %v5512_v26 = vld [vmem:[#allocation2 + $0x7b8] sm:$0xf0]  ;;  %v1499_v54 = vpop.f32.mrf.mxu3  ;;  %v7863_v1 = vor.u32 %v6434_v39, %v5638_v23  ;;  %v1539_v5 = vadd.f32 %v1538_v55, %v1526_v43 }
 0x147   : > { %9426 = vst [vmem:[#allocation296_spill] sm:$0xff] %v7836_v11  ;;  %2858 = vmatpush.bf16.msrb.mxu3 %v7836_v11  ;;  %2884 = vmatpush.bf16.msrb.mxu2 %v7838_v46  ;;  %v6464_v28 = vld [vmem:[#allocation2 + $0x9ac] sm:$0xf]  ;;  %v5768_v9 = vld [vmem:[#allocation2 + $0x9b8] sm:$0xf0]  ;;  %v1500_v37 = vadd.f32 %v1499_v54, %v7793_v14 }
 0x148   : > { %9427 = vst [vmem:[#allocation297_spill] sm:$0xff] %v7838_v46  ;;  %v7857_v46 = vor.u32 %v6432_v42, %v5640_v44  ;;  %v6430_v22 = vld [vmem:[#allocation2 + $0x894] sm:$0xf0]  ;;  %v6428_v35 = vld [vmem:[#allocation2 + $0x88c] sm:$0xf]  ;;  %v7871_v14 = vor.u32 %v6464_v28, %v5768_v9  ;;  %v7876_v6 = vadd.f32 %v1551_v27, %v1539_v5 }
 0x149   : > { %9428 = vst [vmem:[#allocation298_spill] sm:$0xff] %v7840_v32  ;;  %2898 = vmatpush.bf16.msrb.mxu0 %v7843_v58  ;;  %v5622_v32 = vld [vmem:[#allocation2 + $0x888] sm:$0xf]  ;;  %v5624_v11 = vld [vmem:[#allocation2 + $0x898] sm:$0xf0]  ;;  %v7868_v30 = vadd.f32 %v7737_v62, %v1500_v37 }
 0x14a   : > { %9429 = vst [vmem:[#allocation299_spill] sm:$0xff] %v7843_v58  ;;  %v7865_v58 = vor.u32 %v6400_v18, %v5512_v26  ;;  %v6396_v42 = vld [vmem:[#allocation2 + $0x78c] sm:$0xf]  ;;  %v6503_v44 = vld [vmem:[#allocation2 + $0xae4] sm:$0xf]  ;;  %2911 = vmatpush.bf16.msrb.mxu1 %v7853_v2  ;;  %v7874_v23 = vor.u32 %v6428_v35, %v5624_v11  ;;  %v7882_v55 = vor.u32 %v6430_v22, %v5622_v32  ;;  %v1553_v11 = vpop.f32.mrf.mxu1 }
 0x14b   : > { %9430 = vst [vmem:[#allocation300_spill] sm:$0xff] %v7848_v4  ;;  %2859 = vmatpush.bf16.msrb.mxu3 %v7848_v4  ;;  %2885 = vmatpush.bf16.msrb.mxu2 %v7850_v41  ;;  %v5924_v49 = vld [vmem:[#allocation2 + $0xaf0] sm:$0xf0]  ;;  %v5496_v56 = vld [vmem:[#allocation2 + $0x798] sm:$0xf0] }
 0x14c   : > { %9431 = vst [vmem:[#allocation301_spill] sm:$0xff] %v7850_v41  ;;  %v6460_v54 = vld [vmem:[#allocation2 + $0x98c] sm:$0xf]  ;;  %v5752_v4 = vld [vmem:[#allocation2 + $0x998] sm:$0xf0]  ;;  %v1540_v41 = vpop.f32.mrf.mxu0  ;;  %v7884_v28 = vor.u32 %v6396_v42, %v5496_v56 }
 0x14d   : > { %9432 = vst [vmem:[#allocation302_spill] sm:$0xff] %v7853_v2  ;;  %2899 = vmatpush.bf16.msrb.mxu0 %v7857_v46  ;;  %v5922_v26 = vld [vmem:[#allocation2 + $0xae0] sm:$0xf]  ;;  %v6505_v39 = vld [vmem:[#allocation2 + $0xaec] sm:$0xf0]  ;;  %v7878_v2 = vor.u32 %v6503_v44, %v5924_v49  ;;  %v7887_v9 = vor.u32 %v6460_v54, %v5752_v4  ;;  %v1527_v44 = vpop.f32.mrf.mxu2 }
 0x14e   : > { %9433 = vst [vmem:[#allocation303_spill] sm:$0xff] %v7857_v46  ;;  %v6050_v18 = vld [vmem:[#allocation2 + $0xbe0] sm:$0xf]  ;;  %v6537_v62 = vld [vmem:[#allocation2 + $0xbec] sm:$0xf0]  ;;  %2912 = vmatpush.bf16.msrb.mxu1 %v7871_v14  ;;  %v7889_v41 = vor.u32 %v6505_v39, %v5922_v26  ;;  %v1501_v5 = vpop.f32.mrf.mxu3  ;;  %v9469_v46 = vunpack.c.l.b16 %v7321_v53 }
 0x14f   : > { %9434 = vst [vmem:[#allocation304_spill] sm:$0xff] %v7863_v1  ;;  %v6114_v37 = vld [vmem:[#allocation2 + $0xc60] sm:$0xf]  ;;  %v6553_v50 = vld [vmem:[#allocation2 + $0xc6c] sm:$0xf0]  ;;  %2860 = vmatpush.bf16.msrb.mxu3 %v7863_v1  ;;  %2886 = vmatpush.bf16.msrb.mxu2 %v7865_v58  ;;  %v7892_v49 = vor.u32 %v6537_v62, %v6050_v18 }
 0x150   : > { %9435 = vst [vmem:[#allocation305_spill] sm:$0xff] %v7865_v58  ;;  %v6499_v27 = vld [vmem:[#allocation2 + $0xac4] sm:$0xf]  ;;  %v5908_v43 = vld [vmem:[#allocation2 + $0xad0] sm:$0xf0]  ;;  %v7894_v35 = vor.u32 %v6553_v50, %v6114_v37 }
 0x151   : > { %9436 = vst [vmem:[#allocation306_spill] sm:$0xff] %v7871_v14  ;;  %2900 = vmatpush.bf16.msrb.mxu0 %v7874_v23  ;;  %v5906_v32 = vld [vmem:[#allocation2 + $0xac0] sm:$0xf]  ;;  %v6501_v22 = vld [vmem:[#allocation2 + $0xacc] sm:$0xf0]  ;;  %v7899_v26 = vor.u32 %v6499_v27, %v5908_v43 }
 0x152   : > { %9437 = vst [vmem:[#allocation307_spill] sm:$0xff] %v7874_v23  ;;  %v6034_v42 = vld [vmem:[#allocation2 + $0xbc0] sm:$0xf]  ;;  %v6533_v56 = vld [vmem:[#allocation2 + $0xbcc] sm:$0xf0]  ;;  %2913 = vmatpush.bf16.msrb.mxu1 %v7887_v9  ;;  %v7903_v50 = vor.u32 %v6501_v22, %v5906_v32 }
 0x153   : > { %9438 = vst [vmem:[#allocation308_spill] sm:$0xff] %v7878_v2  ;;  %v6098_v4 = vld [vmem:[#allocation2 + $0xc40] sm:$0xf]  ;;  %v6549_v54 = vld [vmem:[#allocation2 + $0xc4c] sm:$0xf0]  ;;  %2861 = vmatpush.bf16.msrb.mxu3 %v7882_v55  ;;  %2887 = vmatpush.bf16.msrb.mxu2 %v7884_v28  ;;  %v7907_v62 = vor.u32 %v6533_v56, %v6034_v42 }
 0x154   : > { %9439 = vst [vmem:[#allocation309_spill] sm:$0xff] %v7882_v55  ;;  %v6495_v39 = vld [vmem:[#allocation2 + $0xaa4] sm:$0xf]  ;;  %v5892_v18 = vld [vmem:[#allocation2 + $0xab0] sm:$0xf0]  ;;  %v7909_v37 = vor.u32 %v6549_v54, %v6098_v4  ;;  %2901 = vmatmul.bf16.vlgmr.msrb.gmra.mxu0 %v7731_v15 }
 0x155   : > { %9440 = vst [vmem:[#allocation310_spill] sm:$0xff] %v7884_v28  ;;  %3461 = vmatpush.bf16.msra.mxu0 %v7878_v2  ;;  %v5890_v11 = vld [vmem:[#allocation2 + $0xaa0] sm:$0xf]  ;;  %v6497_v27 = vld [vmem:[#allocation2 + $0xaac] sm:$0xf0]  ;;  %v7914_v5 = vor.u32 %v6495_v39, %v5892_v18  ;;  %5807 = vmatmul.msk.bf16.vlgmr.msrb.gmra.mxu1 %vm826_vm0, %v7665_v40 }
 0x156   : > { %9441 = vst [vmem:[#allocation311_spill] sm:$0xff] %v7887_v9  ;;  %3435 = vmatpush.bf16.msra.mxu1 %v7892_v49  ;;  %v6018_v43 = vld [vmem:[#allocation2 + $0xba0] sm:$0xf]  ;;  %2862 = vmatmul.bf16.vlgmr.msrb.gmra.mxu3 %v7731_v15  ;;  %v6529_v44 = vld [vmem:[#allocation2 + $0xbac] sm:$0xf0]  ;;  %v7918_v42 = vor.u32 %v6497_v27, %v5890_v11 }
 0x157   : > { %9442 = vst [vmem:[#allocation312_spill] sm:$0xff] %v7889_v41  ;;  %3422 = vmatpush.bf16.msra.mxu3 %v7889_v41  ;;  %3452 = vmatpush.bf16.msra.mxu2 %v7894_v35  ;;  %v6082_v32 = vld [vmem:[#allocation2 + $0xc20] sm:$0xf]  ;;  %v6545_v22 = vld [vmem:[#allocation2 + $0xc2c] sm:$0xf0]  ;;  %v7929_v41 = vpop.f32.mrf.mxu2 }
 0x158   : > { %9443 = vst [vmem:[#allocation313_spill] sm:$0xff] %v7892_v49  ;;  %2888 = vmatmul.bf16.vlgmr.msrb.gmra.mxu2 %v7725_v36  ;;  %v6491_v56 = vld [vmem:[#allocation2 + $0xa84] sm:$0xf]  ;;  %v5876_v4 = vld [vmem:[#allocation2 + $0xa90] sm:$0xf0]  ;;  %v7925_v49 = vor.u32 %v6545_v22, %v6082_v32 }
 0x159   : > { %9444 = vst [vmem:[#allocation314_spill] sm:$0xff] %v7894_v35  ;;  %3462 = vmatpush.bf16.msra.mxu0 %v7899_v26  ;;  %v2924_v54 = vld [vmem:[%s7028_s10 + $0x8] sm:$0xe]  ;;  %v7923_v35 = vor.u32 %v6529_v44, %v6018_v43  ;;  %v6493_v39 = vld [vmem:[#allocation2 + $0xa8c] sm:$0xf0] }
 0x15a   : > { %9445 = vst [vmem:[#allocation315_spill] sm:$0xff] %v7899_v26  ;;  %3436 = vmatpush.bf16.msra.mxu1 %v7907_v62  ;;  %v5874_v26 = vld [vmem:[#allocation2 + $0xa80] sm:$0xf]  ;;  %v6541_v27 = vld [vmem:[#allocation2 + $0xc0c] sm:$0xf0]  ;;  %v3010_v44 = vunpack.c.l.b16 %v2924_v54 }
 0x15b   : > { %9446 = vst [vmem:[#allocation316_spill] sm:$0xff] %v7903_v50  ;;  %3423 = vmatpush.bf16.msra.mxu3 %v7903_v50  ;;  %3453 = vmatpush.bf16.msra.mxu2 %v7909_v37  ;;  %v6002_v18 = vld [vmem:[#allocation2 + $0xb80] sm:$0xf]  ;;  %v6525_v50 = vld [vmem:[#allocation2 + $0xb8c] sm:$0xf0]  ;;  %v7935_v32 = vor.u32 %v6493_v39, %v5874_v26 }
 0x15c   : > { %9447 = vst [vmem:[#allocation317_spill] sm:$0xff] %v7907_v62  ;;  %v6066_v11 = vld [vmem:[#allocation2 + $0xc00] sm:$0xf]  ;;  %v7932_v62 = vor.u32 %v6491_v56, %v5876_v4  ;;  %v6052_v43 = vld [vmem:[#allocation2 + $0xbf0] sm:$0xf0]  ;;  %v7939_v28 = vor.u32 %v6525_v50, %v6002_v18 }
 0x15d   : > { %9448 = vst [vmem:[#allocation318_spill] sm:$0xff] %v7909_v37  ;;  %3463 = vmatpush.bf16.msra.mxu0 %v7914_v5  ;;  %v6535_v37 = vld [vmem:[#allocation2 + $0xbe4] sm:$0xf]  ;;  %v5860_v9 = vld [vmem:[#allocation2 + $0xa70] sm:$0xf0]  ;;  %v7941_v55 = vor.u32 %v6541_v27, %v6066_v11  ;;  %v2101_v27 = vpop.f32.mrf.mxu1 }
 0x15e   : > { %9449 = vst [vmem:[#allocation319_spill] sm:$0xff] %v7914_v5  ;;  %v6487_v22 = vld [vmem:[#allocation2 + $0xa64] sm:$0xf]  ;;  %3437 = vmatpush.bf16.msra.mxu1 %v7923_v35  ;;  %v5858_v5 = vld [vmem:[#allocation2 + $0xa60] sm:$0xf]  ;;  %v7943_v4 = vor.u32 %v6535_v37, %v6052_v43  ;;  %v7953_v37 = vpop.f32.mrf.mxu0 }
 0x15f   : > { %9450 = vst [vmem:[#allocation320_spill] sm:$0xff] %v7918_v42  ;;  %3424 = vmatpush.bf16.msra.mxu3 %v7918_v42  ;;  %3454 = vmatpush.bf16.msra.mxu2 %v7925_v49  ;;  %v6489_v56 = vld [vmem:[#allocation2 + $0xa6c] sm:$0xf0]  ;;  %v5986_v2 = vld [vmem:[#allocation2 + $0xb60] sm:$0xf]  ;;  %v7946_v26 = vor.u32 %v6487_v22, %v5860_v9 }
 0x160   : > { %9451 = vst [vmem:[#allocation321_spill] sm:$0xff] %v7923_v35  ;;  %v6521_v54 = vld [vmem:[#allocation2 + $0xb6c] sm:$0xf0]  ;;  %v6531_v39 = vld [vmem:[#allocation2 + $0xbc4] sm:$0xf]  ;;  %v9459_v35 = vunpack.c.l.b16 %v7269_v61  ;;  %v7951_v50 = vor.u32 %v6489_v56, %v5858_v5 }
 0x161   : > { %9452 = vst [vmem:[#allocation322_spill] sm:$0xff] %v7925_v49  ;;  %3464 = vmatpush.bf16.msra.mxu0 %v7932_v62  ;;  %v6036_v42 = vld [vmem:[#allocation2 + $0xbd0] sm:$0xf0]  ;;  %v6483_v18 = vld [vmem:[#allocation2 + $0xa44] sm:$0xf]  ;;  %v7957_v9 = vor.u32 %v6521_v54, %v5986_v2 }
 0x162   : > { %9453 = vst [vmem:[#allocation323_spill] sm:$0xff] %v7932_v62  ;;  %v3013_v23 = vpack.c.b16 %v9459_v35, %v3010_v44  ;;  %v5844_v11 = vld [vmem:[#allocation2 + $0xa50] sm:$0xf0]  ;;  %3438 = vmatpush.bf16.msra.mxu1 %v7939_v28  ;;  %v5842_v43 = vld [vmem:[#allocation2 + $0xa40] sm:$0xf]  ;;  %v7960_v61 = vor.u32 %v6531_v39, %v6036_v42  ;;  %v2116_v44 = vpop.f32.mrf.mxu2 }
 0x163   : > { %9454 = vst [vmem:[#allocation324_spill] sm:$0xff] %v7935_v32  ;;  %3425 = vmatpush.bf16.msra.mxu3 %v7935_v32  ;;  %3455 = vmatpush.bf16.msra.mxu2 %v7941_v55  ;;  %v6485_v22 = vld [vmem:[#allocation2 + $0xa4c] sm:$0xf0]  ;;  %v5970_v35 = vld [vmem:[#allocation2 + $0xb40] sm:$0xf]  ;;  %v7964_v32 = vor.u32 %v6483_v18, %v5844_v11  ;;  %v2088_v18 = vpop.f32.mrf.mxu3 }
 0x164   : > { %9455 = vst [vmem:[#allocation325_spill] sm:$0xff] %v7939_v28  ;;  %v6517_v5 = vld [vmem:[#allocation2 + $0xb4c] sm:$0xf0]  ;;  %v2923_v56 = vld [vmem:[%s7028_s10] sm:$0xee]  ;;  %v7969_v2 = vor.u32 %v6485_v22, %v5842_v43 }
 0x165   : > { %9456 = vst [vmem:[#allocation326_spill] sm:$0xff] %v7941_v55  ;;  %3465 = vmatpush.bf16.msra.mxu0 %v7946_v26  ;;  %v6527_v28 = vld [vmem:[#allocation2 + $0xba4] sm:$0xf]  ;;  %v6020_v62 = vld [vmem:[#allocation2 + $0xbb0] sm:$0xf0]  ;;  %v7966_v55 = vrot.slane %v3013_v23, 1  ;;  %v7972_v42 = vor.u32 %v6517_v5, %v5970_v35  ;;  %v3008_v49 = vunpack.c.l.b16 %v2923_v56  ;;  %v3009_v1 = vunpack.c.h.b16 %v2923_v56 }
 0x166   : > { %9457 = vst [vmem:[#allocation327_spill] sm:$0xff] %v7943_v4  ;;  %v6479_v54 = vld [vmem:[#allocation2 + $0xa24] sm:$0xf]  ;;  %3439 = vmatpush.bf16.msra.mxu1 %v7957_v9  ;;  %v5826_v39 = vld [vmem:[#allocation2 + $0xa20] sm:$0xf]  ;;  %v7975_v11 = vor.u32 %v6527_v28, %v6020_v62  ;;  %v2129_v58 = vpop.f32.mrf.mxu0 }
 0x167   : > { %9458 = vst [vmem:[#allocation328_spill] sm:$0xff] %v7946_v26  ;;  %3474 = vmatpush.bf16.msrb.mxu2 %v7943_v4  ;;  %3426 = vmatpush.bf16.msra.mxu3 %v7951_v50  ;;  %v5828_v4 = vld [vmem:[#allocation2 + $0xa30] sm:$0xf0]  ;;  %v6481_v44 = vld [vmem:[#allocation2 + $0xa2c] sm:$0xf0]  ;;  %v3011_v15 = vpack.c.b16 %v9469_v46, %v3008_v49 }
 0x168   : > { %9460 = vst [vmem:[#allocation329_spill] sm:$0xff] %v7951_v50  ;;  %v5954_v23 = vld [vmem:[#allocation2 + $0xb20] sm:$0xf]  ;;  %v6513_v26 = vld [vmem:[#allocation2 + $0xb2c] sm:$0xf0]  ;;  %v2102_v50 = vadd.f32 %v2101_v27, %v2088_v18  ;;  %v7978_v43 = vor.u32 %v6479_v54, %v5828_v4  ;;  %6128 = vmatmul.msk.bf16.vlgmr.msra.gmra.mxu2 %vm826_vm0, %v7966_v55  ;;  %v7983_v5 = vor.u32 %v6481_v44, %v5826_v39 }
 0x169   : > { %9461 = vst [vmem:[#allocation330_spill] sm:$0xff] %v7957_v9  ;;  %v6523_v14 = vld [vmem:[#allocation2 + $0xb84] sm:$0xf]  ;;  %3466 = vmatpush.bf16.msra.mxu0 %v7964_v32  ;;  %v6004_v22 = vld [vmem:[#allocation2 + $0xb90] sm:$0xf0]  ;;  %v7987_v4 = vor.u32 %v6513_v26, %v5954_v23 }
 0x16a   : > { %9462 = vst [vmem:[#allocation331_spill] sm:$0xff] %v7960_v61  ;;  %v5810_v9 = vld [vmem:[#allocation2 + $0xa00] sm:$0xf]  ;;  %v6477_v35 = vld [vmem:[#allocation2 + $0xa0c] sm:$0xf0]  ;;  %v2115_v27 = vadd.f32 %v7929_v41, %v2102_v50  ;;  %3440 = vmatpush.bf16.msra.mxu1 %v7972_v42  ;;  %v7992_v39 = vor.u32 %v6523_v14, %v6004_v22  ;;  %v9474_v14 = vunpack.c.h.b16 %v7321_v53 }
 0x16b   : > { %9463 = vst [vmem:[#allocation332_spill] sm:$0xff] %v7964_v32  ;;  %3475 = vmatpush.bf16.msrb.mxu2 %v7960_v61  ;;  %3427 = vmatpush.bf16.msra.mxu3 %v7969_v2  ;;  %v5938_v28 = vld [vmem:[#allocation2 + $0xb00] sm:$0xf]  ;;  %v6475_v62 = vld [vmem:[#allocation2 + $0xa04] sm:$0xf]  ;;  %v8001_v46 = vor.u32 %v6477_v35, %v5810_v9 }
 0x16c   : > { %9464 = vst [vmem:[#allocation333_spill] sm:$0xff] %v7969_v2  ;;  %v5812_v61 = vld [vmem:[#allocation2 + $0xa10] sm:$0xf0]  ;;  %v6509_v54 = vld [vmem:[#allocation2 + $0xb0c] sm:$0xf0]  ;;  %v2103_v2 = vpop.f32.mrf.mxu1  ;;  %v7995_v41 = vadd.f32 %v2115_v27, %v7702_v24 }
 0x16d   : > { %9465 = vst [vmem:[#allocation334_spill] sm:$0xff] %v7972_v42  ;;  %v6122_v18 = vld [vmem:[#allocation2 + $0xc68] sm:$0xf]  ;;  %v6554_v32 = vld [vmem:[#allocation2 + $0xc74] sm:$0xf0]  ;;  %3467 = vmatpush.bf16.msra.mxu0 %v7978_v43  ;;  %v7998_v26 = vor.u32 %v6475_v62, %v5812_v61  ;;  %v3012_v2 = vpack.c.b16 %v9474_v14, %v3009_v1  ;;  %v8008_v24 = vor.u32 %v6509_v54, %v5938_v28  ;;  %v8012_v61 = vrot.slane %v3011_v15, 1 }
 0x16e   : > { %9466 = vst [vmem:[#allocation335_spill] sm:$0xff] %v7978_v43  ;;  %v6519_v44 = vld [vmem:[#allocation2 + $0xb64] sm:$0xf]  ;;  %v6116_v56 = vld [vmem:[#allocation2 + $0xc70] sm:$0xf0]  ;;  %v8003_v49 = vor.u32 %v6554_v32, %v6122_v18  ;;  %3441 = vmatpush.bf16.msra.mxu1 %v7987_v4 }
 0x16f   : > { %9467 = vst [vmem:[#allocation336_spill] sm:$0xff] %v7983_v5  ;;  %3476 = vmatpush.bf16.msrb.mxu2 %v7975_v11  ;;  %v6551_v58 = vld [vmem:[#allocation2 + $0xc64] sm:$0xf]  ;;  %v5988_v50 = vld [vmem:[#allocation2 + $0xb70] sm:$0xf0]  ;;  %3428 = vmatpush.bf16.msra.mxu3 %v7983_v5  ;;  %v2090_v5 = vpop.f32.mrf.mxu3 }
 0x170   : > { %9468 = vst [vmem:[#allocation337_spill] sm:$0xff] %v7987_v4  ;;  %v5930_v23 = vld [vmem:[#allocation2 + $0xae8] sm:$0xf]  ;;  %v6506_v42 = vld [vmem:[#allocation2 + $0xaf4] sm:$0xf0]  ;;  %v8010_v22 = vor.u32 %v6551_v58, %v6116_v56  ;;  %v8015_v9 = vor.u32 %v6519_v44, %v5988_v50  ;;  %v8024_v58 = vrot.slane %v3012_v2, 1  ;;  %v8030_v56 = vpop.f32.mrf.mxu0 }
 0x171   : > { %9470 = vst [vmem:[#allocation338_spill] sm:$0xff] %v7992_v39  ;;  %v6106_v62 = vld [vmem:[#allocation2 + $0xc48] sm:$0xf]  ;;  %v6550_v27 = vld [vmem:[#allocation2 + $0xc54] sm:$0xf0]  ;;  %v8017_v32 = vor.u32 %v6506_v42, %v5930_v23  ;;  %3468 = vmatpush.bf16.msra.mxu0 %v7998_v26 }
 0x172   : > { %9471 = vst [vmem:[#allocation339_spill] sm:$0xff] %v7998_v26  ;;  %v6515_v35 = vld [vmem:[#allocation2 + $0xb44] sm:$0xf]  ;;  %v6100_v1 = vld [vmem:[#allocation2 + $0xc50] sm:$0xf0]  ;;  %v8022_v15 = vor.u32 %v6550_v27, %v6106_v62  ;;  %3442 = vmatpush.bf16.msra.mxu1 %v8008_v24 }
 0x173   : > { %9472 = vst [vmem:[#allocation340_spill] sm:$0xff] %v8001_v46  ;;  %3477 = vmatpush.bf16.msrb.mxu2 %v7992_v39  ;;  %v6547_v53 = vld [vmem:[#allocation2 + $0xc44] sm:$0xf]  ;;  %v5972_v28 = vld [vmem:[#allocation2 + $0xb50] sm:$0xf0]  ;;  %3429 = vmatpush.bf16.msra.mxu3 %v8001_v46 }
 0x174   : > { %9473 = vst [vmem:[#allocation341_spill] sm:$0xff] %v8003_v49  ;;  %v5914_v54 = vld [vmem:[#allocation2 + $0xac8] sm:$0xf]  ;;  %v6502_v18 = vld [vmem:[#allocation2 + $0xad4] sm:$0xf0]  ;;  %v8028_v42 = vor.u32 %v6547_v53, %v6100_v1  ;;  %v8034_v50 = vor.u32 %v6515_v35, %v5972_v28  ;;  %3469 = vmatmul.bf16.vlgmr.msra.gmra.mxu0 %v8012_v61 }
 0x175   : > { %9475 = vst [vmem:[#allocation342_spill] sm:$0xff] %v8008_v24  ;;  %3530 = vmatpush.bf16.msrb.mxu0 %v8003_v49  ;;  %v6090_v5 = vld [vmem:[#allocation2 + $0xc28] sm:$0xf]  ;;  %v6546_v44 = vld [vmem:[#allocation2 + $0xc34] sm:$0xf0]  ;;  %v8036_v23 = vor.u32 %v6502_v18, %v5914_v54  ;;  %3443 = vmatmul.bf16.vlgmr.msra.gmra.mxu1 %v8024_v58 }
 0x176   : > { %9476 = vst [vmem:[#allocation343_spill] sm:$0xff] %v8010_v22  ;;  %3500 = vmatpush.bf16.msrb.mxu1 %v8017_v32  ;;  %v6511_v14 = vld [vmem:[#allocation2 + $0xb24] sm:$0xf]  ;;  %v6084_v62 = vld [vmem:[#allocation2 + $0xc30] sm:$0xf0]  ;;  %3430 = vmatmul.bf16.vlgmr.msra.gmra.mxu3 %v8012_v61 }
 0x177   : > { %9477 = vst [vmem:[#allocation344_spill] sm:$0xff] %v8015_v9  ;;  %3491 = vmatpush.bf16.msrb.mxu3 %v8010_v22  ;;  %3478 = vmatpush.bf16.msrb.mxu2 %v8015_v9  ;;  %v6543_v2 = vld [vmem:[#allocation2 + $0xc24] sm:$0xf]  ;;  %v5956_v27 = vld [vmem:[#allocation2 + $0xb30] sm:$0xf0]  ;;  %v2140_v22 = vpop.f32.mrf.mxu2 }
 0x178   : > { %9478 = vst [vmem:[#allocation345_spill] sm:$0xff] %v8017_v32  ;;  %v5898_v53 = vld [vmem:[#allocation2 + $0xaa8] sm:$0xf]  ;;  %v6498_v1 = vld [vmem:[#allocation2 + $0xab4] sm:$0xf0]  ;;  %v8042_v32 = vor.u32 %v6546_v44, %v6090_v5  ;;  %v2141_v35 = vadd.f32 %v2140_v22, %v7953_v37  ;;  %v8046_v28 = vor.u32 %v6543_v2, %v6084_v62  ;;  %v2153_v22 = vpop.f32.mrf.mxu3 }
 0x179   : > { %9479 = vst [vmem:[#allocation346_spill] sm:$0xff] %v8022_v15  ;;  %3531 = vmatpush.bf16.msrb.mxu0 %v8022_v15  ;;  %v6507_v54 = vld [vmem:[#allocation2 + $0xb04] sm:$0xf]  ;;  %v5940_v18 = vld [vmem:[#allocation2 + $0xb10] sm:$0xf0]  ;;  %v8050_v15 = vor.u32 %v6511_v14, %v5956_v27  ;;  %v8052_v46 = vor.u32 %v6498_v1, %v5898_v53  ;;  %v2194_v53 = vpop.f32.mrf.mxu0 }
 0x17a   : > { %9480 = vst [vmem:[#allocation347_spill] sm:$0xff] %v8028_v42  ;;  %v6539_v9 = vld [vmem:[#allocation2 + $0xc04] sm:$0xf]  ;;  %v6074_v24 = vld [vmem:[#allocation2 + $0xc08] sm:$0xf]  ;;  %3501 = vmatpush.bf16.msrb.mxu1 %v8036_v23  ;;  %v2154_v26 = vadd.f32 %v2153_v22, %v2141_v35  ;;  %v8067_v35 = vor.u32 %v6507_v54, %v5940_v18 }
 0x17b   : > { %9481 = vst [vmem:[#allocation348_spill] sm:$0xff] %v8034_v50  ;;  %3492 = vmatpush.bf16.msrb.mxu3 %v8028_v42  ;;  %v6542_v49 = vld [vmem:[#allocation2 + $0xc14] sm:$0xf0]  ;;  %3479 = vmatpush.bf16.msrb.mxu2 %v8034_v50  ;;  %v6068_v5 = vld [vmem:[#allocation2 + $0xc10] sm:$0xf0] }
 0x17c   : > { %9482 = vst [vmem:[#allocation349_spill] sm:$0xff] %v8042_v32  ;;  %v6536_v44 = vld [vmem:[#allocation2 + $0xbec] sm:$0xf]  ;;  %v6060_v37 = vld [vmem:[#allocation2 + $0xbf8] sm:$0xf0]  ;;  %v8055_v39 = vor.u32 %v6542_v49, %v6074_v24  ;;  %v8058_v14 = vor.u32 %v6539_v9, %v6068_v5  ;;  %v8063_v1 = vadd.f32 %v2154_v26, %v7761_v31 }
 0x17d   : > { %9483 = vst [vmem:[#allocation350_spill] sm:$0xff] %v8050_v15  ;;  %v5882_v42 = vld [vmem:[#allocation2 + $0xa88] sm:$0xf]  ;;  %v6494_v2 = vld [vmem:[#allocation2 + $0xa94] sm:$0xf0]  ;;  %3532 = vmatpush.bf16.msrb.mxu0 %v8042_v32  ;;  %v8060_v27 = vor.u32 %v6536_v44, %v6060_v37 }
 0x17e   : > { %9484 = vst [vmem:[#allocation351_spill] sm:$0xff] %v8052_v46  ;;  %v6058_v62 = vld [vmem:[#allocation2 + $0xbe8] sm:$0xf]  ;;  %v6538_v4 = vld [vmem:[#allocation2 + $0xbf4] sm:$0xf0]  ;;  %3502 = vmatpush.bf16.msrb.mxu1 %v8052_v46  ;;  %v8069_v49 = vor.u32 %v6494_v2, %v5882_v42 }
 0x17f   : > { %9485 = vst [vmem:[#allocation352_spill] sm:$0xff] %v8055_v39  ;;  %v6504_v50 = vld [vmem:[#allocation2 + $0xaec] sm:$0xf]  ;;  %v5932_v43 = vld [vmem:[#allocation2 + $0xaf8] sm:$0xf0]  ;;  %3493 = vmatpush.bf16.msrb.mxu3 %v8046_v28  ;;  %3480 = vmatpush.bf16.msrb.mxu2 %v8050_v15  ;;  %v8071_v32 = vor.u32 %v6538_v4, %v6058_v62  ;;  %v2142_v15 = vpop.f32.mrf.mxu2  ;;  %v8084_v4 = vpop.f32.mrf.mxu1 }
 0x180   : > { %9486 = vst [vmem:[#allocation353_spill] sm:$0xff] %v8058_v14  ;;  %v6532_v24 = vld [vmem:[#allocation2 + $0xbcc] sm:$0xf]  ;;  %v6044_v22 = vld [vmem:[#allocation2 + $0xbd8] sm:$0xf0]  ;;  %v8073_v9 = vor.u32 %v6504_v50, %v5932_v43 }
 0x181   : > { %9487 = vst [vmem:[#allocation354_spill] sm:$0xff] %v8060_v27  ;;  %v5866_v5 = vld [vmem:[#allocation2 + $0xa68] sm:$0xf]  ;;  %v6490_v44 = vld [vmem:[#allocation2 + $0xa74] sm:$0xf0]  ;;  %3533 = vmatpush.bf16.msrb.mxu0 %v8055_v39  ;;  %v8078_v42 = vor.u32 %v6532_v24, %v6044_v22  ;;  %v2155_v22 = vpop.f32.mrf.mxu3 }
 0x182   : > { %9488 = vst [vmem:[#allocation355_spill] sm:$0xff] %v8067_v35  ;;  %v6042_v37 = vld [vmem:[#allocation2 + $0xbc8] sm:$0xf]  ;;  %v6534_v31 = vld [vmem:[#allocation2 + $0xbd4] sm:$0xf0]  ;;  %3503 = vmatpush.bf16.msrb.mxu1 %v8069_v49  ;;  %v8082_v43 = vor.u32 %v6490_v44, %v5866_v5 }
 0x183   : > { %9489 = vst [vmem:[#allocation356_spill] sm:$0xff] %v8069_v49  ;;  %v6500_v26 = vld [vmem:[#allocation2 + $0xacc] sm:$0xf]  ;;  %v5916_v53 = vld [vmem:[#allocation2 + $0xad8] sm:$0xf0]  ;;  %3494 = vmatpush.bf16.msrb.mxu3 %v8058_v14  ;;  %3481 = vmatpush.bf16.msrb.mxu2 %v8067_v35  ;;  %v8088_v15 = vor.u32 %v6534_v31, %v6042_v37 }
 0x184   : > { %9490 = vst [vmem:[#allocation357_spill] sm:$0xff] %v8071_v32  ;;  %v6528_v50 = vld [vmem:[#allocation2 + $0xbac] sm:$0xf]  ;;  %v6028_v54 = vld [vmem:[#allocation2 + $0xbb8] sm:$0xf0]  ;;  %v8090_v18 = vor.u32 %v6500_v26, %v5916_v53  ;;  %6130 = vmatmul.msk.bf16.vlgmr.msrb.gmra.mxu0 %vm826_vm0, %v7966_v55 }
 0x185   : > { %9491 = vst [vmem:[#allocation358_spill] sm:$0xff] %v8073_v9  ;;  %3552 = vmatpush.bf16.msra.mxu0 %v8060_v27  ;;  %v5850_v2 = vld [vmem:[#allocation2 + $0xa48] sm:$0xf]  ;;  %v6486_v62 = vld [vmem:[#allocation2 + $0xa54] sm:$0xf0]  ;;  %v8094_v44 = vor.u32 %v6528_v50, %v6028_v54 }
 0x186   : > { %9492 = vst [vmem:[#allocation359_spill] sm:$0xff] %v8078_v42  ;;  %v6026_v24 = vld [vmem:[#allocation2 + $0xba8] sm:$0xf]  ;;  %v6530_v35 = vld [vmem:[#allocation2 + $0xbb4] sm:$0xf0]  ;;  %3482 = vmatmul.bf16.vlgmr.msrb.gmra.mxu2 %v8024_v58  ;;  %3504 = vmatpush.bf16.msrb.mxu1 %v8082_v43 }
 0x187   : > { %9493 = vst [vmem:[#allocation360_spill] sm:$0xff] %v8082_v43  ;;  %3513 = vmatpush.bf16.msra.mxu3 %v8071_v32  ;;  %3539 = vmatpush.bf16.msra.mxu2 %v8073_v9  ;;  %v6496_v49 = vld [vmem:[#allocation2 + $0xaac] sm:$0xf]  ;;  %v5900_v5 = vld [vmem:[#allocation2 + $0xab8] sm:$0xf0]  ;;  %v8097_v9 = vor.u32 %v6486_v62, %v5850_v2  ;;  %v8101_v26 = vor.u32 %v6530_v35, %v6026_v24 }
 0x188   : > { %9494 = vst [vmem:[#allocation361_spill] sm:$0xff] %v8088_v15  ;;  %v6524_v37 = vld [vmem:[#allocation2 + $0xb8c] sm:$0xf]  ;;  %v6012_v31 = vld [vmem:[#allocation2 + $0xb98] sm:$0xf0]  ;;  %v8103_v53 = vor.u32 %v6496_v49, %v5900_v5  ;;  %6129 = vmatmul.msk.bf16.vlgmr.msrb.gmra.mxu3 %vm826_vm0, %v7966_v55  ;;  %v2168_v49 = vpop.f32.mrf.mxu1 }
 0x189   : > { %9495 = vst [vmem:[#allocation362_spill] sm:$0xff] %v8090_v18  ;;  %3553 = vmatpush.bf16.msra.mxu0 %v8078_v42  ;;  %v5834_v22 = vld [vmem:[#allocation2 + $0xa28] sm:$0xf]  ;;  %v6482_v32 = vld [vmem:[#allocation2 + $0xa34] sm:$0xf0]  ;;  %v8110_v62 = vor.u32 %v6524_v37, %v6012_v31 }
 0x18a   : > { %9496 = vst [vmem:[#allocation363_spill] sm:$0xff] %v8094_v44  ;;  %v6010_v27 = vld [vmem:[#allocation2 + $0xb88] sm:$0xf]  ;;  %v6526_v50 = vld [vmem:[#allocation2 + $0xb94] sm:$0xf0]  ;;  %3505 = vmatpush.bf16.msrb.mxu1 %v8097_v9  ;;  %v8113_v35 = vor.u32 %v6482_v32, %v5834_v22 }
 0x18b   : > { %9497 = vst [vmem:[#allocation364_spill] sm:$0xff] %v8097_v9  ;;  %3514 = vmatpush.bf16.msra.mxu3 %v8088_v15  ;;  %3540 = vmatpush.bf16.msra.mxu2 %v8090_v18  ;;  %v6492_v54 = vld [vmem:[#allocation2 + $0xa8c] sm:$0xf]  ;;  %v5884_v2 = vld [vmem:[#allocation2 + $0xa98] sm:$0xf0]  ;;  %v8117_v18 = vor.u32 %v6526_v50, %v6010_v27 }
 0x18c   : > { %9498 = vst [vmem:[#allocation365_spill] sm:$0xff] %v8101_v26  ;;  %v6520_v24 = vld [vmem:[#allocation2 + $0xb6c] sm:$0xf]  ;;  %v5996_v5 = vld [vmem:[#allocation2 + $0xb78] sm:$0xf0]  ;;  %v8119_v15 = vor.u32 %v6492_v54, %v5884_v2 }
 0x18d   : > { %9499 = vst [vmem:[#allocation366_spill] sm:$0xff] %v8103_v53  ;;  %3554 = vmatpush.bf16.msra.mxu0 %v8094_v44  ;;  %v5818_v43 = vld [vmem:[#allocation2 + $0xa08] sm:$0xf]  ;;  %v6478_v42 = vld [vmem:[#allocation2 + $0xa14] sm:$0xf0]  ;;  %v8122_v32 = vor.u32 %v6520_v24, %v5996_v5 }
 0x18e   : > { %9500 = vst [vmem:[#allocation367_spill] sm:$0xff] %v8110_v62  ;;  %v5994_v44 = vld [vmem:[#allocation2 + $0xb68] sm:$0xf]  ;;  %v6522_v37 = vld [vmem:[#allocation2 + $0xb74] sm:$0xf0]  ;;  %3506 = vmatpush.bf16.msrb.mxu1 %v8113_v35 }
 0x18f   : > { %9501 = vst [vmem:[#allocation368_spill] sm:$0xff] %v8113_v35  ;;  %3515 = vmatpush.bf16.msra.mxu3 %v8101_v26  ;;  %3541 = vmatpush.bf16.msra.mxu2 %v8103_v53  ;;  %v6488_v31 = vld [vmem:[#allocation2 + $0xa6c] sm:$0xf]  ;;  %v5868_v14 = vld [vmem:[#allocation2 + $0xa78] sm:$0xf0]  ;;  %v8125_v26 = vor.u32 %v6478_v42, %v5818_v43  ;;  %v8129_v54 = vor.u32 %v6522_v37, %v5994_v44  ;;  %v2218_v42 = vpop.f32.mrf.mxu0 }
 0x190   : > { %9502 = vst [vmem:[#allocation369_spill] sm:$0xff] %v8117_v18  ;;  %v6552_v22 = vld [vmem:[#allocation2 + $0xc6c] sm:$0xf]  ;;  %v6124_v49 = vld [vmem:[#allocation2 + $0xc78] sm:$0xf0]  ;;  %v8131_v2 = vor.u32 %v6488_v31, %v5868_v14  ;;  %v2231_v31 = vpop.f32.mrf.mxu1 }
 0x191   : > { %9503 = vst [vmem:[#allocation370_spill] sm:$0xff] %v8119_v15  ;;  %3555 = vmatpush.bf16.msra.mxu0 %v8110_v62  ;;  %v6516_v27 = vld [vmem:[#allocation2 + $0xb4c] sm:$0xf]  ;;  %v5980_v50 = vld [vmem:[#allocation2 + $0xb58] sm:$0xf0]  ;;  %v8133_v62 = vor.u32 %v6552_v22, %v6124_v49 }
 0x192   : > { %9504 = vst [vmem:[#allocation371_spill] sm:$0xff] %v8122_v32  ;;  %v5978_v53 = vld [vmem:[#allocation2 + $0xb48] sm:$0xf]  ;;  %v6518_v24 = vld [vmem:[#allocation2 + $0xb54] sm:$0xf0]  ;;  %v8136_v43 = vor.u32 %v6516_v27, %v5980_v50  ;;  %3507 = vmatpush.bf16.msrb.mxu1 %v8125_v26 }
 0x193   : > { %9505 = vst [vmem:[#allocation372_spill] sm:$0xff] %v8125_v26  ;;  %3516 = vmatpush.bf16.msra.mxu3 %v8117_v18  ;;  %3542 = vmatpush.bf16.msra.mxu2 %v8119_v15  ;;  %v6484_v5 = vld [vmem:[#allocation2 + $0xa4c] sm:$0xf]  ;;  %v5852_v9 = vld [vmem:[#allocation2 + $0xa58] sm:$0xf0]  ;;  %v8141_v14 = vor.u32 %v6518_v24, %v5978_v53  ;;  %v2179_v26 = vpop.f32.mrf.mxu3  ;;  %v2205_v18 = vpop.f32.mrf.mxu2 }
 0x194   : > { %9506 = vst [vmem:[#allocation373_spill] sm:$0xff] %v8129_v54  ;;  %v6548_v35 = vld [vmem:[#allocation2 + $0xc4c] sm:$0xf]  ;;  %v6108_v39 = vld [vmem:[#allocation2 + $0xc58] sm:$0xf0]  ;;  %v8143_v37 = vor.u32 %v6484_v5, %v5852_v9  ;;  %v2180_v24 = vadd.f32 %v2179_v26, %v8084_v4  ;;  %v2219_v5 = vadd.f32 %v2218_v42, %v2205_v18 }
 0x195   : > { %9507 = vst [vmem:[#allocation374_spill] sm:$0xff] %v8131_v2  ;;  %3556 = vmatpush.bf16.msra.mxu0 %v8122_v32  ;;  %v6512_v15 = vld [vmem:[#allocation2 + $0xb2c] sm:$0xf]  ;;  %v5964_v44 = vld [vmem:[#allocation2 + $0xb38] sm:$0xf0]  ;;  %v8146_v49 = vor.u32 %v6548_v35, %v6108_v39  ;;  %3508 = vmatmul.bf16.vlgmr.msrb.gmra.mxu1 %v8012_v61 }
 0x196   : > { %9508 = vst [vmem:[#allocation375_spill] sm:$0xff] %v8133_v62  ;;  %v5962_v22 = vld [vmem:[#allocation2 + $0xb28] sm:$0xf]  ;;  %3569 = vmatpush.bf16.msra.mxu1 %v8133_v62  ;;  %v6514_v27 = vld [vmem:[#allocation2 + $0xb34] sm:$0xf0]  ;;  %v2193_v46 = vadd.f32 %v8030_v56, %v2180_v24 }
 0x197   : > { %9509 = vst [vmem:[#allocation376_spill] sm:$0xff] %v8136_v43  ;;  %3517 = vmatpush.bf16.msra.mxu3 %v8129_v54  ;;  %3543 = vmatpush.bf16.msra.mxu2 %v8131_v2  ;;  %v6480_v50 = vld [vmem:[#allocation2 + $0xa2c] sm:$0xf]  ;;  %v5836_v32 = vld [vmem:[#allocation2 + $0xa38] sm:$0xf0]  ;;  %v8150_v2 = vor.u32 %v6512_v15, %v5964_v44  ;;  %v8155_v39 = vor.u32 %v6514_v27, %v5962_v22  ;;  %v2220_v27 = vpop.f32.mrf.mxu0 }
 0x198   : > { %9510 = vst [vmem:[#allocation377_spill] sm:$0xff] %v8143_v37  ;;  %v6544_v53 = vld [vmem:[#allocation2 + $0xc2c] sm:$0xf]  ;;  %v6092_v9 = vld [vmem:[#allocation2 + $0xc38] sm:$0xf0]  ;;  %v8157_v35 = vor.u32 %v6480_v50, %v5836_v32  ;;  %v2232_v15 = vadd.f32 %v2231_v31, %v2219_v5  ;;  %v8167_v32 = vadd.f32 %v2193_v46, %v7868_v30 }
 0x199   : > { %3557 = vmatpush.bf16.msra.mxu0 %v8136_v43  ;;  %v6508_v54 = vld [vmem:[#allocation2 + $0xb0c] sm:$0xf]  ;;  %v5948_v62 = vld [vmem:[#allocation2 + $0xb18] sm:$0xf0]  ;;  %v5946_v43 = vld [vmem:[#allocation2 + $0xb08] sm:$0xf]  ;;  %v8161_v44 = vor.u32 %v6544_v53, %v6092_v9  ;;  %v2233_v53 = vpop.f32.mrf.mxu1 }
 0x19a   : > { %3570 = vmatpush.bf16.msra.mxu1 %v8146_v49  ;;  %v6510_v4 = vld [vmem:[#allocation2 + $0xb14] sm:$0xf0]  ;;  %v6476_v18 = vld [vmem:[#allocation2 + $0xa0c] sm:$0xf]  ;;  %v5820_v26 = vld [vmem:[#allocation2 + $0xa18] sm:$0xf0]  ;;  %v8164_v42 = vor.u32 %v6508_v54, %v5948_v62  ;;  %v8170_v56 = vadd.f32 %v2232_v15, %v7876_v6 }
 0x19b   : > { %3518 = vmatpush.bf16.msra.mxu3 %v8141_v14  ;;  %3544 = vmatpush.bf16.msra.mxu2 %v8143_v37  ;;  %v6540_v37 = vld [vmem:[#allocation2 + $0xc0c] sm:$0xf]  ;;  %v6076_v22 = vld [vmem:[#allocation2 + $0xc18] sm:$0xf0]  ;;  %v8174_v31 = vor.u32 %v6510_v4, %v5946_v43  ;;  %v8176_v50 = vor.u32 %v6476_v18, %v5820_v26  ;;  %v2207_v30 = vpop.f32.mrf.mxu2  ;;  %v2181_v46 = vpop.f32.mrf.mxu3  ;;  %v9525_v43 = vld [vmem:[#allocation24_spill] sm:$0xff] }
 0x19c   : > { %v8179_v62 = vor.u32 %v6540_v37, %v6076_v22  ;;  %v9523_v6 = vld [vmem:[#allocation21_spill] sm:$0xff]  ;;  %v9526_v37 = vld [vmem:[#allocation22_spill] sm:$0xff]  ;;  %v9529_v4 = vld [vmem:[#allocation28_spill] sm:$0xff] }
 0x19d   : > { %3558 = vmatpush.bf16.msra.mxu0 %v8150_v2  ;;  %v9527_v9 = vld [vmem:[#allocation25_spill] sm:$0xff]  ;;  %v9528_v15 = vld [vmem:[#allocation26_spill] sm:$0xff]  ;;  %v9530_v22 = vld [vmem:[#allocation27_spill] sm:$0xff] }
 0x19e   : > { %3571 = vmatpush.bf16.msra.mxu1 %v8161_v44  ;;  %v9531_v27 = vld [vmem:[#allocation29_spill] sm:$0xff]  ;;  %v9532_v53 = vld [vmem:[#allocation30_spill] sm:$0xff] }
 0x19f   : > { %3519 = vmatpush.bf16.msra.mxu3 %v8155_v39  ;;  %3545 = vmatpush.bf16.msra.mxu2 %v8157_v35  ;;  %v9533_v46 = vld [vmem:[#allocation33_spill] sm:$0xff] }
 0x1a1   : > { %3559 = vmatpush.bf16.msra.mxu0 %v8164_v42 }
 0x1a2   : > { %3572 = vmatpush.bf16.msra.mxu1 %v8179_v62 }
 0x1a3   : > { %3520 = vmatpush.bf16.msra.mxu3 %v8174_v31  ;;  %3546 = vmatpush.bf16.msra.mxu2 %v8176_v50 }
 0x1a4   : > { %3560 = vmatmul.bf16.vlgmr.msra.gmra.mxu0 %v8024_v58 }
 0x1a5   : > { %3621 = vmatpush.bf16.msrb.mxu0 %v6728_v12  ;;  %6131 = vmatmul.msk.bf16.vlgmr.msra.gmra.mxu1 %vm826_vm0, %v7966_v55 }
 0x1a6   : > { %3595 = vmatpush.bf16.msrb.mxu1 %v6723_v7  ;;  %3521 = vmatmul.bf16.vlgmr.msra.gmra.mxu3 %v8024_v58  ;;  %v2811_v7 = vpop.f32.mrf.mxu0 }
 0x1a7   : > { %3582 = vmatpush.bf16.msrb.mxu3 %v6721_v3  ;;  %3612 = vmatpush.bf16.msrb.mxu2 %v6725_v8  ;;  %v2798_v3 = vpop.f32.mrf.mxu2  ;;  %v2785_v8 = vpop.f32.mrf.mxu1 }
 0x1a8   : > { %3547 = vmatmul.bf16.vlgmr.msra.gmra.mxu2 %v8012_v61 }
 0x1a9   : > { %3622 = vmatpush.bf16.msrb.mxu0 %v6739_v25 }
 0x1aa   : > { %3596 = vmatpush.bf16.msrb.mxu1 %v6734_v17 }
 0x1ab   : > { %3583 = vmatpush.bf16.msrb.mxu3 %v6732_v16  ;;  %3613 = vmatpush.bf16.msrb.mxu2 %v6737_v21  ;;  %v2772_v16 = vpop.f32.mrf.mxu3 }
 0x1ac   : > { %v2786_v17 = vadd.f32 %v2785_v8, %v2772_v16  ;;  %v9536_v8 = vld [vmem:[#allocation34_spill] sm:$0xff]  ;;  %v9537_v16 = vld [vmem:[#allocation35_spill] sm:$0xff] }
 0x1ad   : > { %3623 = vmatpush.bf16.msrb.mxu0 %v6751_v38  ;;  %v9512_v38 = vld [vmem:[#allocation8_spill] sm:$0xff] }
 0x1ae   : > { %3597 = vmatpush.bf16.msrb.mxu1 %v6746_v33  ;;  %v2813_v21 = vpop.f32.mrf.mxu0  ;;  %v2799_v25 = vadd.f32 %v2798_v3, %v2786_v17  ;;  %v9534_v3 = vld [vmem:[#allocation32_spill] sm:$0xff] }
 0x1af   : > { %3584 = vmatpush.bf16.msrb.mxu3 %v6742_v29  ;;  %3614 = vmatpush.bf16.msrb.mxu2 %v6748_v34  ;;  %v2800_v12 = vpop.f32.mrf.mxu2  ;;  %v2787_v29 = vpop.f32.mrf.mxu1  ;;  %v9511_v34 = vld [vmem:[#allocation11_spill] sm:$0xff]  ;;  %v9539_v21 = vld [vmem:[#allocation37_spill] sm:$0xff] }
 0x1b0   : > { %v8218_v33 = vadd.f32 %v2799_v25, %v7995_v41  ;;  %v9524_v41 = vld [vmem:[#allocation184_spill] sm:$0xff]  ;;  %v9540_v25 = vld [vmem:[#allocation38_spill] sm:$0xff]  ;;  %v9541_v29 = vld [vmem:[#allocation39_spill] sm:$0xff] }
 0x1b1   : > { %3624 = vmatpush.bf16.msrb.mxu0 %v6764_v51  ;;  %v9515_v51 = vld [vmem:[#allocation16_spill] sm:$0xff] }
 0x1b2   : > { %3598 = vmatpush.bf16.msrb.mxu1 %v6758_v47  ;;  %v9514_v47 = vld [vmem:[#allocation12_spill] sm:$0xff] }
 0x1b3   : > { %3585 = vmatpush.bf16.msrb.mxu3 %v6754_v45  ;;  %3615 = vmatpush.bf16.msrb.mxu2 %v6760_v48  ;;  %v9513_v45 = vld [vmem:[#allocation10_spill] sm:$0xff]  ;;  %v2774_v48 = vpop.f32.mrf.mxu3 }
 0x1b4   : > { %v9545_v48 = vld [vmem:[#allocation43_spill] sm:$0xff] }
 0x1b5   : > { %3625 = vmatpush.bf16.msrb.mxu0 %v6777_v63  ;;  %v9519_v63 = vld [vmem:[#allocation18_spill] sm:$0xff] }
 0x1b6   : > { %3599 = vmatpush.bf16.msrb.mxu1 %v6773_v60  ;;  %v9518_v60 = vld [vmem:[#allocation14_spill] sm:$0xff] }
 0x1b7   : > { %3634 = vmatpush.bf16.msra.mxu2 %v6766_v52  ;;  %3586 = vmatpush.bf16.msrb.mxu3 %v6769_v59  ;;  %v9516_v52 = vld [vmem:[#allocation13_spill] sm:$0xff]  ;;  %v9517_v59 = vld [vmem:[#allocation15_spill] sm:$0xff] }
 0x1b8   : > { %6132 = vmatmul.msk.bf16.vlgmr.msrb.gmra.mxu2 %vm826_vm0, %v7350_v57 }
 0x1b9   : > { %3626 = vmatpush.bf16.msrb.mxu0 %v6797_v19  ;;  %v9522_v19 = vld [vmem:[#allocation182_spill] sm:$0xff] }
 0x1ba   : > { %3600 = vmatpush.bf16.msrb.mxu1 %v6792_v13  ;;  %v9521_v13 = vld [vmem:[#allocation19_spill] sm:$0xff] }
 0x1bb   : > { %3635 = vmatpush.bf16.msra.mxu2 %v6779_v0  ;;  %3587 = vmatpush.bf16.msrb.mxu3 %v6789_v10  ;;  %v2876_v0 = vpop.f32.mrf.mxu0  ;;  %v9520_v10 = vld [vmem:[#allocation17_spill] sm:$0xff]  ;;  %v2837_v24 = vpop.f32.mrf.mxu3 }
 0x1bd   : > { %3627 = vmatpush.bf16.msrb.mxu0 %v9511_v34  ;;  %v9542_v34 = vld [vmem:[#allocation40_spill] sm:$0xff] }
 0x1be   : > { %3601 = vmatpush.bf16.msrb.mxu1 %v9513_v45  ;;  %v9544_v45 = vld [vmem:[#allocation42_spill] sm:$0xff] }
 0x1bf   : > { %3636 = vmatpush.bf16.msra.mxu2 %v6799_v20  ;;  %3588 = vmatpush.bf16.msrb.mxu3 %v9512_v38  ;;  %v2824_v20 = vpop.f32.mrf.mxu2  ;;  %v9543_v38 = vld [vmem:[#allocation41_spill] sm:$0xff] }
 0x1c0   : > { %v2825_v54 = vadd.f32 %v2824_v20, %v2811_v7  ;;  %v9535_v7 = vld [vmem:[#allocation31_spill] sm:$0xff]  ;;  %v9552_v20 = vld [vmem:[#allocation50_spill] sm:$0xff] }
 0x1c1   : > { %3628 = vmatpush.bf16.msrb.mxu0 %v9515_v51  ;;  %v9546_v51 = vld [vmem:[#allocation44_spill] sm:$0xff] }
 0x1c2   : > { %3602 = vmatpush.bf16.msrb.mxu1 %v9518_v60  ;;  %v2838_v5 = vadd.f32 %v2837_v24, %v2825_v54  ;;  %v2850_v12 = vpop.f32.mrf.mxu1  ;;  %v9549_v60 = vld [vmem:[#allocation47_spill] sm:$0xff]  ;;  %v9554_v54 = vld [vmem:[#allocation52_spill] sm:$0xff] }
 0x1c3   : > { %3637 = vmatpush.bf16.msra.mxu2 %v9514_v47  ;;  %3589 = vmatpush.bf16.msrb.mxu3 %v9516_v52  ;;  %v2878_v18 = vpop.f32.mrf.mxu0  ;;  %v2839_v17 = vpop.f32.mrf.mxu3  ;;  %v9547_v52 = vld [vmem:[#allocation45_spill] sm:$0xff] }
 0x1c4   : > { %3629 = vmatmul.bf16.vlgmr.msrb.gmra.mxu0 %v9522_v19  ;;  %v8241_v26 = vadd.f32 %v2838_v5, %v8063_v1  ;;  %v9538_v1 = vld [vmem:[#allocation36_spill] sm:$0xff]  ;;  %v9556_v5 = vld [vmem:[#allocation54_spill] sm:$0xff]  ;;  %v9557_v18 = vld [vmem:[#allocation55_spill] sm:$0xff] }
 0x1c5   : > { %3690 = vmatpush.bf16.msra.mxu0 %v9517_v59  ;;  %3603 = vmatmul.bf16.vlgmr.msrb.gmra.mxu1 %v9524_v41  ;;  %v9548_v59 = vld [vmem:[#allocation46_spill] sm:$0xff]  ;;  %v9563_v17 = vld [vmem:[#allocation61_spill] sm:$0xff] }
 0x1c6   : > { %3660 = vmatpush.bf16.msra.mxu1 %v9521_v13  ;;  %3590 = vmatmul.bf16.vlgmr.msrb.gmra.mxu3 %v9522_v19 }
 0x1c7   : > { %3651 = vmatpush.bf16.msra.mxu3 %v9519_v63  ;;  %3638 = vmatpush.bf16.msra.mxu2 %v9520_v10  ;;  %v2826_v30 = vpop.f32.mrf.mxu2  ;;  %v9550_v63 = vld [vmem:[#allocation48_spill] sm:$0xff]  ;;  %v9551_v10 = vld [vmem:[#allocation49_spill] sm:$0xff] }
 0x1c9   : > { %3691 = vmatpush.bf16.msra.mxu0 %v9523_v6  ;;  %v9553_v6 = vld [vmem:[#allocation51_spill] sm:$0xff] }
 0x1ca   : > { %3661 = vmatpush.bf16.msra.mxu1 %v9527_v9  ;;  %v2852_v47 = vpop.f32.mrf.mxu1 }
 0x1cb   : > { %3652 = vmatpush.bf16.msra.mxu3 %v9525_v43  ;;  %3639 = vmatpush.bf16.msra.mxu2 %v9526_v37  ;;  %v9555_v37 = vld [vmem:[#allocation53_spill] sm:$0xff] }
 0x1cc   : > { %v9571_v47 = vld [vmem:[#allocation69_spill] sm:$0xff] }
 0x1cd   : > { %3692 = vmatpush.bf16.msra.mxu0 %v9528_v15 }
 0x1ce   : > { %3662 = vmatpush.bf16.msra.mxu1 %v9531_v27 }
 0x1cf   : > { %3653 = vmatpush.bf16.msra.mxu3 %v9529_v4  ;;  %3640 = vmatpush.bf16.msra.mxu2 %v9530_v22  ;;  %v9558_v22 = vld [vmem:[#allocation56_spill] sm:$0xff] }
 0x1d1   : > { %3693 = vmatpush.bf16.msra.mxu0 %v9532_v53  ;;  %v2902_v13 = vpop.f32.mrf.mxu0  ;;  %v9559_v53 = vld [vmem:[#allocation57_spill] sm:$0xff] }
 0x1d2   : > { %3663 = vmatpush.bf16.msra.mxu1 %v9536_v8  ;;  %v2915_v43 = vpop.f32.mrf.mxu1 }
 0x1d3   : > { %3654 = vmatpush.bf16.msra.mxu3 %v9533_v46  ;;  %3641 = vmatpush.bf16.msra.mxu2 %v9535_v7  ;;  %v9560_v46 = vld [vmem:[#allocation58_spill] sm:$0xff] }
 0x1d4   : > { %6134 = vmatmul.msk.bf16.vlgmr.msra.gmra.mxu0 %vm826_vm0, %v7350_v57 }
 0x1d5   : > { %3712 = vmatpush.bf16.msrb.mxu0 %v9534_v3 }
 0x1d6   : > { %3642 = vmatmul.bf16.vlgmr.msra.gmra.mxu2 %v9524_v41  ;;  %3664 = vmatpush.bf16.msra.mxu1 %v9540_v25 }
 0x1d7   : > { %3673 = vmatpush.bf16.msrb.mxu3 %v9537_v16  ;;  %3699 = vmatpush.bf16.msrb.mxu2 %v9538_v1  ;;  %v9561_v16 = vld [vmem:[#allocation59_spill] sm:$0xff] }
 0x1d8   : > { %6133 = vmatmul.msk.bf16.vlgmr.msra.gmra.mxu3 %vm826_vm0, %v7350_v57 }
 0x1d9   : > { %3713 = vmatpush.bf16.msrb.mxu0 %v9539_v21  ;;  %v2863_v9 = vpop.f32.mrf.mxu3  ;;  %v2904_v3 = vpop.f32.mrf.mxu0 }
 0x1da   : > { %3665 = vmatpush.bf16.msra.mxu1 %v9544_v45  ;;  %v2864_v15 = vadd.f32 %v2863_v9, %v2850_v12  ;;  %v9562_v12 = vld [vmem:[#allocation60_spill] sm:$0xff]  ;;  %v2917_v1 = vpop.f32.mrf.mxu1  ;;  %v9584_v9 = vld [vmem:[#allocation82_spill] sm:$0xff] }
 0x1db   : > { %3674 = vmatpush.bf16.msrb.mxu3 %v9541_v29  ;;  %3700 = vmatpush.bf16.msrb.mxu2 %v9542_v34  ;;  %v2889_v24 = vpop.f32.mrf.mxu2  ;;  %v9565_v29 = vld [vmem:[#allocation63_spill] sm:$0xff]  ;;  %v9566_v34 = vld [vmem:[#allocation64_spill] sm:$0xff]  ;;  %v9593_v1 = vld [vmem:[#allocation90_spill] sm:$0xff] }
 0x1dc   : > { %v2903_v4 = vadd.f32 %v2902_v13, %v2889_v24  ;;  %v2877_v27 = vadd.f32 %v2876_v0, %v2864_v15  ;;  %v9564_v0 = vld [vmem:[#allocation62_spill] sm:$0xff]  ;;  %v9570_v45 = vld [vmem:[#allocation68_spill] sm:$0xff]  ;;  %v9585_v24 = vld [vmem:[#allocation83_spill] sm:$0xff] }
 0x1dd   : > { %3714 = vmatpush.bf16.msrb.mxu0 %v9543_v38  ;;  %v9568_v38 = vld [vmem:[#allocation66_spill] sm:$0xff]  ;;  %v9578_v13 = vld [vmem:[#allocation76_spill] sm:$0xff]  ;;  %v9587_v15 = vld [vmem:[#allocation85_spill] sm:$0xff] }
 0x1de   : > { %3666 = vmatpush.bf16.msra.mxu1 %v9548_v59  ;;  %v2916_v30 = vadd.f32 %v2915_v43, %v2903_v4  ;;  %v8281_v7 = vadd.f32 %v2877_v27, %v8167_v32  ;;  %v9567_v32 = vld [vmem:[#allocation65_spill] sm:$0xff]  ;;  %v9588_v4 = vld [vmem:[#allocation86_spill] sm:$0xff] }
 0x1df   : > { %3675 = vmatpush.bf16.msrb.mxu3 %v9545_v48  ;;  %3701 = vmatpush.bf16.msrb.mxu2 %v9546_v51  ;;  %v9572_v48 = vld [vmem:[#allocation70_spill] sm:$0xff]  ;;  %v9573_v51 = vld [vmem:[#allocation71_spill] sm:$0xff]  ;;  %v9575_v59 = vld [vmem:[#allocation73_spill] sm:$0xff] }
 0x1e0   : > { %v8284_v8 = vadd.f32 %v2916_v30, %v8170_v56  ;;  %v9569_v56 = vld [vmem:[#allocation67_spill] sm:$0xff]  ;;  %v9583_v43 = vld [vmem:[#allocation81_spill] sm:$0xff]  ;;  %v9591_v30 = vld [vmem:[#allocation88_spill] sm:$0xff] }
 0x1e1   : > { %3715 = vmatpush.bf16.msrb.mxu0 %v9547_v52  ;;  %v2865_v25 = vpop.f32.mrf.mxu3  ;;  %v9574_v52 = vld [vmem:[#allocation72_spill] sm:$0xff] }
 0x1e2   : > { %3667 = vmatpush.bf16.msra.mxu1 %v9552_v20  ;;  %v9579_v20 = vld [vmem:[#allocation77_spill] sm:$0xff] }
 0x1e3   : > { %3676 = vmatpush.bf16.msrb.mxu3 %v9549_v60  ;;  %3702 = vmatpush.bf16.msrb.mxu2 %v9550_v63  ;;  %v2891_v21 = vpop.f32.mrf.mxu2  ;;  %v9576_v60 = vld [vmem:[#allocation74_spill] sm:$0xff]  ;;  %v9596_v25 = vld [vmem:[#allocation93_spill] sm:$0xff] }
 0x1e4   : > { %v9595_v21 = vld [vmem:[#allocation92_spill] sm:$0xff] }
 0x1e5   : > { %3716 = vmatpush.bf16.msrb.mxu0 %v9551_v10  ;;  %3668 = vmatmul.bf16.vlgmr.msra.gmra.mxu1 %v9522_v19  ;;  %v9577_v10 = vld [vmem:[#allocation75_spill] sm:$0xff] }
 0x1e6   : > { %3729 = vmatpush.bf16.msrb.mxu1 %v9555_v37 }
 0x1e7   : > { %3677 = vmatpush.bf16.msrb.mxu3 %v9553_v6  ;;  %3703 = vmatpush.bf16.msrb.mxu2 %v9554_v54  ;;  %v9582_v54 = vld [vmem:[#allocation80_spill] sm:$0xff] }
 0x1e9   : > { %3717 = vmatpush.bf16.msrb.mxu0 %v9556_v5  ;;  %v9586_v5 = vld [vmem:[#allocation84_spill] sm:$0xff] }
 0x1ea   : > { %3730 = vmatpush.bf16.msrb.mxu1 %v9559_v53  ;;  %v9590_v53 = vld [vmem:[#allocation9_spill] sm:$0xff] }
 0x1eb   : > { %3678 = vmatpush.bf16.msrb.mxu3 %v9557_v18  ;;  %3704 = vmatpush.bf16.msrb.mxu2 %v9558_v22  ;;  %v3457_v63 = vpop.f32.mrf.mxu2  ;;  %v9589_v22 = vld [vmem:[#allocation87_spill] sm:$0xff] }
 0x1ed   : > { %3718 = vmatpush.bf16.msrb.mxu0 %v9560_v46 }
 0x1ee   : > { %3731 = vmatpush.bf16.msrb.mxu1 %v9563_v17  ;;  %v9594_v17 = vld [vmem:[#allocation91_spill] sm:$0xff] }
 0x1ef   : > { %3679 = vmatpush.bf16.msrb.mxu3 %v9561_v16  ;;  %3705 = vmatpush.bf16.msrb.mxu2 %v9562_v12  ;;  %v9592_v16 = vld [vmem:[#allocation89_spill] sm:$0xff] }
 0x1f1   : > { %3719 = vmatpush.bf16.msrb.mxu0 %v9564_v0  ;;  %v3470_v6 = vpop.f32.mrf.mxu0 }
 0x1f2   : > { %3732 = vmatpush.bf16.msrb.mxu1 %v9568_v38  ;;  %v3444_v37 = vpop.f32.mrf.mxu1  ;;  %v9599_v38 = vld [vmem:[#allocation96_spill] sm:$0xff] }
 0x1f3   : > { %3680 = vmatpush.bf16.msrb.mxu3 %v9566_v34  ;;  %3706 = vmatpush.bf16.msrb.mxu2 %v9567_v32  ;;  %v9598_v32 = vld [vmem:[#allocation95_spill] sm:$0xff] }
 0x1f4   : > { %3720 = vmatmul.bf16.vlgmr.msrb.gmra.mxu0 %v9524_v41 }
 0x1f5   : > { %3777 = vmatpush.bf16.msra.mxu0 %v9565_v29  ;;  %6135 = vmatmul.msk.bf16.vlgmr.msrb.gmra.mxu1 %vm826_vm0, %v7350_v57  ;;  %v3459_v57 = vpop.f32.mrf.mxu2  ;;  %v9597_v29 = vld [vmem:[#allocation94_spill] sm:$0xff] }
 0x1f6   : > { %3751 = vmatpush.bf16.msra.mxu1 %v9570_v45  ;;  %3681 = vmatmul.bf16.vlgmr.msrb.gmra.mxu3 %v9524_v41  ;;  %v9581_v41 = vld [vmem:[#allocation79_spill] sm:$0xff]  ;;  %v9601_v45 = vld [vmem:[#allocation98_spill] sm:$0xff]  ;;  %v9613_v57 = vld [vmem:[#allocation108_spill] sm:$0xff] }
 0x1f7   : > { %3738 = vmatpush.bf16.msra.mxu3 %v9569_v56  ;;  %3768 = vmatpush.bf16.msra.mxu2 %v9571_v47  ;;  %v9600_v56 = vld [vmem:[#allocation97_spill] sm:$0xff]  ;;  %v9602_v47 = vld [vmem:[#allocation99_spill] sm:$0xff] }
 0x1f8   : > { %3707 = vmatmul.bf16.vlgmr.msrb.gmra.mxu2 %v9522_v19  ;;  %v9580_v19 = vld [vmem:[#allocation78_spill] sm:$0xff] }
 0x1f9   : > { %3778 = vmatpush.bf16.msra.mxu0 %v9572_v48  ;;  %v3431_v18 = vpop.f32.mrf.mxu3  ;;  %v3472_v46 = vpop.f32.mrf.mxu0 }
 0x1fa   : > { %3752 = vmatpush.bf16.msra.mxu1 %v9574_v52  ;;  %v3445_v27 = vadd.f32 %v3444_v37, %v3431_v18  ;;  %v3446_v12 = vpop.f32.mrf.mxu1  ;;  %v9605_v52 = vld [vmem:[#allocation20_spill] sm:$0xff]  ;;  %v9612_v37 = vld [vmem:[#allocation107_spill] sm:$0xff] }
 0x1fb   : > { %3739 = vmatpush.bf16.msra.mxu3 %v9573_v51  ;;  %3769 = vmatpush.bf16.msra.mxu2 %v9575_v59  ;;  %v9604_v51 = vld [vmem:[#allocation101_spill] sm:$0xff]  ;;  %v9617_v18 = vld [vmem:[#allocation112_spill] sm:$0xff]  ;;  %v9620_v46 = vld [vmem:[#allocation115_spill] sm:$0xff] }
 0x1fc   : > { %v3458_v3 = vadd.f32 %v3457_v63, %v3445_v27  ;;  %v9607_v63 = vld [vmem:[#allocation23_spill] sm:$0xff]  ;;  %v9619_v27 = vld [vmem:[#allocation114_spill] sm:$0xff] }
 0x1fd   : > { %3779 = vmatpush.bf16.msra.mxu0 %v9576_v60  ;;  %v9606_v60 = vld [vmem:[#allocation102_spill] sm:$0xff] }
 0x1fe   : > { %3753 = vmatpush.bf16.msra.mxu1 %v9578_v13  ;;  %v8327_v0 = vadd.f32 %v3458_v3, %v8218_v33  ;;  %v9603_v33 = vld [vmem:[#allocation100_spill] sm:$0xff]  ;;  %v9608_v13 = vld [vmem:[#allocation103_spill] sm:$0xff]  ;;  %v9623_v12 = vld [vmem:[#allocation118_spill] sm:$0xff] }
 0x1ff   : > { %3740 = vmatpush.bf16.msra.mxu3 %v9577_v10  ;;  %3770 = vmatpush.bf16.msra.mxu2 %v9579_v20  ;;  %v9609_v20 = vld [vmem:[#allocation104_spill] sm:$0xff] }
 0x201   : > { %3780 = vmatpush.bf16.msra.mxu0 %v9580_v19  ;;  %v3433_v34 = vpop.f32.mrf.mxu3  ;;  %v3535_v48 = vpop.f32.mrf.mxu0  ;;  %v9610_v19 = vld [vmem:[#allocation105_spill] sm:$0xff] }
 0x202   : > { %3754 = vmatpush.bf16.msra.mxu1 %v9582_v54  ;;  %v9628_v34 = vld [vmem:[#allocation123_spill] sm:$0xff] }
 0x203   : > { %3741 = vmatpush.bf16.msra.mxu3 %v9581_v41  ;;  %3771 = vmatpush.bf16.msra.mxu2 %v9583_v43  ;;  %v9611_v43 = vld [vmem:[#allocation106_spill] sm:$0xff] }
 0x205   : > { %3781 = vmatpush.bf16.msra.mxu0 %v9585_v24 }
 0x206   : > { %3755 = vmatpush.bf16.msra.mxu1 %v9587_v15 }
 0x207   : > { %3790 = vmatpush.bf16.msrb.mxu2 %v9584_v9  ;;  %3742 = vmatpush.bf16.msra.mxu3 %v9586_v5  ;;  %v9614_v5 = vld [vmem:[#allocation109_spill] sm:$0xff] }
 0x208   : > { %6136 = vmatmul.msk.bf16.vlgmr.msra.gmra.mxu2 %vm826_vm0, %v9590_v53 }
 0x209   : > { %3782 = vmatpush.bf16.msra.mxu0 %v9589_v22  ;;  %v3483_v59 = vpop.f32.mrf.mxu2  ;;  %v3537_v9 = vpop.f32.mrf.mxu0  ;;  %v9618_v22 = vld [vmem:[#allocation113_spill] sm:$0xff] }
 0x20a   : > { %3756 = vmatpush.bf16.msra.mxu1 %v9592_v16  ;;  %v3484_v10 = vadd.f32 %v3483_v59, %v3470_v6  ;;  %v9615_v6 = vld [vmem:[#allocation110_spill] sm:$0xff]  ;;  %v9622_v16 = vld [vmem:[#allocation117_spill] sm:$0xff]  ;;  %v9640_v9 = vld [vmem:[#allocation135_spill] sm:$0xff] }
 0x20b   : > { %3791 = vmatpush.bf16.msrb.mxu2 %v9588_v4  ;;  %3743 = vmatpush.bf16.msra.mxu3 %v9591_v30  ;;  %v3496_v41 = vpop.f32.mrf.mxu3  ;;  %v9616_v4 = vld [vmem:[#allocation111_spill] sm:$0xff]  ;;  %v9635_v59 = vld [vmem:[#allocation130_spill] sm:$0xff] }
 0x20c   : > { %v3497_v54 = vadd.f32 %v3496_v41, %v3484_v10  ;;  %v9637_v10 = vld [vmem:[#allocation132_spill] sm:$0xff] }
 0x20d   : > { %3783 = vmatpush.bf16.msra.mxu0 %v9594_v17  ;;  %v9625_v17 = vld [vmem:[#allocation120_spill] sm:$0xff] }
 0x20e   : > { %3757 = vmatpush.bf16.msra.mxu1 %v9596_v25  ;;  %v8349_v24 = vadd.f32 %v3497_v54, %v8241_v26  ;;  %v9621_v26 = vld [vmem:[#allocation116_spill] sm:$0xff]  ;;  %v9627_v25 = vld [vmem:[#allocation122_spill] sm:$0xff] }
 0x20f   : > { %3792 = vmatpush.bf16.msrb.mxu2 %v9593_v1  ;;  %3744 = vmatpush.bf16.msra.mxu3 %v9595_v21  ;;  %v9624_v1 = vld [vmem:[#allocation119_spill] sm:$0xff]  ;;  %v9626_v21 = vld [vmem:[#allocation121_spill] sm:$0xff]  ;;  %v9639_v54 = vld [vmem:[#allocation134_spill] sm:$0xff] }
 0x211   : > { %3784 = vmatpush.bf16.msra.mxu0 %v9598_v32  ;;  %v3485_v15 = vpop.f32.mrf.mxu2  ;;  %v9629_v32 = vld [vmem:[#allocation124_spill] sm:$0xff] }
 0x212   : > { %3758 = vmatpush.bf16.msra.mxu1 %v9601_v45  ;;  %v3509_v30 = vpop.f32.mrf.mxu1  ;;  %v9632_v45 = vld [vmem:[#allocation127_spill] sm:$0xff] }
 0x213   : > { %3793 = vmatpush.bf16.msrb.mxu2 %v9597_v29  ;;  %3745 = vmatpush.bf16.msra.mxu3 %v9600_v56  ;;  %v3498_v3 = vpop.f32.mrf.mxu3  ;;  %v9631_v56 = vld [vmem:[#allocation126_spill] sm:$0xff] }
 0x214   : > { %3785 = vmatmul.bf16.vlgmr.msra.gmra.mxu0 %v9605_v52  ;;  %v9646_v3 = vld [vmem:[#allocation141_spill] sm:$0xff] }
 0x215   : > { %3846 = vmatpush.bf16.msrb.mxu0 %v9599_v38  ;;  %3759 = vmatmul.bf16.vlgmr.msra.gmra.mxu1 %v9607_v63  ;;  %v9630_v38 = vld [vmem:[#allocation125_spill] sm:$0xff] }
 0x216   : > { %3816 = vmatpush.bf16.msrb.mxu1 %v9604_v51  ;;  %3746 = vmatmul.bf16.vlgmr.msra.gmra.mxu3 %v9605_v52 }
 0x217   : > { %3807 = vmatpush.bf16.msrb.mxu3 %v9602_v47  ;;  %3794 = vmatpush.bf16.msrb.mxu2 %v9603_v33  ;;  %v9633_v47 = vld [vmem:[#allocation128_spill] sm:$0xff]  ;;  %v9634_v33 = vld [vmem:[#allocation129_spill] sm:$0xff] }
 0x219   : > { %3847 = vmatpush.bf16.msrb.mxu0 %v9606_v60  ;;  %v9636_v60 = vld [vmem:[#allocation131_spill] sm:$0xff] }
 0x21a   : > { %3817 = vmatpush.bf16.msrb.mxu1 %v9610_v19  ;;  %v3511_v29 = vpop.f32.mrf.mxu1 }
 0x21b   : > { %3808 = vmatpush.bf16.msrb.mxu3 %v9608_v13  ;;  %3795 = vmatpush.bf16.msrb.mxu2 %v9609_v20  ;;  %v9638_v20 = vld [vmem:[#allocation133_spill] sm:$0xff] }
 0x21c   : > { %v9654_v29 = vld [vmem:[#allocation149_spill] sm:$0xff] }
 0x21d   : > { %3848 = vmatpush.bf16.msrb.mxu0 %v9611_v43 }
 0x21e   : > { %3818 = vmatpush.bf16.msrb.mxu1 %v9614_v5 }
 0x21f   : > { %3809 = vmatpush.bf16.msrb.mxu3 %v9612_v37  ;;  %3796 = vmatpush.bf16.msrb.mxu2 %v9613_v57  ;;  %v9641_v57 = vld [vmem:[#allocation136_spill] sm:$0xff] }
 0x221   : > { %3849 = vmatpush.bf16.msrb.mxu0 %v9615_v6  ;;  %v3561_v51 = vpop.f32.mrf.mxu0  ;;  %v9642_v6 = vld [vmem:[#allocation137_spill] sm:$0xff] }
 0x222   : > { %3819 = vmatpush.bf16.msrb.mxu1 %v9619_v27  ;;  %v3574_v13 = vpop.f32.mrf.mxu1 }
 0x223   : > { %3810 = vmatpush.bf16.msrb.mxu3 %v9616_v4  ;;  %3797 = vmatpush.bf16.msrb.mxu2 %v9618_v22  ;;  %v9643_v4 = vld [vmem:[#allocation138_spill] sm:$0xff] }
 0x224   : > { %6138 = vmatmul.msk.bf16.vlgmr.msrb.gmra.mxu0 %vm826_vm0, %v9590_v53 }
 0x225   : > { %3868 = vmatpush.bf16.msra.mxu0 %v9617_v18 }
 0x226   : > { %3798 = vmatmul.bf16.vlgmr.msrb.gmra.mxu2 %v9607_v63  ;;  %3820 = vmatpush.bf16.msrb.mxu1 %v9623_v12 }
 0x227   : > { %3829 = vmatpush.bf16.msra.mxu3 %v9620_v46  ;;  %3855 = vmatpush.bf16.msra.mxu2 %v9621_v26  ;;  %v9644_v46 = vld [vmem:[#allocation139_spill] sm:$0xff] }
 0x228   : > { %6137 = vmatmul.msk.bf16.vlgmr.msrb.gmra.mxu3 %vm826_vm0, %v9590_v53 }
 0x229   : > { %3869 = vmatpush.bf16.msra.mxu0 %v9622_v16  ;;  %v3522_v19 = vpop.f32.mrf.mxu3  ;;  %v3563_v18 = vpop.f32.mrf.mxu0 }
 0x22a   : > { %3821 = vmatpush.bf16.msrb.mxu1 %v9627_v25  ;;  %v3523_v43 = vadd.f32 %v3522_v19, %v3509_v30  ;;  %v9645_v30 = vld [vmem:[#allocation140_spill] sm:$0xff]  ;;  %v3576_v26 = vpop.f32.mrf.mxu1 }
 0x22b   : > { %3830 = vmatpush.bf16.msra.mxu3 %v9624_v1  ;;  %3856 = vmatpush.bf16.msra.mxu2 %v9625_v17  ;;  %v3548_v41 = vpop.f32.mrf.mxu2  ;;  %v9648_v1 = vld [vmem:[#allocation143_spill] sm:$0xff]  ;;  %v9649_v17 = vld [vmem:[#allocation144_spill] sm:$0xff] }
 0x22c   : > { %v3562_v37 = vadd.f32 %v3561_v51, %v3548_v41  ;;  %v3536_v5 = vadd.f32 %v3535_v48, %v3523_v43  ;;  %v9647_v48 = vld [vmem:[#allocation142_spill] sm:$0xff]  ;;  %v9653_v25 = vld [vmem:[#allocation148_spill] sm:$0xff]  ;;  %v9668_v41 = vld [vmem:[#allocation163_spill] sm:$0xff] }
 0x22d   : > { %3870 = vmatpush.bf16.msra.mxu0 %v9626_v21  ;;  %v9651_v21 = vld [vmem:[#allocation146_spill] sm:$0xff]  ;;  %v9661_v51 = vld [vmem:[#allocation156_spill] sm:$0xff]  ;;  %v9670_v43 = vld [vmem:[#allocation165_spill] sm:$0xff] }
 0x22e   : > { %3822 = vmatpush.bf16.msrb.mxu1 %v9631_v56  ;;  %v3575_v15 = vadd.f32 %v3574_v13, %v3562_v37  ;;  %v8389_v22 = vadd.f32 %v3536_v5, %v8281_v7  ;;  %v9650_v7 = vld [vmem:[#allocation145_spill] sm:$0xff]  ;;  %v9671_v37 = vld [vmem:[#allocation166_spill] sm:$0xff]  ;;  %v9676_v26 = vld [vmem:[#allocation171_spill] sm:$0xff] }
 0x22f   : > { %3831 = vmatpush.bf16.msra.mxu3 %v9628_v34  ;;  %3857 = vmatpush.bf16.msra.mxu2 %v9629_v32  ;;  %v9655_v34 = vld [vmem:[#allocation150_spill] sm:$0xff]  ;;  %v9656_v32 = vld [vmem:[#allocation151_spill] sm:$0xff]  ;;  %v9658_v56 = vld [vmem:[#allocation153_spill] sm:$0xff] }
 0x230   : > { %v8392_v27 = vadd.f32 %v3575_v15, %v8284_v8  ;;  %v9652_v8 = vld [vmem:[#allocation147_spill] sm:$0xff]  ;;  %v9666_v13 = vld [vmem:[#allocation161_spill] sm:$0xff] }
 0x231   : > { %3871 = vmatpush.bf16.msra.mxu0 %v9630_v38  ;;  %v3524_v12 = vpop.f32.mrf.mxu3  ;;  %v9657_v38 = vld [vmem:[#allocation152_spill] sm:$0xff] }
 0x232   : > { %3823 = vmatpush.bf16.msrb.mxu1 %v9635_v59  ;;  %v9663_v59 = vld [vmem:[#allocation158_spill] sm:$0xff] }
 0x233   : > { %3832 = vmatpush.bf16.msra.mxu3 %v9632_v45  ;;  %3858 = vmatpush.bf16.msra.mxu2 %v9633_v47  ;;  %v3550_v16 = vpop.f32.mrf.mxu2  ;;  %v9659_v47 = vld [vmem:[#allocation154_spill] sm:$0xff] }
 0x234   : > { %v9679_v16 = vld [vmem:[#allocation174_spill] sm:$0xff] }
 0x235   : > { %3872 = vmatpush.bf16.msra.mxu0 %v9634_v33  ;;  %3824 = vmatmul.bf16.vlgmr.msrb.gmra.mxu1 %v9605_v52  ;;  %v9660_v33 = vld [vmem:[#allocation155_spill] sm:$0xff] }
 0x236   : > { %3885 = vmatpush.bf16.msra.mxu1 %v9638_v20 }
 0x237   : > { %3833 = vmatpush.bf16.msra.mxu3 %v9636_v60  ;;  %3859 = vmatpush.bf16.msra.mxu2 %v9637_v10  ;;  %v9664_v60 = vld [vmem:[#allocation159_spill] sm:$0xff]  ;;  %v9665_v10 = vld [vmem:[#allocation160_spill] sm:$0xff] }
 0x239   : > { %3873 = vmatpush.bf16.msra.mxu0 %v9639_v54  ;;  %v9669_v54 = vld [vmem:[#allocation164_spill] sm:$0xff] }
 0x23a   : > { %3886 = vmatpush.bf16.msra.mxu1 %v9642_v6  ;;  %v9673_v6 = vld [vmem:[#allocation168_spill] sm:$0xff] }
 0x23b   : > { %3834 = vmatpush.bf16.msra.mxu3 %v9640_v9  ;;  %3860 = vmatpush.bf16.msra.mxu2 %v9641_v57  ;;  %v3617_v45 = vpop.f32.mrf.mxu2  ;;  %v9672_v57 = vld [vmem:[#allocation167_spill] sm:$0xff] }
 0x23d   : > { %3874 = vmatpush.bf16.msra.mxu0 %v9643_v4  ;;  %v9674_v4 = vld [vmem:[#allocation169_spill] sm:$0xff] }
 0x23e   : > { %3887 = vmatpush.bf16.msra.mxu1 %v9646_v3  ;;  %v9677_v3 = vld [vmem:[#allocation172_spill] sm:$0xff] }
 0x23f   : > { %3835 = vmatpush.bf16.msra.mxu3 %v9644_v46  ;;  %3861 = vmatpush.bf16.msra.mxu2 %v9645_v30  ;;  %v9675_v30 = vld [vmem:[#allocation170_spill] sm:$0xff] }
 0x241   : > { %3875 = vmatpush.bf16.msra.mxu0 %v9647_v48  ;;  %v9678_v48 = vld [vmem:[#allocation173_spill] sm:$0xff] }
 0x242   : > { %3888 = vmatpush.bf16.msra.mxu1 %v9651_v21  ;;  %v3604_v20 = vpop.f32.mrf.mxu1  ;;  %v9683_v21 = vld [vmem:[#allocation178_spill] sm:$0xff] }
 0x243   : > { %3836 = vmatpush.bf16.msra.mxu3 %v9649_v17  ;;  %3862 = vmatpush.bf16.msra.mxu2 %v9650_v7  ;;  %v3619_v19 = vpop.f32.mrf.mxu2  ;;  %v9681_v17 = vld [vmem:[#allocation176_spill] sm:$0xff]  ;;  %v9682_v7 = vld [vmem:[#allocation177_spill] sm:$0xff] }
 0x244   : > { %3876 = vmatmul.bf16.vlgmr.msra.gmra.mxu0 %v9607_v63  ;;  %v9696_v19 = vld [vmem:[#allocation192_spill] sm:$0xff] }
 0x245   : > { %3933 = vmatpush.bf16.msrb.mxu0 %v9648_v1  ;;  %6139 = vmatmul.msk.bf16.vlgmr.msra.gmra.mxu1 %vm826_vm0, %v9590_v53  ;;  %v9667_v53 = vld [vmem:[#allocation162_spill] sm:$0xff]  ;;  %v9680_v1 = vld [vmem:[#allocation175_spill] sm:$0xff] }
 0x246   : > { %3907 = vmatpush.bf16.msrb.mxu1 %v9653_v25  ;;  %3837 = vmatmul.bf16.vlgmr.msra.gmra.mxu3 %v9607_v63  ;;  %v3630_v63 = vpop.f32.mrf.mxu0 }
 0x247   : > { %3894 = vmatpush.bf16.msrb.mxu3 %v9652_v8  ;;  %3924 = vmatpush.bf16.msrb.mxu2 %v9654_v29  ;;  %v9684_v8 = vld [vmem:[#allocation179_spill] sm:$0xff]  ;;  %v9685_v29 = vld [vmem:[#allocation180_spill] sm:$0xff] }
 0x248   : > { %3863 = vmatmul.bf16.vlgmr.msra.gmra.mxu2 %v9605_v52  ;;  %v9662_v52 = vld [vmem:[#allocation157_spill] sm:$0xff] }
 0x249   : > { %3934 = vmatpush.bf16.msrb.mxu0 %v9655_v34  ;;  %v3591_v9 = vpop.f32.mrf.mxu3  ;;  %v9686_v34 = vld [vmem:[#allocation181_spill] sm:$0xff] }
 0x24a   : > { %3908 = vmatpush.bf16.msrb.mxu1 %v9657_v38  ;;  %v3605_v5 = vadd.f32 %v3604_v20, %v3591_v9  ;;  %v3606_v18 = vpop.f32.mrf.mxu1  ;;  %v9687_v38 = vld [vmem:[#allocation183_spill] sm:$0xff]  ;;  %v9694_v20 = vld [vmem:[#allocation190_spill] sm:$0xff] }
 0x24b   : > { %3895 = vmatpush.bf16.msrb.mxu3 %v9656_v32  ;;  %3925 = vmatpush.bf16.msrb.mxu2 %v9658_v56  ;;  %v9688_v56 = vld [vmem:[#allocation267_spill] sm:$0xff]  ;;  %v9705_v18 = vld [vmem:[#allocation201_spill] sm:$0xff] }
 0x24c   : > { %v8432_v46 = vadd.f32 %v3617_v45, %v3605_v5  ;;  %v9702_v5 = vld [vmem:[#allocation198_spill] sm:$0xff] }
 0x24d   : > { %3935 = vmatpush.bf16.msrb.mxu0 %v9659_v47  ;;  %v9689_v47 = vld [vmem:[#allocation185_spill] sm:$0xff] }
 0x24e   : > { %3909 = vmatpush.bf16.msrb.mxu1 %v9661_v51  ;;  %v3632_v15 = vpop.f32.mrf.mxu0  ;;  %v9691_v51 = vld [vmem:[#allocation187_spill] sm:$0xff] }
 0x24f   : > { %3896 = vmatpush.bf16.msrb.mxu3 %v9660_v33  ;;  %3926 = vmatpush.bf16.msrb.mxu2 %v9662_v52  ;;  %v9690_v33 = vld [vmem:[#allocation186_spill] sm:$0xff]  ;;  %v9703_v15 = vld [vmem:[#allocation199_spill] sm:$0xff] }
 0x251   : > { %3936 = vmatpush.bf16.msrb.mxu0 %v9663_v59  ;;  %v3593_v12 = vpop.f32.mrf.mxu3 }
 0x252   : > { %3910 = vmatpush.bf16.msrb.mxu1 %v9665_v10  ;;  %v9693_v10 = vld [vmem:[#allocation189_spill] sm:$0xff]  ;;  %v9710_v12 = vld [vmem:[#allocation206_spill] sm:$0xff] }
 0x253   : > { %3897 = vmatpush.bf16.msrb.mxu3 %v9664_v60  ;;  %3927 = vmatpush.bf16.msrb.mxu2 %v9666_v13  ;;  %v9692_v60 = vld [vmem:[#allocation188_spill] sm:$0xff] }
 0x255   : > { %3937 = vmatpush.bf16.msrb.mxu0 %v9668_v41  ;;  %v9697_v41 = vld [vmem:[#allocation193_spill] sm:$0xff] }
 0x256   : > { %3911 = vmatpush.bf16.msrb.mxu1 %v9670_v43  ;;  %v3695_v25 = vpop.f32.mrf.mxu0  ;;  %v9699_v43 = vld [vmem:[#allocation195_spill] sm:$0xff] }
 0x257   : > { %3946 = vmatpush.bf16.msra.mxu2 %v9667_v53  ;;  %3898 = vmatpush.bf16.msrb.mxu3 %v9669_v54  ;;  %v9695_v53 = vld [vmem:[#allocation191_spill] sm:$0xff]  ;;  %v9698_v54 = vld [vmem:[#allocation194_spill] sm:$0xff] }
 0x258   : > { %6140 = vmatmul.msk.bf16.vlgmr.msrb.gmra.mxu2 %vm826_vm0, %v7665_v40 }
 0x259   : > { %3938 = vmatpush.bf16.msrb.mxu0 %v9672_v57  ;;  %v3643_v32 = vpop.f32.mrf.mxu2  ;;  %v9701_v57 = vld [vmem:[#allocation197_spill] sm:$0xff] }
 0x25a   : > { %3912 = vmatpush.bf16.msrb.mxu1 %v9674_v4  ;;  %v3644_v45 = vadd.f32 %v3643_v32, %v3630_v63  ;;  %v9704_v4 = vld [vmem:[#allocation200_spill] sm:$0xff]  ;;  %v9717_v32 = vld [vmem:[#allocation213_spill] sm:$0xff] }
 0x25b   : > { %3947 = vmatpush.bf16.msra.mxu2 %v9671_v37  ;;  %3899 = vmatpush.bf16.msrb.mxu3 %v9673_v6  ;;  %v3656_v52 = vpop.f32.mrf.mxu3  ;;  %v9700_v37 = vld [vmem:[#allocation196_spill] sm:$0xff] }
 0x25c   : > { %v8453_v59 = vadd.f32 %v3656_v52, %v3644_v45 }
 0x25d   : > { %3939 = vmatpush.bf16.msrb.mxu0 %v9676_v26  ;;  %v9707_v26 = vld [vmem:[#allocation203_spill] sm:$0xff] }
 0x25e   : > { %3913 = vmatpush.bf16.msrb.mxu1 %v9678_v48  ;;  %v3697_v13 = vpop.f32.mrf.mxu0 }
 0x25f   : > { %3948 = vmatpush.bf16.msra.mxu2 %v9675_v30  ;;  %3900 = vmatpush.bf16.msrb.mxu3 %v9677_v3  ;;  %v9706_v30 = vld [vmem:[#allocation202_spill] sm:$0xff]  ;;  %v9708_v3 = vld [vmem:[#allocation204_spill] sm:$0xff] }
 0x260   : > { %v9722_v13 = vld [vmem:[#allocation218_spill] sm:$0xff] }
 0x261   : > { %3940 = vmatpush.bf16.msrb.mxu0 %v9680_v1  ;;  %v3645_v63 = vpop.f32.mrf.mxu2  ;;  %v9711_v1 = vld [vmem:[#allocation207_spill] sm:$0xff] }
 0x262   : > { %3914 = vmatpush.bf16.msrb.mxu1 %v9683_v21  ;;  %v3669_v9 = vpop.f32.mrf.mxu1  ;;  %v9714_v21 = vld [vmem:[#allocation210_spill] sm:$0xff] }
 0x263   : > { %3949 = vmatpush.bf16.msra.mxu2 %v9679_v16  ;;  %3901 = vmatpush.bf16.msrb.mxu3 %v9681_v17  ;;  %v3658_v6 = vpop.f32.mrf.mxu3  ;;  %v9709_v16 = vld [vmem:[#allocation205_spill] sm:$0xff]  ;;  %v9712_v17 = vld [vmem:[#allocation208_spill] sm:$0xff] }
 0x264   : > { %3941 = vmatmul.bf16.vlgmr.msrb.gmra.mxu0 %v7725_v36 }
 0x265   : > { %4002 = vmatpush.bf16.msra.mxu0 %v9682_v7  ;;  %3915 = vmatmul.bf16.vlgmr.msrb.gmra.mxu1 %v9688_v56  ;;  %v9713_v7 = vld [vmem:[#allocation209_spill] sm:$0xff] }
 0x266   : > { %3972 = vmatpush.bf16.msra.mxu1 %v9686_v34  ;;  %3902 = vmatmul.bf16.vlgmr.msrb.gmra.mxu3 %v7725_v36  ;;  %v9716_v34 = vld [vmem:[#allocation212_spill] sm:$0xff] }
 0x267   : > { %3963 = vmatpush.bf16.msra.mxu3 %v9684_v8  ;;  %3950 = vmatpush.bf16.msra.mxu2 %v9685_v29  ;;  %v9715_v29 = vld [vmem:[#allocation211_spill] sm:$0xff] }
 0x269   : > { %4003 = vmatpush.bf16.msra.mxu0 %v9687_v38  ;;  %v9718_v38 = vld [vmem:[#allocation214_spill] sm:$0xff] }
 0x26a   : > { %3973 = vmatpush.bf16.msra.mxu1 %v9691_v51  ;;  %v3671_v48 = vpop.f32.mrf.mxu1  ;;  %v9720_v51 = vld [vmem:[#allocation216_spill] sm:$0xff] }
 0x26b   : > { %3964 = vmatpush.bf16.msra.mxu3 %v9689_v47  ;;  %3951 = vmatpush.bf16.msra.mxu2 %v9690_v33  ;;  %v9719_v47 = vld [vmem:[#allocation215_spill] sm:$0xff]  ;;  %v9735_v48 = vld [vmem:[#allocation232_spill] sm:$0xff] }
 0x26d   : > { %4004 = vmatpush.bf16.msra.mxu0 %v9692_v60 }
 0x26e   : > { %3974 = vmatpush.bf16.msra.mxu1 %v9695_v53  ;;  %v9723_v53 = vld [vmem:[#allocation219_spill] sm:$0xff] }
 0x26f   : > { %3965 = vmatpush.bf16.msra.mxu3 %v9693_v10  ;;  %3952 = vmatpush.bf16.msra.mxu2 %v9694_v20  ;;  %v9721_v10 = vld [vmem:[#allocation217_spill] sm:$0xff] }
 0x271   : > { %4005 = vmatpush.bf16.msra.mxu0 %v9696_v19  ;;  %v3721_v8 = vpop.f32.mrf.mxu0 }
 0x272   : > { %3975 = vmatpush.bf16.msra.mxu1 %v9700_v37  ;;  %v3734_v45 = vpop.f32.mrf.mxu1  ;;  %v9726_v37 = vld [vmem:[#allocation222_spill] sm:$0xff] }
 0x273   : > { %3966 = vmatpush.bf16.msra.mxu3 %v9697_v41  ;;  %3953 = vmatpush.bf16.msra.mxu2 %v9699_v43  ;;  %v9724_v41 = vld [vmem:[#allocation220_spill] sm:$0xff]  ;;  %v9725_v43 = vld [vmem:[#allocation221_spill] sm:$0xff] }
 0x274   : > { %6142 = vmatmul.msk.bf16.vlgmr.msra.gmra.mxu0 %vm826_vm0, %v7665_v40 }
 0x275   : > { %4024 = vmatpush.bf16.msrb.mxu0 %v9698_v54 }
 0x276   : > { %3954 = vmatmul.bf16.vlgmr.msra.gmra.mxu2 %v9688_v56  ;;  %3976 = vmatpush.bf16.msra.mxu1 %v9704_v4 }
 0x277   : > { %3985 = vmatpush.bf16.msrb.mxu3 %v9701_v57  ;;  %4011 = vmatpush.bf16.msrb.mxu2 %v9702_v5  ;;  %v9727_v57 = vld [vmem:[#allocation223_spill] sm:$0xff]  ;;  %v9728_v5 = vld [vmem:[#allocation224_spill] sm:$0xff] }
 0x278   : > { %6141 = vmatmul.msk.bf16.vlgmr.msra.gmra.mxu3 %vm826_vm0, %v7665_v40 }
 0x279   : > { %4025 = vmatpush.bf16.msrb.mxu0 %v9703_v15  ;;  %v3682_v33 = vpop.f32.mrf.mxu3  ;;  %v3723_v19 = vpop.f32.mrf.mxu0  ;;  %v9729_v15 = vld [vmem:[#allocation225_spill] sm:$0xff] }
 0x27a   : > { %3977 = vmatpush.bf16.msra.mxu1 %v9708_v3  ;;  %v3683_v52 = vadd.f32 %v3682_v33, %v3669_v9  ;;  %v3736_v9 = vpop.f32.mrf.mxu1  ;;  %v9734_v3 = vld [vmem:[#allocation231_spill] sm:$0xff]  ;;  %v9748_v33 = vld [vmem:[#allocation246_spill] sm:$0xff] }
 0x27b   : > { %3986 = vmatpush.bf16.msrb.mxu3 %v9705_v18  ;;  %4012 = vmatpush.bf16.msrb.mxu2 %v9706_v30  ;;  %v3708_v60 = vpop.f32.mrf.mxu2  ;;  %v9730_v18 = vld [vmem:[#allocation226_spill] sm:$0xff]  ;;  %v9732_v30 = vld [vmem:[#allocation228_spill] sm:$0xff]  ;;  %v9753_v19 = vld [vmem:[#allocation251_spill] sm:$0xff] }
 0x27c   : > { %v3722_v20 = vadd.f32 %v3721_v8, %v3708_v60  ;;  %v8493_v63 = vadd.f32 %v3695_v25, %v3683_v52  ;;  %v9731_v25 = vld [vmem:[#allocation227_spill] sm:$0xff]  ;;  %v9741_v8 = vld [vmem:[#allocation238_spill] sm:$0xff]  ;;  %v9750_v60 = vld [vmem:[#allocation248_spill] sm:$0xff] }
 0x27d   : > { %4026 = vmatpush.bf16.msrb.mxu0 %v9707_v26  ;;  %v9733_v26 = vld [vmem:[#allocation229_spill] sm:$0xff]  ;;  %v9749_v52 = vld [vmem:[#allocation247_spill] sm:$0xff] }
 0x27e   : > { %3978 = vmatpush.bf16.msra.mxu1 %v9712_v17  ;;  %v8496_v54 = vadd.f32 %v3734_v45, %v3722_v20  ;;  %v9739_v17 = vld [vmem:[#allocation236_spill] sm:$0xff]  ;;  %v9747_v45 = vld [vmem:[#allocation245_spill] sm:$0xff] }
 0x27f   : > { %3987 = vmatpush.bf16.msrb.mxu3 %v9709_v16  ;;  %4013 = vmatpush.bf16.msrb.mxu2 %v9710_v12  ;;  %v9736_v16 = vld [vmem:[#allocation233_spill] sm:$0xff]  ;;  %v9737_v12 = vld [vmem:[#allocation234_spill] sm:$0xff] }
 0x281   : > { %4027 = vmatpush.bf16.msrb.mxu0 %v9711_v1  ;;  %v3684_v6 = vpop.f32.mrf.mxu3  ;;  %v9738_v1 = vld [vmem:[#allocation235_spill] sm:$0xff] }
 0x282   : > { %3979 = vmatpush.bf16.msra.mxu1 %v9716_v34  ;;  %v9744_v34 = vld [vmem:[#allocation241_spill] sm:$0xff]  ;;  %v9757_v6 = vld [vmem:[#allocation255_spill] sm:$0xff] }
 0x283   : > { %3988 = vmatpush.bf16.msrb.mxu3 %v9713_v7  ;;  %4014 = vmatpush.bf16.msrb.mxu2 %v9714_v21  ;;  %v3710_v4 = vpop.f32.mrf.mxu2  ;;  %v9740_v21 = vld [vmem:[#allocation237_spill] sm:$0xff] }
 0x284   : > { %v9760_v4 = vld [vmem:[#allocation258_spill] sm:$0xff] }
 0x285   : > { %4028 = vmatpush.bf16.msrb.mxu0 %v9715_v29  ;;  %3980 = vmatmul.bf16.vlgmr.msra.gmra.mxu1 %v7725_v36  ;;  %v9742_v29 = vld [vmem:[#allocation239_spill] sm:$0xff] }
 0x286   : > { %4041 = vmatpush.bf16.msrb.mxu1 %v9719_v47 }
 0x287   : > { %3989 = vmatpush.bf16.msrb.mxu3 %v9717_v32  ;;  %4015 = vmatpush.bf16.msrb.mxu2 %v9718_v38  ;;  %v9745_v32 = vld [vmem:[#allocation242_spill] sm:$0xff]  ;;  %v9746_v38 = vld [vmem:[#allocation244_spill] sm:$0xff] }
 0x289   : > { %4029 = vmatpush.bf16.msrb.mxu0 %v9720_v51 }
 0x28a   : > { %4042 = vmatpush.bf16.msrb.mxu1 %v9723_v53 }
 0x28b   : > { %3990 = vmatpush.bf16.msrb.mxu3 %v9721_v10  ;;  %4016 = vmatpush.bf16.msrb.mxu2 %v9722_v13  ;;  %v3773_v7 = vpop.f32.mrf.mxu2  ;;  %v9751_v10 = vld [vmem:[#allocation249_spill] sm:$0xff]  ;;  %v9752_v13 = vld [vmem:[#allocation250_spill] sm:$0xff] }
 0x28d   : > { %4030 = vmatpush.bf16.msrb.mxu0 %v9724_v41 }
 0x28e   : > { %4043 = vmatpush.bf16.msrb.mxu1 %v9727_v57  ;;  %v9756_v57 = vld [vmem:[#allocation254_spill] sm:$0xff] }
 0x28f   : > { %3991 = vmatpush.bf16.msrb.mxu3 %v9725_v43  ;;  %4017 = vmatpush.bf16.msrb.mxu2 %v9726_v37  ;;  %v9755_v43 = vld [vmem:[#allocation253_spill] sm:$0xff] }
 0x291   : > { %4031 = vmatpush.bf16.msrb.mxu0 %v9728_v5 }
 0x292   : > { %4044 = vmatpush.bf16.msrb.mxu1 %v9732_v30  ;;  %v3760_v47 = vpop.f32.mrf.mxu1  ;;  %v9762_v30 = vld [vmem:[#allocation260_spill] sm:$0xff] }
 0x293   : > { %3992 = vmatpush.bf16.msrb.mxu3 %v9730_v18  ;;  %4018 = vmatpush.bf16.msrb.mxu2 %v9731_v25  ;;  %v3775_v51 = vpop.f32.mrf.mxu2  ;;  %v9761_v25 = vld [vmem:[#allocation259_spill] sm:$0xff] }
 0x294   : > { %4032 = vmatmul.bf16.vlgmr.msrb.gmra.mxu0 %v9688_v56  ;;  %v9776_v51 = vld [vmem:[#allocation275_spill] sm:$0xff] }
 0x295   : > { %4093 = vmatpush.bf16.msra.mxu0 %v9729_v15  ;;  %6143 = vmatmul.msk.bf16.vlgmr.msrb.gmra.mxu1 %vm826_vm0, %v7665_v40  ;;  %v9758_v15 = vld [vmem:[#allocation256_spill] sm:$0xff] }
 0x296   : > { %4067 = vmatpush.bf16.msra.mxu1 %v9734_v3  ;;  %3993 = vmatmul.bf16.vlgmr.msrb.gmra.mxu3 %v9688_v56  ;;  %v3786_v56 = vpop.f32.mrf.mxu0  ;;  %v9764_v3 = vld [vmem:[#allocation262_spill] sm:$0xff] }
 0x297   : > { %4054 = vmatpush.bf16.msra.mxu3 %v9733_v26  ;;  %4084 = vmatpush.bf16.msra.mxu2 %v9735_v48  ;;  %v3787_v40 = vadd.f32 %v3786_v56, %v8453_v59  ;;  %v9754_v59 = vld [vmem:[#allocation252_spill] sm:$0xff]  ;;  %v9763_v26 = vld [vmem:[#allocation261_spill] sm:$0xff]  ;;  %v9765_v48 = vld [vmem:[#allocation263_spill] sm:$0xff] }
 0x298   : > { %4019 = vmatmul.bf16.vlgmr.msrb.gmra.mxu2 %v7725_v36  ;;  %v9743_v36 = vld [vmem:[#allocation240_spill] sm:$0xff]  ;;  %v9772_v56 = vld [vmem:[#allocation271_spill] sm:$0xff] }
 0x299   : > { %4094 = vmatpush.bf16.msra.mxu0 %v9736_v16  ;;  %v3747_v20 = vpop.f32.mrf.mxu3 }
 0x29a   : > { %4068 = vmatpush.bf16.msra.mxu1 %v9738_v1  ;;  %v3748_v53 = vadd.f32 %v3747_v20, %v8432_v46  ;;  %v3762_v9 = vpop.f32.mrf.mxu1  ;;  %v9759_v46 = vld [vmem:[#allocation257_spill] sm:$0xff] }
 0x29b   : > { %4055 = vmatpush.bf16.msra.mxu3 %v9737_v12  ;;  %4085 = vmatpush.bf16.msra.mxu2 %v9739_v17  ;;  %v9766_v12 = vld [vmem:[#allocation264_spill] sm:$0xff]  ;;  %v9767_v1 = vld [vmem:[#allocation265_spill] sm:$0xff] }
 0x29c   : > { %v3761_v37 = vadd.f32 %v3760_v47, %v3748_v53  ;;  %v9774_v47 = vld [vmem:[#allocation273_spill] sm:$0xff]  ;;  %v9781_v53 = vld [vmem:[#allocation280_spill] sm:$0xff] }
 0x29d   : > { %4095 = vmatpush.bf16.msra.mxu0 %v9740_v21  ;;  %v9785_v9 = vld [vmem:[#allocation284_spill] sm:$0xff] }
 0x29e   : > { %4069 = vmatpush.bf16.msra.mxu1 %v9742_v29  ;;  %v3788_v41 = vpop.f32.mrf.mxu0  ;;  %v8539_v5 = vadd.f32 %v3773_v7, %v3761_v37  ;;  %v9768_v7 = vld [vmem:[#allocation266_spill] sm:$0xff]  ;;  %v9770_v29 = vld [vmem:[#allocation269_spill] sm:$0xff]  ;;  %v9784_v37 = vld [vmem:[#allocation283_spill] sm:$0xff] }
 0x29f   : > { %4056 = vmatpush.bf16.msra.mxu3 %v9741_v8  ;;  %4086 = vmatpush.bf16.msra.mxu2 %v9743_v36  ;;  %v9769_v8 = vld [vmem:[#allocation268_spill] sm:$0xff]  ;;  %v9771_v36 = vld [vmem:[#allocation270_spill] sm:$0xff] }
 0x2a1   : > { %4096 = vmatpush.bf16.msra.mxu0 %v9744_v34  ;;  %v3749_v18 = vpop.f32.mrf.mxu3 }
 0x2a2   : > { %4070 = vmatpush.bf16.msra.mxu1 %v9746_v38  ;;  %v9773_v38 = vld [vmem:[#allocation272_spill] sm:$0xff]  ;;  %v9791_v18 = vld [vmem:[#allocation290_spill] sm:$0xff] }
 0x2a3   : > { %4057 = vmatpush.bf16.msra.mxu3 %v9745_v32  ;;  %4087 = vmatpush.bf16.msra.mxu2 %v9747_v45 }
 0x2a5   : > { %4097 = vmatpush.bf16.msra.mxu0 %v9749_v52  ;;  %v9777_v52 = vld [vmem:[#allocation276_spill] sm:$0xff] }
 0x2a6   : > { %4071 = vmatpush.bf16.msra.mxu1 %v9751_v10  ;;  %v3851_v16 = vpop.f32.mrf.mxu0  ;;  %v9779_v10 = vld [vmem:[#allocation278_spill] sm:$0xff] }
 0x2a7   : > { %4106 = vmatpush.bf16.msrb.mxu2 %v9748_v33  ;;  %4058 = vmatpush.bf16.msra.mxu3 %v9750_v60  ;;  %v9775_v33 = vld [vmem:[#allocation274_spill] sm:$0xff]  ;;  %v9778_v60 = vld [vmem:[#allocation277_spill] sm:$0xff] }
 0x2a8   : > { %6144 = vmatmul.msk.bf16.vlgmr.msra.gmra.mxu2 %vm826_vm0, %v7966_v55 }
 0x2a9   : > { %4098 = vmatpush.bf16.msra.mxu0 %v9753_v19  ;;  %v3799_v17 = vpop.f32.mrf.mxu2  ;;  %v9782_v19 = vld [vmem:[#allocation281_spill] sm:$0xff] }
 0x2aa   : > { %4072 = vmatpush.bf16.msra.mxu1 %v9755_v43  ;;  %v3800_v21 = vadd.f32 %v3799_v17, %v3787_v40  ;;  %v9783_v43 = vld [vmem:[#allocation282_spill] sm:$0xff]  ;;  %v9798_v17 = vld [vmem:[#allocation297_spill] sm:$0xff] }
 0x2ab   : > { %4107 = vmatpush.bf16.msrb.mxu2 %v9752_v13  ;;  %4059 = vmatpush.bf16.msra.mxu3 %v9754_v59  ;;  %v3812_v34 = vpop.f32.mrf.mxu3  ;;  %v9780_v13 = vld [vmem:[#allocation279_spill] sm:$0xff] }
 0x2ac   : > { %v8559_v32 = vadd.f32 %v3812_v34, %v3800_v21  ;;  %v9799_v21 = vld [vmem:[#allocation298_spill] sm:$0xff] }
 0x2ad   : > { %4099 = vmatpush.bf16.msra.mxu0 %v9757_v6  ;;  %v9787_v6 = vld [vmem:[#allocation286_spill] sm:$0xff] }
 0x2ae   : > { %4073 = vmatpush.bf16.msra.mxu1 %v9759_v46  ;;  %v3853_v45 = vpop.f32.mrf.mxu0  ;;  %v9789_v46 = vld [vmem:[#allocation288_spill] sm:$0xff] }
 0x2af   : > { %4108 = vmatpush.bf16.msrb.mxu2 %v9756_v57  ;;  %4060 = vmatpush.bf16.msra.mxu3 %v9758_v15  ;;  %v9786_v57 = vld [vmem:[#allocation285_spill] sm:$0xff] }
 0x2b0   : > { %v9802_v45 = vld [vmem:[#allocation301_spill] sm:$0xff] }
 0x2b1   : > { %4100 = vmatpush.bf16.msra.mxu0 %v9761_v25  ;;  %v3801_v40 = vpop.f32.mrf.mxu2  ;;  %v9792_v25 = vld [vmem:[#allocation291_spill] sm:$0xff] }
 0x2b2   : > { %4074 = vmatpush.bf16.msra.mxu1 %v9764_v3  ;;  %v3825_v20 = vpop.f32.mrf.mxu1  ;;  %v9795_v3 = vld [vmem:[#allocation294_spill] sm:$0xff]  ;;  %v9804_v40 = vld [vmem:[#allocation303_spill] sm:$0xff] }
 0x2b3   : > { %4109 = vmatpush.bf16.msrb.mxu2 %v9760_v4  ;;  %4061 = vmatpush.bf16.msra.mxu3 %v9762_v30  ;;  %v3826_v59 = vadd.f32 %v3825_v20, %v8493_v63  ;;  %v3814_v41 = vpop.f32.mrf.mxu3  ;;  %v9788_v63 = vld [vmem:[#allocation287_spill] sm:$0xff]  ;;  %v9790_v4 = vld [vmem:[#allocation289_spill] sm:$0xff]  ;;  %v9793_v30 = vld [vmem:[#allocation292_spill] sm:$0xff] }
 0x2b4   : > { %4101 = vmatmul.bf16.vlgmr.msra.gmra.mxu0 %v8012_v61  ;;  %v9810_v41 = vld [vmem:[#allocation309_spill] sm:$0xff] }
 0x2b5   : > { %4162 = vmatpush.bf16.msrb.mxu0 %v9763_v26  ;;  %4075 = vmatmul.bf16.vlgmr.msra.gmra.mxu1 %v8024_v58  ;;  %v9794_v26 = vld [vmem:[#allocation293_spill] sm:$0xff] }
 0x2b6   : > { %4132 = vmatpush.bf16.msrb.mxu1 %v9767_v1  ;;  %4062 = vmatmul.bf16.vlgmr.msra.gmra.mxu3 %v8012_v61  ;;  %v9797_v1 = vld [vmem:[#allocation296_spill] sm:$0xff] }
 0x2b7   : > { %4123 = vmatpush.bf16.msrb.mxu3 %v9765_v48  ;;  %4110 = vmatpush.bf16.msrb.mxu2 %v9766_v12  ;;  %v9796_v12 = vld [vmem:[#allocation295_spill] sm:$0xff] }
 0x2b9   : > { %4163 = vmatpush.bf16.msrb.mxu0 %v9768_v7 }
 0x2ba   : > { %4133 = vmatpush.bf16.msrb.mxu1 %v9771_v36  ;;  %v3827_v15 = vpop.f32.mrf.mxu1  ;;  %v9800_v36 = vld [vmem:[#allocation299_spill] sm:$0xff] }
 0x2bb   : > { %4124 = vmatpush.bf16.msrb.mxu3 %v9769_v8  ;;  %4111 = vmatpush.bf16.msrb.mxu2 %v9770_v29  ;;  %v9817_v15 = vld [vmem:[#allocation316_spill] sm:$0xff] }
 0x2bd   : > { %4164 = vmatpush.bf16.msrb.mxu0 %v9772_v56 }
 0x2be   : > { %4134 = vmatpush.bf16.msrb.mxu1 %v9775_v33  ;;  %v9803_v33 = vld [vmem:[#allocation302_spill] sm:$0xff] }
 0x2bf   : > { %4125 = vmatpush.bf16.msrb.mxu3 %v9773_v38  ;;  %4112 = vmatpush.bf16.msrb.mxu2 %v9774_v47  ;;  %v9801_v38 = vld [vmem:[#allocation300_spill] sm:$0xff] }
 0x2c1   : > { %4165 = vmatpush.bf16.msrb.mxu0 %v9776_v51  ;;  %v3877_v48 = vpop.f32.mrf.mxu0 }
 0x2c2   : > { %4135 = vmatpush.bf16.msrb.mxu1 %v9780_v13  ;;  %v3890_v7 = vpop.f32.mrf.mxu1  ;;  %v9806_v13 = vld [vmem:[#allocation305_spill] sm:$0xff] }
 0x2c3   : > { %4126 = vmatpush.bf16.msrb.mxu3 %v9777_v52  ;;  %4113 = vmatpush.bf16.msrb.mxu2 %v9779_v10  ;;  %v9805_v10 = vld [vmem:[#allocation304_spill] sm:$0xff] }
 0x2c4   : > { %6146 = vmatmul.msk.bf16.vlgmr.msrb.gmra.mxu0 %vm826_vm0, %v7966_v55 }
 0x2c5   : > { %4184 = vmatpush.bf16.msra.mxu0 %v9778_v60 }
 0x2c6   : > { %4114 = vmatmul.bf16.vlgmr.msrb.gmra.mxu2 %v8024_v58  ;;  %4136 = vmatpush.bf16.msrb.mxu1 %v9784_v37  ;;  %v9812_v37 = vld [vmem:[#allocation311_spill] sm:$0xff] }
 0x2c7   : > { %4145 = vmatpush.bf16.msra.mxu3 %v9781_v53  ;;  %4171 = vmatpush.bf16.msra.mxu2 %v9782_v19  ;;  %v9808_v53 = vld [vmem:[#allocation307_spill] sm:$0xff] }
 0x2c8   : > { %6145 = vmatmul.msk.bf16.vlgmr.msrb.gmra.mxu3 %vm826_vm0, %v7966_v55 }
 0x2c9   : > { %4185 = vmatpush.bf16.msra.mxu0 %v9783_v43  ;;  %v3838_v8 = vpop.f32.mrf.mxu3  ;;  %v3879_v52 = vpop.f32.mrf.mxu0  ;;  %v9811_v43 = vld [vmem:[#allocation310_spill] sm:$0xff] }
 0x2ca   : > { %4137 = vmatpush.bf16.msrb.mxu1 %v9788_v63  ;;  %v3839_v34 = vadd.f32 %v3838_v8, %v3826_v59  ;;  %v3892_v20 = vpop.f32.mrf.mxu1  ;;  %v9809_v59 = vld [vmem:[#allocation308_spill] sm:$0xff]  ;;  %v9816_v63 = vld [vmem:[#allocation315_spill] sm:$0xff]  ;;  %v9829_v8 = vld [vmem:[#allocation326_spill] sm:$0xff] }
 0x2cb   : > { %4146 = vmatpush.bf16.msra.mxu3 %v9785_v9  ;;  %4172 = vmatpush.bf16.msra.mxu2 %v9786_v57  ;;  %v3864_v29 = vpop.f32.mrf.mxu2  ;;  %v9813_v9 = vld [vmem:[#allocation312_spill] sm:$0xff]  ;;  %v9814_v57 = vld [vmem:[#allocation313_spill] sm:$0xff] }
 0x2cc   : > { %v3865_v56 = vadd.f32 %v3864_v29, %v8496_v54  ;;  %v8600_v47 = vadd.f32 %v3851_v16, %v3839_v34  ;;  %v9807_v54 = vld [vmem:[#allocation306_spill] sm:$0xff] }
 0x2cd   : > { %4186 = vmatpush.bf16.msra.mxu0 %v9787_v6  ;;  %v9815_v6 = vld [vmem:[#allocation314_spill] sm:$0xff] }
 0x2ce   : > { %4138 = vmatpush.bf16.msrb.mxu1 %v9792_v25  ;;  %v3878_v51 = vadd.f32 %v3877_v48, %v3865_v56  ;;  %v9823_v48 = vld [vmem:[#allocation322_spill] sm:$0xff]  ;;  %v9831_v56 = vld [vmem:[#allocation328_spill] sm:$0xff] }
 0x2cf   : > { %4147 = vmatpush.bf16.msra.mxu3 %v9789_v46  ;;  %4173 = vmatpush.bf16.msra.mxu2 %v9790_v4  ;;  %v4215_v46 = vld [vmem:[%s6786_s7 + $0x8] sm:$0xe] }
 0x2d0   : > { %v8604_v60 = vadd.f32 %v3890_v7, %v3878_v51  ;;  %v9818_v4 = vld [vmem:[#allocation317_spill] sm:$0xff]  ;;  %v9827_v7 = vld [vmem:[#allocation324_spill] sm:$0xff]  ;;  %v9833_v51 = vld [vmem:[#allocation330_spill] sm:$0xff] }
 0x2d1   : > { %4187 = vmatpush.bf16.msra.mxu0 %v9791_v18  ;;  %v3840_v19 = vpop.f32.mrf.mxu3  ;;  %v9819_v18 = vld [vmem:[#allocation318_spill] sm:$0xff] }
 0x2d2   : > { %4139 = vmatpush.bf16.msrb.mxu1 %v9796_v12  ;;  %v9825_v12 = vld [vmem:[#allocation230_spill] sm:$0xff] }
 0x2d3   : > { %4148 = vmatpush.bf16.msra.mxu3 %v9793_v30  ;;  %4174 = vmatpush.bf16.msra.mxu2 %v9794_v26  ;;  %v3866_v16 = vpop.f32.mrf.mxu2  ;;  %v9820_v30 = vld [vmem:[#allocation319_spill] sm:$0xff]  ;;  %v4220_v26 = vunpack.c.l.b16 %v4215_v46 }
 0x2d5   : > { %4188 = vmatpush.bf16.msra.mxu0 %v9795_v3  ;;  %4140 = vmatmul.bf16.vlgmr.msrb.gmra.mxu1 %v8012_v61  ;;  %v9821_v3 = vld [vmem:[#allocation320_spill] sm:$0xff] }
 0x2d6   : > { %4201 = vmatpush.bf16.msra.mxu1 %v9799_v21 }
 0x2d7   : > { %4149 = vmatpush.bf16.msra.mxu3 %v9797_v1  ;;  %4175 = vmatpush.bf16.msra.mxu2 %v9798_v17  ;;  %v9826_v1 = vunpack.c.l.b16 %v9825_v12  ;;  %v9850_v12 = vld [vmem:[#allocation344_spill] sm:$0xff] }
 0x2d9   : > { %4189 = vmatpush.bf16.msra.mxu0 %v9800_v36  ;;  %v4223_v17 = vpack.c.b16 %v9826_v1, %v4220_v26  ;;  %v9830_v36 = vld [vmem:[#allocation327_spill] sm:$0xff]  ;;  %v9847_v26 = vld [vmem:[#allocation341_spill] sm:$0xff] }
 0x2da   : > { %4202 = vmatpush.bf16.msra.mxu1 %v9803_v33  ;;  %v4214_v33 = vld [vmem:[%s6786_s7] sm:$0xee]  ;;  %v9851_v1 = vld [vmem:[#allocation345_spill] sm:$0xff] }
 0x2db   : > { %4150 = vmatpush.bf16.msra.mxu3 %v9801_v38  ;;  %4176 = vmatpush.bf16.msra.mxu2 %v9802_v45  ;;  %v3929_v25 = vpop.f32.mrf.mxu2  ;;  %v8639_v38 = vrot.slane %v4223_v17, 1  ;;  %v9832_v45 = vld [vmem:[#allocation329_spill] sm:$0xff]  ;;  %v4218_v20 = vunpack.c.l.b16 %v4214_v33  ;;  %v4219_v16 = vunpack.c.h.b16 %v4214_v33 }
 0x2dd   : > { %4190 = vmatpush.bf16.msra.mxu0 %v9804_v40  ;;  %v9834_v40 = vld [vmem:[#allocation331_spill] sm:$0xff] }
 0x2de   : > { %4203 = vmatpush.bf16.msra.mxu1 %v9807_v54  ;;  %v9836_v54 = vld [vmem:[#allocation333_spill] sm:$0xff] }
 0x2df   : > { %4151 = vmatpush.bf16.msra.mxu3 %v9805_v10  ;;  %4177 = vmatpush.bf16.msra.mxu2 %v9806_v13  ;;  %v9835_v13 = vld [vmem:[#allocation332_spill] sm:$0xff] }
 0x2e1   : > { %4191 = vmatpush.bf16.msra.mxu0 %v9808_v53  ;;  %v3942_v21 = vpop.f32.mrf.mxu0 }
 0x2e2   : > { %4204 = vmatpush.bf16.msra.mxu1 %v9812_v37  ;;  %v3916_v29 = vpop.f32.mrf.mxu1  ;;  %v9838_v37 = vld [vmem:[#allocation335_spill] sm:$0xff] }
 0x2e3   : > { %4152 = vmatpush.bf16.msra.mxu3 %v9810_v41  ;;  %4178 = vmatpush.bf16.msra.mxu2 %v9811_v43  ;;  %v3931_v34 = vpop.f32.mrf.mxu2 }
 0x2e4   : > { %4192 = vmatmul.bf16.vlgmr.msra.gmra.mxu0 %v8024_v58 }
 0x2e5   : > { %4271 = vmatpush.bf16.msrb.mxu0 %v9809_v59  ;;  %6147 = vmatmul.msk.bf16.vlgmr.msra.gmra.mxu1 %vm826_vm0, %v7966_v55  ;;  %v9828_v55 = vld [vmem:[#allocation325_spill] sm:$0xff]  ;;  %v9837_v59 = vld [vmem:[#allocation334_spill] sm:$0xff] }
 0x2e6   : > { %4245 = vmatpush.bf16.msrb.mxu1 %v9814_v57  ;;  %4153 = vmatmul.bf16.vlgmr.msra.gmra.mxu3 %v8024_v58  ;;  %v9824_v58 = vld [vmem:[#allocation323_spill] sm:$0xff] }
 0x2e7   : > { %4232 = vmatpush.bf16.msrb.mxu3 %v9813_v9  ;;  %4262 = vmatpush.bf16.msrb.mxu2 %v9815_v6  ;;  %v9839_v9 = vld [vmem:[#allocation243_spill] sm:$0xff] }
 0x2e8   : > { %4179 = vmatmul.bf16.vlgmr.msra.gmra.mxu2 %v8012_v61  ;;  %v9822_v61 = vld [vmem:[#allocation321_spill] sm:$0xff]  ;;  %v9840_v57 = vunpack.c.l.b16 %v9839_v9 }
 0x2e9   : > { %4272 = vmatpush.bf16.msrb.mxu0 %v9816_v63  ;;  %v3903_v52 = vpop.f32.mrf.mxu3  ;;  %v3944_v53 = vpop.f32.mrf.mxu0  ;;  %v9841_v63 = vld [vmem:[#allocation336_spill] sm:$0xff] }
 0x2ea   : > { %4246 = vmatpush.bf16.msrb.mxu1 %v9818_v4  ;;  %v3917_v10 = vadd.f32 %v3916_v29, %v3903_v52  ;;  %v3918_v41 = vpop.f32.mrf.mxu1  ;;  %v4221_v6 = vpack.c.b16 %v9840_v57, %v4218_v20  ;;  %v9843_v4 = vld [vmem:[#allocation337_spill] sm:$0xff]  ;;  %v9854_v29 = vld [vmem:[#allocation348_spill] sm:$0xff] }
 0x2eb   : > { %4233 = vmatpush.bf16.msrb.mxu3 %v9817_v15  ;;  %4263 = vmatpush.bf16.msrb.mxu2 %v9819_v18  ;;  %v9842_v15 = vunpack.c.h.b16 %v9839_v9  ;;  %v9844_v18 = vld [vmem:[#allocation338_spill] sm:$0xff]  ;;  %v9862_v20 = vld [vmem:[#allocation356_spill] sm:$0xff] }
 0x2ec   : > { %v3930_v19 = vadd.f32 %v3929_v25, %v3917_v10  ;;  %v9859_v10 = vld [vmem:[#allocation353_spill] sm:$0xff]  ;;  %v9868_v41 = vld [vmem:[#allocation362_spill] sm:$0xff]  ;;  %v9870_v9 = vld [vmem:[#allocation364_spill] sm:$0xff] }
 0x2ed   : > { %4273 = vmatpush.bf16.msrb.mxu0 %v9820_v30  ;;  %v4222_v46 = vpack.c.b16 %v9842_v15, %v4219_v16  ;;  %v9845_v30 = vld [vmem:[#allocation339_spill] sm:$0xff] }
 0x2ee   : > { %4247 = vmatpush.bf16.msrb.mxu1 %v9822_v61  ;;  %v8652_v43 = vadd.f32 %v3930_v19, %v8539_v5  ;;  %v9846_v5 = vld [vmem:[#allocation340_spill] sm:$0xff]  ;;  %v9848_v61 = vld [vmem:[#allocation342_spill] sm:$0xff]  ;;  %v9865_v16 = vld [vmem:[#allocation359_spill] sm:$0xff] }
 0x2ef   : > { %4234 = vmatpush.bf16.msrb.mxu3 %v9821_v3  ;;  %4264 = vmatpush.bf16.msrb.mxu2 %v9823_v48  ;;  %v8667_v3 = vrot.slane %v4222_v46, 1  ;;  %v9849_v48 = vld [vmem:[#allocation343_spill] sm:$0xff]  ;;  %v9866_v19 = vld [vmem:[#allocation360_spill] sm:$0xff] }
 0x2f0   : > { %v9873_v15 = vld [vmem:[#allocation367_spill] sm:$0xff]  ;;  %v9874_v46 = vld [vmem:[#allocation368_spill] sm:$0xff] }
 0x2f1   : > { %4274 = vmatpush.bf16.msrb.mxu0 %v9824_v58  ;;  %v3905_v25 = vpop.f32.mrf.mxu3  ;;  %v4007_v58 = vpop.f32.mrf.mxu0 }
 0x2f2   : > { %4248 = vmatpush.bf16.msrb.mxu1 %v9828_v55  ;;  %v9877_v25 = vld [vmem:[#allocation371_spill] sm:$0xff] }
 0x2f3   : > { %4235 = vmatpush.bf16.msrb.mxu3 %v9827_v7  ;;  %4265 = vmatpush.bf16.msrb.mxu2 %v9829_v8  ;;  %v9852_v7 = vld [vmem:[#allocation346_spill] sm:$0xff]  ;;  %v9853_v8 = vld [vmem:[#allocation347_spill] sm:$0xff] }
 0x2f5   : > { %4275 = vmatpush.bf16.msrb.mxu0 %v9831_v56  ;;  %v9855_v56 = vld [vmem:[#allocation349_spill] sm:$0xff] }
 0x2f6   : > { %4249 = vmatpush.bf16.msrb.mxu1 %v9833_v51  ;;  %v9856_v51 = vld [vmem:[#allocation350_spill] sm:$0xff] }
 0x2f7   : > { %4284 = vmatpush.bf16.msra.mxu2 %v9830_v36  ;;  %4236 = vmatpush.bf16.msrb.mxu3 %v9832_v45 }
 0x2f8   : > { %6148 = vmatmul.msk.bf16.vlgmr.msrb.gmra.mxu2 %vm826_vm0, %v8639_v38 }
 0x2f9   : > { %4276 = vmatpush.bf16.msrb.mxu0 %v9835_v13  ;;  %v3955_v17 = vpop.f32.mrf.mxu2  ;;  %v4009_v45 = vpop.f32.mrf.mxu0  ;;  %v9861_v13 = vld [vmem:[#allocation355_spill] sm:$0xff] }
 0x2fa   : > { %4250 = vmatpush.bf16.msrb.mxu1 %v9837_v59  ;;  %v3956_v55 = vadd.f32 %v3955_v17, %v3942_v21  ;;  %v9858_v21 = vld [vmem:[#allocation352_spill] sm:$0xff]  ;;  %v9867_v59 = vld [vmem:[#allocation361_spill] sm:$0xff] }
 0x2fb   : > { %4285 = vmatpush.bf16.msra.mxu2 %v9834_v40  ;;  %4237 = vmatpush.bf16.msrb.mxu3 %v9836_v54  ;;  %v3968_v36 = vpop.f32.mrf.mxu3  ;;  %v9857_v40 = vld [vmem:[#allocation351_spill] sm:$0xff]  ;;  %v9863_v54 = vld [vmem:[#allocation357_spill] sm:$0xff] }
 0x2fc   : > { %v3969_v34 = vadd.f32 %v3968_v36, %v3956_v55 }
 0x2fd   : > { %4277 = vmatpush.bf16.msrb.mxu0 %v9838_v37  ;;  %v9869_v37 = vld [vmem:[#allocation363_spill] sm:$0xff] }
 0x2fe   : > { %4251 = vmatpush.bf16.msrb.mxu1 %v9843_v4  ;;  %v8683_v33 = vadd.f32 %v3969_v34, %v8559_v32  ;;  %v9864_v32 = vld [vmem:[#allocation358_spill] sm:$0xff]  ;;  %v9875_v4 = vld [vmem:[#allocation369_spill] sm:$0xff] }
 0x2ff   : > { %4286 = vmatpush.bf16.msra.mxu2 %v7975_v11  ;;  %4238 = vmatpush.bf16.msrb.mxu3 %v9841_v63  ;;  %v8663_v11 = vrot.slane %v4221_v6, 1  ;;  %v9871_v6 = vld [vmem:[#allocation365_spill] sm:$0xff]  ;;  %v9872_v63 = vld [vmem:[#allocation366_spill] sm:$0xff] }
 0x301   : > { %4278 = vmatpush.bf16.msrb.mxu0 %v9845_v30  ;;  %v3957_v52 = vpop.f32.mrf.mxu2 }
 0x302   : > { %4252 = vmatpush.bf16.msrb.mxu1 %v9848_v61  ;;  %v9880_v61 = vld [vmem:[#allocation374_spill] sm:$0xff] }
 0x303   : > { %4287 = vmatpush.bf16.msra.mxu2 %v9844_v18  ;;  %4239 = vmatpush.bf16.msrb.mxu3 %v9846_v5  ;;  %v3970_v53 = vpop.f32.mrf.mxu3  ;;  %v9876_v18 = vld [vmem:[#allocation370_spill] sm:$0xff]  ;;  %v9878_v5 = vld [vmem:[#allocation372_spill] sm:$0xff] }
 0x304   : > { %4279 = vmatmul.bf16.vlgmr.msrb.gmra.mxu0 %v8663_v11 }
 0x305   : > { %4340 = vmatpush.bf16.msra.mxu0 %v9847_v26  ;;  %4253 = vmatmul.bf16.vlgmr.msrb.gmra.mxu1 %v8667_v3  ;;  %v9879_v26 = vld [vmem:[#allocation373_spill] sm:$0xff] }
 0x306   : > { %4310 = vmatpush.bf16.msra.mxu1 %v9851_v1  ;;  %4240 = vmatmul.bf16.vlgmr.msrb.gmra.mxu3 %v8663_v11 }
 0x307   : > { %4301 = vmatpush.bf16.msra.mxu3 %v9849_v48  ;;  %4288 = vmatpush.bf16.msra.mxu2 %v9850_v12  ;;  %v9881_v12 = vld [vmem:[#allocation375_spill] sm:$0xff] }
 0x309   : > { %4341 = vmatpush.bf16.msra.mxu0 %v9852_v7  ;;  %v9882_v7 = vld [vmem:[#allocation376_spill] sm:$0xff] }
 0x30a   : > { %4311 = vmatpush.bf16.msra.mxu1 %v8036_v23  ;;  %v9860_v23 = vld [vmem:[#allocation354_spill] sm:$0xff] }
 0x30b   : > { %4302 = vmatpush.bf16.msra.mxu3 %v9853_v8  ;;  %4289 = vmatpush.bf16.msra.mxu2 %v9854_v29  ;;  %v9883_v29 = vld [vmem:[#allocation377_spill] sm:$0xff] }
 0x30d   : > { %4342 = vmatpush.bf16.msra.mxu0 %v9855_v56 }
 0x30e   : > { %4312 = vmatpush.bf16.msra.mxu1 %v9857_v40 }
 0x30f   : > { %4303 = vmatpush.bf16.msra.mxu3 %v8046_v28  ;;  %4290 = vmatpush.bf16.msra.mxu2 %v9856_v51  ;;  %v3981_v28 = vpop.f32.mrf.mxu1 }
 0x311   : > { %4343 = vmatpush.bf16.msra.mxu0 %v9858_v21  ;;  %v4033_v30 = vpop.f32.mrf.mxu0 }
 0x312   : > { %4313 = vmatpush.bf16.msra.mxu1 %v9862_v20 }
 0x313   : > { %4304 = vmatpush.bf16.msra.mxu3 %v9859_v10  ;;  %4291 = vmatpush.bf16.msra.mxu2 %v9861_v13 }
 0x314   : > { %6150 = vmatmul.msk.bf16.vlgmr.msra.gmra.mxu0 %vm826_vm0, %v8639_v38 }
 0x315   : > { %4362 = vmatpush.bf16.msrb.mxu0 %v9860_v23 }
 0x316   : > { %4292 = vmatmul.bf16.vlgmr.msra.gmra.mxu2 %v8667_v3  ;;  %4314 = vmatpush.bf16.msra.mxu1 %v9866_v19 }
 0x317   : > { %4323 = vmatpush.bf16.msrb.mxu3 %v9863_v54  ;;  %4349 = vmatpush.bf16.msrb.mxu2 %v9864_v32  ;;  %v3983_v57 = vpop.f32.mrf.mxu1 }
 0x318   : > { %6149 = vmatmul.msk.bf16.vlgmr.msra.gmra.mxu3 %vm826_vm0, %v8639_v38 }
 0x319   : > { %4363 = vmatpush.bf16.msrb.mxu0 %v9865_v16  ;;  %v3994_v1 = vpop.f32.mrf.mxu3  ;;  %v4035_v56 = vpop.f32.mrf.mxu0 }
 0x31a   : > { %4315 = vmatpush.bf16.msra.mxu1 %v9870_v9  ;;  %v3995_v55 = vadd.f32 %v3994_v1, %v3981_v28 }
 0x31b   : > { %4324 = vmatpush.bf16.msrb.mxu3 %v9867_v59  ;;  %4350 = vmatpush.bf16.msrb.mxu2 %v9868_v41  ;;  %v4020_v17 = vpop.f32.mrf.mxu2 }
 0x31c   : > { %v4034_v8 = vadd.f32 %v4033_v30, %v4020_v17  ;;  %v4008_v36 = vadd.f32 %v4007_v58, %v3995_v55 }
 0x31d   : > { %4364 = vmatpush.bf16.msrb.mxu0 %v9869_v37 }
 0x31e   : > { %4316 = vmatpush.bf16.msra.mxu1 %v9874_v46  ;;  %v4052_v45 = vadd.f32 %v4008_v36, %v8600_v47 }
 0x31f   : > { %4325 = vmatpush.bf16.msrb.mxu3 %v9871_v6  ;;  %4351 = vmatpush.bf16.msrb.mxu2 %v9872_v63  ;;  %v4046_v48 = vpop.f32.mrf.mxu1 }
 0x320   : > { %v4047_v34 = vadd.f32 %v4046_v48, %v4034_v8 }
 0x321   : > { %4365 = vmatpush.bf16.msrb.mxu0 %v9873_v15  ;;  %v3996_v58 = vpop.f32.mrf.mxu3 }
 0x322   : > { %4317 = vmatpush.bf16.msra.mxu1 %v9878_v5  ;;  %v4053_v51 = vadd.f32 %v4047_v34, %v8604_v60 }
 0x323   : > { %4326 = vmatpush.bf16.msrb.mxu3 %v9875_v4  ;;  %4352 = vmatpush.bf16.msrb.mxu2 %v9876_v18 }
 0x325   : > { %4366 = vmatpush.bf16.msrb.mxu0 %v9877_v25  ;;  %4318 = vmatmul.bf16.vlgmr.msra.gmra.mxu1 %v8663_v11 }
 0x326   : > { %4379 = vmatpush.bf16.msrb.mxu1 %v9881_v12 }
 0x327   : > { %4327 = vmatpush.bf16.msrb.mxu3 %v9879_v26  ;;  %4353 = vmatpush.bf16.msrb.mxu2 %v9880_v61  ;;  %v4048_v40 = vpop.f32.mrf.mxu1 }
 0x329   : > { %4367 = vmatpush.bf16.msrb.mxu0 %v9882_v7 }
 0x32a   : > { %4380 = vmatpush.bf16.msrb.mxu1 %v8146_v49 }
 0x32b   : > { %4328 = vmatpush.bf16.msrb.mxu3 %v8141_v14  ;;  %4354 = vmatpush.bf16.msrb.mxu2 %v9883_v29  ;;  %v4022_v14 = vpop.f32.mrf.mxu2 }
 0x32d   : > { %4368 = vmatpush.bf16.msrb.mxu0 %v8150_v2 }
 0x32e   : > { %4381 = vmatpush.bf16.msrb.mxu1 %v8161_v44 }
 0x32f   : > { %4329 = vmatpush.bf16.msrb.mxu3 %v8155_v39  ;;  %4355 = vmatpush.bf16.msrb.mxu2 %v8157_v35 }
 0x331   : > { %4369 = vmatpush.bf16.msrb.mxu0 %v8164_v42  ;;  %v4102_v49 = vpop.f32.mrf.mxu0 }
 0x332   : > { %4382 = vmatpush.bf16.msrb.mxu1 %v8179_v62  ;;  %v4076_v39 = vpop.f32.mrf.mxu1 }
 0x333   : > { %4330 = vmatpush.bf16.msrb.mxu3 %v8174_v31  ;;  %4356 = vmatpush.bf16.msrb.mxu2 %v8176_v50  ;;  %v4089_v2 = vpop.f32.mrf.mxu2 }
 0x334   : > { %4370 = vmatmul.bf16.vlgmr.msrb.gmra.mxu0 %v8667_v3 }
 0x335   : > { %6151 = vmatmul.msk.bf16.vlgmr.msrb.gmra.mxu1 %vm826_vm0, %v8639_v38 }
 0x336   : > { %4331 = vmatmul.bf16.vlgmr.msrb.gmra.mxu3 %v8667_v3  ;;  %4357 = vmatmul.bf16.vlgmr.msrb.gmra.mxu2 %v8663_v11 }
 0x339   : > { %v4063_v44 = vpop.f32.mrf.mxu3  ;;  %v4104_v31 = vpop.f32.mrf.mxu0 }
 0x33a   : > { %v4077_v42 = vadd.f32 %v4076_v39, %v4063_v44  ;;  %v4078_v50 = vpop.f32.mrf.mxu1 }
 0x33b   : > { %v4091_v35 = vpop.f32.mrf.mxu2  ;;  %v4398_v50 = vld [vmem:[#allocation4] sm:$0x3] }
 0x33c   : > { %v4090_v47 = vadd.f32 %v4089_v2, %v4077_v42 }
 0x33e   : > { %v4210_v60 = vadd.f32 %v4090_v47, %v8652_v43 }
 0x341   : > { %v4065_v21 = vpop.f32.mrf.mxu3  ;;  %v4167_v62 = vpop.f32.mrf.mxu0 }
 0x349   : > { %v4115_v52 = vpop.f32.mrf.mxu2  ;;  %v4169_v23 = vpop.f32.mrf.mxu0 }
 0x34a   : > { %v4116_v3 = vadd.f32 %v4115_v52, %v4102_v49  ;;  %v4400_v52 = vperm.slane %v4398_v50, 0 }
 0x34b   : > { %v4128_v10 = vpop.f32.mrf.mxu3 }
 0x34c   : > { %v4129_v11 = vadd.f32 %v4128_v10, %v4116_v3  ;;  %v4401_v10 = vperm.slane %v4398_v50, 1 }
 0x34e   : > { %v4211_v38 = vadd.f32 %v4129_v11, %v8683_v33 }
 0x351   : > { %v4117_v13 = vpop.f32.mrf.mxu2 }
 0x352   : > { %v4141_v20 = vpop.f32.mrf.mxu1 }
 0x353   : > { %v4130_v28 = vpop.f32.mrf.mxu3 }
 0x35a   : > { %v4143_v54 = vpop.f32.mrf.mxu1 }
 0x361   : > { %v4193_v32 = vpop.f32.mrf.mxu0 }
 0x362   : > { %v4206_v53 = vpop.f32.mrf.mxu1 }
 0x369   : > { %v4154_v16 = vpop.f32.mrf.mxu3  ;;  %v4195_v9 = vpop.f32.mrf.mxu0 }
 0x36a   : > { %v4155_v59 = vadd.f32 %v4154_v16, %v4141_v20  ;;  %v4208_v63 = vpop.f32.mrf.mxu1 }
 0x36b   : > { %v4180_v19 = vpop.f32.mrf.mxu2 }
 0x36c   : > { %v4194_v41 = vadd.f32 %v4193_v32, %v4180_v19  ;;  %v4168_v43 = vadd.f32 %v4167_v62, %v4155_v59 }
 0x36e   : > { %v4207_v37 = vadd.f32 %v4206_v53, %v4194_v41  ;;  %v4212_v57 = vadd.f32 %v4168_v43, %v4052_v45 }
 0x370   : > { %v4213_v6 = vadd.f32 %v4207_v37, %v4053_v51 }
 0x371   : > { %v4156_v46 = vpop.f32.mrf.mxu3 }
 0x373   : > { %v4182_v15 = vpop.f32.mrf.mxu2 }
 0x37b   : > { %v4267_v4 = vpop.f32.mrf.mxu2 }
 0x381   : > { %v4280_v33 = vpop.f32.mrf.mxu0 }
 0x382   : > { %v4254_v18 = vpop.f32.mrf.mxu1 }
 0x383   : > { %v4269_v25 = vpop.f32.mrf.mxu2 }
 0x389   : > { %v4241_v30 = vpop.f32.mrf.mxu3  ;;  %v4282_v26 = vpop.f32.mrf.mxu0 }
 0x38a   : > { %v4255_v5 = vadd.f32 %v4254_v18, %v4241_v30  ;;  %v4256_v48 = vpop.f32.mrf.mxu1 }
 0x38c   : > { %v4268_v61 = vadd.f32 %v4267_v4, %v4255_v5 }
 0x38e   : > { %v4388_v12 = vadd.f32 %v4268_v61, %v4210_v60 }
 0x390   : > { %v4392_v1 = vmax.f32 %v8327_v0, %v4388_v12 }
 0x391   : > { %v4243_v17 = vpop.f32.mrf.mxu3  ;;  %v4345_v7 = vpop.f32.mrf.mxu0 }
 0x399   : > { %v4293_v55 = vpop.f32.mrf.mxu2  ;;  %v4347_v34 = vpop.f32.mrf.mxu0 }
 0x39a   : > { %v4294_v8 = vadd.f32 %v4293_v55, %v4280_v33 }
 0x39b   : > { %v4306_v29 = vpop.f32.mrf.mxu3 }
 0x39c   : > { %v4307_v36 = vadd.f32 %v4306_v29, %v4294_v8 }
 0x39e   : > { %v4389_v56 = vadd.f32 %v4307_v36, %v4211_v38 }
 0x3a0   : > { %v4393_v45 = vmax.f32 %v8349_v24, %v4389_v56 }
 0x3a1   : > { %v4295_v51 = vpop.f32.mrf.mxu2 }
 0x3a2   : > { %v4319_v40 = vpop.f32.mrf.mxu1 }
 0x3a3   : > { %v4308_v14 = vpop.f32.mrf.mxu3 }
 0x3aa   : > { %v4321_v58 = vpop.f32.mrf.mxu1 }
 0x3b1   : > { %v4371_v2 = vpop.f32.mrf.mxu0 }
 0x3b2   : > { %v4384_v49 = vpop.f32.mrf.mxu1 }
 0x3b9   : > { %v4332_v39 = vpop.f32.mrf.mxu3  ;;  %v4358_v35 = vpop.f32.mrf.mxu2 }
 0x3ba   : > { %v4333_v44 = vadd.f32 %v4332_v39, %v4319_v40  ;;  %v4372_v0 = vadd.f32 %v4371_v2, %v4358_v35  ;;  %v4373_v42 = vpop.f32.mrf.mxu0  ;;  %v4386_v62 = vpop.f32.mrf.mxu1 }
 0x3bc   : > { %v4346_v31 = vadd.f32 %v4345_v7, %v4333_v44  ;;  %v4385_v47 = vadd.f32 %v4384_v49, %v4372_v0 }
 0x3be   : > { %v4390_v60 = vadd.f32 %v4346_v31, %v4212_v57  ;;  %v4391_v21 = vadd.f32 %v4385_v47, %v4213_v6 }
 0x3c0   : > { %v4394_v24 = vmax.f32 %v8389_v22, %v4390_v60  ;;  %v4395_v3 = vmax.f32 %v8392_v27, %v4391_v21 }
 0x3c1   : > { %v4334_v11 = vpop.f32.mrf.mxu3  ;;  %v4360_v23 = vpop.f32.mrf.mxu2 }
 0x3c2   : > { %v4396_v38 = vmax.f32 %v4392_v1, %v4394_v24  ;;  %v4397_v13 = vmax.f32 %v4393_v45, %v4395_v3 }
 0x3c4   : > { %v4404_v20 = vadd.f32 %v4400_v52, %v4396_v38  ;;  %v4405_v28 = vadd.f32 %v4401_v10, %v4397_v13 }
 0x3c6   : > { %v4406_v54 = vmax.f32 %v4404_v20, 0.0  ;;  %v4407_v32 = vmax.f32 %v4405_v28, 0.0 }
 0x3c8   : > { %v4408_v53 = vpack.c.bf16 %v4407_v32, %v4406_v54 }
 0x3ca   : > { %4409 = vst [vmem:[%s249_s14] sm:$0xff] %v4408_v53 }
 0x3cb PF: > { %s16_s15 = sadd.s32 1, %s6661_s15  }
 0x3cc   : > { %p13_p7 = scmp.ge.s32.totalorder %s16_s15, 4  }
 0x3ce   :  { %15 = sbr.rel (!%p13_p7) target bundleno = 2 (0x2), region = 82 }
 0x3d3   :  { %4431 = vsyncpa [#allocation3], 1 }
 0x3d4   :  { %4433 = vsyncpa [#allocation3 + $0x1], 1 }
 0x3d5   :  { %4434 = vsyncpa [#allocation5], 1 }

</bundles_post_ra>
